<compile_context>
chip_gen: v5e
topology: v5e:2x2
jax: 0.10.0
libtpu: 0.0.40
codegen_flags: <defaults>
</compile_context>

<pallas_src>
import functools
import math

import jax
import jax.numpy as jnp
from jax.experimental import pallas as pl
from jax.experimental.pallas import tpu as pltpu


LEAKY_SLOPE = 0.1  # matches nn.LeakyReLU(negative_slope=0.1) / F.leaky_relu(..., 0.1) in the spec
_PARALLEL = pltpu.CompilerParams(dimension_semantics=("parallel",))


def _activate(y, kind):
    if kind == "none":
        return y
    if kind == "relu":
        return jnp.maximum(y, 0.0)
    if kind == "leaky_relu":
        return jnp.where(y >= 0, y, LEAKY_SLOPE * y)
    raise ValueError(kind)


def _row_tile(m, target=128):
    # Row-tile: target rows per grid step (multiple of 8), or the whole extent if small.
    return m if m <= target else target


# ----------------------------------------------------------------------------
# Kernel 1: fused 2-layer MLP  y = act2(act1(x @ W1 + b1) @ W2 + b2)
#   (node_encoder / node_encoder_net)
# ----------------------------------------------------------------------------
def _mlp2_kernel(x_ref, w1_ref, b1_ref, w2_ref, b2_ref, o_ref, *, act_inner, act_outer):
    h = jnp.dot(x_ref[...], w1_ref[...], preferred_element_type=jnp.float32) + b1_ref[...]
    h = _activate(h, act_inner)
    y = jnp.dot(h, w2_ref[...], preferred_element_type=jnp.float32) + b2_ref[...]
    o_ref[...] = _activate(y, act_outer).astype(o_ref.dtype)


def fused_mlp2(x, w1, b1, w2, b2, act_inner, act_outer, tm=128):
    M, K = x.shape
    H = w1.shape[1]
    N = w2.shape[1]
    tm = _row_tile(M, tm)
    return pl.pallas_call(
        functools.partial(_mlp2_kernel, act_inner=act_inner, act_outer=act_outer),
        out_shape=jax.ShapeDtypeStruct((M, N), jnp.float32),
        grid=(pl.cdiv(M, tm),),
        in_specs=[
            pl.BlockSpec((tm, K), lambda i: (i, 0)),
            pl.BlockSpec((K, H), lambda i: (0, 0)),
            pl.BlockSpec((1, H), lambda i: (0, 0)),
            pl.BlockSpec((H, N), lambda i: (0, 0)),
            pl.BlockSpec((1, N), lambda i: (0, 0)),
        ],
        out_specs=pl.BlockSpec((tm, N), lambda i: (i, 0)),
        compiler_params=_PARALLEL,
    )(x, w1, b1.reshape(1, H), w2, b2.reshape(1, N))


# ----------------------------------------------------------------------------
# Kernel 2: net side of HyperConv
#   net_agg = phi(net_inst_adj @ x_inst) + x_net     (phi = Lin,ReLU,Lin)
# ----------------------------------------------------------------------------
def _net_agg_kernel(adj_ref, x_ref, w1_ref, b1_ref, w2_ref, b2_ref, xnet_ref, o_ref):
    t = jnp.dot(adj_ref[...], x_ref[...], preferred_element_type=jnp.float32)
    h = jnp.maximum(jnp.dot(t, w1_ref[...], preferred_element_type=jnp.float32) + b1_ref[...], 0.0)
    y = jnp.dot(h, w2_ref[...], preferred_element_type=jnp.float32) + b2_ref[...]
    o_ref[...] = (y + xnet_ref[...]).astype(o_ref.dtype)


def hyper_net_agg(net_inst_adj, x_inst, w1, b1, w2, b2, x_net, tm=128):
    Nn, Mi = net_inst_adj.shape
    E = x_inst.shape[1]
    tm = _row_tile(Nn, tm)
    row = lambda i: (i, 0)
    full = lambda i: (0, 0)
    return pl.pallas_call(
        _net_agg_kernel,
        out_shape=jax.ShapeDtypeStruct((Nn, E), jnp.float32),
        grid=(pl.cdiv(Nn, tm),),
        in_specs=[
            pl.BlockSpec((tm, Mi), row),   # adjacency row tile
            pl.BlockSpec((Mi, E), full),   # all instance features (resident)
            pl.BlockSpec((E, E), full),
            pl.BlockSpec((1, E), full),
            pl.BlockSpec((E, E), full),
            pl.BlockSpec((1, E), full),
            pl.BlockSpec((tm, E), row),    # residual x_net tile
        ],
        out_specs=pl.BlockSpec((tm, E), row),
        compiler_params=_PARALLEL,
    )(net_inst_adj, x_inst, w1, b1.reshape(1, E), w2, b2.reshape(1, E), x_net)


# ----------------------------------------------------------------------------
# Kernel 3: instance side of HyperConv (fully fused, no concat materialization)
#   h_drive = drive_adj @ net_agg
#   h_sink  = psi(sink_adj @ net_agg)
#   h       = mlp(cat([x, h_drive, h_sink])) + x
#           = (relu(x@W1x + h_drive@W1d + h_sink@W1s + b1)) @ W2 + b2 + x
# ----------------------------------------------------------------------------
def _inst_update_kernel(x_ref, drive_ref, sink_ref, netagg_ref,
                        pw1_ref, pb1_ref, pw2_ref, pb2_ref,
                        mwx_ref, mwd_ref, mws_ref, mb1_ref, mw2_ref, mb2_ref,
                        o_ref):
    x = x_ref[...]
    net_agg = netagg_ref[...]
    h_drive = jnp.dot(drive_ref[...], net_agg, preferred_element_type=jnp.float32)
    s = jnp.dot(sink_ref[...], net_agg, preferred_element_type=jnp.float32)
    hp = jnp.maximum(
        jnp.dot(s, pw1_ref[...], preferred_element_type=jnp.float32) + pb1_ref[...], 0.0)
    h_sink = jnp.dot(hp, pw2_ref[...], preferred_element_type=jnp.float32) + pb2_ref[...]
    hidden = (jnp.dot(x, mwx_ref[...], preferred_element_type=jnp.float32)
              + jnp.dot(h_drive, mwd_ref[...], preferred_element_type=jnp.float32)
              + jnp.dot(h_sink, mws_ref[...], preferred_element_type=jnp.float32)
              + mb1_ref[...])
    hidden = jnp.maximum(hidden, 0.0)
    y = jnp.dot(hidden, mw2_ref[...], preferred_element_type=jnp.float32) + mb2_ref[...]
    o_ref[...] = (y + x).astype(o_ref.dtype)


def hyper_inst_update(x_inst, drive_adj, sink_adj, net_agg,
                      pw1, pb1, pw2, pb2,
                      mw1x, mw1d, mw1s, mb1, mw2, mb2, tm=128):
    Mi, E = x_inst.shape
    Nn = net_agg.shape[0]
    H3 = mw1x.shape[1]
    tm = _row_tile(Mi, tm)
    row = lambda i: (i, 0)
    full = lambda i: (0, 0)
    return pl.pallas_call(
        _inst_update_kernel,
        out_shape=jax.ShapeDtypeStruct((Mi, E), jnp.float32),
        grid=(pl.cdiv(Mi, tm),),
        in_specs=[
            pl.BlockSpec((tm, E), row),    # x tile
            pl.BlockSpec((tm, Nn), row),   # drive adjacency row tile
            pl.BlockSpec((tm, Nn), row),   # sink adjacency row tile
            pl.BlockSpec((Nn, E), full),   # net_agg (resident)
            pl.BlockSpec((E, E), full),    # psi
            pl.BlockSpec((1, E), full),
            pl.BlockSpec((E, E), full),
            pl.BlockSpec((1, E), full),
            pl.BlockSpec((E, H3), full),   # mlp W1 split: x / drive / sink row blocks
            pl.BlockSpec((E, H3), full),
            pl.BlockSpec((E, H3), full),
            pl.BlockSpec((1, H3), full),
            pl.BlockSpec((H3, E), full),   # mlp W2
            pl.BlockSpec((1, E), full),
        ],
        out_specs=pl.BlockSpec((tm, E), row),
        compiler_params=_PARALLEL,
    )(x_inst, drive_adj, sink_adj, net_agg,
      pw1, pb1.reshape(1, E), pw2, pb2.reshape(1, E),
      mw1x, mw1d, mw1s, mb1.reshape(1, H3), mw2, mb2.reshape(1, E))


# ----------------------------------------------------------------------------
# Kernel 4: fused residual-add + LayerNorm + LeakyReLU (row-tiled)
# ----------------------------------------------------------------------------
def _add_ln_lrelu_kernel(x_ref, r_ref, g_ref, b_ref, o_ref):
    x = x_ref[...] + r_ref[...]
    mu = jnp.mean(x, axis=-1, keepdims=True)
    var = jnp.mean((x - mu) ** 2, axis=-1, keepdims=True)
    y = (x - mu) * jax.lax.rsqrt(var + 1e-5)
    y = y * g_ref[...] + b_ref[...]
    o_ref[...] = jnp.where(y >= 0, y, LEAKY_SLOPE * y).astype(o_ref.dtype)


def add_layernorm_lrelu(x, residual, gamma, beta, tm=256):
    M, D = x.shape
    tm = _row_tile(M, tm)
    row = lambda i: (i, 0)
    full = lambda i: (0, 0)
    return pl.pallas_call(
        _add_ln_lrelu_kernel,
        out_shape=jax.ShapeDtypeStruct((M, D), jnp.float32),
        grid=(pl.cdiv(M, tm),),
        in_specs=[
            pl.BlockSpec((tm, D), row),
            pl.BlockSpec((tm, D), row),
            pl.BlockSpec((1, D), full),
            pl.BlockSpec((1, D), full),
        ],
        out_specs=pl.BlockSpec((tm, D), row),
        compiler_params=_PARALLEL,
    )(x, residual, gamma.reshape(1, D), beta.reshape(1, D))


# ----------------------------------------------------------------------------
# Parameters (torch.nn.Linear-style init)
# ----------------------------------------------------------------------------
def init_linear_params(key, in_dim, out_dim):
    k1, k2 = jax.random.split(key)
    bound = 1.0 / math.sqrt(in_dim)
    w = jax.random.uniform(k1, (in_dim, out_dim), jnp.float32, -bound, bound)
    b = jax.random.uniform(k2, (out_dim,), jnp.float32, -bound, bound)
    return w, b


def init_gnn_params(key, num_layer, emb_dim, node_dim, net_dim):
    keys = iter(jax.random.split(key, 4 + num_layer * 6))
    p = {}
    # node_encoder: Linear(node_dim, 2*emb) -> LeakyReLU(0.1) -> Linear(2*emb, emb) -> LeakyReLU(0.1)
    p["enc_w1"], p["enc_b1"] = init_linear_params(next(keys), node_dim, 2 * emb_dim)
    p["enc_w2"], p["enc_b2"] = init_linear_params(next(keys), 2 * emb_dim, emb_dim)
    # node_encoder_net: Linear(net_dim, emb) -> LeakyReLU(0.1) -> Linear(emb, emb) -> LeakyReLU(0.1)
    p["nenc_w1"], p["nenc_b1"] = init_linear_params(next(keys), net_dim, emb_dim)
    p["nenc_w2"], p["nenc_b2"] = init_linear_params(next(keys), emb_dim, emb_dim)
    p["layers"] = []
    for _ in range(num_layer):
        lp = {}
        lp["phi_w1"], lp["phi_b1"] = init_linear_params(next(keys), emb_dim, emb_dim)
        lp["phi_w2"], lp["phi_b2"] = init_linear_params(next(keys), emb_dim, emb_dim)
        lp["psi_w1"], lp["psi_b1"] = init_linear_params(next(keys), emb_dim, emb_dim)
        lp["psi_w2"], lp["psi_b2"] = init_linear_params(next(keys), emb_dim, emb_dim)
        mlp_w1, lp["mlp_b1"] = init_linear_params(next(keys), 3 * emb_dim, 3 * emb_dim)
        # pre-split the first MLP weight into the [x | h_drive | h_sink] row blocks so the
        # kernel never materializes the (M, 3*emb) concat.
        lp["mlp_w1x"], lp["mlp_w1d"], lp["mlp_w1s"] = jnp.split(mlp_w1, 3, axis=0)
        lp["mlp_w2"], lp["mlp_b2"] = init_linear_params(next(keys), 3 * emb_dim, emb_dim)
        lp["ln_g"] = jnp.ones((emb_dim,), jnp.float32)
        lp["ln_b"] = jnp.zeros((emb_dim,), jnp.float32)
        p["layers"].append(lp)
    return p


# ----------------------------------------------------------------------------
# GNN_node forward (gnn_type='hyper', JK='concat', norm='layer', residual=True)
# ----------------------------------------------------------------------------
def gnn_node_forward(params, x, x_net, net_inst_adj, inst_net_adj_v_drive,
                     inst_net_adj_v_sink, num_layer):
    # node encoders (fused 2-layer MLPs)
    h_inst = fused_mlp2(x, params["enc_w1"], params["enc_b1"],
                        params["enc_w2"], params["enc_b2"], "leaky_relu", "leaky_relu")
    h_net = fused_mlp2(x_net, params["nenc_w1"], params["nenc_b1"],
                       params["nenc_w2"], params["nenc_b2"], "leaky_relu", "leaky_relu")

    net_feats = [h_net]  # only the net rows survive JK='concat' + [num_instances:] slice
    for layer in range(num_layer):
        lp = params["layers"][layer]
        # HyperConv (fused): net side then instance side
        net_agg = hyper_net_agg(net_inst_adj, h_inst,
                                lp["phi_w1"], lp["phi_b1"], lp["phi_w2"], lp["phi_b2"], h_net)
        new_inst = hyper_inst_update(h_inst, inst_net_adj_v_drive, inst_net_adj_v_sink, net_agg,
                                     lp["psi_w1"], lp["psi_b1"], lp["psi_w2"], lp["psi_b2"],
                                     lp["mlp_w1x"], lp["mlp_w1d"], lp["mlp_w1s"], lp["mlp_b1"],
                                     lp["mlp_w2"], lp["mlp_b2"])
        # h = leaky_relu(LayerNorm(cat([h_inst, h_net]) + h_prev)) -- applied per half,
        # which is exactly equivalent since LayerNorm and LeakyReLU are per-row.
        h_inst = add_layernorm_lrelu(new_inst, h_inst, lp["ln_g"], lp["ln_b"])
        h_net = add_layernorm_lrelu(net_agg, h_net, lp["ln_g"], lp["ln_b"])
        net_feats.append(h_net)

    # JK == 'concat' and return node_representation[num_instances:] (net rows only)
    return jnp.concatenate(net_feats, axis=1)


# ----------------------------------------------------------------------------
# Main
# ----------------------------------------------------------------------------
if __name__ == "__main__":
    key = jax.random.PRNGKey(0)
    k_param, k_x, k_xnet, k_a1, k_a2, k_a3 = jax.random.split(key, 6)

    num_instances = 256
    num_nets = 128
    node_dim = 16
    net_dim = 8
    emb_dim = 32
    num_layer = 2

    params = init_gnn_params(k_param, num_layer, emb_dim, node_dim, net_dim)

    x = jax.random.normal(k_x, (num_instances, node_dim), jnp.float32)
    x_net = jax.random.normal(k_xnet, (num_nets, net_dim), jnp.float32)
    # dense 0/1 incidence matrices (stand-ins for the sparse adjacencies)
    net_inst_adj = jax.random.bernoulli(
        k_a1, 0.1, (num_nets, num_instances)).astype(jnp.float32)
    inst_net_adj_v_drive = jax.random.bernoulli(
        k_a2, 0.05, (num_instances, num_nets)).astype(jnp.float32)
    inst_net_adj_v_sink = jax.random.bernoulli(
        k_a3, 0.1, (num_instances, num_nets)).astype(jnp.float32)

    fwd = jax.jit(functools.partial(gnn_node_forward, num_layer=num_layer))
    out = fwd(params, x, x_net, net_inst_adj, inst_net_adj_v_drive, inst_net_adj_v_sink)
    out = jax.block_until_ready(out)

    expected_shape = (num_nets, emb_dim * (num_layer + 1))
    assert out.shape == expected_shape, (out.shape, expected_shape)
    assert bool(jnp.all(jnp.isfinite(out)))
    print("KERNEL_OK")
</pallas_src>

<mosaic_0001>
module attributes {stable_mosaic.version = 11 : i64} {
  func.func @_mlp2_kernel(%arg0: i32, %arg1: memref<128x8xf32, #tpu.memory_space<vmem>>, %arg2: memref<8x32xf32, #tpu.memory_space<vmem>>, %arg3: memref<1x32xf32, #tpu.memory_space<vmem>>, %arg4: memref<32x32xf32, #tpu.memory_space<vmem>>, %arg5: memref<1x32xf32, #tpu.memory_space<vmem>>, %arg6: memref<128x32xf32, #tpu.memory_space<vmem>>) attributes {dimension_semantics = [#tpu.dimension_semantics<parallel>], iteration_bounds = array<i64: 1>, scalar_prefetch = 0 : i64, scratch_operands = 0 : i64, tpu.core_type = #tpu.core_type<tc>, window_params = [{transform_indices = @transform_0, window_bounds = array<i64: 128, 8>}, {pipeline_mode = #tpu.pipeline_mode<synchronous>, transform_indices = @transform_1, window_bounds = array<i64: 8, 32>}, {pipeline_mode = #tpu.pipeline_mode<synchronous>, transform_indices = @transform_2, window_bounds = array<i64: 1, 32>}, {pipeline_mode = #tpu.pipeline_mode<synchronous>, transform_indices = @transform_3, window_bounds = array<i64: 32, 32>}, {pipeline_mode = #tpu.pipeline_mode<synchronous>, transform_indices = @transform_4, window_bounds = array<i64: 1, 32>}, {transform_indices = @transform_5, window_bounds = array<i64: 128, 32>}]} {
    %c0 = arith.constant 0 : index
    %c0_0 = arith.constant 0 : index
    %0 = vector.load %arg1[%c0, %c0_0] : memref<128x8xf32, #tpu.memory_space<vmem>>, vector<128x8xf32>
    %c0_1 = arith.constant 0 : index
    %c0_2 = arith.constant 0 : index
    %1 = vector.load %arg2[%c0_1, %c0_2] : memref<8x32xf32, #tpu.memory_space<vmem>>, vector<8x32xf32>
    %cst = arith.constant dense<0.000000e+00> : vector<128x32xf32>
    %2 = tpu.matmul %0, %1, %cst {dimension_numbers = #tpu.dot_dimension_numbers<[1], [0], [0], [1], [0, 0, 1, 1], [], []>} : vector<128x8xf32>, vector<8x32xf32>, vector<128x32xf32> -> vector<128x32xf32>
    %c0_3 = arith.constant 0 : index
    %c0_4 = arith.constant 0 : index
    %3 = vector.load %arg3[%c0_3, %c0_4] : memref<1x32xf32, #tpu.memory_space<vmem>>, vector<1x32xf32>
    %4 = vector.broadcast %3 : vector<1x32xf32> to vector<128x32xf32>
    %5 = arith.addf %2, %4 : vector<128x32xf32>
    %cst_5 = arith.constant 0.000000e+00 : f32
    %6 = vector.broadcast %cst_5 : f32 to vector<128x32xf32>
    %7 = arith.cmpf oge, %5, %6 : vector<128x32xf32>
    %cst_6 = arith.constant 1.000000e-01 : f32
    %8 = vector.broadcast %cst_6 : f32 to vector<128x32xf32>
    %9 = arith.mulf %8, %5 : vector<128x32xf32>
    %10 = arith.select %7, %5, %9 : vector<128x32xi1>, vector<128x32xf32>
    %c0_7 = arith.constant 0 : index
    %c0_8 = arith.constant 0 : index
    %11 = vector.load %arg4[%c0_7, %c0_8] : memref<32x32xf32, #tpu.memory_space<vmem>>, vector<32x32xf32>
    %cst_9 = arith.constant dense<0.000000e+00> : vector<128x32xf32>
    %12 = tpu.matmul %10, %11, %cst_9 {dimension_numbers = #tpu.dot_dimension_numbers<[1], [0], [0], [1], [0, 0, 1, 1], [], []>} : vector<128x32xf32>, vector<32x32xf32>, vector<128x32xf32> -> vector<128x32xf32>
    %c0_10 = arith.constant 0 : index
    %c0_11 = arith.constant 0 : index
    %13 = vector.load %arg5[%c0_10, %c0_11] : memref<1x32xf32, #tpu.memory_space<vmem>>, vector<1x32xf32>
    %14 = vector.broadcast %13 : vector<1x32xf32> to vector<128x32xf32>
    %15 = arith.addf %12, %14 : vector<128x32xf32>
    %cst_12 = arith.constant 0.000000e+00 : f32
    %16 = vector.broadcast %cst_12 : f32 to vector<128x32xf32>
    %17 = arith.cmpf oge, %15, %16 : vector<128x32xf32>
    %cst_13 = arith.constant 1.000000e-01 : f32
    %18 = vector.broadcast %cst_13 : f32 to vector<128x32xf32>
    %19 = arith.mulf %18, %15 : vector<128x32xf32>
    %20 = arith.select %17, %15, %19 : vector<128x32xi1>, vector<128x32xf32>
    %c0_14 = arith.constant 0 : index
    %c0_15 = arith.constant 0 : index
    %21 = vector.load %arg6[%c0_14, %c0_15] : memref<128x32xf32, #tpu.memory_space<vmem>>, vector<128x32xf32>
    tpu.vector_store %arg6[%c0_14, %c0_15], %20 {strides = array<i32>} : memref<128x32xf32, #tpu.memory_space<vmem>>, vector<128x32xf32>,
    return
  }
  func.func @transform_0(%arg0: i32) -> (i32, i32) {
    %c0_i32 = arith.constant 0 : i32
    %c0_i32_0 = arith.constant 0 : i32
    return %arg0, %c0_i32 : i32, i32
  }
  func.func @transform_1(%arg0: i32) -> (i32, i32) {
    %c0_i32 = arith.constant 0 : i32
    %c0_i32_0 = arith.constant 0 : i32
    %c0_i32_1 = arith.constant 0 : i32
    return %c0_i32, %c0_i32_0 : i32, i32
  }
  func.func @transform_2(%arg0: i32) -> (i32, i32) {
    %c0_i32 = arith.constant 0 : i32
    %c0_i32_0 = arith.constant 0 : i32
    %c0_i32_1 = arith.constant 0 : i32
    return %c0_i32, %c0_i32_0 : i32, i32
  }
  func.func @transform_3(%arg0: i32) -> (i32, i32) {
    %c0_i32 = arith.constant 0 : i32
    %c0_i32_0 = arith.constant 0 : i32
    %c0_i32_1 = arith.constant 0 : i32
    return %c0_i32, %c0_i32_0 : i32, i32
  }
  func.func @transform_4(%arg0: i32) -> (i32, i32) {
    %c0_i32 = arith.constant 0 : i32
    %c0_i32_0 = arith.constant 0 : i32
    %c0_i32_1 = arith.constant 0 : i32
    return %c0_i32, %c0_i32_0 : i32, i32
  }
  func.func @transform_5(%arg0: i32) -> (i32, i32) {
    %c0_i32 = arith.constant 0 : i32
    %c0_i32_0 = arith.constant 0 : i32
    return %arg0, %c0_i32 : i32, i32
  }
}

module attributes {stable_mosaic.version = 11 : i64} {
  func.func @_net_agg_kernel(%arg0: i32, %arg1: memref<128x256xf32, #tpu.memory_space<vmem>>, %arg2: memref<256x32xf32, #tpu.memory_space<vmem>>, %arg3: memref<32x32xf32, #tpu.memory_space<vmem>>, %arg4: memref<1x32xf32, #tpu.memory_space<vmem>>, %arg5: memref<32x32xf32, #tpu.memory_space<vmem>>, %arg6: memref<1x32xf32, #tpu.memory_space<vmem>>, %arg7: memref<128x32xf32, #tpu.memory_space<vmem>>, %arg8: memref<128x32xf32, #tpu.memory_space<vmem>>) attributes {dimension_semantics = [#tpu.dimension_semantics<parallel>], iteration_bounds = array<i64: 1>, scalar_prefetch = 0 : i64, scratch_operands = 0 : i64, tpu.core_type = #tpu.core_type<tc>, window_params = [{transform_indices = @transform_0, window_bounds = array<i64: 128, 256>}, {pipeline_mode = #tpu.pipeline_mode<synchronous>, transform_indices = @transform_1, window_bounds = array<i64: 256, 32>}, {pipeline_mode = #tpu.pipeline_mode<synchronous>, transform_indices = @transform_2, window_bounds = array<i64: 32, 32>}, {pipeline_mode = #tpu.pipeline_mode<synchronous>, transform_indices = @transform_3, window_bounds = array<i64: 1, 32>}, {pipeline_mode = #tpu.pipeline_mode<synchronous>, transform_indices = @transform_4, window_bounds = array<i64: 32, 32>}, {pipeline_mode = #tpu.pipeline_mode<synchronous>, transform_indices = @transform_5, window_bounds = array<i64: 1, 32>}, {transform_indices = @transform_6, window_bounds = array<i64: 128, 32>}, {transform_indices = @transform_7, window_bounds = array<i64: 128, 32>}]} {
    %c0 = arith.constant 0 : index
    %c0_0 = arith.constant 0 : index
    %0 = vector.load %arg1[%c0, %c0_0] : memref<128x256xf32, #tpu.memory_space<vmem>>, vector<128x256xf32>
    %c0_1 = arith.constant 0 : index
    %c0_2 = arith.constant 0 : index
    %1 = vector.load %arg2[%c0_1, %c0_2] : memref<256x32xf32, #tpu.memory_space<vmem>>, vector<256x32xf32>
    %cst = arith.constant dense<0.000000e+00> : vector<128x32xf32>
    %2 = tpu.matmul %0, %1, %cst {dimension_numbers = #tpu.dot_dimension_numbers<[1], [0], [0], [1], [0, 0, 1, 1], [], []>} : vector<128x256xf32>, vector<256x32xf32>, vector<128x32xf32> -> vector<128x32xf32>
    %c0_3 = arith.constant 0 : index
    %c0_4 = arith.constant 0 : index
    %3 = vector.load %arg3[%c0_3, %c0_4] : memref<32x32xf32, #tpu.memory_space<vmem>>, vector<32x32xf32>
    %cst_5 = arith.constant dense<0.000000e+00> : vector<128x32xf32>
    %4 = tpu.matmul %2, %3, %cst_5 {dimension_numbers = #tpu.dot_dimension_numbers<[1], [0], [0], [1], [0, 0, 1, 1], [], []>} : vector<128x32xf32>, vector<32x32xf32>, vector<128x32xf32> -> vector<128x32xf32>
    %c0_6 = arith.constant 0 : index
    %c0_7 = arith.constant 0 : index
    %5 = vector.load %arg4[%c0_6, %c0_7] : memref<1x32xf32, #tpu.memory_space<vmem>>, vector<1x32xf32>
    %6 = vector.broadcast %5 : vector<1x32xf32> to vector<128x32xf32>
    %7 = arith.addf %4, %6 : vector<128x32xf32>
    %cst_8 = arith.constant 0.000000e+00 : f32
    %8 = vector.broadcast %cst_8 : f32 to vector<128x32xf32>
    %9 = arith.maximumf %7, %8 : vector<128x32xf32>
    %c0_9 = arith.constant 0 : index
    %c0_10 = arith.constant 0 : index
    %10 = vector.load %arg5[%c0_9, %c0_10] : memref<32x32xf32, #tpu.memory_space<vmem>>, vector<32x32xf32>
    %cst_11 = arith.constant dense<0.000000e+00> : vector<128x32xf32>
    %11 = tpu.matmul %9, %10, %cst_11 {dimension_numbers = #tpu.dot_dimension_numbers<[1], [0], [0], [1], [0, 0, 1, 1], [], []>} : vector<128x32xf32>, vector<32x32xf32>, vector<128x32xf32> -> vector<128x32xf32>
    %c0_12 = arith.constant 0 : index
    %c0_13 = arith.constant 0 : index
    %12 = vector.load %arg6[%c0_12, %c0_13] : memref<1x32xf32, #tpu.memory_space<vmem>>, vector<1x32xf32>
    %13 = vector.broadcast %12 : vector<1x32xf32> to vector<128x32xf32>
    %14 = arith.addf %11, %13 : vector<128x32xf32>
    %c0_14 = arith.constant 0 : index
    %c0_15 = arith.constant 0 : index
    %15 = vector.load %arg7[%c0_14, %c0_15] : memref<128x32xf32, #tpu.memory_space<vmem>>, vector<128x32xf32>
    %16 = arith.addf %14, %15 : vector<128x32xf32>
    %c0_16 = arith.constant 0 : index
    %c0_17 = arith.constant 0 : index
    %17 = vector.load %arg8[%c0_16, %c0_17] : memref<128x32xf32, #tpu.memory_space<vmem>>, vector<128x32xf32>
    tpu.vector_store %arg8[%c0_16, %c0_17], %16 {strides = array<i32>} : memref<128x32xf32, #tpu.memory_space<vmem>>, vector<128x32xf32>,
    return
  }
  func.func @transform_0(%arg0: i32) -> (i32, i32) {
    %c0_i32 = arith.constant 0 : i32
    %c0_i32_0 = arith.constant 0 : i32
    return %arg0, %c0_i32 : i32, i32
  }
  func.func @transform_1(%arg0: i32) -> (i32, i32) {
    %c0_i32 = arith.constant 0 : i32
    %c0_i32_0 = arith.constant 0 : i32
    %c0_i32_1 = arith.constant 0 : i32
    return %c0_i32, %c0_i32_0 : i32, i32
  }
  func.func @transform_2(%arg0: i32) -> (i32, i32) {
    %c0_i32 = arith.constant 0 : i32
    %c0_i32_0 = arith.constant 0 : i32
    %c0_i32_1 = arith.constant 0 : i32
    return %c0_i32, %c0_i32_0 : i32, i32
  }
  func.func @transform_3(%arg0: i32) -> (i32, i32) {
    %c0_i32 = arith.constant 0 : i32
    %c0_i32_0 = arith.constant 0 : i32
    %c0_i32_1 = arith.constant 0 : i32
    return %c0_i32, %c0_i32_0 : i32, i32
  }
  func.func @transform_4(%arg0: i32) -> (i32, i32) {
    %c0_i32 = arith.constant 0 : i32
    %c0_i32_0 = arith.constant 0 : i32
    %c0_i32_1 = arith.constant 0 : i32
    return %c0_i32, %c0_i32_0 : i32, i32
  }
  func.func @transform_5(%arg0: i32) -> (i32, i32) {
    %c0_i32 = arith.constant 0 : i32
    %c0_i32_0 = arith.constant 0 : i32
    %c0_i32_1 = arith.constant 0 : i32
    return %c0_i32, %c0_i32_0 : i32, i32
  }
  func.func @transform_6(%arg0: i32) -> (i32, i32) {
    %c0_i32 = arith.constant 0 : i32
    %c0_i32_0 = arith.constant 0 : i32
    return %arg0, %c0_i32 : i32, i32
  }
  func.func @transform_7(%arg0: i32) -> (i32, i32) {
    %c0_i32 = arith.constant 0 : i32
    %c0_i32_0 = arith.constant 0 : i32
    return %arg0, %c0_i32 : i32, i32
  }
}

module attributes {stable_mosaic.version = 11 : i64} {
  func.func @_mlp2_kernel(%arg0: i32, %arg1: memref<128x16xf32, #tpu.memory_space<vmem>>, %arg2: memref<16x64xf32, #tpu.memory_space<vmem>>, %arg3: memref<1x64xf32, #tpu.memory_space<vmem>>, %arg4: memref<64x32xf32, #tpu.memory_space<vmem>>, %arg5: memref<1x32xf32, #tpu.memory_space<vmem>>, %arg6: memref<128x32xf32, #tpu.memory_space<vmem>>) attributes {dimension_semantics = [#tpu.dimension_semantics<parallel>], iteration_bounds = array<i64: 2>, scalar_prefetch = 0 : i64, scratch_operands = 0 : i64, tpu.core_type = #tpu.core_type<tc>, window_params = [{transform_indices = @transform_0, window_bounds = array<i64: 128, 16>}, {pipeline_mode = #tpu.pipeline_mode<synchronous>, transform_indices = @transform_1, window_bounds = array<i64: 16, 64>}, {pipeline_mode = #tpu.pipeline_mode<synchronous>, transform_indices = @transform_2, window_bounds = array<i64: 1, 64>}, {pipeline_mode = #tpu.pipeline_mode<synchronous>, transform_indices = @transform_3, window_bounds = array<i64: 64, 32>}, {pipeline_mode = #tpu.pipeline_mode<synchronous>, transform_indices = @transform_4, window_bounds = array<i64: 1, 32>}, {transform_indices = @transform_5, window_bounds = array<i64: 128, 32>}]} {
    %c0 = arith.constant 0 : index
    %c0_0 = arith.constant 0 : index
    %0 = vector.load %arg1[%c0, %c0_0] : memref<128x16xf32, #tpu.memory_space<vmem>>, vector<128x16xf32>
    %c0_1 = arith.constant 0 : index
    %c0_2 = arith.constant 0 : index
    %1 = vector.load %arg2[%c0_1, %c0_2] : memref<16x64xf32, #tpu.memory_space<vmem>>, vector<16x64xf32>
    %cst = arith.constant dense<0.000000e+00> : vector<128x64xf32>
    %2 = tpu.matmul %0, %1, %cst {dimension_numbers = #tpu.dot_dimension_numbers<[1], [0], [0], [1], [0, 0, 1, 1], [], []>} : vector<128x16xf32>, vector<16x64xf32>, vector<128x64xf32> -> vector<128x64xf32>
    %c0_3 = arith.constant 0 : index
    %c0_4 = arith.constant 0 : index
    %3 = vector.load %arg3[%c0_3, %c0_4] : memref<1x64xf32, #tpu.memory_space<vmem>>, vector<1x64xf32>
    %4 = vector.broadcast %3 : vector<1x64xf32> to vector<128x64xf32>
    %5 = arith.addf %2, %4 : vector<128x64xf32>
    %cst_5 = arith.constant 0.000000e+00 : f32
    %6 = vector.broadcast %cst_5 : f32 to vector<128x64xf32>
    %7 = arith.cmpf oge, %5, %6 : vector<128x64xf32>
    %cst_6 = arith.constant 1.000000e-01 : f32
    %8 = vector.broadcast %cst_6 : f32 to vector<128x64xf32>
    %9 = arith.mulf %8, %5 : vector<128x64xf32>
    %10 = arith.select %7, %5, %9 : vector<128x64xi1>, vector<128x64xf32>
    %c0_7 = arith.constant 0 : index
    %c0_8 = arith.constant 0 : index
    %11 = vector.load %arg4[%c0_7, %c0_8] : memref<64x32xf32, #tpu.memory_space<vmem>>, vector<64x32xf32>
    %cst_9 = arith.constant dense<0.000000e+00> : vector<128x32xf32>
    %12 = tpu.matmul %10, %11, %cst_9 {dimension_numbers = #tpu.dot_dimension_numbers<[1], [0], [0], [1], [0, 0, 1, 1], [], []>} : vector<128x64xf32>, vector<64x32xf32>, vector<128x32xf32> -> vector<128x32xf32>
    %c0_10 = arith.constant 0 : index
    %c0_11 = arith.constant 0 : index
    %13 = vector.load %arg5[%c0_10, %c0_11] : memref<1x32xf32, #tpu.memory_space<vmem>>, vector<1x32xf32>
    %14 = vector.broadcast %13 : vector<1x32xf32> to vector<128x32xf32>
    %15 = arith.addf %12, %14 : vector<128x32xf32>
    %cst_12 = arith.constant 0.000000e+00 : f32
    %16 = vector.broadcast %cst_12 : f32 to vector<128x32xf32>
    %17 = arith.cmpf oge, %15, %16 : vector<128x32xf32>
    %cst_13 = arith.constant 1.000000e-01 : f32
    %18 = vector.broadcast %cst_13 : f32 to vector<128x32xf32>
    %19 = arith.mulf %18, %15 : vector<128x32xf32>
    %20 = arith.select %17, %15, %19 : vector<128x32xi1>, vector<128x32xf32>
    %c0_14 = arith.constant 0 : index
    %c0_15 = arith.constant 0 : index
    %21 = vector.load %arg6[%c0_14, %c0_15] : memref<128x32xf32, #tpu.memory_space<vmem>>, vector<128x32xf32>
    tpu.vector_store %arg6[%c0_14, %c0_15], %20 {strides = array<i32>} : memref<128x32xf32, #tpu.memory_space<vmem>>, vector<128x32xf32>,
    return
  }
  func.func @transform_0(%arg0: i32) -> (i32, i32) {
    %c0_i32 = arith.constant 0 : i32
    %c0_i32_0 = arith.constant 0 : i32
    return %arg0, %c0_i32 : i32, i32
  }
  func.func @transform_1(%arg0: i32) -> (i32, i32) {
    %c0_i32 = arith.constant 0 : i32
    %c0_i32_0 = arith.constant 0 : i32
    %c0_i32_1 = arith.constant 0 : i32
    return %c0_i32, %c0_i32_0 : i32, i32
  }
  func.func @transform_2(%arg0: i32) -> (i32, i32) {
    %c0_i32 = arith.constant 0 : i32
    %c0_i32_0 = arith.constant 0 : i32
    %c0_i32_1 = arith.constant 0 : i32
    return %c0_i32, %c0_i32_0 : i32, i32
  }
  func.func @transform_3(%arg0: i32) -> (i32, i32) {
    %c0_i32 = arith.constant 0 : i32
    %c0_i32_0 = arith.constant 0 : i32
    %c0_i32_1 = arith.constant 0 : i32
    return %c0_i32, %c0_i32_0 : i32, i32
  }
  func.func @transform_4(%arg0: i32) -> (i32, i32) {
    %c0_i32 = arith.constant 0 : i32
    %c0_i32_0 = arith.constant 0 : i32
    %c0_i32_1 = arith.constant 0 : i32
    return %c0_i32, %c0_i32_0 : i32, i32
  }
  func.func @transform_5(%arg0: i32) -> (i32, i32) {
    %c0_i32 = arith.constant 0 : i32
    %c0_i32_0 = arith.constant 0 : i32
    return %arg0, %c0_i32 : i32, i32
  }
}

module attributes {stable_mosaic.version = 11 : i64} {
  func.func @_add_ln_lrelu_kernel(%arg0: i32, %arg1: memref<128x32xf32, #tpu.memory_space<vmem>>, %arg2: memref<128x32xf32, #tpu.memory_space<vmem>>, %arg3: memref<1x32xf32, #tpu.memory_space<vmem>>, %arg4: memref<1x32xf32, #tpu.memory_space<vmem>>, %arg5: memref<128x32xf32, #tpu.memory_space<vmem>>) attributes {dimension_semantics = [#tpu.dimension_semantics<parallel>], iteration_bounds = array<i64: 1>, scalar_prefetch = 0 : i64, scratch_operands = 0 : i64, tpu.core_type = #tpu.core_type<tc>, window_params = [{transform_indices = @transform_0, window_bounds = array<i64: 128, 32>}, {transform_indices = @transform_1, window_bounds = array<i64: 128, 32>}, {pipeline_mode = #tpu.pipeline_mode<synchronous>, transform_indices = @transform_2, window_bounds = array<i64: 1, 32>}, {pipeline_mode = #tpu.pipeline_mode<synchronous>, transform_indices = @transform_3, window_bounds = array<i64: 1, 32>}, {transform_indices = @transform_4, window_bounds = array<i64: 128, 32>}]} {
    %c0 = arith.constant 0 : index
    %c0_0 = arith.constant 0 : index
    %0 = vector.load %arg1[%c0, %c0_0] : memref<128x32xf32, #tpu.memory_space<vmem>>, vector<128x32xf32>
    %c0_1 = arith.constant 0 : index
    %c0_2 = arith.constant 0 : index
    %1 = vector.load %arg2[%c0_1, %c0_2] : memref<128x32xf32, #tpu.memory_space<vmem>>, vector<128x32xf32>
    %2 = arith.addf %0, %1 : vector<128x32xf32>
    %cst = arith.constant dense<0.000000e+00> : vector<128xf32>
    %3 = vector.multi_reduction <add>, %2, %cst [1] : vector<128x32xf32> to vector<128xf32>
    %4 = vector.shape_cast %3 : vector<128xf32> to vector<128x1xf32>
    %cst_3 = arith.constant 3.200000e+01 : f32
    %5 = vector.broadcast %cst_3 : f32 to vector<128x1xf32>
    %6 = arith.divf %4, %5 : vector<128x1xf32>
    %7 = vector.broadcast %6 : vector<128x1xf32> to vector<128x32xf32>
    %8 = arith.subf %2, %7 : vector<128x32xf32>
    %9 = arith.mulf %8, %8 : vector<128x32xf32>
    %cst_4 = arith.constant dense<0.000000e+00> : vector<128xf32>
    %10 = vector.multi_reduction <add>, %9, %cst_4 [1] : vector<128x32xf32> to vector<128xf32>
    %11 = vector.shape_cast %10 : vector<128xf32> to vector<128x1xf32>
    %cst_5 = arith.constant 3.200000e+01 : f32
    %12 = vector.broadcast %cst_5 : f32 to vector<128x1xf32>
    %13 = arith.divf %11, %12 : vector<128x1xf32>
    %14 = vector.broadcast %6 : vector<128x1xf32> to vector<128x32xf32>
    %15 = arith.subf %2, %14 : vector<128x32xf32>
    %cst_6 = arith.constant 9.99999974E-6 : f32
    %16 = vector.broadcast %cst_6 : f32 to vector<128x1xf32>
    %17 = arith.addf %13, %16 : vector<128x1xf32>
    %18 = math.rsqrt %17 : vector<128x1xf32>
    %19 = vector.broadcast %18 : vector<128x1xf32> to vector<128x32xf32>
    %20 = arith.mulf %15, %19 : vector<128x32xf32>
    %c0_7 = arith.constant 0 : index
    %c0_8 = arith.constant 0 : index
    %21 = vector.load %arg3[%c0_7, %c0_8] : memref<1x32xf32, #tpu.memory_space<vmem>>, vector<1x32xf32>
    %22 = vector.broadcast %21 : vector<1x32xf32> to vector<128x32xf32>
    %23 = arith.mulf %20, %22 : vector<128x32xf32>
    %c0_9 = arith.constant 0 : index
    %c0_10 = arith.constant 0 : index
    %24 = vector.load %arg4[%c0_9, %c0_10] : memref<1x32xf32, #tpu.memory_space<vmem>>, vector<1x32xf32>
    %25 = vector.broadcast %24 : vector<1x32xf32> to vector<128x32xf32>
    %26 = arith.addf %23, %25 : vector<128x32xf32>
    %cst_11 = arith.constant 0.000000e+00 : f32
    %27 = vector.broadcast %cst_11 : f32 to vector<128x32xf32>
    %28 = arith.cmpf oge, %26, %27 : vector<128x32xf32>
    %cst_12 = arith.constant 1.000000e-01 : f32
    %29 = vector.broadcast %cst_12 : f32 to vector<128x32xf32>
    %30 = arith.mulf %29, %26 : vector<128x32xf32>
    %31 = arith.select %28, %26, %30 : vector<128x32xi1>, vector<128x32xf32>
    %c0_13 = arith.constant 0 : index
    %c0_14 = arith.constant 0 : index
    %32 = vector.load %arg5[%c0_13, %c0_14] : memref<128x32xf32, #tpu.memory_space<vmem>>, vector<128x32xf32>
    tpu.vector_store %arg5[%c0_13, %c0_14], %31 {strides = array<i32>} : memref<128x32xf32, #tpu.memory_space<vmem>>, vector<128x32xf32>,
    return
  }
  func.func @transform_0(%arg0: i32) -> (i32, i32) {
    %c0_i32 = arith.constant 0 : i32
    %c0_i32_0 = arith.constant 0 : i32
    return %arg0, %c0_i32 : i32, i32
  }
  func.func @transform_1(%arg0: i32) -> (i32, i32) {
    %c0_i32 = arith.constant 0 : i32
    %c0_i32_0 = arith.constant 0 : i32
    return %arg0, %c0_i32 : i32, i32
  }
  func.func @transform_2(%arg0: i32) -> (i32, i32) {
    %c0_i32 = arith.constant 0 : i32
    %c0_i32_0 = arith.constant 0 : i32
    %c0_i32_1 = arith.constant 0 : i32
    return %c0_i32, %c0_i32_0 : i32, i32
  }
  func.func @transform_3(%arg0: i32) -> (i32, i32) {
    %c0_i32 = arith.constant 0 : i32
    %c0_i32_0 = arith.constant 0 : i32
    %c0_i32_1 = arith.constant 0 : i32
    return %c0_i32, %c0_i32_0 : i32, i32
  }
  func.func @transform_4(%arg0: i32) -> (i32, i32) {
    %c0_i32 = arith.constant 0 : i32
    %c0_i32_0 = arith.constant 0 : i32
    return %arg0, %c0_i32 : i32, i32
  }
}

module attributes {stable_mosaic.version = 11 : i64} {
  func.func @_inst_update_kernel(%arg0: i32, %arg1: memref<128x32xf32, #tpu.memory_space<vmem>>, %arg2: memref<128x128xf32, #tpu.memory_space<vmem>>, %arg3: memref<128x128xf32, #tpu.memory_space<vmem>>, %arg4: memref<128x32xf32, #tpu.memory_space<vmem>>, %arg5: memref<32x32xf32, #tpu.memory_space<vmem>>, %arg6: memref<1x32xf32, #tpu.memory_space<vmem>>, %arg7: memref<32x32xf32, #tpu.memory_space<vmem>>, %arg8: memref<1x32xf32, #tpu.memory_space<vmem>>, %arg9: memref<32x96xf32, #tpu.memory_space<vmem>>, %arg10: memref<32x96xf32, #tpu.memory_space<vmem>>, %arg11: memref<32x96xf32, #tpu.memory_space<vmem>>, %arg12: memref<1x96xf32, #tpu.memory_space<vmem>>, %arg13: memref<96x32xf32, #tpu.memory_space<vmem>>, %arg14: memref<1x32xf32, #tpu.memory_space<vmem>>, %arg15: memref<128x32xf32, #tpu.memory_space<vmem>>) attributes {dimension_semantics = [#tpu.dimension_semantics<parallel>], iteration_bounds = array<i64: 2>, scalar_prefetch = 0 : i64, scratch_operands = 0 : i64, tpu.core_type = #tpu.core_type<tc>, window_params = [{transform_indices = @transform_0, window_bounds = array<i64: 128, 32>}, {transform_indices = @transform_1, window_bounds = array<i64: 128, 128>}, {transform_indices = @transform_2, window_bounds = array<i64: 128, 128>}, {pipeline_mode = #tpu.pipeline_mode<synchronous>, transform_indices = @transform_3, window_bounds = array<i64: 128, 32>}, {pipeline_mode = #tpu.pipeline_mode<synchronous>, transform_indices = @transform_4, window_bounds = array<i64: 32, 32>}, {pipeline_mode = #tpu.pipeline_mode<synchronous>, transform_indices = @transform_5, window_bounds = array<i64: 1, 32>}, {pipeline_mode = #tpu.pipeline_mode<synchronous>, transform_indices = @transform_6, window_bounds = array<i64: 32, 32>}, {pipeline_mode = #tpu.pipeline_mode<synchronous>, transform_indices = @transform_7, window_bounds = array<i64: 1, 32>}, {pipeline_mode = #tpu.pipeline_mode<synchronous>, transform_indices = @transform_8, window_bounds = array<i64: 32, 96>}, {pipeline_mode = #tpu.pipeline_mode<synchronous>, transform_indices = @transform_9, window_bounds = array<i64: 32, 96>}, {pipeline_mode = #tpu.pipeline_mode<synchronous>, transform_indices = @transform_10, window_bounds = array<i64: 32, 96>}, {pipeline_mode = #tpu.pipeline_mode<synchronous>, transform_indices = @transform_11, window_bounds = array<i64: 1, 96>}, {pipeline_mode = #tpu.pipeline_mode<synchronous>, transform_indices = @transform_12, window_bounds = array<i64: 96, 32>}, {pipeline_mode = #tpu.pipeline_mode<synchronous>, transform_indices = @transform_13, window_bounds = array<i64: 1, 32>}, {transform_indices = @transform_14, window_bounds = array<i64: 128, 32>}]} {
    %c0 = arith.constant 0 : index
    %c0_0 = arith.constant 0 : index
    %0 = vector.load %arg1[%c0, %c0_0] : memref<128x32xf32, #tpu.memory_space<vmem>>, vector<128x32xf32>
    %c0_1 = arith.constant 0 : index
    %c0_2 = arith.constant 0 : index
    %1 = vector.load %arg4[%c0_1, %c0_2] : memref<128x32xf32, #tpu.memory_space<vmem>>, vector<128x32xf32>
    %c0_3 = arith.constant 0 : index
    %c0_4 = arith.constant 0 : index
    %2 = vector.load %arg2[%c0_3, %c0_4] : memref<128x128xf32, #tpu.memory_space<vmem>>, vector<128x128xf32>
    %cst = arith.constant dense<0.000000e+00> : vector<128x32xf32>
    %3 = tpu.matmul %2, %1, %cst {dimension_numbers = #tpu.dot_dimension_numbers<[1], [0], [0], [1], [0, 0, 1, 1], [], []>} : vector<128x128xf32>, vector<128x32xf32>, vector<128x32xf32> -> vector<128x32xf32>
    %c0_5 = arith.constant 0 : index
    %c0_6 = arith.constant 0 : index
    %4 = vector.load %arg3[%c0_5, %c0_6] : memref<128x128xf32, #tpu.memory_space<vmem>>, vector<128x128xf32>
    %cst_7 = arith.constant dense<0.000000e+00> : vector<128x32xf32>
    %5 = tpu.matmul %4, %1, %cst_7 {dimension_numbers = #tpu.dot_dimension_numbers<[1], [0], [0], [1], [0, 0, 1, 1], [], []>} : vector<128x128xf32>, vector<128x32xf32>, vector<128x32xf32> -> vector<128x32xf32>
    %c0_8 = arith.constant 0 : index
    %c0_9 = arith.constant 0 : index
    %6 = vector.load %arg5[%c0_8, %c0_9] : memref<32x32xf32, #tpu.memory_space<vmem>>, vector<32x32xf32>
    %cst_10 = arith.constant dense<0.000000e+00> : vector<128x32xf32>
    %7 = tpu.matmul %5, %6, %cst_10 {dimension_numbers = #tpu.dot_dimension_numbers<[1], [0], [0], [1], [0, 0, 1, 1], [], []>} : vector<128x32xf32>, vector<32x32xf32>, vector<128x32xf32> -> vector<128x32xf32>
    %c0_11 = arith.constant 0 : index
    %c0_12 = arith.constant 0 : index
    %8 = vector.load %arg6[%c0_11, %c0_12] : memref<1x32xf32, #tpu.memory_space<vmem>>, vector<1x32xf32>
    %9 = vector.broadcast %8 : vector<1x32xf32> to vector<128x32xf32>
    %10 = arith.addf %7, %9 : vector<128x32xf32>
    %cst_13 = arith.constant 0.000000e+00 : f32
    %11 = vector.broadcast %cst_13 : f32 to vector<128x32xf32>
    %12 = arith.maximumf %10, %11 : vector<128x32xf32>
    %c0_14 = arith.constant 0 : index
    %c0_15 = arith.constant 0 : index
    %13 = vector.load %arg7[%c0_14, %c0_15] : memref<32x32xf32, #tpu.memory_space<vmem>>, vector<32x32xf32>
    %cst_16 = arith.constant dense<0.000000e+00> : vector<128x32xf32>
    %14 = tpu.matmul %12, %13, %cst_16 {dimension_numbers = #tpu.dot_dimension_numbers<[1], [0], [0], [1], [0, 0, 1, 1], [], []>} : vector<128x32xf32>, vector<32x32xf32>, vector<128x32xf32> -> vector<128x32xf32>
    %c0_17 = arith.constant 0 : index
    %c0_18 = arith.constant 0 : index
    %15 = vector.load %arg8[%c0_17, %c0_18] : memref<1x32xf32, #tpu.memory_space<vmem>>, vector<1x32xf32>
    %16 = vector.broadcast %15 : vector<1x32xf32> to vector<128x32xf32>
    %17 = arith.addf %14, %16 : vector<128x32xf32>
    %c0_19 = arith.constant 0 : index
    %c0_20 = arith.constant 0 : index
    %18 = vector.load %arg9[%c0_19, %c0_20] : memref<32x96xf32, #tpu.memory_space<vmem>>, vector<32x96xf32>
    %cst_21 = arith.constant dense<0.000000e+00> : vector<128x96xf32>
    %19 = tpu.matmul %0, %18, %cst_21 {dimension_numbers = #tpu.dot_dimension_numbers<[1], [0], [0], [1], [0, 0, 1, 1], [], []>} : vector<128x32xf32>, vector<32x96xf32>, vector<128x96xf32> -> vector<128x96xf32>
    %c0_22 = arith.constant 0 : index
    %c0_23 = arith.constant 0 : index
    %20 = vector.load %arg10[%c0_22, %c0_23] : memref<32x96xf32, #tpu.memory_space<vmem>>, vector<32x96xf32>
    %cst_24 = arith.constant dense<0.000000e+00> : vector<128x96xf32>
    %21 = tpu.matmul %3, %20, %cst_24 {dimension_numbers = #tpu.dot_dimension_numbers<[1], [0], [0], [1], [0, 0, 1, 1], [], []>} : vector<128x32xf32>, vector<32x96xf32>, vector<128x96xf32> -> vector<128x96xf32>
    %22 = arith.addf %19, %21 : vector<128x96xf32>
    %c0_25 = arith.constant 0 : index
    %c0_26 = arith.constant 0 : index
    %23 = vector.load %arg11[%c0_25, %c0_26] : memref<32x96xf32, #tpu.memory_space<vmem>>, vector<32x96xf32>
    %cst_27 = arith.constant dense<0.000000e+00> : vector<128x96xf32>
    %24 = tpu.matmul %17, %23, %cst_27 {dimension_numbers = #tpu.dot_dimension_numbers<[1], [0], [0], [1], [0, 0, 1, 1], [], []>} : vector<128x32xf32>, vector<32x96xf32>, vector<128x96xf32> -> vector<128x96xf32>
    %25 = arith.addf %22, %24 : vector<128x96xf32>
    %c0_28 = arith.constant 0 : index
    %c0_29 = arith.constant 0 : index
    %26 = vector.load %arg12[%c0_28, %c0_29] : memref<1x96xf32, #tpu.memory_space<vmem>>, vector<1x96xf32>
    %27 = vector.broadcast %26 : vector<1x96xf32> to vector<128x96xf32>
    %28 = arith.addf %25, %27 : vector<128x96xf32>
    %cst_30 = arith.constant 0.000000e+00 : f32
    %29 = vector.broadcast %cst_30 : f32 to vector<128x96xf32>
    %30 = arith.maximumf %28, %29 : vector<128x96xf32>
    %c0_31 = arith.constant 0 : index
    %c0_32 = arith.constant 0 : index
    %31 = vector.load %arg13[%c0_31, %c0_32] : memref<96x32xf32, #tpu.memory_space<vmem>>, vector<96x32xf32>
    %cst_33 = arith.constant dense<0.000000e+00> : vector<128x32xf32>
    %32 = tpu.matmul %30, %31, %cst_33 {dimension_numbers = #tpu.dot_dimension_numbers<[1], [0], [0], [1], [0, 0, 1, 1], [], []>} : vector<128x96xf32>, vector<96x32xf32>, vector<128x32xf32> -> vector<128x32xf32>
    %c0_34 = arith.constant 0 : index
    %c0_35 = arith.constant 0 : index
    %33 = vector.load %arg14[%c0_34, %c0_35] : memref<1x32xf32, #tpu.memory_space<vmem>>, vector<1x32xf32>
    %34 = vector.broadcast %33 : vector<1x32xf32> to vector<128x32xf32>
    %35 = arith.addf %32, %34 : vector<128x32xf32>
    %36 = arith.addf %35, %0 : vector<128x32xf32>
    %c0_36 = arith.constant 0 : index
    %c0_37 = arith.constant 0 : index
    %37 = vector.load %arg15[%c0_36, %c0_37] : memref<128x32xf32, #tpu.memory_space<vmem>>, vector<128x32xf32>
    tpu.vector_store %arg15[%c0_36, %c0_37], %36 {strides = array<i32>} : memref<128x32xf32, #tpu.memory_space<vmem>>, vector<128x32xf32>,
    return
  }
  func.func @transform_0(%arg0: i32) -> (i32, i32) {
    %c0_i32 = arith.constant 0 : i32
    %c0_i32_0 = arith.constant 0 : i32
    return %arg0, %c0_i32 : i32, i32
  }
  func.func @transform_1(%arg0: i32) -> (i32, i32) {
    %c0_i32 = arith.constant 0 : i32
    %c0_i32_0 = arith.constant 0 : i32
    return %arg0, %c0_i32 : i32, i32
  }
  func.func @transform_2(%arg0: i32) -> (i32, i32) {
    %c0_i32 = arith.constant 0 : i32
    %c0_i32_0 = arith.constant 0 : i32
    return %arg0, %c0_i32 : i32, i32
  }
  func.func @transform_3(%arg0: i32) -> (i32, i32) {
    %c0_i32 = arith.constant 0 : i32
    %c0_i32_0 = arith.constant 0 : i32
    %c0_i32_1 = arith.constant 0 : i32
    return %c0_i32, %c0_i32_0 : i32, i32
  }
  func.func @transform_4(%arg0: i32) -> (i32, i32) {
    %c0_i32 = arith.constant 0 : i32
    %c0_i32_0 = arith.constant 0 : i32
    %c0_i32_1 = arith.constant 0 : i32
    return %c0_i32, %c0_i32_0 : i32, i32
  }
  func.func @transform_5(%arg0: i32) -> (i32, i32) {
    %c0_i32 = arith.constant 0 : i32
    %c0_i32_0 = arith.constant 0 : i32
    %c0_i32_1 = arith.constant 0 : i32
    return %c0_i32, %c0_i32_0 : i32, i32
  }
  func.func @transform_6(%arg0: i32) -> (i32, i32) {
    %c0_i32 = arith.constant 0 : i32
    %c0_i32_0 = arith.constant 0 : i32
    %c0_i32_1 = arith.constant 0 : i32
    return %c0_i32, %c0_i32_0 : i32, i32
  }
  func.func @transform_7(%arg0: i32) -> (i32, i32) {
    %c0_i32 = arith.constant 0 : i32
    %c0_i32_0 = arith.constant 0 : i32
    %c0_i32_1 = arith.constant 0 : i32
    return %c0_i32, %c0_i32_0 : i32, i32
  }
  func.func @transform_8(%arg0: i32) -> (i32, i32) {
    %c0_i32 = arith.constant 0 : i32
    %c0_i32_0 = arith.constant 0 : i32
    %c0_i32_1 = arith.constant 0 : i32
    return %c0_i32, %c0_i32_0 : i32, i32
  }
  func.func @transform_9(%arg0: i32) -> (i32, i32) {
    %c0_i32 = arith.constant 0 : i32
    %c0_i32_0 = arith.constant 0 : i32
    %c0_i32_1 = arith.constant 0 : i32
    return %c0_i32, %c0_i32_0 : i32, i32
  }
  func.func @transform_10(%arg0: i32) -> (i32, i32) {
    %c0_i32 = arith.constant 0 : i32
    %c0_i32_0 = arith.constant 0 : i32
    %c0_i32_1 = arith.constant 0 : i32
    return %c0_i32, %c0_i32_0 : i32, i32
  }
  func.func @transform_11(%arg0: i32) -> (i32, i32) {
    %c0_i32 = arith.constant 0 : i32
    %c0_i32_0 = arith.constant 0 : i32
    %c0_i32_1 = arith.constant 0 : i32
    return %c0_i32, %c0_i32_0 : i32, i32
  }
  func.func @transform_12(%arg0: i32) -> (i32, i32) {
    %c0_i32 = arith.constant 0 : i32
    %c0_i32_0 = arith.constant 0 : i32
    %c0_i32_1 = arith.constant 0 : i32
    return %c0_i32, %c0_i32_0 : i32, i32
  }
  func.func @transform_13(%arg0: i32) -> (i32, i32) {
    %c0_i32 = arith.constant 0 : i32
    %c0_i32_0 = arith.constant 0 : i32
    %c0_i32_1 = arith.constant 0 : i32
    return %c0_i32, %c0_i32_0 : i32, i32
  }
  func.func @transform_14(%arg0: i32) -> (i32, i32) {
    %c0_i32 = arith.constant 0 : i32
    %c0_i32_0 = arith.constant 0 : i32
    return %arg0, %c0_i32 : i32, i32
  }
}

module attributes {stable_mosaic.version = 11 : i64} {
  func.func @_add_ln_lrelu_kernel(%arg0: i32, %arg1: memref<256x32xf32, #tpu.memory_space<vmem>>, %arg2: memref<256x32xf32, #tpu.memory_space<vmem>>, %arg3: memref<1x32xf32, #tpu.memory_space<vmem>>, %arg4: memref<1x32xf32, #tpu.memory_space<vmem>>, %arg5: memref<256x32xf32, #tpu.memory_space<vmem>>) attributes {dimension_semantics = [#tpu.dimension_semantics<parallel>], iteration_bounds = array<i64: 1>, scalar_prefetch = 0 : i64, scratch_operands = 0 : i64, tpu.core_type = #tpu.core_type<tc>, window_params = [{transform_indices = @transform_0, window_bounds = array<i64: 256, 32>}, {transform_indices = @transform_1, window_bounds = array<i64: 256, 32>}, {pipeline_mode = #tpu.pipeline_mode<synchronous>, transform_indices = @transform_2, window_bounds = array<i64: 1, 32>}, {pipeline_mode = #tpu.pipeline_mode<synchronous>, transform_indices = @transform_3, window_bounds = array<i64: 1, 32>}, {transform_indices = @transform_4, window_bounds = array<i64: 256, 32>}]} {
    %c0 = arith.constant 0 : index
    %c0_0 = arith.constant 0 : index
    %0 = vector.load %arg1[%c0, %c0_0] : memref<256x32xf32, #tpu.memory_space<vmem>>, vector<256x32xf32>
    %c0_1 = arith.constant 0 : index
    %c0_2 = arith.constant 0 : index
    %1 = vector.load %arg2[%c0_1, %c0_2] : memref<256x32xf32, #tpu.memory_space<vmem>>, vector<256x32xf32>
    %2 = arith.addf %0, %1 : vector<256x32xf32>
    %cst = arith.constant dense<0.000000e+00> : vector<256xf32>
    %3 = vector.multi_reduction <add>, %2, %cst [1] : vector<256x32xf32> to vector<256xf32>
    %4 = vector.shape_cast %3 : vector<256xf32> to vector<256x1xf32>
    %cst_3 = arith.constant 3.200000e+01 : f32
    %5 = vector.broadcast %cst_3 : f32 to vector<256x1xf32>
    %6 = arith.divf %4, %5 : vector<256x1xf32>
    %7 = vector.broadcast %6 : vector<256x1xf32> to vector<256x32xf32>
    %8 = arith.subf %2, %7 : vector<256x32xf32>
    %9 = arith.mulf %8, %8 : vector<256x32xf32>
    %cst_4 = arith.constant dense<0.000000e+00> : vector<256xf32>
    %10 = vector.multi_reduction <add>, %9, %cst_4 [1] : vector<256x32xf32> to vector<256xf32>
    %11 = vector.shape_cast %10 : vector<256xf32> to vector<256x1xf32>
    %cst_5 = arith.constant 3.200000e+01 : f32
    %12 = vector.broadcast %cst_5 : f32 to vector<256x1xf32>
    %13 = arith.divf %11, %12 : vector<256x1xf32>
    %14 = vector.broadcast %6 : vector<256x1xf32> to vector<256x32xf32>
    %15 = arith.subf %2, %14 : vector<256x32xf32>
    %cst_6 = arith.constant 9.99999974E-6 : f32
    %16 = vector.broadcast %cst_6 : f32 to vector<256x1xf32>
    %17 = arith.addf %13, %16 : vector<256x1xf32>
    %18 = math.rsqrt %17 : vector<256x1xf32>
    %19 = vector.broadcast %18 : vector<256x1xf32> to vector<256x32xf32>
    %20 = arith.mulf %15, %19 : vector<256x32xf32>
    %c0_7 = arith.constant 0 : index
    %c0_8 = arith.constant 0 : index
    %21 = vector.load %arg3[%c0_7, %c0_8] : memref<1x32xf32, #tpu.memory_space<vmem>>, vector<1x32xf32>
    %22 = vector.broadcast %21 : vector<1x32xf32> to vector<256x32xf32>
    %23 = arith.mulf %20, %22 : vector<256x32xf32>
    %c0_9 = arith.constant 0 : index
    %c0_10 = arith.constant 0 : index
    %24 = vector.load %arg4[%c0_9, %c0_10] : memref<1x32xf32, #tpu.memory_space<vmem>>, vector<1x32xf32>
    %25 = vector.broadcast %24 : vector<1x32xf32> to vector<256x32xf32>
    %26 = arith.addf %23, %25 : vector<256x32xf32>
    %cst_11 = arith.constant 0.000000e+00 : f32
    %27 = vector.broadcast %cst_11 : f32 to vector<256x32xf32>
    %28 = arith.cmpf oge, %26, %27 : vector<256x32xf32>
    %cst_12 = arith.constant 1.000000e-01 : f32
    %29 = vector.broadcast %cst_12 : f32 to vector<256x32xf32>
    %30 = arith.mulf %29, %26 : vector<256x32xf32>
    %31 = arith.select %28, %26, %30 : vector<256x32xi1>, vector<256x32xf32>
    %c0_13 = arith.constant 0 : index
    %c0_14 = arith.constant 0 : index
    %32 = vector.load %arg5[%c0_13, %c0_14] : memref<256x32xf32, #tpu.memory_space<vmem>>, vector<256x32xf32>
    tpu.vector_store %arg5[%c0_13, %c0_14], %31 {strides = array<i32>} : memref<256x32xf32, #tpu.memory_space<vmem>>, vector<256x32xf32>,
    return
  }
  func.func @transform_0(%arg0: i32) -> (i32, i32) {
    %c0_i32 = arith.constant 0 : i32
    %c0_i32_0 = arith.constant 0 : i32
    return %arg0, %c0_i32 : i32, i32
  }
  func.func @transform_1(%arg0: i32) -> (i32, i32) {
    %c0_i32 = arith.constant 0 : i32
    %c0_i32_0 = arith.constant 0 : i32
    return %arg0, %c0_i32 : i32, i32
  }
  func.func @transform_2(%arg0: i32) -> (i32, i32) {
    %c0_i32 = arith.constant 0 : i32
    %c0_i32_0 = arith.constant 0 : i32
    %c0_i32_1 = arith.constant 0 : i32
    return %c0_i32, %c0_i32_0 : i32, i32
  }
  func.func @transform_3(%arg0: i32) -> (i32, i32) {
    %c0_i32 = arith.constant 0 : i32
    %c0_i32_0 = arith.constant 0 : i32
    %c0_i32_1 = arith.constant 0 : i32
    return %c0_i32, %c0_i32_0 : i32, i32
  }
  func.func @transform_4(%arg0: i32) -> (i32, i32) {
    %c0_i32 = arith.constant 0 : i32
    %c0_i32_0 = arith.constant 0 : i32
    return %arg0, %c0_i32 : i32, i32
  }
}

module attributes {stable_mosaic.version = 11 : i64} {
  func.func @_net_agg_kernel(%arg0: i32, %arg1: memref<128x256xf32, #tpu.memory_space<vmem>>, %arg2: memref<256x32xf32, #tpu.memory_space<vmem>>, %arg3: memref<32x32xf32, #tpu.memory_space<vmem>>, %arg4: memref<1x32xf32, #tpu.memory_space<vmem>>, %arg5: memref<32x32xf32, #tpu.memory_space<vmem>>, %arg6: memref<1x32xf32, #tpu.memory_space<vmem>>, %arg7: memref<128x32xf32, #tpu.memory_space<vmem>>, %arg8: memref<128x32xf32, #tpu.memory_space<vmem>>) attributes {dimension_semantics = [#tpu.dimension_semantics<parallel>], iteration_bounds = array<i64: 1>, scalar_prefetch = 0 : i64, scratch_operands = 0 : i64, tpu.core_type = #tpu.core_type<tc>, window_params = [{transform_indices = @transform_0, window_bounds = array<i64: 128, 256>}, {pipeline_mode = #tpu.pipeline_mode<synchronous>, transform_indices = @transform_1, window_bounds = array<i64: 256, 32>}, {pipeline_mode = #tpu.pipeline_mode<synchronous>, transform_indices = @transform_2, window_bounds = array<i64: 32, 32>}, {pipeline_mode = #tpu.pipeline_mode<synchronous>, transform_indices = @transform_3, window_bounds = array<i64: 1, 32>}, {pipeline_mode = #tpu.pipeline_mode<synchronous>, transform_indices = @transform_4, window_bounds = array<i64: 32, 32>}, {pipeline_mode = #tpu.pipeline_mode<synchronous>, transform_indices = @transform_5, window_bounds = array<i64: 1, 32>}, {transform_indices = @transform_6, window_bounds = array<i64: 128, 32>}, {transform_indices = @transform_7, window_bounds = array<i64: 128, 32>}]} {
    %c0 = arith.constant 0 : index
    %c0_0 = arith.constant 0 : index
    %0 = vector.load %arg1[%c0, %c0_0] : memref<128x256xf32, #tpu.memory_space<vmem>>, vector<128x256xf32>
    %c0_1 = arith.constant 0 : index
    %c0_2 = arith.constant 0 : index
    %1 = vector.load %arg2[%c0_1, %c0_2] : memref<256x32xf32, #tpu.memory_space<vmem>>, vector<256x32xf32>
    %cst = arith.constant dense<0.000000e+00> : vector<128x32xf32>
    %2 = tpu.matmul %0, %1, %cst {dimension_numbers = #tpu.dot_dimension_numbers<[1], [0], [0], [1], [0, 0, 1, 1], [], []>} : vector<128x256xf32>, vector<256x32xf32>, vector<128x32xf32> -> vector<128x32xf32>
    %c0_3 = arith.constant 0 : index
    %c0_4 = arith.constant 0 : index
    %3 = vector.load %arg3[%c0_3, %c0_4] : memref<32x32xf32, #tpu.memory_space<vmem>>, vector<32x32xf32>
    %cst_5 = arith.constant dense<0.000000e+00> : vector<128x32xf32>
    %4 = tpu.matmul %2, %3, %cst_5 {dimension_numbers = #tpu.dot_dimension_numbers<[1], [0], [0], [1], [0, 0, 1, 1], [], []>} : vector<128x32xf32>, vector<32x32xf32>, vector<128x32xf32> -> vector<128x32xf32>
    %c0_6 = arith.constant 0 : index
    %c0_7 = arith.constant 0 : index
    %5 = vector.load %arg4[%c0_6, %c0_7] : memref<1x32xf32, #tpu.memory_space<vmem>>, vector<1x32xf32>
    %6 = vector.broadcast %5 : vector<1x32xf32> to vector<128x32xf32>
    %7 = arith.addf %4, %6 : vector<128x32xf32>
    %cst_8 = arith.constant 0.000000e+00 : f32
    %8 = vector.broadcast %cst_8 : f32 to vector<128x32xf32>
    %9 = arith.maximumf %7, %8 : vector<128x32xf32>
    %c0_9 = arith.constant 0 : index
    %c0_10 = arith.constant 0 : index
    %10 = vector.load %arg5[%c0_9, %c0_10] : memref<32x32xf32, #tpu.memory_space<vmem>>, vector<32x32xf32>
    %cst_11 = arith.constant dense<0.000000e+00> : vector<128x32xf32>
    %11 = tpu.matmul %9, %10, %cst_11 {dimension_numbers = #tpu.dot_dimension_numbers<[1], [0], [0], [1], [0, 0, 1, 1], [], []>} : vector<128x32xf32>, vector<32x32xf32>, vector<128x32xf32> -> vector<128x32xf32>
    %c0_12 = arith.constant 0 : index
    %c0_13 = arith.constant 0 : index
    %12 = vector.load %arg6[%c0_12, %c0_13] : memref<1x32xf32, #tpu.memory_space<vmem>>, vector<1x32xf32>
    %13 = vector.broadcast %12 : vector<1x32xf32> to vector<128x32xf32>
    %14 = arith.addf %11, %13 : vector<128x32xf32>
    %c0_14 = arith.constant 0 : index
    %c0_15 = arith.constant 0 : index
    %15 = vector.load %arg7[%c0_14, %c0_15] : memref<128x32xf32, #tpu.memory_space<vmem>>, vector<128x32xf32>
    %16 = arith.addf %14, %15 : vector<128x32xf32>
    %c0_16 = arith.constant 0 : index
    %c0_17 = arith.constant 0 : index
    %17 = vector.load %arg8[%c0_16, %c0_17] : memref<128x32xf32, #tpu.memory_space<vmem>>, vector<128x32xf32>
    tpu.vector_store %arg8[%c0_16, %c0_17], %16 {strides = array<i32>} : memref<128x32xf32, #tpu.memory_space<vmem>>, vector<128x32xf32>,
    return
  }
  func.func @transform_0(%arg0: i32) -> (i32, i32) {
    %c0_i32 = arith.constant 0 : i32
    %c0_i32_0 = arith.constant 0 : i32
    return %arg0, %c0_i32 : i32, i32
  }
  func.func @transform_1(%arg0: i32) -> (i32, i32) {
    %c0_i32 = arith.constant 0 : i32
    %c0_i32_0 = arith.constant 0 : i32
    %c0_i32_1 = arith.constant 0 : i32
    return %c0_i32, %c0_i32_0 : i32, i32
  }
  func.func @transform_2(%arg0: i32) -> (i32, i32) {
    %c0_i32 = arith.constant 0 : i32
    %c0_i32_0 = arith.constant 0 : i32
    %c0_i32_1 = arith.constant 0 : i32
    return %c0_i32, %c0_i32_0 : i32, i32
  }
  func.func @transform_3(%arg0: i32) -> (i32, i32) {
    %c0_i32 = arith.constant 0 : i32
    %c0_i32_0 = arith.constant 0 : i32
    %c0_i32_1 = arith.constant 0 : i32
    return %c0_i32, %c0_i32_0 : i32, i32
  }
  func.func @transform_4(%arg0: i32) -> (i32, i32) {
    %c0_i32 = arith.constant 0 : i32
    %c0_i32_0 = arith.constant 0 : i32
    %c0_i32_1 = arith.constant 0 : i32
    return %c0_i32, %c0_i32_0 : i32, i32
  }
  func.func @transform_5(%arg0: i32) -> (i32, i32) {
    %c0_i32 = arith.constant 0 : i32
    %c0_i32_0 = arith.constant 0 : i32
    %c0_i32_1 = arith.constant 0 : i32
    return %c0_i32, %c0_i32_0 : i32, i32
  }
  func.func @transform_6(%arg0: i32) -> (i32, i32) {
    %c0_i32 = arith.constant 0 : i32
    %c0_i32_0 = arith.constant 0 : i32
    return %arg0, %c0_i32 : i32, i32
  }
  func.func @transform_7(%arg0: i32) -> (i32, i32) {
    %c0_i32 = arith.constant 0 : i32
    %c0_i32_0 = arith.constant 0 : i32
    return %arg0, %c0_i32 : i32, i32
  }
}

module attributes {stable_mosaic.version = 11 : i64} {
  func.func @_add_ln_lrelu_kernel(%arg0: i32, %arg1: memref<128x32xf32, #tpu.memory_space<vmem>>, %arg2: memref<128x32xf32, #tpu.memory_space<vmem>>, %arg3: memref<1x32xf32, #tpu.memory_space<vmem>>, %arg4: memref<1x32xf32, #tpu.memory_space<vmem>>, %arg5: memref<128x32xf32, #tpu.memory_space<vmem>>) attributes {dimension_semantics = [#tpu.dimension_semantics<parallel>], iteration_bounds = array<i64: 1>, scalar_prefetch = 0 : i64, scratch_operands = 0 : i64, tpu.core_type = #tpu.core_type<tc>, window_params = [{transform_indices = @transform_0, window_bounds = array<i64: 128, 32>}, {transform_indices = @transform_1, window_bounds = array<i64: 128, 32>}, {pipeline_mode = #tpu.pipeline_mode<synchronous>, transform_indices = @transform_2, window_bounds = array<i64: 1, 32>}, {pipeline_mode = #tpu.pipeline_mode<synchronous>, transform_indices = @transform_3, window_bounds = array<i64: 1, 32>}, {transform_indices = @transform_4, window_bounds = array<i64: 128, 32>}]} {
    %c0 = arith.constant 0 : index
    %c0_0 = arith.constant 0 : index
    %0 = vector.load %arg1[%c0, %c0_0] : memref<128x32xf32, #tpu.memory_space<vmem>>, vector<128x32xf32>
    %c0_1 = arith.constant 0 : index
    %c0_2 = arith.constant 0 : index
    %1 = vector.load %arg2[%c0_1, %c0_2] : memref<128x32xf32, #tpu.memory_space<vmem>>, vector<128x32xf32>
    %2 = arith.addf %0, %1 : vector<128x32xf32>
    %cst = arith.constant dense<0.000000e+00> : vector<128xf32>
    %3 = vector.multi_reduction <add>, %2, %cst [1] : vector<128x32xf32> to vector<128xf32>
    %4 = vector.shape_cast %3 : vector<128xf32> to vector<128x1xf32>
    %cst_3 = arith.constant 3.200000e+01 : f32
    %5 = vector.broadcast %cst_3 : f32 to vector<128x1xf32>
    %6 = arith.divf %4, %5 : vector<128x1xf32>
    %7 = vector.broadcast %6 : vector<128x1xf32> to vector<128x32xf32>
    %8 = arith.subf %2, %7 : vector<128x32xf32>
    %9 = arith.mulf %8, %8 : vector<128x32xf32>
    %cst_4 = arith.constant dense<0.000000e+00> : vector<128xf32>
    %10 = vector.multi_reduction <add>, %9, %cst_4 [1] : vector<128x32xf32> to vector<128xf32>
    %11 = vector.shape_cast %10 : vector<128xf32> to vector<128x1xf32>
    %cst_5 = arith.constant 3.200000e+01 : f32
    %12 = vector.broadcast %cst_5 : f32 to vector<128x1xf32>
    %13 = arith.divf %11, %12 : vector<128x1xf32>
    %14 = vector.broadcast %6 : vector<128x1xf32> to vector<128x32xf32>
    %15 = arith.subf %2, %14 : vector<128x32xf32>
    %cst_6 = arith.constant 9.99999974E-6 : f32
    %16 = vector.broadcast %cst_6 : f32 to vector<128x1xf32>
    %17 = arith.addf %13, %16 : vector<128x1xf32>
    %18 = math.rsqrt %17 : vector<128x1xf32>
    %19 = vector.broadcast %18 : vector<128x1xf32> to vector<128x32xf32>
    %20 = arith.mulf %15, %19 : vector<128x32xf32>
    %c0_7 = arith.constant 0 : index
    %c0_8 = arith.constant 0 : index
    %21 = vector.load %arg3[%c0_7, %c0_8] : memref<1x32xf32, #tpu.memory_space<vmem>>, vector<1x32xf32>
    %22 = vector.broadcast %21 : vector<1x32xf32> to vector<128x32xf32>
    %23 = arith.mulf %20, %22 : vector<128x32xf32>
    %c0_9 = arith.constant 0 : index
    %c0_10 = arith.constant 0 : index
    %24 = vector.load %arg4[%c0_9, %c0_10] : memref<1x32xf32, #tpu.memory_space<vmem>>, vector<1x32xf32>
    %25 = vector.broadcast %24 : vector<1x32xf32> to vector<128x32xf32>
    %26 = arith.addf %23, %25 : vector<128x32xf32>
    %cst_11 = arith.constant 0.000000e+00 : f32
    %27 = vector.broadcast %cst_11 : f32 to vector<128x32xf32>
    %28 = arith.cmpf oge, %26, %27 : vector<128x32xf32>
    %cst_12 = arith.constant 1.000000e-01 : f32
    %29 = vector.broadcast %cst_12 : f32 to vector<128x32xf32>
    %30 = arith.mulf %29, %26 : vector<128x32xf32>
    %31 = arith.select %28, %26, %30 : vector<128x32xi1>, vector<128x32xf32>
    %c0_13 = arith.constant 0 : index
    %c0_14 = arith.constant 0 : index
    %32 = vector.load %arg5[%c0_13, %c0_14] : memref<128x32xf32, #tpu.memory_space<vmem>>, vector<128x32xf32>
    tpu.vector_store %arg5[%c0_13, %c0_14], %31 {strides = array<i32>} : memref<128x32xf32, #tpu.memory_space<vmem>>, vector<128x32xf32>,
    return
  }
  func.func @transform_0(%arg0: i32) -> (i32, i32) {
    %c0_i32 = arith.constant 0 : i32
    %c0_i32_0 = arith.constant 0 : i32
    return %arg0, %c0_i32 : i32, i32
  }
  func.func @transform_1(%arg0: i32) -> (i32, i32) {
    %c0_i32 = arith.constant 0 : i32
    %c0_i32_0 = arith.constant 0 : i32
    return %arg0, %c0_i32 : i32, i32
  }
  func.func @transform_2(%arg0: i32) -> (i32, i32) {
    %c0_i32 = arith.constant 0 : i32
    %c0_i32_0 = arith.constant 0 : i32
    %c0_i32_1 = arith.constant 0 : i32
    return %c0_i32, %c0_i32_0 : i32, i32
  }
  func.func @transform_3(%arg0: i32) -> (i32, i32) {
    %c0_i32 = arith.constant 0 : i32
    %c0_i32_0 = arith.constant 0 : i32
    %c0_i32_1 = arith.constant 0 : i32
    return %c0_i32, %c0_i32_0 : i32, i32
  }
  func.func @transform_4(%arg0: i32) -> (i32, i32) {
    %c0_i32 = arith.constant 0 : i32
    %c0_i32_0 = arith.constant 0 : i32
    return %arg0, %c0_i32 : i32, i32
  }
}

</mosaic_0001>

<bundles_post_ra>
// kernel: gnn_node_forward.9
= control target key start
LH: loop header
LB: loop body
LE: loop exit
PB: predicated region body
PF: predicated region fallthrough
CT: control target
= control target key end

     0   :  { %vm41_vm0 = vcmask 64512   ;;  %vm211_vm2 = vcmask 261120   ;;  %s663_s1 = inlined_call_operand.vmem [shape: f32[8,32], index: 1, kind: input, shape index: {}]   ;;  %s664_s0 = inlined_call_operand.vmem [shape: f32[128,8], index: 0, kind: input, shape index: {}]   ;;  %s665_s2 = inlined_call_operand.vmem [shape: f32[1,32], index: 2, kind: input, shape index: {}]   ;;  %s666_s3 = inlined_call_operand.vmem [shape: f32[32,32], index: 3, kind: input, shape index: {}]   ;;  %s667_s4 = inlined_call_operand.vmem [shape: f32[1,32], index: 4, kind: input, shape index: {}]   ;;  %s668_s5 = inlined_call_operand.vmem [shape: f32[128,32], index: 5, kind: output, shape index: {}]  }
   0x1   :  { %v36_v0 = vld [vmem:[%s663_s1] sm:$0xff]  ;;  %v21_v2 = vld [vmem:[%s664_s0 + $0x8] sm:$0xff]  ;;  %v22_v3 = vld [vmem:[%s664_s0 + $0x10] sm:$0xff] }
   0x2   :  { %v20_v1 = vld [vmem:[%s664_s0] sm:$0xff]  ;;  %105 = vmatpush.msra.mxu0 %v36_v0  ;;  %425 = vmatpush.msra.mxu3 %v36_v0  ;;  %v23_v4 = vld [vmem:[%s664_s0 + $0x18] sm:$0xff]  ;;  %v29_v6 = vld [vmem:[%s664_s0 + $0x48] sm:$0xff] }
   0x3   :  { %393 = vmatmul.msk.f32.vlgmr.msra.gmra.mxu0 %vm41_vm0, %v20_v1  ;;  %v24_v5 = vld [vmem:[%s664_s0 + $0x20] sm:$0xff]  ;;  %402 = vmatmul.msk.f32.vlgmr.msra.gmra.mxu3 %vm41_vm0, %v29_v6  ;;  %v25_v7 = vld [vmem:[%s664_s0 + $0x28] sm:$0xff]  ;;  %v30_v8 = vld [vmem:[%s664_s0 + $0x50] sm:$0xff] }
   0x4   :  { %v26_v9 = vld [vmem:[%s664_s0 + $0x30] sm:$0xff]  ;;  %v31_v10 = vld [vmem:[%s664_s0 + $0x58] sm:$0xff]  ;;  %v32_v13 = vld [vmem:[%s664_s0 + $0x60] sm:$0xff] }
   0x5   :  { %v206_v11 = vld [vmem:[%s666_s3 + $0x18] sm:$0xff]  ;;  %v28_v14 = vld [vmem:[%s664_s0 + $0x40] sm:$0xff]  ;;  %v33_v15 = vld [vmem:[%s664_s0 + $0x68] sm:$0xff] }
   0x6   :  { %272 = vmatpush.msra.mxu1 %v206_v11  ;;  %426 = vmatpush.msra.mxu2 %v206_v11  ;;  %v27_v12 = vld [vmem:[%s664_s0 + $0x38] sm:$0xff]  ;;  %v34_v16 = vld [vmem:[%s664_s0 + $0x70] sm:$0xff]  ;;  %v204_v19 = vld [vmem:[%s666_s3 + $0x8] sm:$0xff] }
   0x7   :  { %v35_v17 = vld [vmem:[%s664_s0 + $0x78] sm:$0xff]  ;;  %v205_v18 = vld [vmem:[%s666_s3 + $0x10] sm:$0xff]  ;;  %v203_v20 = vld [vmem:[%s666_s3] sm:$0xff] }
   0x8   :  { %273 = vmatpush.msra.mxu1 %v205_v18  ;;  %427 = vmatpush.msra.mxu2 %v205_v18  ;;  %v544_v21 = vld [vmem:[%s665_s2] ss:$0 sm:$0xff] }
   0xa   :  { %274 = vmatpush.msra.mxu1 %v204_v19  ;;  %428 = vmatpush.msra.mxu2 %v204_v19 }
   0xb   :  { %394 = vmatmul.msk.f32.gmra.mxu0 %vm41_vm0, %v21_v2  ;;  %403 = vmatmul.msk.f32.gmra.mxu3 %vm41_vm0, %v30_v8 }
   0xc   :  { %275 = vmatpush.msra.mxu1 %v203_v20  ;;  %429 = vmatpush.msra.mxu2 %v203_v20 }
  0x13   :  { %395 = vmatmul.msk.f32.gmra.mxu0 %vm41_vm0, %v22_v3  ;;  %404 = vmatmul.msk.f32.gmra.mxu3 %vm41_vm0, %v31_v10 }
  0x1b   :  { %396 = vmatmul.msk.f32.gmra.mxu0 %vm41_vm0, %v23_v4  ;;  %405 = vmatmul.msk.f32.gmra.mxu3 %vm41_vm0, %v32_v13 }
  0x23   :  { %397 = vmatmul.msk.f32.gmra.mxu0 %vm41_vm0, %v24_v5  ;;  %406 = vmatmul.msk.f32.gmra.mxu3 %vm41_vm0, %v33_v15 }
  0x2b   :  { %398 = vmatmul.msk.f32.gmra.mxu0 %vm41_vm0, %v25_v7  ;;  %407 = vmatmul.msk.f32.gmra.mxu3 %vm41_vm0, %v34_v16 }
  0x33   :  { %399 = vmatmul.msk.f32.gmra.mxu0 %vm41_vm0, %v26_v9  ;;  %408 = vmatmul.msk.f32.gmra.mxu3 %vm41_vm0, %v35_v17 }
  0x3b   :  { %400 = vmatmul.msk.f32.gmra.mxu0 %vm41_vm0, %v27_v12 }
  0x43   :  { %401 = vmatmul.msk.f32.gmra.mxu0 %vm41_vm0, %v28_v14 }
  0x80   :  { %v107_v22 = vpop.f32.mrf.mxu0 }
  0x81   :  { %v108_v23 = vadd.f32 %v544_v21, %v107_v22 }
  0x83   :  { %v171_v24 = vmul.f32 0.1, %v108_v23  ;;  %vm155_vm1 = vcmp.ge.f32.partialorder %v108_v23, 0.0 }
  0x85   :  { %v187_v25 = vsel %vm155_vm1, %v108_v23, %v171_v24  ;;  %v581_v23 = vld [vmem:[%s667_s4] ss:$0 sm:$0xff] }
  0x86   :  { %409 = vmatmul.msk.f32.vlgmr.msra.gmra.mxu1 %vm211_vm2, %v187_v25  ;;  %v134_v50 = vpop.f32.mrf.mxu3 }
  0x87   :  { %v135_v59 = vadd.f32 %v544_v21, %v134_v50 }
  0x88   :  { %v110_v26 = vpop.f32.mrf.mxu0 }
  0x89   :  { %v111_v27 = vadd.f32 %v544_v21, %v110_v26  ;;  %v180_v61 = vmul.f32 0.1, %v135_v59  ;;  %vm164_vm11 = vcmp.ge.f32.partialorder %v135_v59, 0.0 }
  0x8b   :  { %v172_v28 = vmul.f32 0.1, %v111_v27  ;;  %vm156_vm3 = vcmp.ge.f32.partialorder %v111_v27, 0.0  ;;  %v196_v0 = vsel %vm164_vm11, %v135_v59, %v180_v61 }
  0x8d   :  { %v188_v29 = vsel %vm156_vm3, %v111_v27, %v172_v28 }
  0x8e   :  { %410 = vmatmul.msk.f32.gmra.mxu1 %vm211_vm2, %v188_v29  ;;  %v137_v56 = vpop.f32.mrf.mxu3 }
  0x8f   :  { %v138_v63 = vadd.f32 %v544_v21, %v137_v56 }
  0x90   :  { %v113_v30 = vpop.f32.mrf.mxu0 }
  0x91   :  { %v114_v31 = vadd.f32 %v544_v21, %v113_v30  ;;  %v181_v1 = vmul.f32 0.1, %v138_v63  ;;  %vm165_vm12 = vcmp.ge.f32.partialorder %v138_v63, 0.0 }
  0x93   :  { %v173_v32 = vmul.f32 0.1, %v114_v31  ;;  %vm157_vm4 = vcmp.ge.f32.partialorder %v114_v31, 0.0  ;;  %v197_v4 = vsel %vm165_vm12, %v138_v63, %v181_v1 }
  0x95   :  { %v189_v33 = vsel %vm157_vm4, %v114_v31, %v173_v32 }
  0x96   :  { %411 = vmatmul.msk.f32.gmra.mxu1 %vm211_vm2, %v189_v33  ;;  %v140_v62 = vpop.f32.mrf.mxu3 }
  0x97   :  { %v141_v3 = vadd.f32 %v544_v21, %v140_v62 }
  0x98   :  { %v116_v34 = vpop.f32.mrf.mxu0 }
  0x99   :  { %v117_v35 = vadd.f32 %v544_v21, %v116_v34  ;;  %v182_v5 = vmul.f32 0.1, %v141_v3  ;;  %vm166_vm13 = vcmp.ge.f32.partialorder %v141_v3, 0.0 }
  0x9b   :  { %v174_v36 = vmul.f32 0.1, %v117_v35  ;;  %vm158_vm5 = vcmp.ge.f32.partialorder %v117_v35, 0.0  ;;  %v198_v7 = vsel %vm166_vm13, %v141_v3, %v182_v5 }
  0x9d   :  { %v190_v37 = vsel %vm158_vm5, %v117_v35, %v174_v36 }
  0x9e   :  { %412 = vmatmul.msk.f32.gmra.mxu1 %vm211_vm2, %v190_v37  ;;  %v143_v2 = vpop.f32.mrf.mxu3 }
  0x9f   :  { %v144_v6 = vadd.f32 %v544_v21, %v143_v2 }
  0xa0   :  { %v119_v38 = vpop.f32.mrf.mxu0 }
  0xa1   :  { %v120_v39 = vadd.f32 %v544_v21, %v119_v38  ;;  %v183_v9 = vmul.f32 0.1, %v144_v6  ;;  %vm167_vm14 = vcmp.ge.f32.partialorder %v144_v6, 0.0 }
  0xa3   :  { %v175_v40 = vmul.f32 0.1, %v120_v39  ;;  %vm159_vm6 = vcmp.ge.f32.partialorder %v120_v39, 0.0  ;;  %v199_v11 = vsel %vm167_vm14, %v144_v6, %v183_v9 }
  0xa5   :  { %v191_v41 = vsel %vm159_vm6, %v120_v39, %v175_v40 }
  0xa6   :  { %413 = vmatmul.msk.f32.gmra.mxu1 %vm211_vm2, %v191_v41  ;;  %v146_v8 = vpop.f32.mrf.mxu3 }
  0xa7   :  { %v147_v10 = vadd.f32 %v544_v21, %v146_v8 }
  0xa8   :  { %v122_v42 = vpop.f32.mrf.mxu0 }
  0xa9   :  { %v123_v43 = vadd.f32 %v544_v21, %v122_v42  ;;  %v184_v13 = vmul.f32 0.1, %v147_v10  ;;  %vm168_vm15 = vcmp.ge.f32.partialorder %v147_v10, 0.0 }
  0xab   :  { %v176_v44 = vmul.f32 0.1, %v123_v43  ;;  %vm160_vm7 = vcmp.ge.f32.partialorder %v123_v43, 0.0  ;;  %v200_v15 = vsel %vm168_vm15, %v147_v10, %v184_v13 }
  0xad   :  { %v192_v45 = vsel %vm160_vm7, %v123_v43, %v176_v44 }
  0xae   :  { %414 = vmatmul.msk.f32.gmra.mxu1 %vm211_vm2, %v192_v45  ;;  %v149_v12 = vpop.f32.mrf.mxu3 }
  0xaf   :  { %v150_v14 = vadd.f32 %v544_v21, %v149_v12 }
  0xb0   :  { %v125_v46 = vpop.f32.mrf.mxu0 }
  0xb1   :  { %v126_v47 = vadd.f32 %v544_v21, %v125_v46  ;;  %v185_v16 = vmul.f32 0.1, %v150_v14  ;;  %vm169_vm0 = vcmp.ge.f32.partialorder %v150_v14, 0.0 }
  0xb3   :  { %v177_v48 = vmul.f32 0.1, %v126_v47  ;;  %vm161_vm8 = vcmp.ge.f32.partialorder %v126_v47, 0.0  ;;  %v201_v19 = vsel %vm169_vm0, %v150_v14, %v185_v16 }
  0xb5   :  { %v193_v49 = vsel %vm161_vm8, %v126_v47, %v177_v48 }
  0xb6   :  { %415 = vmatmul.msk.f32.gmra.mxu1 %vm211_vm2, %v193_v49  ;;  %v152_v17 = vpop.f32.mrf.mxu3 }
  0xb7   :  { %v153_v18 = vadd.f32 %v544_v21, %v152_v17 }
  0xb8   :  { %v128_v51 = vpop.f32.mrf.mxu0 }
  0xb9   :  { %v129_v52 = vadd.f32 %v544_v21, %v128_v51  ;;  %v186_v20 = vmul.f32 0.1, %v153_v18  ;;  %vm170_vm1 = vcmp.ge.f32.partialorder %v153_v18, 0.0 }
  0xbb   :  { %v178_v53 = vmul.f32 0.1, %v129_v52  ;;  %vm162_vm9 = vcmp.ge.f32.partialorder %v129_v52, 0.0  ;;  %v202_v22 = vsel %vm170_vm1, %v153_v18, %v186_v20 }
  0xbd   :  { %v194_v54 = vsel %vm162_vm9, %v129_v52, %v178_v53 }
  0xbe   :  { %416 = vmatmul.msk.f32.gmra.mxu1 %vm211_vm2, %v194_v54 }
  0xc0   :  { %v131_v55 = vpop.f32.mrf.mxu0 }
  0xc1   :  { %v132_v57 = vadd.f32 %v544_v21, %v131_v55 }
  0xc3   :  { %v179_v58 = vmul.f32 0.1, %v132_v57  ;;  %vm163_vm10 = vcmp.ge.f32.partialorder %v132_v57, 0.0 }
  0xc5   :  { %v195_v60 = vsel %vm163_vm10, %v132_v57, %v179_v58 }
  0xc6   :  { %417 = vmatmul.msk.f32.vlgmr.msra.gmra.mxu2 %vm211_vm2, %v195_v60 }
  0xce   :  { %418 = vmatmul.msk.f32.gmra.mxu2 %vm211_vm2, %v196_v0 }
  0xd6   :  { %419 = vmatmul.msk.f32.gmra.mxu2 %vm211_vm2, %v197_v4 }
  0xde   :  { %420 = vmatmul.msk.f32.gmra.mxu2 %vm211_vm2, %v198_v7 }
  0xe6   :  { %421 = vmatmul.msk.f32.gmra.mxu2 %vm211_vm2, %v199_v11 }
  0xee   :  { %422 = vmatmul.msk.f32.gmra.mxu2 %vm211_vm2, %v200_v15 }
  0xf6   :  { %423 = vmatmul.msk.f32.gmra.mxu2 %vm211_vm2, %v201_v19 }
  0xfe   :  { %424 = vmatmul.msk.f32.gmra.mxu2 %vm211_vm2, %v202_v22 }
 0x103   :  { %v277_v24 = vpop.f32.mrf.mxu1 }
 0x104   :  { %v278_v25 = vadd.f32 %v581_v23, %v277_v24 }
 0x106   :  { %vm325_vm3 = vcmp.ge.f32.partialorder %v278_v25, 0.0  ;;  %v341_v26 = vmul.f32 0.1, %v278_v25 }
 0x108   :  { %v357_v27 = vsel %vm325_vm3, %v278_v25, %v341_v26 }
 0x109   :  { %373 = vst.msk [vmem:[%s668_s5] sm:$0xff] %vm211_vm2, %v357_v27 }
 0x10b   :  { %v280_v21 = vpop.f32.mrf.mxu1 }
 0x10c   :  { %v281_v28 = vadd.f32 %v581_v23, %v280_v21 }
 0x10e   :  { %vm326_vm4 = vcmp.ge.f32.partialorder %v281_v28, 0.0  ;;  %v342_v29 = vmul.f32 0.1, %v281_v28 }
 0x110   :  { %v358_v30 = vsel %vm326_vm4, %v281_v28, %v342_v29 }
 0x111   :  { %374 = vst.msk [vmem:[%s668_s5 + $0x8] sm:$0xff] %vm211_vm2, %v358_v30 }
 0x113   :  { %v283_v31 = vpop.f32.mrf.mxu1 }
 0x114   :  { %v284_v32 = vadd.f32 %v581_v23, %v283_v31 }
 0x116   :  { %vm327_vm5 = vcmp.ge.f32.partialorder %v284_v32, 0.0  ;;  %v343_v33 = vmul.f32 0.1, %v284_v32 }
 0x118   :  { %v359_v34 = vsel %vm327_vm5, %v284_v32, %v343_v33 }
 0x119   :  { %375 = vst.msk [vmem:[%s668_s5 + $0x10] sm:$0xff] %vm211_vm2, %v359_v34 }
 0x11b   :  { %v286_v35 = vpop.f32.mrf.mxu1 }
 0x11c   :  { %v287_v36 = vadd.f32 %v581_v23, %v286_v35 }
 0x11e   :  { %vm328_vm6 = vcmp.ge.f32.partialorder %v287_v36, 0.0  ;;  %v344_v37 = vmul.f32 0.1, %v287_v36 }
 0x120   :  { %v360_v38 = vsel %vm328_vm6, %v287_v36, %v344_v37 }
 0x121   :  { %376 = vst.msk [vmem:[%s668_s5 + $0x18] sm:$0xff] %vm211_vm2, %v360_v38 }
 0x123   :  { %v289_v39 = vpop.f32.mrf.mxu1 }
 0x124   :  { %v290_v40 = vadd.f32 %v581_v23, %v289_v39 }
 0x126   :  { %vm329_vm7 = vcmp.ge.f32.partialorder %v290_v40, 0.0  ;;  %v345_v41 = vmul.f32 0.1, %v290_v40 }
 0x128   :  { %v361_v42 = vsel %vm329_vm7, %v290_v40, %v345_v41 }
 0x129   :  { %377 = vst.msk [vmem:[%s668_s5 + $0x20] sm:$0xff] %vm211_vm2, %v361_v42 }
 0x12b   :  { %v292_v43 = vpop.f32.mrf.mxu1 }
 0x12c   :  { %v293_v44 = vadd.f32 %v581_v23, %v292_v43 }
 0x12e   :  { %vm330_vm8 = vcmp.ge.f32.partialorder %v293_v44, 0.0  ;;  %v346_v45 = vmul.f32 0.1, %v293_v44 }
 0x130   :  { %v362_v46 = vsel %vm330_vm8, %v293_v44, %v346_v45 }
 0x131   :  { %378 = vst.msk [vmem:[%s668_s5 + $0x28] sm:$0xff] %vm211_vm2, %v362_v46 }
 0x133   :  { %v295_v47 = vpop.f32.mrf.mxu1 }
 0x134   :  { %v296_v48 = vadd.f32 %v581_v23, %v295_v47 }
 0x136   :  { %vm331_vm9 = vcmp.ge.f32.partialorder %v296_v48, 0.0  ;;  %v347_v49 = vmul.f32 0.1, %v296_v48 }
 0x138   :  { %v363_v50 = vsel %vm331_vm9, %v296_v48, %v347_v49 }
 0x139   :  { %379 = vst.msk [vmem:[%s668_s5 + $0x30] sm:$0xff] %vm211_vm2, %v363_v50 }
 0x13b   :  { %v298_v51 = vpop.f32.mrf.mxu1 }
 0x13c   :  { %v299_v52 = vadd.f32 %v581_v23, %v298_v51 }
 0x13e   :  { %vm332_vm10 = vcmp.ge.f32.partialorder %v299_v52, 0.0  ;;  %v348_v53 = vmul.f32 0.1, %v299_v52 }
 0x140   :  { %v364_v54 = vsel %vm332_vm10, %v299_v52, %v348_v53 }
 0x141   :  { %380 = vst.msk [vmem:[%s668_s5 + $0x38] sm:$0xff] %vm211_vm2, %v364_v54 }
 0x149   :  { %v301_v55 = vpop.f32.mrf.mxu2 }
 0x14a   :  { %v302_v56 = vadd.f32 %v581_v23, %v301_v55 }
 0x14c   :  { %vm333_vm11 = vcmp.ge.f32.partialorder %v302_v56, 0.0  ;;  %v349_v57 = vmul.f32 0.1, %v302_v56 }
 0x14e   :  { %v365_v58 = vsel %vm333_vm11, %v302_v56, %v349_v57 }
 0x14f   :  { %381 = vst.msk [vmem:[%s668_s5 + $0x40] sm:$0xff] %vm211_vm2, %v365_v58 }
 0x151   :  { %v304_v59 = vpop.f32.mrf.mxu2 }
 0x152   :  { %v305_v60 = vadd.f32 %v581_v23, %v304_v59 }
 0x154   :  { %vm334_vm12 = vcmp.ge.f32.partialorder %v305_v60, 0.0  ;;  %v350_v61 = vmul.f32 0.1, %v305_v60 }
 0x156   :  { %v366_v62 = vsel %vm334_vm12, %v305_v60, %v350_v61 }
 0x157   :  { %382 = vst.msk [vmem:[%s668_s5 + $0x48] sm:$0xff] %vm211_vm2, %v366_v62 }
 0x159   :  { %v307_v63 = vpop.f32.mrf.mxu2 }
 0x15a   :  { %v308_v0 = vadd.f32 %v581_v23, %v307_v63 }
 0x15c   :  { %vm335_vm13 = vcmp.ge.f32.partialorder %v308_v0, 0.0  ;;  %v351_v1 = vmul.f32 0.1, %v308_v0 }
 0x15e   :  { %v367_v2 = vsel %vm335_vm13, %v308_v0, %v351_v1 }
 0x15f   :  { %383 = vst.msk [vmem:[%s668_s5 + $0x50] sm:$0xff] %vm211_vm2, %v367_v2 }
 0x161   :  { %v310_v3 = vpop.f32.mrf.mxu2 }
 0x162   :  { %v311_v4 = vadd.f32 %v581_v23, %v310_v3 }
 0x164   :  { %vm336_vm14 = vcmp.ge.f32.partialorder %v311_v4, 0.0  ;;  %v352_v5 = vmul.f32 0.1, %v311_v4 }
 0x166   :  { %v368_v6 = vsel %vm336_vm14, %v311_v4, %v352_v5 }
 0x167   :  { %384 = vst.msk [vmem:[%s668_s5 + $0x58] sm:$0xff] %vm211_vm2, %v368_v6 }
 0x169   :  { %v313_v7 = vpop.f32.mrf.mxu2 }
 0x16a   :  { %v314_v8 = vadd.f32 %v581_v23, %v313_v7 }
 0x16c   :  { %vm337_vm15 = vcmp.ge.f32.partialorder %v314_v8, 0.0  ;;  %v353_v9 = vmul.f32 0.1, %v314_v8 }
 0x16e   :  { %v369_v10 = vsel %vm337_vm15, %v314_v8, %v353_v9 }
 0x16f   :  { %385 = vst.msk [vmem:[%s668_s5 + $0x60] sm:$0xff] %vm211_vm2, %v369_v10 }
 0x171   :  { %v316_v11 = vpop.f32.mrf.mxu2 }
 0x172   :  { %v317_v12 = vadd.f32 %v581_v23, %v316_v11 }
 0x174   :  { %vm338_vm0 = vcmp.ge.f32.partialorder %v317_v12, 0.0  ;;  %v354_v13 = vmul.f32 0.1, %v317_v12 }
 0x176   :  { %v370_v14 = vsel %vm338_vm0, %v317_v12, %v354_v13 }
 0x177   :  { %386 = vst.msk [vmem:[%s668_s5 + $0x68] sm:$0xff] %vm211_vm2, %v370_v14 }
 0x179   :  { %v319_v15 = vpop.f32.mrf.mxu2 }
 0x17a   :  { %v320_v16 = vadd.f32 %v581_v23, %v319_v15 }
 0x17c   :  { %vm339_vm1 = vcmp.ge.f32.partialorder %v320_v16, 0.0  ;;  %v355_v17 = vmul.f32 0.1, %v320_v16 }
 0x17e   :  { %v371_v18 = vsel %vm339_vm1, %v320_v16, %v355_v17 }
 0x17f   :  { %387 = vst.msk [vmem:[%s668_s5 + $0x70] sm:$0xff] %vm211_vm2, %v371_v18 }
 0x181   :  { %v322_v19 = vpop.f32.mrf.mxu2 }
 0x182   :  { %v323_v20 = vadd.f32 %v581_v23, %v322_v19 }
 0x184   :  { %vm340_vm3 = vcmp.ge.f32.partialorder %v323_v20, 0.0  ;;  %v356_v22 = vmul.f32 0.1, %v323_v20 }
 0x186   :  { %v372_v24 = vsel %vm340_vm3, %v323_v20, %v356_v22 }
 0x187   :  { %388 = vst.msk [vmem:[%s668_s5 + $0x78] sm:$0xff] %vm211_vm2, %v372_v24 }

// kernel: gnn_node_forward.8
= control target key start
LH: loop header
LB: loop body
LE: loop exit
PB: predicated region body
PF: predicated region fallthrough
CT: control target
= control target key end

     0   :  { %10 = vsyncpa [#allocation3], 0  ;;  %s1109_s0 = inlined_call_operand.vmem [shape: f32[256,16], index: 0, kind: input, shape index: {}]   ;;  %s1110_s1 = inlined_call_operand.vmem [shape: f32[16,64], index: 1, kind: input, shape index: {}]   ;;  %s1111_s2 = inlined_call_operand.hbm [shape: f32[1,64], index: 2, kind: input, shape index: {}]   ;;  %s1112_s3 = inlined_call_operand.vmem [shape: f32[64,32], index: 3, kind: input, shape index: {}]   ;;  %s1113_s4 = inlined_call_operand.hbm [shape: f32[1,32], index: 4, kind: input, shape index: {}]   ;;  %s1114_s5 = inlined_call_operand.vmem [shape: f32[256,32], index: 5, kind: output, shape index: {}]  }
   0x1   :  { %11 = vsyncpa [#allocation5], 0  ;;  %s907_s18 = smov 0  }
   0x2 LB: > { %s173_s21 = sshll.u32 %s1111_s2, 4  ;;  %s711_s22 = sadd.s32 4294967295, %s873_s18   ;;  %s873_s18 = sphi %s907_s18, %s17_s18   ;;  %s174_s21 = int_to_ptr.hbm [resolvable:$true] %s173_s21 }
   0x3   : > { %p713_p0 = scmp.ge.s32.totalorder %s873_s18, 1  ;;  %p158_p1 = scmp.lt.s32.totalorder %s873_s18, 3 }
   0x4   : > { %p918_p2 = scmp.eq.s32.totalorder %s711_s22, 0  ;;  %s875_s25 = smov [#allocation2]  }
   0x5   : > { %p922_p3 = pnand %p713_p0, %p158_p1  ;;  %s175_s26 = sshll.u32 %s875_s25, 4  ;;  %s176_s26 = int_to_ptr.vmem [resolvable:$true] %s175_s26 }
   0x6   : > { %s188_s29 = sshll.u32 %s1113_s4, 4  ;;  %s876_s30 = smov [#allocation4]   ;;  %s189_s29 = int_to_ptr.hbm [resolvable:$true] %s188_s29 }
   0x7   : > { %p776_p4 = pneg %p922_p3  ;;  %s190_s6 = sshll.u32 %s876_s30, 4  ;;  %s191_s6 = int_to_ptr.vmem [resolvable:$true] %s190_s6 }
   0x8   : > { %212 = sbr.rel (%p922_p3) target bundleno = 412 (0x19c), region = 40 }
   0x9   : > { %p777_p5 = pnand %p918_p2, %p776_p4 }
   0xb   : > { %779 = dma.hbm_to_vmem [thread:$0]  (!%p777_p5), %s174_s21, 16, %s176_s26, [#allocation3]  }
   0xc   : > { %782 = dma.hbm_to_vmem [thread:$0]  (!%p777_p5), %s189_s29, 16, %s191_s6, [#allocation5]  }
   0xd   : > { %864 = dma.done.wait (%p918_p2), [#allocation3], 16  }
   0xe   : > { %866 = vsyncadd (%p918_p2), [#allocation3], 4294967280 }
   0xf   : > { %868 = dma.done.wait (%p918_p2), [#allocation5], 16  }
  0x10   : > { %870 = vsyncadd (%p918_p2), [#allocation5], 4294967280  ;;  %s720_s7 = sshll.u32 %s711_s22, 4  ;;  %v275_v0 = vld [vmem:[%s1110_s1 + $0x8] sm:$0xff]  ;;  %v274_v1 = vld [vmem:[%s1110_s1] sm:$0xff]  ;;  %vm280_vm0 = vcmask 130048  }
  0x11   : > { %p247_p6 = scmp.lt.s32.totalorder %s720_s7, 31  ;;  %343 = vmatpush.msra.mxu0 %v275_v0  ;;  %758 = vmatpush.msra.mxu3 %v275_v0  ;;  %v449_v12 = vld [vmem:[%s1112_s3 + $0x38] sm:$0xff]  ;;  %v448_v13 = vld [vmem:[%s1112_s3 + $0x30] sm:$0xff]  ;;  %v447_v14 = vld [vmem:[%s1112_s3 + $0x28] sm:$0xff]  ;;  %vm454_vm2 = vcmask 523264  }
  0x12   : > { %511 = vmatpush.msra.mxu1 %v449_v12  ;;  %760 = vmatpush.msra.mxu2 %v449_v12  ;;  %v446_v15 = vld [vmem:[%s1112_s3 + $0x20] sm:$0xff]  ;;  %v445_v18 = vld [vmem:[%s1112_s3 + $0x18] sm:$0xff]  ;;  %v444_v23 = vld [vmem:[%s1112_s3 + $0x10] sm:$0xff] }
  0x13   : > { %s1118_s7 = smov (!%p247_p6, %s720_s7), 31  ;;  %344 = vmatpush.msra.mxu0 %v274_v1  ;;  %759 = vmatpush.msra.mxu3 %v274_v1  ;;  %v443_v24 = vld [vmem:[%s1112_s3 + $0x8] sm:$0xff]  ;;  %v442_v25 = vld [vmem:[%s1112_s3] sm:$0xff] }
  0x14   : > { %s721_s8 = sshll.u32 %s1118_s7, 3  ;;  %512 = vmatpush.msra.mxu1 %v448_v13  ;;  %761 = vmatpush.msra.mxu2 %v448_v13  ;;  %v1015_v26 = vld [vmem:[#allocation2] ss:$0 sm:$0xff] }
  0x15   : > { %s951_s11 = scalar_lea.vmem %s1109_s0, %s721_s8  ;;  %s1057_s12 = scalar_lea.vmem %s1114_s5, %s721_s8 }
  0x16   : > { %v258_v2 = vld [vmem:[%s951_s11] sm:$0xff]  ;;  %v259_v3 = vld [vmem:[%s951_s11 + $0x8] sm:$0xff]  ;;  %v260_v4 = vld [vmem:[%s951_s11 + $0x10] sm:$0xff]  ;;  %513 = vmatpush.msra.mxu1 %v447_v14  ;;  %762 = vmatpush.msra.mxu2 %v447_v14 }
  0x17   : > { %724 = vmatmul.msk.f32.vlgmr.msra.gmra.mxu0 %vm280_vm0, %v258_v2  ;;  %v261_v5 = vld [vmem:[%s951_s11 + $0x18] sm:$0xff]  ;;  %v262_v6 = vld [vmem:[%s951_s11 + $0x20] sm:$0xff]  ;;  %v267_v7 = vld [vmem:[%s951_s11 + $0x48] sm:$0xff] }
  0x18   : > { %733 = vmatmul.msk.f32.vlgmr.msra.gmra.mxu3 %vm280_vm0, %v267_v7  ;;  %v263_v8 = vld [vmem:[%s951_s11 + $0x28] sm:$0xff]  ;;  %v268_v9 = vld [vmem:[%s951_s11 + $0x50] sm:$0xff]  ;;  %v269_v11 = vld [vmem:[%s951_s11 + $0x58] sm:$0xff]  ;;  %514 = vmatpush.msra.mxu1 %v446_v15 }
  0x19   : > { %v264_v10 = vld [vmem:[%s951_s11 + $0x30] sm:$0xff]  ;;  %v265_v16 = vld [vmem:[%s951_s11 + $0x38] sm:$0xff]  ;;  %v270_v17 = vld [vmem:[%s951_s11 + $0x60] sm:$0xff]  ;;  %763 = vmatpush.msra.mxu2 %v446_v15 }
  0x1a   : > { %515 = vmatpush.msra.mxu1 %v445_v18  ;;  %v266_v19 = vld [vmem:[%s951_s11 + $0x40] sm:$0xff]  ;;  %v271_v20 = vld [vmem:[%s951_s11 + $0x68] sm:$0xff]  ;;  %v272_v21 = vld [vmem:[%s951_s11 + $0x70] sm:$0xff] }
  0x1b   : > { %764 = vmatpush.msra.mxu2 %v445_v18  ;;  %v273_v22 = vld [vmem:[%s951_s11 + $0x78] sm:$0xff] }
  0x1c   : > { %516 = vmatpush.msra.mxu1 %v444_v23 }
  0x1d   : > { %765 = vmatpush.msra.mxu2 %v444_v23 }
  0x1e   : > { %517 = vmatpush.msra.mxu1 %v443_v24 }
  0x1f   : > { %725 = vmatmul.msk.f32.gmra.mxu0 %vm280_vm0, %v259_v3  ;;  %766 = vmatpush.msra.mxu2 %v443_v24 }
  0x20   : > { %734 = vmatmul.msk.f32.gmra.mxu3 %vm280_vm0, %v268_v9  ;;  %518 = vmatpush.msra.mxu1 %v442_v25 }
  0x21   : > { %767 = vmatpush.msra.mxu2 %v442_v25 }
  0x27   : > { %726 = vmatmul.msk.f32.gmra.mxu0 %vm280_vm0, %v260_v4 }
  0x28   : > { %735 = vmatmul.msk.f32.gmra.mxu3 %vm280_vm0, %v269_v11 }
  0x2f   : > { %727 = vmatmul.msk.f32.gmra.mxu0 %vm280_vm0, %v261_v5 }
  0x30   : > { %736 = vmatmul.msk.f32.gmra.mxu3 %vm280_vm0, %v270_v17 }
  0x37   : > { %728 = vmatmul.msk.f32.gmra.mxu0 %vm280_vm0, %v262_v6 }
  0x38   : > { %737 = vmatmul.msk.f32.gmra.mxu3 %vm280_vm0, %v271_v20 }
  0x3f   : > { %729 = vmatmul.msk.f32.gmra.mxu0 %vm280_vm0, %v263_v8 }
  0x40   : > { %738 = vmatmul.msk.f32.gmra.mxu3 %vm280_vm0, %v272_v21 }
  0x47   : > { %730 = vmatmul.msk.f32.gmra.mxu0 %vm280_vm0, %v264_v10 }
  0x48   : > { %739 = vmatmul.msk.f32.gmra.mxu3 %vm280_vm0, %v273_v22 }
  0x4f   : > { %731 = vmatmul.msk.f32.gmra.mxu0 %vm280_vm0, %v265_v16 }
  0x57   : > { %732 = vmatmul.msk.f32.gmra.mxu0 %vm280_vm0, %v266_v19 }
  0x94   : > { %v346_v27 = vpop.f32.mrf.mxu0 }
  0x95   : > { %v347_v28 = vadd.f32 %v1015_v26, %v346_v27 }
  0x97   : > { %v410_v29 = vmul.f32 0.1, %v347_v28  ;;  %vm394_vm1 = vcmp.ge.f32.partialorder %v347_v28, 0.0 }
  0x99   : > { %v426_v30 = vsel %vm394_vm1, %v347_v28, %v410_v29  ;;  %v1049_v28 = vld [vmem:[#allocation4] ss:$0 sm:$0xff] }
  0x9a   : > { %740 = vmatmul.msk.f32.vlgmr.msra.gmra.mxu1 %vm454_vm2, %v426_v30 }
  0x9b   : > { %v373_v55 = vpop.f32.mrf.mxu3 }
  0x9c   : > { %v349_v31 = vpop.f32.mrf.mxu0  ;;  %v374_v0 = vadd.f32 %v1015_v26, %v373_v55 }
  0x9d   : > { %v350_v32 = vadd.f32 %v1015_v26, %v349_v31 }
  0x9e   : > { %v419_v2 = vmul.f32 0.1, %v374_v0  ;;  %vm403_vm11 = vcmp.ge.f32.partialorder %v374_v0, 0.0 }
  0x9f   : > { %v411_v33 = vmul.f32 0.1, %v350_v32  ;;  %vm395_vm3 = vcmp.ge.f32.partialorder %v350_v32, 0.0 }
  0xa0   : > { %v435_v5 = vsel %vm403_vm11, %v374_v0, %v419_v2 }
  0xa1   : > { %v427_v34 = vsel %vm395_vm3, %v350_v32, %v411_v33 }
  0xa2   : > { %741 = vmatmul.msk.f32.gmra.mxu1 %vm454_vm2, %v427_v34 }
  0xa3   : > { %v376_v61 = vpop.f32.mrf.mxu3 }
  0xa4   : > { %v352_v35 = vpop.f32.mrf.mxu0  ;;  %v377_v4 = vadd.f32 %v1015_v26, %v376_v61 }
  0xa5   : > { %v353_v36 = vadd.f32 %v1015_v26, %v352_v35 }
  0xa6   : > { %v420_v6 = vmul.f32 0.1, %v377_v4  ;;  %vm404_vm12 = vcmp.ge.f32.partialorder %v377_v4, 0.0 }
  0xa7   : > { %v412_v37 = vmul.f32 0.1, %v353_v36  ;;  %vm396_vm4 = vcmp.ge.f32.partialorder %v353_v36, 0.0 }
  0xa8   : > { %v436_v9 = vsel %vm404_vm12, %v377_v4, %v420_v6 }
  0xa9   : > { %v428_v38 = vsel %vm396_vm4, %v353_v36, %v412_v37  ;;  %vm616_vm4 = vcmask 261120  }
  0xaa   : > { %742 = vmatmul.msk.f32.gmra.mxu1 %vm454_vm2, %v428_v38 }
  0xab   : > { %v379_v3 = vpop.f32.mrf.mxu3 }
  0xac   : > { %v355_v39 = vpop.f32.mrf.mxu0  ;;  %v380_v8 = vadd.f32 %v1015_v26, %v379_v3 }
  0xad   : > { %v356_v40 = vadd.f32 %v1015_v26, %v355_v39 }
  0xae   : > { %v421_v10 = vmul.f32 0.1, %v380_v8  ;;  %vm405_vm13 = vcmp.ge.f32.partialorder %v380_v8, 0.0 }
  0xaf   : > { %v413_v41 = vmul.f32 0.1, %v356_v40  ;;  %vm397_vm5 = vcmp.ge.f32.partialorder %v356_v40, 0.0 }
  0xb0   : > { %v437_v12 = vsel %vm405_vm13, %v380_v8, %v421_v10 }
  0xb1   : > { %v429_v42 = vsel %vm397_vm5, %v356_v40, %v413_v41 }
  0xb2   : > { %743 = vmatmul.msk.f32.gmra.mxu1 %vm454_vm2, %v429_v42 }
  0xb3   : > { %v382_v7 = vpop.f32.mrf.mxu3 }
  0xb4   : > { %v358_v43 = vpop.f32.mrf.mxu0  ;;  %v383_v11 = vadd.f32 %v1015_v26, %v382_v7 }
  0xb5   : > { %v359_v44 = vadd.f32 %v1015_v26, %v358_v43 }
  0xb6   : > { %v422_v14 = vmul.f32 0.1, %v383_v11  ;;  %vm406_vm14 = vcmp.ge.f32.partialorder %v383_v11, 0.0 }
  0xb7   : > { %v414_v45 = vmul.f32 0.1, %v359_v44  ;;  %vm398_vm6 = vcmp.ge.f32.partialorder %v359_v44, 0.0 }
  0xb8   : > { %v438_v16 = vsel %vm406_vm14, %v383_v11, %v422_v14 }
  0xb9   : > { %v430_v46 = vsel %vm398_vm6, %v359_v44, %v414_v45 }
  0xba   : > { %744 = vmatmul.msk.f32.gmra.mxu1 %vm454_vm2, %v430_v46 }
  0xbb   : > { %v385_v13 = vpop.f32.mrf.mxu3 }
  0xbc   : > { %v361_v47 = vpop.f32.mrf.mxu0  ;;  %v386_v15 = vadd.f32 %v1015_v26, %v385_v13 }
  0xbd   : > { %v362_v48 = vadd.f32 %v1015_v26, %v361_v47 }
  0xbe   : > { %v423_v18 = vmul.f32 0.1, %v386_v15  ;;  %vm407_vm15 = vcmp.ge.f32.partialorder %v386_v15, 0.0 }
  0xbf   : > { %v415_v49 = vmul.f32 0.1, %v362_v48  ;;  %vm399_vm7 = vcmp.ge.f32.partialorder %v362_v48, 0.0 }
  0xc0   : > { %v439_v20 = vsel %vm407_vm15, %v386_v15, %v423_v18 }
  0xc1   : > { %v431_v50 = vsel %vm399_vm7, %v362_v48, %v415_v49 }
  0xc2   : > { %745 = vmatmul.msk.f32.gmra.mxu1 %vm454_vm2, %v431_v50 }
  0xc3   : > { %v388_v17 = vpop.f32.mrf.mxu3 }
  0xc4   : > { %v364_v51 = vpop.f32.mrf.mxu0  ;;  %v389_v19 = vadd.f32 %v1015_v26, %v388_v17 }
  0xc5   : > { %v365_v52 = vadd.f32 %v1015_v26, %v364_v51 }
  0xc6   : > { %v424_v21 = vmul.f32 0.1, %v389_v19  ;;  %vm408_vm0 = vcmp.ge.f32.partialorder %v389_v19, 0.0 }
  0xc7   : > { %v416_v53 = vmul.f32 0.1, %v365_v52  ;;  %vm400_vm8 = vcmp.ge.f32.partialorder %v365_v52, 0.0 }
  0xc8   : > { %v440_v24 = vsel %vm408_vm0, %v389_v19, %v424_v21 }
  0xc9   : > { %v432_v54 = vsel %vm400_vm8, %v365_v52, %v416_v53 }
  0xca   : > { %746 = vmatmul.msk.f32.gmra.mxu1 %vm454_vm2, %v432_v54 }
  0xcb   : > { %v391_v22 = vpop.f32.mrf.mxu3 }
  0xcc   : > { %v367_v56 = vpop.f32.mrf.mxu0  ;;  %v392_v23 = vadd.f32 %v1015_v26, %v391_v22 }
  0xcd   : > { %v368_v57 = vadd.f32 %v1015_v26, %v367_v56 }
  0xce   : > { %v425_v25 = vmul.f32 0.1, %v392_v23  ;;  %vm409_vm1 = vcmp.ge.f32.partialorder %v392_v23, 0.0 }
  0xcf   : > { %v417_v58 = vmul.f32 0.1, %v368_v57  ;;  %vm401_vm9 = vcmp.ge.f32.partialorder %v368_v57, 0.0 }
  0xd0   : > { %v441_v27 = vsel %vm409_vm1, %v392_v23, %v425_v25 }
  0xd1   : > { %v433_v59 = vsel %vm401_vm9, %v368_v57, %v417_v58 }
  0xd2   : > { %747 = vmatmul.msk.f32.gmra.mxu1 %vm454_vm2, %v433_v59 }
  0xd4   : > { %v370_v60 = vpop.f32.mrf.mxu0 }
  0xd5   : > { %v371_v62 = vadd.f32 %v1015_v26, %v370_v60 }
  0xd7   : > { %v418_v63 = vmul.f32 0.1, %v371_v62  ;;  %vm402_vm10 = vcmp.ge.f32.partialorder %v371_v62, 0.0 }
  0xd9   : > { %v434_v1 = vsel %vm402_vm10, %v371_v62, %v418_v63 }
  0xda   : > { %748 = vmatmul.msk.f32.vlgmr.msra.gmra.mxu2 %vm454_vm2, %v434_v1 }
  0xe2   : > { %749 = vmatmul.msk.f32.gmra.mxu2 %vm454_vm2, %v435_v5 }
  0xea   : > { %750 = vmatmul.msk.f32.gmra.mxu2 %vm454_vm2, %v436_v9 }
  0xf2   : > { %751 = vmatmul.msk.f32.gmra.mxu2 %vm454_vm2, %v437_v12 }
  0xfa   : > { %752 = vmatmul.msk.f32.gmra.mxu2 %vm454_vm2, %v438_v16 }
 0x102   : > { %753 = vmatmul.msk.f32.gmra.mxu2 %vm454_vm2, %v439_v20 }
 0x10a   : > { %754 = vmatmul.msk.f32.gmra.mxu2 %vm454_vm2, %v440_v24 }
 0x112   : > { %755 = vmatmul.msk.f32.gmra.mxu2 %vm454_vm2, %v441_v27 }
 0x117   : > { %v520_v29 = vpop.f32.mrf.mxu1 }
 0x118   : > { %v521_v30 = vadd.f32 %v1049_v28, %v520_v29 }
 0x11a   : > { %vm568_vm3 = vcmp.ge.f32.partialorder %v521_v30, 0.0  ;;  %v584_v26 = vmul.f32 0.1, %v521_v30 }
 0x11c   : > { %v600_v31 = vsel %vm568_vm3, %v521_v30, %v584_v26 }
 0x11d   : > { %617 = vst.msk [vmem:[%s1057_s12] sm:$0xff] %vm616_vm4, %v600_v31 }
 0x11f   : > { %v523_v32 = vpop.f32.mrf.mxu1 }
 0x120   : > { %v524_v33 = vadd.f32 %v1049_v28, %v523_v32 }
 0x122   : > { %vm569_vm2 = vcmp.ge.f32.partialorder %v524_v33, 0.0  ;;  %v585_v34 = vmul.f32 0.1, %v524_v33 }
 0x124   : > { %v601_v35 = vsel %vm569_vm2, %v524_v33, %v585_v34 }
 0x125   : > { %618 = vst.msk [vmem:[%s1057_s12 + $0x8] sm:$0xff] %vm616_vm4, %v601_v35 }
 0x127   : > { %v526_v36 = vpop.f32.mrf.mxu1 }
 0x128   : > { %v527_v37 = vadd.f32 %v1049_v28, %v526_v36 }
 0x12a   : > { %vm570_vm5 = vcmp.ge.f32.partialorder %v527_v37, 0.0  ;;  %v586_v38 = vmul.f32 0.1, %v527_v37 }
 0x12c   : > { %v602_v39 = vsel %vm570_vm5, %v527_v37, %v586_v38 }
 0x12d   : > { %619 = vst.msk [vmem:[%s1057_s12 + $0x10] sm:$0xff] %vm616_vm4, %v602_v39 }
 0x12f   : > { %v529_v40 = vpop.f32.mrf.mxu1 }
 0x130   : > { %v530_v41 = vadd.f32 %v1049_v28, %v529_v40 }
 0x132   : > { %vm571_vm6 = vcmp.ge.f32.partialorder %v530_v41, 0.0  ;;  %v587_v42 = vmul.f32 0.1, %v530_v41 }
 0x134   : > { %v603_v43 = vsel %vm571_vm6, %v530_v41, %v587_v42 }
 0x135   : > { %620 = vst.msk [vmem:[%s1057_s12 + $0x18] sm:$0xff] %vm616_vm4, %v603_v43 }
 0x137   : > { %v532_v44 = vpop.f32.mrf.mxu1 }
 0x138   : > { %v533_v45 = vadd.f32 %v1049_v28, %v532_v44 }
 0x13a   : > { %vm572_vm7 = vcmp.ge.f32.partialorder %v533_v45, 0.0  ;;  %v588_v46 = vmul.f32 0.1, %v533_v45 }
 0x13c   : > { %v604_v47 = vsel %vm572_vm7, %v533_v45, %v588_v46 }
 0x13d   : > { %621 = vst.msk [vmem:[%s1057_s12 + $0x20] sm:$0xff] %vm616_vm4, %v604_v47 }
 0x13f   : > { %v535_v48 = vpop.f32.mrf.mxu1 }
 0x140   : > { %v536_v49 = vadd.f32 %v1049_v28, %v535_v48 }
 0x142   : > { %vm573_vm8 = vcmp.ge.f32.partialorder %v536_v49, 0.0  ;;  %v589_v50 = vmul.f32 0.1, %v536_v49 }
 0x144   : > { %v605_v51 = vsel %vm573_vm8, %v536_v49, %v589_v50 }
 0x145   : > { %622 = vst.msk [vmem:[%s1057_s12 + $0x28] sm:$0xff] %vm616_vm4, %v605_v51 }
 0x147   : > { %v538_v52 = vpop.f32.mrf.mxu1 }
 0x148   : > { %v539_v53 = vadd.f32 %v1049_v28, %v538_v52 }
 0x14a   : > { %vm574_vm9 = vcmp.ge.f32.partialorder %v539_v53, 0.0  ;;  %v590_v54 = vmul.f32 0.1, %v539_v53 }
 0x14c   : > { %v606_v55 = vsel %vm574_vm9, %v539_v53, %v590_v54 }
 0x14d   : > { %623 = vst.msk [vmem:[%s1057_s12 + $0x30] sm:$0xff] %vm616_vm4, %v606_v55 }
 0x14f   : > { %v541_v56 = vpop.f32.mrf.mxu1 }
 0x150   : > { %v542_v57 = vadd.f32 %v1049_v28, %v541_v56 }
 0x152   : > { %vm575_vm10 = vcmp.ge.f32.partialorder %v542_v57, 0.0  ;;  %v591_v58 = vmul.f32 0.1, %v542_v57 }
 0x154   : > { %v607_v59 = vsel %vm575_vm10, %v542_v57, %v591_v58 }
 0x155   : > { %624 = vst.msk [vmem:[%s1057_s12 + $0x38] sm:$0xff] %vm616_vm4, %v607_v59 }
 0x15d   : > { %v544_v60 = vpop.f32.mrf.mxu2 }
 0x15e   : > { %v545_v61 = vadd.f32 %v1049_v28, %v544_v60 }
 0x160   : > { %vm576_vm11 = vcmp.ge.f32.partialorder %v545_v61, 0.0  ;;  %v592_v62 = vmul.f32 0.1, %v545_v61 }
 0x162   : > { %v608_v63 = vsel %vm576_vm11, %v545_v61, %v592_v62 }
 0x163   : > { %625 = vst.msk [vmem:[%s1057_s12 + $0x40] sm:$0xff] %vm616_vm4, %v608_v63 }
 0x165   : > { %v547_v0 = vpop.f32.mrf.mxu2 }
 0x166   : > { %v548_v1 = vadd.f32 %v1049_v28, %v547_v0 }
 0x168   : > { %vm577_vm12 = vcmp.ge.f32.partialorder %v548_v1, 0.0  ;;  %v593_v2 = vmul.f32 0.1, %v548_v1 }
 0x16a   : > { %v609_v3 = vsel %vm577_vm12, %v548_v1, %v593_v2 }
 0x16b   : > { %626 = vst.msk [vmem:[%s1057_s12 + $0x48] sm:$0xff] %vm616_vm4, %v609_v3 }
 0x16d   : > { %v550_v4 = vpop.f32.mrf.mxu2 }
 0x16e   : > { %v551_v5 = vadd.f32 %v1049_v28, %v550_v4 }
 0x170   : > { %vm578_vm13 = vcmp.ge.f32.partialorder %v551_v5, 0.0  ;;  %v594_v6 = vmul.f32 0.1, %v551_v5 }
 0x172   : > { %v610_v7 = vsel %vm578_vm13, %v551_v5, %v594_v6 }
 0x173   : > { %627 = vst.msk [vmem:[%s1057_s12 + $0x50] sm:$0xff] %vm616_vm4, %v610_v7 }
 0x175   : > { %v553_v8 = vpop.f32.mrf.mxu2 }
 0x176   : > { %v554_v9 = vadd.f32 %v1049_v28, %v553_v8 }
 0x178   : > { %vm579_vm14 = vcmp.ge.f32.partialorder %v554_v9, 0.0  ;;  %v595_v10 = vmul.f32 0.1, %v554_v9 }
 0x17a   : > { %v611_v11 = vsel %vm579_vm14, %v554_v9, %v595_v10 }
 0x17b   : > { %628 = vst.msk [vmem:[%s1057_s12 + $0x58] sm:$0xff] %vm616_vm4, %v611_v11 }
 0x17d   : > { %v556_v12 = vpop.f32.mrf.mxu2 }
 0x17e   : > { %v557_v13 = vadd.f32 %v1049_v28, %v556_v12 }
 0x180   : > { %vm580_vm15 = vcmp.ge.f32.partialorder %v557_v13, 0.0  ;;  %v596_v14 = vmul.f32 0.1, %v557_v13 }
 0x182   : > { %v612_v15 = vsel %vm580_vm15, %v557_v13, %v596_v14 }
 0x183   : > { %629 = vst.msk [vmem:[%s1057_s12 + $0x60] sm:$0xff] %vm616_vm4, %v612_v15 }
 0x185   : > { %v559_v16 = vpop.f32.mrf.mxu2 }
 0x186   : > { %v560_v17 = vadd.f32 %v1049_v28, %v559_v16 }
 0x188   : > { %vm581_vm0 = vcmp.ge.f32.partialorder %v560_v17, 0.0  ;;  %v597_v18 = vmul.f32 0.1, %v560_v17 }
 0x18a   : > { %v613_v19 = vsel %vm581_vm0, %v560_v17, %v597_v18 }
 0x18b   : > { %630 = vst.msk [vmem:[%s1057_s12 + $0x68] sm:$0xff] %vm616_vm4, %v613_v19 }
 0x18d   : > { %v562_v20 = vpop.f32.mrf.mxu2 }
 0x18e   : > { %v563_v21 = vadd.f32 %v1049_v28, %v562_v20 }
 0x190   : > { %vm582_vm1 = vcmp.ge.f32.partialorder %v563_v21, 0.0  ;;  %v598_v22 = vmul.f32 0.1, %v563_v21 }
 0x192   : > { %v614_v23 = vsel %vm582_vm1, %v563_v21, %v598_v22 }
 0x193   : > { %631 = vst.msk [vmem:[%s1057_s12 + $0x70] sm:$0xff] %vm616_vm4, %v614_v23 }
 0x195   : > { %v565_v24 = vpop.f32.mrf.mxu2 }
 0x196   : > { %v566_v25 = vadd.f32 %v1049_v28, %v565_v24 }
 0x198   : > { %vm583_vm3 = vcmp.ge.f32.partialorder %v566_v25, 0.0  ;;  %v599_v27 = vmul.f32 0.1, %v566_v25 }
 0x19a   : > { %v615_v29 = vsel %vm583_vm3, %v566_v25, %v599_v27 }
 0x19b   : > { %632 = vst.msk [vmem:[%s1057_s12 + $0x78] sm:$0xff] %vm616_vm4, %v615_v29 }
 0x19c PF: > { %s17_s18 = sadd.s32 1, %s873_s18  }
 0x19d   : > { %p14_p7 = scmp.ge.s32.totalorder %s17_s18, 4  }
 0x19f   :  { %16 = sbr.rel (!%p14_p7) target bundleno = 2 (0x2), region = 79 }
 0x1a4   :  { %655 = vsyncpa [#allocation3], 1 }
 0x1a5   :  { %657 = vsyncpa [#allocation3 + $0x1], 1 }
 0x1a6   :  { %658 = vsyncpa [#allocation5], 1 }

// kernel: gnn_node_forward.10
= control target key start
LH: loop header
LB: loop body
LE: loop exit
PB: predicated region body
PF: predicated region fallthrough
CT: control target
= control target key end

     0   :  { %12 = vsyncpa [#allocation3], 0  ;;  %s988_s0 = inlined_call_operand.hbm [shape: f32[128,256], index: 0, kind: input, shape index: {}]   ;;  %s989_s1 = inlined_call_operand.vmem [shape: f32[256,32], index: 1, kind: input, shape index: {}]   ;;  %s990_s2 = inlined_call_operand.vmem [shape: f32[32,32], index: 2, kind: input, shape index: {}]   ;;  %s991_s3 = inlined_call_operand.vmem [shape: f32[1,32], index: 3, kind: input, shape index: {}]   ;;  %s992_s4 = inlined_call_operand.vmem [shape: f32[32,32], index: 4, kind: input, shape index: {}]   ;;  %s993_s5 = inlined_call_operand.hbm [shape: f32[1,32], index: 5, kind: input, shape index: {}]   ;;  %s994_s6 = inlined_call_operand.vmem [shape: f32[128,32], index: 6, kind: input, shape index: {}]   ;;  %s995_s7 = inlined_call_operand.vmem [shape: f32[128,32], index: 7, kind: output, shape index: {}]  }
   0x1   :  { %s18_s26 = sshll.u32 %s988_s0, 4  ;;  %s19_s26 = int_to_ptr.hbm [resolvable:$true] %s18_s26 }
   0x2   :  { %13 = vsyncpa [#allocation5], 0  ;;  %s653_s27 = smov [#allocation2]   ;;  %s40_s8 = sshll.u32 %s993_s5, 4  ;;  %s41_s8 = int_to_ptr.hbm [resolvable:$true] %s40_s8 }
   0x3   :  { %s20_s28 = sshll.u32 %s653_s27, 4  ;;  %s654_s9 = smov 256   ;;  %s21_s28 = int_to_ptr.vmem [resolvable:$true] %s20_s28 }
   0x4   :  { %s655_s10 = smov 16   ;;  %s656_s11 = smov [#allocation4]  }
   0x5   :  { %26 = dma.hbm_to_vmem [thread:$0]  %s19_s26, 4096, %s21_s28, [#allocation3], %s654_s9, %s654_s9, %s655_s10  }
   0x6   :  { %s42_s12 = sshll.u32 %s656_s11, 4  ;;  %s43_s12 = int_to_ptr.vmem [resolvable:$true] %s42_s12 }
   0x7   :  { %45 = dma.hbm_to_vmem [thread:$0]  %s41_s8, 16, %s43_s12, [#allocation5]  }
   0x8   :  { %649 = dma.done.wait [#allocation3], 4096  }
   0x9   :  { %650 = vsyncadd [#allocation3], 4294963200 }
   0xa   :  { %651 = dma.done.wait [#allocation5], 16  }
   0xb   :  { %652 = vsyncadd [#allocation5], 4294967280  ;;  %v103_v0 = vld [vmem:[%s989_s1 + $0x78] sm:$0xff]  ;;  %v102_v2 = vld [vmem:[%s989_s1 + $0x70] sm:$0xff]  ;;  %vm258_vm0 = vcmask 261120  }
   0xc   :  { %v119_v1 = vld [vmem:[%s989_s1 + $0xf8] sm:$0xff]  ;;  %120 = vmatpush.msra.mxu0 %v103_v0  ;;  %v118_v3 = vld [vmem:[%s989_s1 + $0xf0] sm:$0xff]  ;;  %v101_v4 = vld [vmem:[%s989_s1 + $0x68] sm:$0xff] }
   0xd   :  { %185 = vmatpush.msra.mxu1 %v119_v1  ;;  %v117_v5 = vld [vmem:[%s989_s1 + $0xe8] sm:$0xff]  ;;  %v100_v6 = vld [vmem:[%s989_s1 + $0x60] sm:$0xff]  ;;  %v99_v8 = vld [vmem:[%s989_s1 + $0x58] sm:$0xff] }
   0xe   :  { %121 = vmatpush.msra.mxu0 %v102_v2  ;;  %v116_v7 = vld [vmem:[%s989_s1 + $0xe0] sm:$0xff]  ;;  %v115_v9 = vld [vmem:[%s989_s1 + $0xd8] sm:$0xff]  ;;  %v98_v10 = vld [vmem:[%s989_s1 + $0x50] sm:$0xff] }
   0xf   :  { %186 = vmatpush.msra.mxu1 %v118_v3  ;;  %v114_v11 = vld [vmem:[%s989_s1 + $0xd0] sm:$0xff]  ;;  %v97_v12 = vld [vmem:[%s989_s1 + $0x48] sm:$0xff]  ;;  %v96_v14 = vld [vmem:[%s989_s1 + $0x40] sm:$0xff] }
  0x10   :  { %122 = vmatpush.msra.mxu0 %v101_v4  ;;  %v113_v13 = vld [vmem:[%s989_s1 + $0xc8] sm:$0xff]  ;;  %v112_v15 = vld [vmem:[%s989_s1 + $0xc0] sm:$0xff]  ;;  %v95_v16 = vld [vmem:[%s989_s1 + $0x38] sm:$0xff] }
  0x11   :  { %187 = vmatpush.msra.mxu1 %v117_v5  ;;  %v111_v17 = vld [vmem:[%s989_s1 + $0xb8] sm:$0xff]  ;;  %v94_v18 = vld [vmem:[%s989_s1 + $0x30] sm:$0xff]  ;;  %v93_v20 = vld [vmem:[%s989_s1 + $0x28] sm:$0xff] }
  0x12   :  { %123 = vmatpush.msra.mxu0 %v100_v6  ;;  %v110_v19 = vld [vmem:[%s989_s1 + $0xb0] sm:$0xff]  ;;  %v109_v21 = vld [vmem:[%s989_s1 + $0xa8] sm:$0xff]  ;;  %v92_v22 = vld [vmem:[%s989_s1 + $0x20] sm:$0xff] }
  0x13   :  { %188 = vmatpush.msra.mxu1 %v116_v7  ;;  %v108_v23 = vld [vmem:[%s989_s1 + $0xa0] sm:$0xff]  ;;  %v91_v24 = vld [vmem:[%s989_s1 + $0x18] sm:$0xff]  ;;  %v90_v26 = vld [vmem:[%s989_s1 + $0x10] sm:$0xff] }
  0x14   :  { %124 = vmatpush.msra.mxu0 %v99_v8  ;;  %v107_v25 = vld [vmem:[%s989_s1 + $0x98] sm:$0xff]  ;;  %v106_v27 = vld [vmem:[%s989_s1 + $0x90] sm:$0xff]  ;;  %v89_v28 = vld [vmem:[%s989_s1 + $0x8] sm:$0xff] }
  0x15   :  { %189 = vmatpush.msra.mxu1 %v115_v9  ;;  %v105_v29 = vld [vmem:[%s989_s1 + $0x88] sm:$0xff]  ;;  %v88_v30 = vld [vmem:[%s989_s1] sm:$0xff]  ;;  %v58_v34 = vld [vmem:[#allocation2 + $0x10] sm:$0xff] }
  0x16   :  { %125 = vmatpush.msra.mxu0 %v98_v10  ;;  %v104_v31 = vld [vmem:[%s989_s1 + $0x80] sm:$0xff]  ;;  %v57_v33 = vld [vmem:[#allocation2 + $0x8] sm:$0xff]  ;;  %v59_v35 = vld [vmem:[#allocation2 + $0x18] sm:$0xff] }
  0x17   :  { %190 = vmatpush.msra.mxu1 %v114_v11  ;;  %v56_v32 = vld [vmem:[#allocation2] sm:$0xff]  ;;  %v61_v37 = vld [vmem:[#allocation2 + $0x28] sm:$0xff]  ;;  %v62_v38 = vld [vmem:[#allocation2 + $0x30] sm:$0xff] }
  0x18   :  { %126 = vmatpush.msra.mxu0 %v97_v12  ;;  %v60_v36 = vld [vmem:[#allocation2 + $0x20] sm:$0xff]  ;;  %v63_v39 = vld [vmem:[#allocation2 + $0x38] sm:$0xff]  ;;  %v65_v41 = vld [vmem:[#allocation2 + $0x48] sm:$0xff] }
  0x19   :  { %191 = vmatpush.msra.mxu1 %v113_v13  ;;  %v64_v40 = vld [vmem:[#allocation2 + $0x40] sm:$0xff]  ;;  %v66_v42 = vld [vmem:[#allocation2 + $0x50] sm:$0xff]  ;;  %v67_v43 = vld [vmem:[#allocation2 + $0x58] sm:$0xff] }
  0x1a   :  { %127 = vmatpush.msra.mxu0 %v96_v14  ;;  %v68_v44 = vld [vmem:[#allocation2 + $0x60] sm:$0xff]  ;;  %v69_v45 = vld [vmem:[#allocation2 + $0x68] sm:$0xff]  ;;  %v70_v46 = vld [vmem:[#allocation2 + $0x70] sm:$0xff] }
  0x1b   :  { %192 = vmatpush.msra.mxu1 %v112_v15  ;;  %v71_v47 = vld [vmem:[#allocation2 + $0x78] sm:$0xff]  ;;  %v72_v48 = vld [vmem:[#allocation2 + $0x80] sm:$0xff]  ;;  %v73_v49 = vld [vmem:[#allocation2 + $0x88] sm:$0xff] }
  0x1c   :  { %128 = vmatpush.msra.mxu0 %v95_v16  ;;  %v74_v50 = vld [vmem:[#allocation2 + $0x90] sm:$0xff]  ;;  %v75_v51 = vld [vmem:[#allocation2 + $0x98] sm:$0xff]  ;;  %v76_v52 = vld [vmem:[#allocation2 + $0xa0] sm:$0xff] }
  0x1d   :  { %193 = vmatpush.msra.mxu1 %v111_v17  ;;  %v77_v53 = vld [vmem:[#allocation2 + $0xa8] sm:$0xff]  ;;  %v78_v54 = vld [vmem:[#allocation2 + $0xb0] sm:$0xff]  ;;  %v79_v55 = vld [vmem:[#allocation2 + $0xb8] sm:$0xff] }
  0x1e   :  { %129 = vmatpush.msra.mxu0 %v94_v18  ;;  %v253_v56 = vld [vmem:[%s990_s2 + $0x18] sm:$0xff]  ;;  %v252_v57 = vld [vmem:[%s990_s2 + $0x10] sm:$0xff]  ;;  %v251_v58 = vld [vmem:[%s990_s2 + $0x8] sm:$0xff] }
  0x1f   :  { %194 = vmatpush.msra.mxu1 %v110_v19  ;;  %319 = vmatpush.msra.mxu2 %v253_v56  ;;  %v80_v59 = vld [vmem:[#allocation2 + $0xc0] sm:$0xff]  ;;  %v81_v60 = vld [vmem:[#allocation2 + $0xc8] sm:$0xff]  ;;  %v82_v62 = vld [vmem:[#allocation2 + $0xd0] sm:$0xff] }
  0x20   :  { %130 = vmatpush.msra.mxu0 %v93_v20  ;;  %v250_v61 = vld [vmem:[%s990_s2] sm:$0xff]  ;;  %v83_v63 = vld [vmem:[#allocation2 + $0xd8] sm:$0xff]  ;;  %v85_v1 = vld [vmem:[#allocation2 + $0xe8] sm:$0xff] }
  0x21   :  { %195 = vmatpush.msra.mxu1 %v109_v21  ;;  %320 = vmatpush.msra.mxu2 %v252_v57  ;;  %v84_v0 = vld [vmem:[#allocation2 + $0xe0] sm:$0xff]  ;;  %v86_v2 = vld [vmem:[#allocation2 + $0xf0] sm:$0xff]  ;;  %v87_v3 = vld [vmem:[#allocation2 + $0xf8] sm:$0xff] }
  0x22   :  { %131 = vmatpush.msra.mxu0 %v92_v22  ;;  %v599_v56 = vld [vmem:[%s991_s3] ss:$0 sm:$0xff] }
  0x23   :  { %196 = vmatpush.msra.mxu1 %v108_v23  ;;  %321 = vmatpush.msra.mxu2 %v251_v58 }
  0x24   :  { %132 = vmatpush.msra.mxu0 %v91_v24 }
  0x25   :  { %197 = vmatpush.msra.mxu1 %v107_v25  ;;  %322 = vmatpush.msra.mxu2 %v250_v61 }
  0x26   :  { %133 = vmatpush.msra.mxu0 %v90_v26 }
  0x27   :  { %198 = vmatpush.msra.mxu1 %v106_v27 }
  0x28   :  { %134 = vmatpush.msra.mxu0 %v89_v28 }
  0x29   :  { %199 = vmatpush.msra.mxu1 %v105_v29 }
  0x2a   :  { %135 = vmatpush.msra.mxu0 %v88_v30 }
  0x2b   :  { %200 = vmatpush.msra.mxu1 %v104_v31  ;;  %136 = vmatmul.f32.vlgmr.msra.gmra.mxu0 %v56_v32 }
  0x2c   :  { %201 = vmatmul.f32.vlgmr.msra.gmra.mxu1 %v57_v33 }
  0x33   :  { %139 = vmatmul.f32.gmra.mxu0 %v58_v34 }
  0x34   :  { %204 = vmatmul.f32.gmra.mxu1 %v59_v35 }
  0x3b   :  { %142 = vmatmul.f32.gmra.mxu0 %v60_v36 }
  0x3c   :  { %207 = vmatmul.f32.gmra.mxu1 %v61_v37 }
  0x43   :  { %145 = vmatmul.f32.gmra.mxu0 %v62_v38 }
  0x44   :  { %210 = vmatmul.f32.gmra.mxu1 %v63_v39 }
  0x4b   :  { %148 = vmatmul.f32.gmra.mxu0 %v64_v40  ;;  %v391_v40 = vld [vmem:[%s992_s4 + $0x18] sm:$0xff] }
  0x4c   :  { %213 = vmatmul.f32.gmra.mxu1 %v65_v41  ;;  %456 = vmatpush.msra.mxu3 %v391_v40 }
  0x53   :  { %151 = vmatmul.f32.gmra.mxu0 %v66_v42 }
  0x54   :  { %216 = vmatmul.f32.gmra.mxu1 %v67_v43 }
  0x5b   :  { %154 = vmatmul.f32.gmra.mxu0 %v68_v44  ;;  %v390_v44 = vld [vmem:[%s992_s4 + $0x10] sm:$0xff] }
  0x5c   :  { %219 = vmatmul.f32.gmra.mxu1 %v69_v45  ;;  %457 = vmatpush.msra.mxu3 %v390_v44  ;;  %v389_v45 = vld [vmem:[%s992_s4 + $0x8] sm:$0xff] }
  0x5e   :  { %458 = vmatpush.msra.mxu3 %v389_v45 }
  0x63   :  { %157 = vmatmul.f32.gmra.mxu0 %v70_v46 }
  0x64   :  { %222 = vmatmul.f32.gmra.mxu1 %v71_v47 }
  0x6b   :  { %160 = vmatmul.f32.gmra.mxu0 %v72_v48 }
  0x6c   :  { %225 = vmatmul.f32.gmra.mxu1 %v73_v49  ;;  %v388_v49 = vld [vmem:[%s992_s4] sm:$0xff] }
  0x6d   :  { %459 = vmatpush.msra.mxu3 %v388_v49 }
  0x73   :  { %163 = vmatmul.f32.gmra.mxu0 %v74_v50 }
  0x74   :  { %228 = vmatmul.f32.gmra.mxu1 %v75_v51 }
  0x7b   :  { %166 = vmatmul.f32.gmra.mxu0 %v76_v52 }
  0x7c   :  { %231 = vmatmul.f32.gmra.mxu1 %v77_v53 }
  0x83   :  { %169 = vmatmul.f32.gmra.mxu0 %v78_v54 }
  0x84   :  { %234 = vmatmul.f32.gmra.mxu1 %v79_v55 }
  0x8b   :  { %172 = vmatmul.f32.gmra.mxu0 %v80_v59 }
  0x8c   :  { %237 = vmatmul.f32.gmra.mxu1 %v81_v60 }
  0x93   :  { %175 = vmatmul.f32.gmra.mxu0 %v82_v62 }
  0x94   :  { %240 = vmatmul.f32.gmra.mxu1 %v83_v63 }
  0x9b   :  { %178 = vmatmul.f32.gmra.mxu0 %v84_v0 }
  0x9c   :  { %243 = vmatmul.f32.gmra.mxu1 %v85_v1 }
  0xa3   :  { %181 = vmatmul.f32.gmra.mxu0 %v86_v2 }
  0xa4   :  { %246 = vmatmul.f32.gmra.mxu1 %v87_v3 }
  0xa8   :  { %v137_v4 = vpop.f32.mrf.mxu0 }
  0xa9   :  { %v202_v5 = vpop.f32.mrf.mxu1 }
  0xaa   :  { %v203_v6 = vadd.f32 %v202_v5, %v137_v4 }
  0xac   :  { %563 = vmatmul.msk.f32.vlgmr.msra.gmra.mxu2 %vm258_vm0, %v203_v6 }
  0xb0   :  { %v140_v7 = vpop.f32.mrf.mxu0 }
  0xb1   :  { %v205_v8 = vpop.f32.mrf.mxu1 }
  0xb2   :  { %v206_v9 = vadd.f32 %v205_v8, %v140_v7 }
  0xb4   :  { %564 = vmatmul.msk.f32.gmra.mxu2 %vm258_vm0, %v206_v9 }
  0xb8   :  { %v143_v10 = vpop.f32.mrf.mxu0 }
  0xb9   :  { %v208_v11 = vpop.f32.mrf.mxu1 }
  0xba   :  { %v209_v12 = vadd.f32 %v208_v11, %v143_v10 }
  0xbc   :  { %565 = vmatmul.msk.f32.gmra.mxu2 %vm258_vm0, %v209_v12 }
  0xc0   :  { %v146_v13 = vpop.f32.mrf.mxu0 }
  0xc1   :  { %v211_v14 = vpop.f32.mrf.mxu1 }
  0xc2   :  { %v212_v15 = vadd.f32 %v211_v14, %v146_v13 }
  0xc4   :  { %566 = vmatmul.msk.f32.gmra.mxu2 %vm258_vm0, %v212_v15 }
  0xc8   :  { %v149_v16 = vpop.f32.mrf.mxu0 }
  0xc9   :  { %v214_v17 = vpop.f32.mrf.mxu1 }
  0xca   :  { %v215_v18 = vadd.f32 %v214_v17, %v149_v16 }
  0xcc   :  { %567 = vmatmul.msk.f32.gmra.mxu2 %vm258_vm0, %v215_v18 }
  0xd0   :  { %v152_v19 = vpop.f32.mrf.mxu0 }
  0xd1   :  { %v217_v20 = vpop.f32.mrf.mxu1 }
  0xd2   :  { %v218_v21 = vadd.f32 %v217_v20, %v152_v19 }
  0xd4   :  { %568 = vmatmul.msk.f32.gmra.mxu2 %vm258_vm0, %v218_v21 }
  0xd8   :  { %v155_v22 = vpop.f32.mrf.mxu0 }
  0xd9   :  { %v220_v23 = vpop.f32.mrf.mxu1 }
  0xda   :  { %v221_v24 = vadd.f32 %v220_v23, %v155_v22 }
  0xdc   :  { %569 = vmatmul.msk.f32.gmra.mxu2 %vm258_vm0, %v221_v24 }
  0xe0   :  { %v158_v25 = vpop.f32.mrf.mxu0 }
  0xe1   :  { %v223_v26 = vpop.f32.mrf.mxu1 }
  0xe2   :  { %v224_v27 = vadd.f32 %v223_v26, %v158_v25 }
  0xe4   :  { %570 = vmatmul.msk.f32.gmra.mxu2 %vm258_vm0, %v224_v27 }
  0xe8   :  { %v161_v28 = vpop.f32.mrf.mxu0 }
  0xe9   :  { %v226_v29 = vpop.f32.mrf.mxu1 }
  0xea   :  { %v227_v30 = vadd.f32 %v226_v29, %v161_v28 }
  0xec   :  { %571 = vmatmul.msk.f32.gmra.mxu2 %vm258_vm0, %v227_v30 }
  0xf0   :  { %v164_v31 = vpop.f32.mrf.mxu0 }
  0xf1   :  { %v229_v32 = vpop.f32.mrf.mxu1 }
  0xf2   :  { %v230_v33 = vadd.f32 %v229_v32, %v164_v31 }
  0xf4   :  { %572 = vmatmul.msk.f32.gmra.mxu2 %vm258_vm0, %v230_v33 }
  0xf8   :  { %v167_v34 = vpop.f32.mrf.mxu0 }
  0xf9   :  { %v232_v35 = vpop.f32.mrf.mxu1 }
  0xfa   :  { %v233_v36 = vadd.f32 %v232_v35, %v167_v34 }
  0xfc   :  { %573 = vmatmul.msk.f32.gmra.mxu2 %vm258_vm0, %v233_v36 }
 0x100   :  { %v170_v37 = vpop.f32.mrf.mxu0 }
 0x101   :  { %v235_v38 = vpop.f32.mrf.mxu1 }
 0x102   :  { %v236_v39 = vadd.f32 %v235_v38, %v170_v37 }
 0x104   :  { %574 = vmatmul.msk.f32.gmra.mxu2 %vm258_vm0, %v236_v39 }
 0x108   :  { %v173_v41 = vpop.f32.mrf.mxu0 }
 0x109   :  { %v238_v42 = vpop.f32.mrf.mxu1 }
 0x10a   :  { %v239_v43 = vadd.f32 %v238_v42, %v173_v41  ;;  %v858_v41 = vld [vmem:[#allocation4] ss:$0 sm:$0xff] }
 0x10c   :  { %575 = vmatmul.msk.f32.gmra.mxu2 %vm258_vm0, %v239_v43  ;;  %v509_v43 = vld [vmem:[%s994_s6] sm:$0xff] }
 0x110   :  { %v176_v46 = vpop.f32.mrf.mxu0 }
 0x111   :  { %v241_v47 = vpop.f32.mrf.mxu1 }
 0x112   :  { %v242_v48 = vadd.f32 %v241_v47, %v176_v46  ;;  %v510_v47 = vld [vmem:[%s994_s6 + $0x8] sm:$0xff] }
 0x114   :  { %576 = vmatmul.msk.f32.gmra.mxu2 %vm258_vm0, %v242_v48 }
 0x118   :  { %v179_v50 = vpop.f32.mrf.mxu0 }
 0x119   :  { %v244_v51 = vpop.f32.mrf.mxu1 }
 0x11a   :  { %v245_v52 = vadd.f32 %v244_v51, %v179_v50  ;;  %v511_v51 = vld [vmem:[%s994_s6 + $0x10] sm:$0xff] }
 0x11c   :  { %577 = vmatmul.msk.f32.gmra.mxu2 %vm258_vm0, %v245_v52 }
 0x120   :  { %v182_v53 = vpop.f32.mrf.mxu0 }
 0x121   :  { %v247_v54 = vpop.f32.mrf.mxu1 }
 0x122   :  { %v248_v55 = vadd.f32 %v247_v54, %v182_v53 }
 0x124   :  { %578 = vmatmul.msk.f32.gmra.mxu2 %vm258_vm0, %v248_v55  ;;  %v512_v55 = vld [vmem:[%s994_s6 + $0x18] sm:$0xff] }
 0x12f   :  { %v324_v57 = vpop.f32.mrf.mxu2 }
 0x130   :  { %v325_v58 = vadd.f32 %v599_v56, %v324_v57 }
 0x132   :  { %v372_v59 = vmax.f32 %v325_v58, 0.0 }
 0x134   :  { %579 = vmatmul.msk.f32.vlgmr.msra.gmra.mxu3 %vm258_vm0, %v372_v59  ;;  %v513_v59 = vld [vmem:[%s994_s6 + $0x20] sm:$0xff] }
 0x137   :  { %v327_v60 = vpop.f32.mrf.mxu2 }
 0x138   :  { %v328_v61 = vadd.f32 %v599_v56, %v327_v60 }
 0x13a   :  { %v373_v62 = vmax.f32 %v328_v61, 0.0 }
 0x13c   :  { %580 = vmatmul.msk.f32.gmra.mxu3 %vm258_vm0, %v373_v62 }
 0x13f   :  { %v330_v63 = vpop.f32.mrf.mxu2 }
 0x140   :  { %v331_v0 = vadd.f32 %v599_v56, %v330_v63  ;;  %v514_v63 = vld [vmem:[%s994_s6 + $0x28] sm:$0xff] }
 0x142   :  { %v374_v1 = vmax.f32 %v331_v0, 0.0 }
 0x144   :  { %581 = vmatmul.msk.f32.gmra.mxu3 %vm258_vm0, %v374_v1 }
 0x147   :  { %v333_v2 = vpop.f32.mrf.mxu2 }
 0x148   :  { %v334_v3 = vadd.f32 %v599_v56, %v333_v2 }
 0x14a   :  { %v375_v4 = vmax.f32 %v334_v3, 0.0  ;;  %v515_v3 = vld [vmem:[%s994_s6 + $0x30] sm:$0xff] }
 0x14c   :  { %582 = vmatmul.msk.f32.gmra.mxu3 %vm258_vm0, %v375_v4 }
 0x14f   :  { %v336_v5 = vpop.f32.mrf.mxu2 }
 0x150   :  { %v337_v6 = vadd.f32 %v599_v56, %v336_v5 }
 0x152   :  { %v376_v7 = vmax.f32 %v337_v6, 0.0 }
 0x154   :  { %583 = vmatmul.msk.f32.gmra.mxu3 %vm258_vm0, %v376_v7  ;;  %v516_v7 = vld [vmem:[%s994_s6 + $0x38] sm:$0xff] }
 0x157   :  { %v339_v8 = vpop.f32.mrf.mxu2 }
 0x158   :  { %v340_v9 = vadd.f32 %v599_v56, %v339_v8 }
 0x15a   :  { %v377_v10 = vmax.f32 %v340_v9, 0.0 }
 0x15c   :  { %584 = vmatmul.msk.f32.gmra.mxu3 %vm258_vm0, %v377_v10 }
 0x15f   :  { %v342_v11 = vpop.f32.mrf.mxu2 }
 0x160   :  { %v343_v12 = vadd.f32 %v599_v56, %v342_v11  ;;  %v517_v11 = vld [vmem:[%s994_s6 + $0x40] sm:$0xff] }
 0x162   :  { %v378_v13 = vmax.f32 %v343_v12, 0.0 }
 0x164   :  { %585 = vmatmul.msk.f32.gmra.mxu3 %vm258_vm0, %v378_v13 }
 0x167   :  { %v345_v14 = vpop.f32.mrf.mxu2 }
 0x168   :  { %v346_v15 = vadd.f32 %v599_v56, %v345_v14 }
 0x16a   :  { %v379_v16 = vmax.f32 %v346_v15, 0.0  ;;  %v518_v15 = vld [vmem:[%s994_s6 + $0x48] sm:$0xff] }
 0x16c   :  { %586 = vmatmul.msk.f32.gmra.mxu3 %vm258_vm0, %v379_v16 }
 0x16f   :  { %v348_v17 = vpop.f32.mrf.mxu2 }
 0x170   :  { %v349_v18 = vadd.f32 %v599_v56, %v348_v17 }
 0x172   :  { %v380_v19 = vmax.f32 %v349_v18, 0.0 }
 0x174   :  { %587 = vmatmul.msk.f32.gmra.mxu3 %vm258_vm0, %v380_v19  ;;  %v519_v19 = vld [vmem:[%s994_s6 + $0x50] sm:$0xff] }
 0x177   :  { %v351_v20 = vpop.f32.mrf.mxu2 }
 0x178   :  { %v352_v21 = vadd.f32 %v599_v56, %v351_v20 }
 0x17a   :  { %v381_v22 = vmax.f32 %v352_v21, 0.0 }
 0x17c   :  { %588 = vmatmul.msk.f32.gmra.mxu3 %vm258_vm0, %v381_v22 }
 0x17f   :  { %v354_v23 = vpop.f32.mrf.mxu2 }
 0x180   :  { %v355_v24 = vadd.f32 %v599_v56, %v354_v23  ;;  %v520_v23 = vld [vmem:[%s994_s6 + $0x58] sm:$0xff] }
 0x182   :  { %v382_v25 = vmax.f32 %v355_v24, 0.0 }
 0x184   :  { %589 = vmatmul.msk.f32.gmra.mxu3 %vm258_vm0, %v382_v25 }
 0x187   :  { %v357_v26 = vpop.f32.mrf.mxu2 }
 0x188   :  { %v358_v27 = vadd.f32 %v599_v56, %v357_v26 }
 0x18a   :  { %v383_v28 = vmax.f32 %v358_v27, 0.0  ;;  %v521_v27 = vld [vmem:[%s994_s6 + $0x60] sm:$0xff] }
 0x18c   :  { %590 = vmatmul.msk.f32.gmra.mxu3 %vm258_vm0, %v383_v28 }
 0x18f   :  { %v360_v29 = vpop.f32.mrf.mxu2 }
 0x190   :  { %v361_v30 = vadd.f32 %v599_v56, %v360_v29 }
 0x192   :  { %v384_v31 = vmax.f32 %v361_v30, 0.0 }
 0x194   :  { %591 = vmatmul.msk.f32.gmra.mxu3 %vm258_vm0, %v384_v31  ;;  %v522_v31 = vld [vmem:[%s994_s6 + $0x68] sm:$0xff] }
 0x197   :  { %v363_v32 = vpop.f32.mrf.mxu2 }
 0x198   :  { %v364_v33 = vadd.f32 %v599_v56, %v363_v32 }
 0x19a   :  { %v385_v34 = vmax.f32 %v364_v33, 0.0 }
 0x19c   :  { %592 = vmatmul.msk.f32.gmra.mxu3 %vm258_vm0, %v385_v34 }
 0x19f   :  { %v366_v35 = vpop.f32.mrf.mxu2 }
 0x1a0   :  { %v367_v36 = vadd.f32 %v599_v56, %v366_v35  ;;  %v523_v35 = vld [vmem:[%s994_s6 + $0x70] sm:$0xff] }
 0x1a2   :  { %v386_v37 = vmax.f32 %v367_v36, 0.0 }
 0x1a4   :  { %593 = vmatmul.msk.f32.gmra.mxu3 %vm258_vm0, %v386_v37 }
 0x1a7   :  { %v369_v38 = vpop.f32.mrf.mxu2 }
 0x1a8   :  { %v370_v39 = vadd.f32 %v599_v56, %v369_v38 }
 0x1aa   :  { %v387_v40 = vmax.f32 %v370_v39, 0.0  ;;  %v524_v39 = vld [vmem:[%s994_s6 + $0x78] sm:$0xff] }
 0x1ac   :  { %594 = vmatmul.msk.f32.gmra.mxu3 %vm258_vm0, %v387_v40 }
 0x1b7   :  { %v461_v42 = vpop.f32.mrf.mxu3 }
 0x1b8   :  { %v462_v44 = vadd.f32 %v858_v41, %v461_v42 }
 0x1ba   :  { %v525_v45 = vadd.f32 %v509_v43, %v462_v44 }
 0x1bc   :  { %541 = vst.msk [vmem:[%s995_s7] sm:$0xff] %vm258_vm0, %v525_v45 }
 0x1bf   :  { %v464_v46 = vpop.f32.mrf.mxu3 }
 0x1c0   :  { %v465_v48 = vadd.f32 %v858_v41, %v464_v46 }
 0x1c2   :  { %v526_v49 = vadd.f32 %v510_v47, %v465_v48 }
 0x1c4   :  { %542 = vst.msk [vmem:[%s995_s7 + $0x8] sm:$0xff] %vm258_vm0, %v526_v49 }
 0x1c7   :  { %v467_v50 = vpop.f32.mrf.mxu3 }
 0x1c8   :  { %v468_v52 = vadd.f32 %v858_v41, %v467_v50 }
 0x1ca   :  { %v527_v53 = vadd.f32 %v511_v51, %v468_v52 }
 0x1cc   :  { %543 = vst.msk [vmem:[%s995_s7 + $0x10] sm:$0xff] %vm258_vm0, %v527_v53 }
 0x1cf   :  { %v470_v54 = vpop.f32.mrf.mxu3 }
 0x1d0   :  { %v471_v56 = vadd.f32 %v858_v41, %v470_v54 }
 0x1d2   :  { %v528_v57 = vadd.f32 %v512_v55, %v471_v56 }
 0x1d4   :  { %544 = vst.msk [vmem:[%s995_s7 + $0x18] sm:$0xff] %vm258_vm0, %v528_v57 }
 0x1d7   :  { %v473_v58 = vpop.f32.mrf.mxu3 }
 0x1d8   :  { %v474_v60 = vadd.f32 %v858_v41, %v473_v58 }
 0x1da   :  { %v529_v61 = vadd.f32 %v513_v59, %v474_v60 }
 0x1dc   :  { %545 = vst.msk [vmem:[%s995_s7 + $0x20] sm:$0xff] %vm258_vm0, %v529_v61 }
 0x1df   :  { %v476_v62 = vpop.f32.mrf.mxu3 }
 0x1e0   :  { %v477_v0 = vadd.f32 %v858_v41, %v476_v62 }
 0x1e2   :  { %v530_v1 = vadd.f32 %v514_v63, %v477_v0 }
 0x1e4   :  { %546 = vst.msk [vmem:[%s995_s7 + $0x28] sm:$0xff] %vm258_vm0, %v530_v1 }
 0x1e7   :  { %v479_v2 = vpop.f32.mrf.mxu3 }
 0x1e8   :  { %v480_v4 = vadd.f32 %v858_v41, %v479_v2 }
 0x1ea   :  { %v531_v5 = vadd.f32 %v515_v3, %v480_v4 }
 0x1ec   :  { %547 = vst.msk [vmem:[%s995_s7 + $0x30] sm:$0xff] %vm258_vm0, %v531_v5 }
 0x1ef   :  { %v482_v6 = vpop.f32.mrf.mxu3 }
 0x1f0   :  { %v483_v8 = vadd.f32 %v858_v41, %v482_v6 }
 0x1f2   :  { %v532_v9 = vadd.f32 %v516_v7, %v483_v8 }
 0x1f4   :  { %548 = vst.msk [vmem:[%s995_s7 + $0x38] sm:$0xff] %vm258_vm0, %v532_v9 }
 0x1f7   :  { %v485_v10 = vpop.f32.mrf.mxu3 }
 0x1f8   :  { %v486_v12 = vadd.f32 %v858_v41, %v485_v10 }
 0x1fa   :  { %v533_v13 = vadd.f32 %v517_v11, %v486_v12 }
 0x1fc   :  { %549 = vst.msk [vmem:[%s995_s7 + $0x40] sm:$0xff] %vm258_vm0, %v533_v13 }
 0x1ff   :  { %v488_v14 = vpop.f32.mrf.mxu3 }
 0x200   :  { %v489_v16 = vadd.f32 %v858_v41, %v488_v14 }
 0x202   :  { %v534_v17 = vadd.f32 %v518_v15, %v489_v16 }
 0x204   :  { %550 = vst.msk [vmem:[%s995_s7 + $0x48] sm:$0xff] %vm258_vm0, %v534_v17 }
 0x207   :  { %v491_v18 = vpop.f32.mrf.mxu3 }
 0x208   :  { %v492_v20 = vadd.f32 %v858_v41, %v491_v18 }
 0x20a   :  { %v535_v21 = vadd.f32 %v519_v19, %v492_v20 }
 0x20c   :  { %551 = vst.msk [vmem:[%s995_s7 + $0x50] sm:$0xff] %vm258_vm0, %v535_v21 }
 0x20f   :  { %v494_v22 = vpop.f32.mrf.mxu3 }
 0x210   :  { %v495_v24 = vadd.f32 %v858_v41, %v494_v22 }
 0x212   :  { %v536_v25 = vadd.f32 %v520_v23, %v495_v24 }
 0x214   :  { %552 = vst.msk [vmem:[%s995_s7 + $0x58] sm:$0xff] %vm258_vm0, %v536_v25 }
 0x217   :  { %v497_v26 = vpop.f32.mrf.mxu3 }
 0x218   :  { %v498_v28 = vadd.f32 %v858_v41, %v497_v26 }
 0x21a   :  { %v537_v29 = vadd.f32 %v521_v27, %v498_v28 }
 0x21c   :  { %553 = vst.msk [vmem:[%s995_s7 + $0x60] sm:$0xff] %vm258_vm0, %v537_v29 }
 0x21f   :  { %v500_v30 = vpop.f32.mrf.mxu3 }
 0x220   :  { %v501_v32 = vadd.f32 %v858_v41, %v500_v30 }
 0x222   :  { %v538_v33 = vadd.f32 %v522_v31, %v501_v32 }
 0x224   :  { %554 = vst.msk [vmem:[%s995_s7 + $0x68] sm:$0xff] %vm258_vm0, %v538_v33 }
 0x227   :  { %v503_v34 = vpop.f32.mrf.mxu3 }
 0x228   :  { %v504_v36 = vadd.f32 %v858_v41, %v503_v34 }
 0x22a   :  { %v539_v37 = vadd.f32 %v523_v35, %v504_v36 }
 0x22c   :  { %555 = vst.msk [vmem:[%s995_s7 + $0x70] sm:$0xff] %vm258_vm0, %v539_v37 }
 0x22f   :  { %v506_v38 = vpop.f32.mrf.mxu3 }
 0x230   :  { %v507_v40 = vadd.f32 %v858_v41, %v506_v38 }
 0x232   :  { %v540_v42 = vadd.f32 %v524_v39, %v507_v40 }
 0x234   :  { %556 = vst.msk [vmem:[%s995_s7 + $0x78] sm:$0xff] %vm258_vm0, %v540_v42 }
 0x235   :  { %561 = vsyncpa [#allocation3], 1 }
 0x236   :  { %562 = vsyncpa [#allocation5], 1 }

// kernel: gnn_node_forward.13
= control target key start
LH: loop header
LB: loop body
LE: loop exit
PB: predicated region body
PF: predicated region fallthrough
CT: control target
= control target key end

     0   :  { %9 = vsyncpa [#allocation3], 0  ;;  %s1257_s0 = inlined_call_operand.vmem [shape: f32[128,32], index: 0, kind: input, shape index: {}]   ;;  %s1258_s1 = inlined_call_operand.vmem [shape: f32[128,32], index: 1, kind: input, shape index: {}]   ;;  %s1259_s2 = inlined_call_operand.hbm [shape: f32[1,32], index: 2, kind: input, shape index: {}]   ;;  %s1260_s3 = inlined_call_operand.hbm [shape: f32[1,32], index: 3, kind: input, shape index: {}]   ;;  %s1261_s4 = inlined_call_operand.vmem [shape: f32[128,32], index: 4, kind: output, shape index: {}]  }
   0x1   :  { %s20_s17 = sshll.u32 %s1259_s2, 4  ;;  %s21_s17 = int_to_ptr.hbm [resolvable:$true] %s20_s17 }
   0x2   :  { %10 = vsyncpa [#allocation5], 0  ;;  %s654_s18 = smov [#allocation2]   ;;  %s31_s22 = sshll.u32 %s1260_s3, 4  ;;  %s32_s22 = int_to_ptr.hbm [resolvable:$true] %s31_s22 }
   0x3   :  { %s22_s19 = sshll.u32 %s654_s18, 4  ;;  %s655_s23 = smov [#allocation4]   ;;  %s23_s19 = int_to_ptr.vmem [resolvable:$true] %s22_s19 }
   0x4   :  { %25 = dma.hbm_to_vmem [thread:$0]  %s21_s17, 16, %s23_s19, [#allocation3]  }
   0x5   :  { %s33_s24 = sshll.u32 %s655_s23, 4  ;;  %s34_s24 = int_to_ptr.vmem [resolvable:$true] %s33_s24 }
   0x6   :  { %36 = dma.hbm_to_vmem [thread:$0]  %s32_s22, 16, %s34_s24, [#allocation5]  }
   0x7   :  { %650 = dma.done.wait [#allocation3], 16  }
   0x8   :  { %651 = vsyncadd [#allocation3], 4294967280 }
   0x9   :  { %652 = dma.done.wait [#allocation5], 16  }
   0xa   :  { %653 = vsyncadd [#allocation5], 4294967280  ;;  %v49_v0 = vld [vmem:[%s1257_s0 + $0x20] sm:$0xff]  ;;  %vm93_vm0 = vcmask 261120   ;;  %v47_v2 = vld [vmem:[%s1257_s0 + $0x10] sm:$0xff] }
   0xb   :  { %v65_v1 = vld [vmem:[%s1258_s1 + $0x20] sm:$0xff]  ;;  %v63_v4 = vld [vmem:[%s1258_s1 + $0x10] sm:$0xff]  ;;  %v50_v9 = vld [vmem:[%s1257_s0 + $0x28] sm:$0xff] }
   0xc   :  { %v697_v3 = vadd.f32 %v65_v1, %v49_v0  ;;  %v45_v5 = vld [vmem:[%s1257_s0] sm:$0xff]  ;;  %v708_v7 = vadd.f32 %v63_v4, %v47_v2  ;;  %v66_v10 = vld [vmem:[%s1258_s1 + $0x28] sm:$0xff]  ;;  %v48_v11 = vld [vmem:[%s1257_s0 + $0x18] sm:$0xff]  ;;  %v656_v0 = vmov 32.0  }
   0xd   :  { %v61_v6 = vld [vmem:[%s1258_s1] sm:$0xff]  ;;  %v64_v13 = vld [vmem:[%s1258_s1 + $0x18] sm:$0xff]  ;;  %v46_v14 = vld [vmem:[%s1257_s0 + $0x8] sm:$0xff]  ;;  %v736_v18 = vadd.f32 %v66_v10, %v50_v9  ;;  %568 = vrcp.f32 %v656_v0 }
   0xe   :  { %v710_v8 = vadd.f32 %v61_v6, %v45_v5  ;;  %v106_v12 = vsel %vm93_vm0, %v697_v3, 0.0  ;;  %v62_v15 = vld [vmem:[%s1258_s1 + $0x8] sm:$0xff]  ;;  %v100_v16 = vsel %vm93_vm0, %v708_v7, 0.0  ;;  %v738_v19 = vadd.f32 %v64_v13, %v48_v11  ;;  %v53_v22 = vld [vmem:[%s1257_s0 + $0x40] sm:$0xff]  ;;  %v51_v26 = vld [vmem:[%s1257_s0 + $0x30] sm:$0xff] }
   0xf   :  { %107 = vadd.xlane.f32.xlu2 %v106_v12  ;;  %101 = vadd.xlane.f32.xlu1 %v100_v16  ;;  %v740_v20 = vadd.f32 %v62_v15, %v46_v14  ;;  %v109_v21 = vsel %vm93_vm0, %v736_v18, 0.0  ;;  %v69_v23 = vld [vmem:[%s1258_s1 + $0x40] sm:$0xff]  ;;  %v67_v27 = vld [vmem:[%s1258_s1 + $0x30] sm:$0xff]  ;;  %v52_v28 = vld [vmem:[%s1257_s0 + $0x38] sm:$0xff] }
  0x10   :  { %v94_v17 = vsel %vm93_vm0, %v710_v8, 0.0  ;;  %v103_v24 = vsel %vm93_vm0, %v738_v19, 0.0  ;;  %v68_v29 = vld [vmem:[%s1258_s1 + $0x38] sm:$0xff]  ;;  %v766_v30 = vadd.f32 %v69_v23, %v53_v22  ;;  %v768_v31 = vadd.f32 %v67_v27, %v51_v26  ;;  %v54_v38 = vld [vmem:[%s1257_s0 + $0x48] sm:$0xff]  ;;  %v55_v40 = vld [vmem:[%s1257_s0 + $0x50] sm:$0xff] }
  0x11   :  { %95 = vadd.xlane.f32.xlu0 %v94_v17  ;;  %v97_v25 = vsel %vm93_vm0, %v740_v20, 0.0  ;;  %v770_v32 = vadd.f32 %v68_v29, %v52_v28  ;;  %v56_v35 = vld [vmem:[%s1257_s0 + $0x58] sm:$0xff]  ;;  %v70_v39 = vld [vmem:[%s1258_s1 + $0x48] sm:$0xff]  ;;  %v71_v41 = vld [vmem:[%s1258_s1 + $0x50] sm:$0xff] }
  0x12   :  { %v118_v33 = vsel %vm93_vm0, %v766_v30, 0.0  ;;  %v112_v34 = vsel %vm93_vm0, %v768_v31, 0.0  ;;  %v72_v36 = vld [vmem:[%s1258_s1 + $0x58] sm:$0xff]  ;;  %v798_v43 = vadd.f32 %v70_v39, %v54_v38  ;;  %v800_v44 = vadd.f32 %v71_v41, %v55_v40  ;;  %v59_v47 = vld [vmem:[%s1257_s0 + $0x70] sm:$0xff]  ;;  %v57_v50 = vld [vmem:[%s1257_s0 + $0x60] sm:$0xff] }
  0x13   :  { %v115_v37 = vsel %vm93_vm0, %v770_v32, 0.0  ;;  %v796_v42 = vadd.f32 %v72_v36, %v56_v35  ;;  %v75_v48 = vld [vmem:[%s1258_s1 + $0x70] sm:$0xff]  ;;  %v73_v51 = vld [vmem:[%s1258_s1 + $0x60] sm:$0xff]  ;;  %v58_v52 = vld [vmem:[%s1257_s0 + $0x68] sm:$0xff]  ;;  %v569_v1 = vpop.eup %568 }
  0x14   :  { %v121_v46 = vsel %vm93_vm0, %v798_v43, 0.0  ;;  %v124_v49 = vsel %vm93_vm0, %v800_v44, 0.0  ;;  %v74_v53 = vld [vmem:[%s1258_s1 + $0x68] sm:$0xff]  ;;  %v826_v54 = vadd.f32 %v75_v48, %v59_v47  ;;  %v828_v55 = vadd.f32 %v73_v51, %v57_v50  ;;  %v60_v60 = vld [vmem:[%s1257_s0 + $0x78] sm:$0xff] }
  0x15   :  { %v127_v45 = vsel %vm93_vm0, %v796_v42, 0.0  ;;  %v830_v56 = vadd.f32 %v74_v53, %v58_v52  ;;  %v76_v61 = vld [vmem:[%s1258_s1 + $0x78] sm:$0xff]  ;;  %v143_v2 = vmul.f32 32.0, %v569_v1  ;;  %vm147_vm1 = vweird.f32 %v569_v1 }
  0x16   :  { %v136_v57 = vsel %vm93_vm0, %v826_v54, 0.0  ;;  %v130_v58 = vsel %vm93_vm0, %v828_v55, 0.0  ;;  %v844_v62 = vadd.f32 %v76_v61, %v60_v60 }
  0x17   :  { %110 = vadd.xlane.f32.xlu2 %v109_v21  ;;  %104 = vadd.xlane.f32.xlu1 %v103_v24  ;;  %v133_v59 = vsel %vm93_vm0, %v830_v56, 0.0  ;;  %v144_v4 = vsub.f32 1.0, %v143_v2 }
  0x18   :  { %v139_v63 = vsel %vm93_vm0, %v844_v62, 0.0 }
  0x19   :  { %98 = vadd.xlane.f32.xlu0 %v97_v25  ;;  %v145_v5 = vmul.f32 %v569_v1, %v144_v4 }
  0x1b   :  { %v146_v6 = vadd.f32 %v569_v1, %v145_v5 }
  0x1d   :  { %v848_v9 = vsel %vm147_vm1, %v569_v1, %v146_v6 }
  0x1f   :  { %119 = vadd.xlane.f32.xlu2 %v118_v33  ;;  %116 = vadd.xlane.f32.xlu1 %v115_v37 }
  0x21   :  { %113 = vadd.xlane.f32.xlu0 %v112_v34 }
  0x27   :  { %128 = vadd.xlane.f32.xlu2 %v127_v45  ;;  %125 = vadd.xlane.f32.xlu1 %v124_v49 }
  0x29   :  { %122 = vadd.xlane.f32.xlu0 %v121_v46 }
  0x2f   :  { %137 = vadd.xlane.f32.xlu2 %v136_v57  ;;  %134 = vadd.xlane.f32.xlu1 %v133_v59 }
  0x31   :  { %131 = vadd.xlane.f32.xlu0 %v130_v58 }
  0x39   :  { %140 = vadd.xlane.f32.xlu0 %v139_v63 }
  0x82   :  { %v108_v10 = vpop.xlane.xlu2 %107  ;;  %v102_v11 = vpop.xlane.xlu1 %101 }
  0x83   :  { %v151_v13 = vmul.f32 %v848_v9, %v102_v11  ;;  %v153_v34 = vmul.f32 %v848_v9, %v108_v10 }
  0x84   :  { %v96_v12 = vpop.xlane.xlu0 %95 }
  0x85   :  { %v149_v14 = vmul.f32 %v848_v9, %v96_v12  ;;  %v853_v15 = vsub.f32 %v708_v7, %v151_v13 }
  0x87   :  { %v856_v16 = vsub.f32 %v710_v8, %v149_v14  ;;  %v183_v17 = vmul.f32 %v853_v15, %v853_v15 }
  0x89   :  { %v181_v21 = vmul.f32 %v856_v16, %v856_v16  ;;  %v203_v23 = vsel %vm93_vm0, %v183_v17, 0.0 }
  0x8a   :  { %v111_v22 = vpop.xlane.xlu2 %110  ;;  %v105_v26 = vpop.xlane.xlu1 %104  ;;  %204 = vadd.xlane.f32.xlu0 %v203_v23 }
  0x8b   :  { %v197_v24 = vsel %vm93_vm0, %v181_v21, 0.0  ;;  %v154_v25 = vmul.f32 %v848_v9, %v111_v22  ;;  %v152_v8 = vmul.f32 %v848_v9, %v105_v26 }
  0x8c   :  { %198 = vadd.xlane.f32.xlu1 %v197_v24  ;;  %v99_v7 = vpop.xlane.xlu0 %98 }
  0x8d   :  { %v150_v27 = vmul.f32 %v848_v9, %v99_v7  ;;  %v868_v28 = vsub.f32 %v736_v18, %v154_v25  ;;  %v871_v29 = vsub.f32 %v738_v19, %v152_v8 }
  0x8f   :  { %v874_v33 = vsub.f32 %v740_v20, %v150_v27  ;;  %v186_v35 = vmul.f32 %v868_v28, %v868_v28  ;;  %v184_v36 = vmul.f32 %v871_v29, %v871_v29  ;;  %v887_v20 = vsub.f32 %v697_v3, %v153_v34 }
  0x91   :  { %v182_v37 = vmul.f32 %v874_v33, %v874_v33  ;;  %v212_v18 = vsel %vm93_vm0, %v186_v35, 0.0  ;;  %v206_v19 = vsel %vm93_vm0, %v184_v36, 0.0  ;;  %v185_v50 = vmul.f32 %v887_v20, %v887_v20 }
  0x92   :  { %v120_v38 = vpop.xlane.xlu2 %119  ;;  %213 = vadd.xlane.f32.xlu0 %v212_v18  ;;  %v117_v45 = vpop.xlane.xlu1 %116 }
  0x93   :  { %v200_v39 = vsel %vm93_vm0, %v182_v37, 0.0  ;;  %v157_v40 = vmul.f32 %v848_v9, %v120_v38  ;;  %v156_v48 = vmul.f32 %v848_v9, %v117_v45  ;;  %v209_v58 = vsel %vm93_vm0, %v185_v50, 0.0 }
  0x94   :  { %207 = vadd.xlane.f32.xlu1 %v206_v19  ;;  %v114_v41 = vpop.xlane.xlu0 %113  ;;  %201 = vadd.xlane.f32.xlu2 %v200_v39 }
  0x95   :  { %v155_v46 = vmul.f32 %v848_v9, %v114_v41  ;;  %v892_v47 = vsub.f32 %v766_v30, %v157_v40  ;;  %v905_v52 = vsub.f32 %v770_v32, %v156_v48 }
  0x97   :  { %v896_v49 = vsub.f32 %v768_v31, %v155_v46  ;;  %v189_v3 = vmul.f32 %v892_v47, %v892_v47  ;;  %v188_v0 = vmul.f32 %v905_v52, %v905_v52 }
  0x99   :  { %v187_v51 = vmul.f32 %v896_v49, %v896_v49  ;;  %v221_v30 = vsel %vm93_vm0, %v189_v3, 0.0  ;;  %v218_v6 = vsel %vm93_vm0, %v188_v0, 0.0 }
  0x9a   :  { %v129_v53 = vpop.xlane.xlu2 %128  ;;  %222 = vadd.xlane.f32.xlu0 %v221_v30  ;;  %v126_v60 = vpop.xlane.xlu1 %125 }
  0x9b   :  { %v215_v57 = vsel %vm93_vm0, %v187_v51, 0.0  ;;  %v160_v31 = vmul.f32 %v848_v9, %v129_v53  ;;  %v159_v32 = vmul.f32 %v848_v9, %v126_v60 }
  0x9c   :  { %216 = vadd.xlane.f32.xlu1 %v215_v57  ;;  %v123_v59 = vpop.xlane.xlu0 %122  ;;  %210 = vadd.xlane.f32.xlu2 %v209_v58 }
  0x9d   :  { %v158_v61 = vmul.f32 %v848_v9, %v123_v59  ;;  %v913_v63 = vsub.f32 %v796_v42, %v160_v31  ;;  %v926_v5 = vsub.f32 %v800_v44, %v159_v32 }
  0x9f   :  { %v919_v1 = vsub.f32 %v798_v43, %v158_v61  ;;  %v192_v2 = vmul.f32 %v913_v63, %v913_v63  ;;  %v191_v21 = vmul.f32 %v926_v5, %v926_v5 }
  0xa1   :  { %v190_v4 = vmul.f32 %v919_v1, %v919_v1  ;;  %v230_v42 = vsel %vm93_vm0, %v192_v2, 0.0  ;;  %v227_v26 = vsel %vm93_vm0, %v191_v21, 0.0 }
  0xa2   :  { %v138_v10 = vpop.xlane.xlu2 %137  ;;  %231 = vadd.xlane.f32.xlu0 %v230_v42  ;;  %v135_v13 = vpop.xlane.xlu1 %134 }
  0xa3   :  { %v224_v11 = vsel %vm93_vm0, %v190_v4, 0.0  ;;  %v163_v12 = vmul.f32 %v848_v9, %v138_v10  ;;  %v162_v44 = vmul.f32 %v848_v9, %v135_v13 }
  0xa4   :  { %225 = vadd.xlane.f32.xlu1 %v224_v11  ;;  %v132_v43 = vpop.xlane.xlu0 %131  ;;  %219 = vadd.xlane.f32.xlu2 %v218_v6 }
  0xa5   :  { %v161_v14 = vmul.f32 %v848_v9, %v132_v43  ;;  %v934_v17 = vsub.f32 %v826_v54, %v163_v12  ;;  %v947_v25 = vsub.f32 %v830_v56, %v162_v44 }
  0xa7   :  { %v940_v22 = vsub.f32 %v828_v55, %v161_v14  ;;  %v195_v23 = vmul.f32 %v934_v17, %v934_v17  ;;  %v194_v27 = vmul.f32 %v947_v25, %v947_v25 }
  0xa9   :  { %v193_v24 = vmul.f32 %v940_v22, %v940_v22  ;;  %v239_v54 = vsel %vm93_vm0, %v195_v23, 0.0  ;;  %v236_v35 = vsel %vm93_vm0, %v194_v27, 0.0 }
  0xaa   :  { %240 = vadd.xlane.f32.xlu0 %v239_v54  ;;  %v992_v54 = vld [vmem:[#allocation2] ss:$0 sm:$0xff] }
  0xab   :  { %v233_v7 = vsel %vm93_vm0, %v193_v24, 0.0 }
  0xac   :  { %234 = vadd.xlane.f32.xlu1 %v233_v7  ;;  %v141_v8 = vpop.xlane.xlu0 %140  ;;  %228 = vadd.xlane.f32.xlu2 %v227_v26 }
  0xad   :  { %v164_v55 = vmul.f32 %v848_v9, %v141_v8 }
  0xaf   :  { %v956_v34 = vsub.f32 %v844_v62, %v164_v55 }
  0xb1   :  { %v196_v56 = vmul.f32 %v956_v34, %v956_v34 }
  0xb3   :  { %v242_v36 = vsel %vm93_vm0, %v196_v56, 0.0 }
  0xb4   :  { %243 = vadd.xlane.f32.xlu1 %v242_v36  ;;  %237 = vadd.xlane.f32.xlu2 %v236_v35  ;;  %v1006_v35 = vld [vmem:[#allocation4] ss:$0 sm:$0xff] }
  0xfd   :  { %v205_v18 = vpop.xlane.xlu0 %204 }
  0xfe   :  { %v247_v19 = vmul.f32 %v205_v18, %v848_v9 }
  0xff   :  { %v199_v37 = vpop.xlane.xlu1 %198 }
 0x100   :  { %v245_v38 = vmul.f32 %v199_v37, %v848_v9  ;;  %v263_v40 = vadd.f32 1e-05, %v247_v19 }
 0x102   :  { %v261_v39 = vadd.f32 1e-05, %v245_v38  ;;  %vm303_vm4 = vweird.f32 %v263_v40 }
 0x104   :  { %570 = vrsqrt.f32 %v261_v39  ;;  %vm283_vm2 = vweird.f32 %v261_v39 }
 0x105   :  { %572 = vrsqrt.f32 %v263_v40  ;;  %v214_v41 = vpop.xlane.xlu0 %213 }
 0x106   :  { %v250_v48 = vmul.f32 %v214_v41, %v848_v9 }
 0x107   :  { %v208_v62 = vpop.xlane.xlu1 %207  ;;  %v202_v46 = vpop.xlane.xlu2 %201 }
 0x108   :  { %v248_v45 = vmul.f32 %v208_v62, %v848_v9  ;;  %v246_v3 = vmul.f32 %v202_v46, %v848_v9  ;;  %v969_v30 = vadd.f32 1e-05, %v250_v48 }
 0x10a   :  { %v571_v50 = vpop.eup %570  ;;  %v967_v51 = vadd.f32 1e-05, %v248_v45  ;;  %v971_v31 = vadd.f32 1e-05, %v246_v3  ;;  %vm333_vm10 = vweird.f32 %v969_v30 }
 0x10b   :  { %v573_v53 = vpop.eup %572  ;;  %v278_v57 = vmul.f32 %v571_v50, %v261_v39  ;;  %vm284_vm3 = vweird.f32 %v571_v50 }
 0x10c   :  { %v298_v58 = vmul.f32 %v573_v53, %v263_v40  ;;  %574 = vrsqrt.f32 %v967_v51  ;;  %vm304_vm5 = vweird.f32 %v573_v53  ;;  %vm313_vm6 = vweird.f32 %v967_v51  ;;  %vm285_vm7 = vmor %vm283_vm2, %vm284_vm3 }
 0x10d   :  { %v279_v59 = vmul.f32 %v571_v50, %v278_v57  ;;  %576 = vrsqrt.f32 %v971_v31  ;;  %v223_v0 = vpop.xlane.xlu0 %222  ;;  %vm305_vm8 = vmor %vm303_vm4, %vm304_vm5  ;;  %vm293_vm9 = vweird.f32 %v971_v31 }
 0x10e   :  { %v299_v60 = vmul.f32 %v573_v53, %v298_v58  ;;  %578 = vrsqrt.f32 %v969_v30  ;;  %v253_v6 = vmul.f32 %v223_v0, %v848_v9 }
 0x10f   :  { %v280_v61 = vmul.f32 0.5, %v279_v59  ;;  %v217_v32 = vpop.xlane.xlu1 %216  ;;  %v211_v4 = vpop.xlane.xlu2 %210 }
 0x110   :  { %v300_v2 = vmul.f32 0.5, %v299_v60  ;;  %v251_v42 = vmul.f32 %v217_v32, %v848_v9  ;;  %v249_v11 = vmul.f32 %v211_v4, %v848_v9  ;;  %v998_v8 = vadd.f32 1e-05, %v253_v6 }
 0x111   :  { %v281_v10 = vsub.f32 1.5, %v280_v61 }
 0x112   :  { %v979_v12 = vpop.eup %574  ;;  %v301_v43 = vsub.f32 1.5, %v300_v2  ;;  %v981_v13 = vadd.f32 1e-05, %v251_v42  ;;  %v988_v23 = vadd.f32 1e-05, %v249_v11 }
 0x113   :  { %v983_v14 = vpop.eup %576  ;;  %v282_v44 = vmul.f32 %v571_v50, %v281_v10  ;;  %v308_v21 = vmul.f32 %v979_v12, %v967_v51  ;;  %vm314_vm11 = vweird.f32 %v979_v12 }
 0x114   :  { %v990_v24 = vpop.eup %578  ;;  %v302_v26 = vmul.f32 %v573_v53, %v301_v43  ;;  %v288_v7 = vmul.f32 %v983_v14, %v971_v31  ;;  %580 = vrsqrt.f32 %v981_v13  ;;  %vm294_vm12 = vweird.f32 %v983_v14  ;;  %vm315_vm15 = vmor %vm313_vm6, %vm314_vm11 }
 0x115   :  { %v286_v55 = vsel %vm285_vm7, %v571_v50, %v282_v44  ;;  %v309_v27 = vmul.f32 %v979_v12, %v308_v21  ;;  %v328_v56 = vmul.f32 %v990_v24, %v969_v30  ;;  %582 = vrsqrt.f32 %v988_v23  ;;  %vm295_vm2 = vmor %vm293_vm9, %vm294_vm12 }
 0x116   :  { %v437_v36 = vmul.f32 %v286_v55, %v856_v16  ;;  %v306_v37 = vsel %vm305_vm8, %v573_v53, %v302_v26  ;;  %v289_v18 = vmul.f32 %v983_v14, %v288_v7  ;;  %584 = vrsqrt.f32 %v998_v8 }
 0x117   :  { %v439_v38 = vmul.f32 %v306_v37, %v853_v15  ;;  %v310_v19 = vmul.f32 0.5, %v309_v27  ;;  %v329_v39 = vmul.f32 %v990_v24, %v328_v56  ;;  %v220_v16 = vpop.xlane.xlu2 %219  ;;  %v226_v41 = vpop.xlane.xlu1 %225  ;;  %vm334_vm13 = vweird.f32 %v990_v24 }
 0x118   :  { %v457_v40 = vmul.f32 %v992_v54, %v437_v36  ;;  %v290_v62 = vmul.f32 0.5, %v289_v18  ;;  %v252_v53 = vmul.f32 %v220_v16, %v848_v9  ;;  %v254_v60 = vmul.f32 %v226_v41, %v848_v9  ;;  %vm335_vm3 = vmor %vm333_vm10, %vm334_vm13 }
 0x119   :  { %v459_v45 = vmul.f32 %v992_v54, %v439_v38  ;;  %v311_v46 = vsub.f32 1.5, %v310_v19  ;;  %v330_v15 = vmul.f32 0.5, %v329_v39  ;;  %vm323_vm4 = vweird.f32 %v988_v23 }
 0x11a   :  { %v1019_v48 = vpop.eup %580  ;;  %v477_v3 = vadd.f32 %v1006_v35, %v457_v40  ;;  %v291_v50 = vsub.f32 1.5, %v290_v62  ;;  %vm343_vm5 = vweird.f32 %v981_v13  ;;  %vm363_vm7 = vweird.f32 %v998_v8 }
 0x11b   :  { %v479_v57 = vadd.f32 %v1006_v35, %v459_v45  ;;  %v312_v58 = vmul.f32 %v979_v12, %v311_v46  ;;  %v331_v59 = vsub.f32 1.5, %v330_v15  ;;  %v1027_v61 = vpop.eup %582  ;;  %v338_v2 = vmul.f32 %v1019_v48, %v981_v13 }
 0x11c   :  { %vm493_vm14 = vcmp.ge.f32.partialorder %v477_v3, 0.0  ;;  %v509_v32 = vmul.f32 0.1, %v477_v3  ;;  %v292_v0 = vmul.f32 %v983_v14, %v291_v50  ;;  %v1042_v10 = vpop.eup %584  ;;  %vm344_vm6 = vweird.f32 %v1019_v48 }
 0x11d   :  { %vm495_vm1 = vcmp.ge.f32.partialorder %v479_v57, 0.0  ;;  %v511_v4 = vmul.f32 0.1, %v479_v57  ;;  %v316_v42 = vsel %vm315_vm15, %v979_v12, %v312_v58  ;;  %v332_v6 = vmul.f32 %v990_v24, %v331_v59 }
 0x11e   :  { %v525_v51 = vsel %vm493_vm14, %v477_v3, %v509_v32  ;;  %v440_v11 = vmul.f32 %v316_v42, %v871_v29  ;;  %v296_v43 = vsel %vm295_vm2, %v983_v14, %v292_v0  ;;  %v318_v12 = vmul.f32 %v1027_v61, %v988_v23  ;;  %vm345_vm14 = vmor %vm343_vm5, %vm344_vm6 }
 0x11f   :  { %541 = vst.msk [vmem:[%s1261_s4] sm:$0xff] %vm93_vm0, %v525_v51  ;;  %v527_v31 = vsel %vm495_vm1, %v479_v57, %v511_v4  ;;  %v438_v29 = vmul.f32 %v296_v43, %v874_v33  ;;  %v336_v14 = vsel %vm335_vm3, %v990_v24, %v332_v6  ;;  %v339_v33 = vmul.f32 %v1019_v48, %v338_v2  ;;  %v229_v41 = vpop.xlane.xlu2 %228  ;;  %v235_v13 = vpop.xlane.xlu1 %234 }
 0x120   :  { %543 = vst.msk [vmem:[%s1261_s4 + $0x10] sm:$0xff] %vm93_vm0, %v527_v31  ;;  %v460_v30 = vmul.f32 %v992_v54, %v440_v11  ;;  %v442_v44 = vmul.f32 %v336_v14, %v868_v28  ;;  %v319_v21 = vmul.f32 %v1027_v61, %v318_v12  ;;  %vm324_vm8 = vweird.f32 %v1027_v61  ;;  %v232_v28 = vpop.xlane.xlu0 %231 }
 0x121   :  { %v458_v24 = vmul.f32 %v992_v54, %v438_v29  ;;  %v358_v26 = vmul.f32 %v1042_v10, %v998_v8  ;;  %v1074_v7 = vadd.f32 1e-05, %v252_v53  ;;  %v340_v36 = vmul.f32 0.5, %v339_v33  ;;  %vm325_vm13 = vmor %vm323_vm4, %vm324_vm8 }
 0x122   :  { %v480_v55 = vadd.f32 %v1006_v35, %v460_v30  ;;  %v462_v27 = vmul.f32 %v992_v54, %v442_v44  ;;  %v320_v56 = vmul.f32 0.5, %v319_v21  ;;  %vm364_vm9 = vweird.f32 %v1042_v10 }
 0x123   :  { %v478_v37 = vadd.f32 %v1006_v35, %v458_v24  ;;  %v359_v18 = vmul.f32 %v1042_v10, %v358_v26  ;;  %586 = vrsqrt.f32 %v1074_v7  ;;  %v341_v62 = vsub.f32 1.5, %v340_v36  ;;  %vm365_vm15 = vmor %vm363_vm7, %vm364_vm9 }
 0x124   :  { %vm496_vm10 = vcmp.ge.f32.partialorder %v480_v55, 0.0  ;;  %v512_v38 = vmul.f32 0.1, %v480_v55  ;;  %v482_v19 = vadd.f32 %v1006_v35, %v462_v27  ;;  %v321_v39 = vsub.f32 1.5, %v320_v56 }
 0x125   :  { %vm494_vm11 = vcmp.ge.f32.partialorder %v478_v37, 0.0  ;;  %v510_v40 = vmul.f32 0.1, %v478_v37  ;;  %v360_v16 = vmul.f32 0.5, %v359_v18  ;;  %v342_v50 = vmul.f32 %v1019_v48, %v341_v62 }
 0x126   :  { %v528_v45 = vsel %vm496_vm10, %v480_v55, %v512_v38  ;;  %vm498_vm12 = vcmp.ge.f32.partialorder %v482_v19, 0.0  ;;  %v514_v46 = vmul.f32 0.1, %v482_v19  ;;  %v322_v15 = vmul.f32 %v1027_v61, %v321_v39 }
 0x127   :  { %544 = vst.msk [vmem:[%s1261_s4 + $0x18] sm:$0xff] %vm93_vm0, %v528_v45  ;;  %v526_v3 = vsel %vm494_vm11, %v478_v37, %v510_v40  ;;  %v361_v53 = vsub.f32 1.5, %v360_v16  ;;  %v1093_v57 = vadd.f32 1e-05, %v254_v60  ;;  %v256_v23 = vmul.f32 %v232_v28, %v848_v9  ;;  %v238_v55 = vpop.xlane.xlu2 %237 }
 0x128   :  { %542 = vst.msk [vmem:[%s1261_s4 + $0x8] sm:$0xff] %vm93_vm0, %v526_v3  ;;  %v530_v58 = vsel %vm498_vm12, %v482_v19, %v514_v46  ;;  %v326_v59 = vsel %vm325_vm13, %v1027_v61, %v322_v15  ;;  %v255_v32 = vmul.f32 %v229_v41, %v848_v9  ;;  %v346_v2 = vsel %vm345_vm14, %v1019_v48, %v342_v50  ;;  %v241_v31 = vpop.xlane.xlu0 %240  ;;  %v244_v41 = vpop.xlane.xlu1 %243 }
 0x129   :  { %v587_v0 = vpop.eup %586  ;;  %546 = vst.msk [vmem:[%s1261_s4 + $0x28] sm:$0xff] %vm93_vm0, %v530_v58  ;;  %v441_v60 = vmul.f32 %v326_v59, %v887_v20  ;;  %v362_v61 = vmul.f32 %v1042_v10, %v361_v53  ;;  %588 = vrsqrt.f32 %v1093_v57  ;;  %v443_v4 = vmul.f32 %v346_v2, %v896_v49 }
 0x12a   :  { %v348_v42 = vmul.f32 %v587_v0, %v1074_v7  ;;  %v1122_v51 = vadd.f32 1e-05, %v256_v23  ;;  %v1124_v48 = vadd.f32 1e-05, %v255_v32  ;;  %v257_v12 = vmul.f32 %v235_v13, %v848_v9 }
 0x12b   :  { %v461_v6 = vmul.f32 %v992_v54, %v441_v60  ;;  %v366_v20 = vsel %vm365_vm15, %v1042_v10, %v362_v61  ;;  %v463_v11 = vmul.f32 %v992_v54, %v443_v4  ;;  %vm354_vm1 = vweird.f32 %v587_v0 }
 0x12c   :  { %v445_v43 = vmul.f32 %v366_v20, %v892_v47  ;;  %v349_v49 = vmul.f32 %v587_v0, %v348_v42  ;;  %590 = vrsqrt.f32 %v1122_v51  ;;  %v1136_v44 = vadd.f32 1e-05, %v257_v12 }
 0x12d   :  { %v481_v8 = vadd.f32 %v1006_v35, %v461_v6  ;;  %v483_v29 = vadd.f32 %v1006_v35, %v463_v11  ;;  %592 = vrsqrt.f32 %v1124_v48  ;;  %v259_v21 = vmul.f32 %v241_v31, %v848_v9 }
 0x12e   :  { %v465_v10 = vmul.f32 %v992_v54, %v445_v43  ;;  %v350_v14 = vmul.f32 0.5, %v349_v49  ;;  %vm353_vm4 = vweird.f32 %v1074_v7  ;;  %594 = vrsqrt.f32 %v1136_v44 }
 0x12f   :  { %v1134_v30 = vpop.eup %588  ;;  %vm497_vm2 = vcmp.ge.f32.partialorder %v481_v8, 0.0  ;;  %v513_v47 = vmul.f32 0.1, %v481_v8  ;;  %vm499_vm3 = vcmp.ge.f32.partialorder %v483_v29, 0.0  ;;  %v515_v33 = vmul.f32 0.1, %v483_v29  ;;  %vm355_vm6 = vmor %vm353_vm4, %vm354_vm1 }
 0x130   :  { %v485_v24 = vadd.f32 %v1006_v35, %v465_v10  ;;  %v351_v26 = vsub.f32 1.5, %v350_v14  ;;  %v368_v56 = vmul.f32 %v1134_v30, %v1093_v57  ;;  %v1154_v38 = vadd.f32 1e-05, %v259_v21 }
 0x131   :  { %v529_v27 = vsel %vm497_vm2, %v481_v8, %v513_v47  ;;  %v531_v36 = vsel %vm499_vm3, %v483_v29, %v515_v33  ;;  %v258_v19 = vmul.f32 %v238_v55, %v848_v9  ;;  %vm373_vm7 = vweird.f32 %v1093_v57 }
 0x132   :  { %545 = vst.msk [vmem:[%s1261_s4 + $0x20] sm:$0xff] %vm93_vm0, %v529_v27  ;;  %vm501_vm5 = vcmp.ge.f32.partialorder %v485_v24, 0.0  ;;  %v517_v28 = vmul.f32 0.1, %v485_v24  ;;  %v352_v37 = vmul.f32 %v587_v0, %v351_v26  ;;  %v591_v18 = vpop.eup %590  ;;  %v369_v7 = vmul.f32 %v1134_v30, %v368_v56 }
 0x133   :  { %547 = vst.msk [vmem:[%s1261_s4 + $0x30] sm:$0xff] %vm93_vm0, %v531_v36  ;;  %v593_v39 = vpop.eup %592  ;;  %v388_v16 = vmul.f32 %v591_v18, %v1122_v51  ;;  %vm393_vm8 = vweird.f32 %v1122_v51  ;;  %vm374_vm9 = vweird.f32 %v1134_v30  ;;  %596 = vrsqrt.f32 %v1154_v38 }
 0x134   :  { %v533_v40 = vsel %vm501_vm5, %v485_v24, %v517_v28  ;;  %v356_v62 = vsel %vm355_vm6, %v587_v0, %v352_v37  ;;  %v370_v46 = vmul.f32 0.5, %v369_v7  ;;  %v378_v15 = vmul.f32 %v593_v39, %v1124_v48  ;;  %v595_v53 = vpop.eup %594  ;;  %vm375_vm12 = vmor %vm373_vm7, %vm374_vm9 }
 0x135   :  { %549 = vst.msk [vmem:[%s1261_s4 + $0x40] sm:$0xff] %vm93_vm0, %v533_v40  ;;  %v444_v45 = vmul.f32 %v356_v62, %v905_v52  ;;  %v389_v3 = vmul.f32 %v591_v18, %v388_v16  ;;  %v1168_v50 = vadd.f32 1e-05, %v258_v19  ;;  %v260_v32 = vmul.f32 %v244_v41, %v848_v9 }
 0x136   :  { %v371_v59 = vsub.f32 1.5, %v370_v46  ;;  %v379_v23 = vmul.f32 %v593_v39, %v378_v15  ;;  %vm383_vm10 = vweird.f32 %v1124_v48  ;;  %v398_v0 = vmul.f32 %v595_v53, %v1136_v44 }
 0x137   :  { %v464_v58 = vmul.f32 %v992_v54, %v444_v45  ;;  %v390_v52 = vmul.f32 0.5, %v389_v3  ;;  %598 = vrsqrt.f32 %v1168_v50  ;;  %vm394_vm11 = vweird.f32 %v591_v18 }
 0x138   :  { %v372_v2 = vmul.f32 %v1134_v30, %v371_v59  ;;  %v380_v61 = vmul.f32 0.5, %v379_v23  ;;  %vm384_vm13 = vweird.f32 %v593_v39  ;;  %v399_v9 = vmul.f32 %v595_v53, %v398_v0  ;;  %vm395_vm15 = vmor %vm393_vm8, %vm394_vm11 }
 0x139   :  { %v484_v60 = vadd.f32 %v1006_v35, %v464_v58  ;;  %v391_v13 = vsub.f32 1.5, %v390_v52  ;;  %v1181_v4 = vadd.f32 1e-05, %v260_v32  ;;  %v597_v11 = vpop.eup %596  ;;  %vm403_vm1 = vweird.f32 %v1136_v44  ;;  %vm385_vm2 = vmor %vm383_vm10, %vm384_vm13 }
 0x13a   :  { %v376_v6 = vsel %vm375_vm12, %v1134_v30, %v372_v2  ;;  %v381_v20 = vsub.f32 1.5, %v380_v61  ;;  %v400_v12 = vmul.f32 0.5, %v399_v9  ;;  %v418_v8 = vmul.f32 %v597_v11, %v1154_v38 }
 0x13b   :  { %vm500_vm14 = vcmp.ge.f32.partialorder %v484_v60, 0.0  ;;  %v516_v42 = vmul.f32 0.1, %v484_v60  ;;  %v446_v43 = vmul.f32 %v376_v6, %v919_v1  ;;  %v392_v49 = vmul.f32 %v591_v18, %v391_v13 }
 0x13c   :  { %600 = vrsqrt.f32 %v1181_v4  ;;  %v382_v57 = vmul.f32 %v593_v39, %v381_v20  ;;  %v401_v51 = vsub.f32 1.5, %v400_v12  ;;  %vm404_vm3 = vweird.f32 %v595_v53 }
 0x13d   :  { %v532_v31 = vsel %vm500_vm14, %v484_v60, %v516_v42  ;;  %v599_v29 = vpop.eup %598  ;;  %v466_v1 = vmul.f32 %v992_v54, %v446_v43  ;;  %v396_v10 = vsel %vm395_vm15, %v591_v18, %v392_v49  ;;  %v419_v47 = vmul.f32 %v597_v11, %v418_v8  ;;  %vm405_vm5 = vmor %vm403_vm1, %vm404_vm3 }
 0x13e   :  { %548 = vst.msk [vmem:[%s1261_s4 + $0x38] sm:$0xff] %vm93_vm0, %v532_v31  ;;  %v448_v14 = vmul.f32 %v396_v10, %v913_v63  ;;  %v386_v30 = vsel %vm385_vm2, %v593_v39, %v382_v57  ;;  %v408_v21 = vmul.f32 %v599_v29, %v1168_v50  ;;  %v402_v26 = vmul.f32 %v595_v53, %v401_v51 }
 0x13f   :  { %v486_v33 = vadd.f32 %v1006_v35, %v466_v1  ;;  %v447_v24 = vmul.f32 %v386_v30, %v926_v5  ;;  %vm423_vm4 = vweird.f32 %v1154_v38  ;;  %v420_v48 = vmul.f32 0.5, %v419_v47 }
 0x140   :  { %v468_v55 = vmul.f32 %v992_v54, %v448_v14  ;;  %vm424_vm6 = vweird.f32 %v597_v11  ;;  %v409_v27 = vmul.f32 %v599_v29, %v408_v21  ;;  %v406_v28 = vsel %vm405_vm5, %v595_v53, %v402_v26 }
 0x141   :  { %vm502_vm7 = vcmp.ge.f32.partialorder %v486_v33, 0.0  ;;  %v518_v56 = vmul.f32 0.1, %v486_v33  ;;  %v467_v36 = vmul.f32 %v992_v54, %v447_v24  ;;  %v449_v5 = vmul.f32 %v406_v28, %v940_v22  ;;  %vm425_vm11 = vmor %vm423_vm4, %vm424_vm6 }
 0x142   :  { %v601_v63 = vpop.eup %600  ;;  %v488_v37 = vadd.f32 %v1006_v35, %v468_v55  ;;  %v421_v18 = vsub.f32 1.5, %v420_v48  ;;  %v410_v7 = vmul.f32 0.5, %v409_v27  ;;  %vm414_vm8 = vweird.f32 %v599_v29 }
 0x143   :  { %v534_v19 = vsel %vm502_vm7, %v486_v33, %v518_v56  ;;  %v487_v39 = vadd.f32 %v1006_v35, %v467_v36  ;;  %v428_v44 = vmul.f32 %v601_v63, %v1181_v4  ;;  %v469_v62 = vmul.f32 %v992_v54, %v449_v5 }
 0x144   :  { %550 = vst.msk [vmem:[%s1261_s4 + $0x48] sm:$0xff] %vm93_vm0, %v534_v19  ;;  %vm504_vm9 = vcmp.ge.f32.partialorder %v488_v37, 0.0  ;;  %v520_v40 = vmul.f32 0.1, %v488_v37  ;;  %v422_v16 = vmul.f32 %v597_v11, %v421_v18  ;;  %v411_v41 = vsub.f32 1.5, %v410_v7 }
 0x145   :  { %vm503_vm10 = vcmp.ge.f32.partialorder %v487_v39, 0.0  ;;  %v519_v22 = vmul.f32 0.1, %v487_v39  ;;  %v429_v45 = vmul.f32 %v601_v63, %v428_v44  ;;  %v489_v15 = vadd.f32 %v1006_v35, %v469_v62 }
 0x146   :  { %v536_v46 = vsel %vm504_vm9, %v488_v37, %v520_v40  ;;  %v426_v3 = vsel %vm425_vm11, %v597_v11, %v422_v16  ;;  %vm413_vm12 = vweird.f32 %v1168_v50  ;;  %v412_v59 = vmul.f32 %v599_v29, %v411_v41 }
 0x147   :  { %552 = vst.msk [vmem:[%s1261_s4 + $0x58] sm:$0xff] %vm93_vm0, %v536_v46  ;;  %v535_v53 = vsel %vm503_vm10, %v487_v39, %v519_v22  ;;  %v451_v58 = vmul.f32 %v426_v3, %v934_v17  ;;  %v430_v23 = vmul.f32 0.5, %v429_v45  ;;  %vm505_vm13 = vcmp.ge.f32.partialorder %v489_v15, 0.0  ;;  %vm415_vm14 = vmor %vm413_vm12, %vm414_vm8 }
 0x148   :  { %551 = vst.msk [vmem:[%s1261_s4 + $0x50] sm:$0xff] %vm93_vm0, %v535_v53  ;;  %v521_v38 = vmul.f32 0.1, %v489_v15  ;;  %v416_v32 = vsel %vm415_vm14, %v599_v29, %v412_v59  ;;  %vm434_vm15 = vweird.f32 %v601_v63  ;;  %vm433_vm1 = vweird.f32 %v1181_v4 }
 0x149   :  { %v471_v50 = vmul.f32 %v992_v54, %v451_v58  ;;  %v431_v52 = vsub.f32 1.5, %v430_v23  ;;  %v450_v60 = vmul.f32 %v416_v32, %v947_v25  ;;  %vm435_vm2 = vmor %vm433_vm1, %vm434_vm15 }
 0x14a   :  { %v537_v0 = vsel %vm505_vm13, %v489_v15, %v521_v38 }
 0x14b   :  { %553 = vst.msk [vmem:[%s1261_s4 + $0x60] sm:$0xff] %vm93_vm0, %v537_v0  ;;  %v491_v17 = vadd.f32 %v1006_v35, %v471_v50  ;;  %v432_v2 = vmul.f32 %v601_v63, %v431_v52  ;;  %v470_v61 = vmul.f32 %v992_v54, %v450_v60 }
 0x14d   :  { %vm507_vm3 = vcmp.ge.f32.partialorder %v491_v17, 0.0  ;;  %v523_v13 = vmul.f32 0.1, %v491_v17  ;;  %v436_v9 = vsel %vm435_vm2, %v601_v63, %v432_v2  ;;  %v490_v42 = vadd.f32 %v1006_v35, %v470_v61 }
 0x14e   :  { %v452_v25 = vmul.f32 %v436_v9, %v956_v34 }
 0x14f   :  { %v539_v6 = vsel %vm507_vm3, %v491_v17, %v523_v13  ;;  %vm506_vm4 = vcmp.ge.f32.partialorder %v490_v42, 0.0  ;;  %v522_v20 = vmul.f32 0.1, %v490_v42 }
 0x150   :  { %555 = vst.msk [vmem:[%s1261_s4 + $0x70] sm:$0xff] %vm93_vm0, %v539_v6  ;;  %v472_v4 = vmul.f32 %v992_v54, %v452_v25 }
 0x151   :  { %v538_v11 = vsel %vm506_vm4, %v490_v42, %v522_v20 }
 0x152   :  { %v492_v43 = vadd.f32 %v1006_v35, %v472_v4  ;;  %554 = vst.msk [vmem:[%s1261_s4 + $0x68] sm:$0xff] %vm93_vm0, %v538_v11 }
 0x154   :  { %vm508_vm5 = vcmp.ge.f32.partialorder %v492_v43, 0.0  ;;  %v524_v34 = vmul.f32 0.1, %v492_v43 }
 0x156   :  { %v540_v49 = vsel %vm508_vm5, %v492_v43, %v524_v34 }
 0x157   :  { %556 = vst.msk [vmem:[%s1261_s4 + $0x78] sm:$0xff] %vm93_vm0, %v540_v49 }
 0x158   :  { %561 = vsyncpa [#allocation3], 1 }
 0x159   :  { %562 = vsyncpa [#allocation5], 1 }

// kernel: gnn_node_forward.12
= control target key start
LH: loop header
LB: loop body
LE: loop exit
PB: predicated region body
PF: predicated region fallthrough
CT: control target
= control target key end

     0   :  { %9 = vsyncpa [#allocation3], 0  ;;  %s1142_s18 = smov [#allocation2]   ;;  %s2472_s0 = inlined_call_operand.vmem [shape: f32[256,32], index: 0, kind: input, shape index: {}]   ;;  %s2473_s1 = inlined_call_operand.vmem [shape: f32[256,32], index: 1, kind: input, shape index: {}]   ;;  %s2474_s2 = inlined_call_operand.vmem [shape: f32[1,32], index: 2, kind: input, shape index: {}]   ;;  %s2475_s3 = inlined_call_operand.hbm [shape: f32[1,32], index: 3, kind: input, shape index: {}]   ;;  %s2476_s4 = inlined_call_operand.vmem [shape: f32[256,32], index: 4, kind: output, shape index: {}]  }
   0x1   :  { %s21_s17 = sshll.u32 %s2475_s3, 4  ;;  %s23_s19 = sshll.u32 %s1142_s18, 4  ;;  %s22_s17 = int_to_ptr.hbm [resolvable:$true] %s21_s17  ;;  %s24_s19 = int_to_ptr.vmem [resolvable:$true] %s23_s19 }
   0x2   :  { %26 = dma.hbm_to_vmem [thread:$0]  %s22_s17, 16, %s24_s19, [#allocation3]  }
   0x3   :  { %1140 = dma.done.wait [#allocation3], 16  }
   0x4   :  { %1141 = vsyncadd [#allocation3], 4294967280  ;;  %v35_v0 = vld [vmem:[%s2472_s0 + $0x20] sm:$0xff]  ;;  %vm127_vm0 = vcmask 261120   ;;  %v33_v2 = vld [vmem:[%s2472_s0 + $0x10] sm:$0xff] }
   0x5   :  { %v67_v1 = vld [vmem:[%s2473_s1 + $0x20] sm:$0xff]  ;;  %v65_v4 = vld [vmem:[%s2473_s1 + $0x10] sm:$0xff]  ;;  %v36_v9 = vld [vmem:[%s2472_s0 + $0x28] sm:$0xff] }
   0x6   :  { %v1181_v3 = vadd.f32 %v67_v1, %v35_v0  ;;  %v31_v5 = vld [vmem:[%s2472_s0] sm:$0xff]  ;;  %v1192_v7 = vadd.f32 %v65_v4, %v33_v2  ;;  %v68_v10 = vld [vmem:[%s2473_s1 + $0x28] sm:$0xff]  ;;  %v34_v11 = vld [vmem:[%s2472_s0 + $0x18] sm:$0xff] }
   0x7   :  { %v63_v6 = vld [vmem:[%s2473_s1] sm:$0xff]  ;;  %v66_v13 = vld [vmem:[%s2473_s1 + $0x18] sm:$0xff]  ;;  %v32_v14 = vld [vmem:[%s2472_s0 + $0x8] sm:$0xff]  ;;  %v1220_v18 = vadd.f32 %v68_v10, %v36_v9 }
   0x8   :  { %v1194_v8 = vadd.f32 %v63_v6, %v31_v5  ;;  %v140_v12 = vsel %vm127_vm0, %v1181_v3, 0.0  ;;  %v64_v15 = vld [vmem:[%s2473_s1 + $0x8] sm:$0xff]  ;;  %v134_v16 = vsel %vm127_vm0, %v1192_v7, 0.0  ;;  %v1222_v19 = vadd.f32 %v66_v13, %v34_v11  ;;  %v39_v22 = vld [vmem:[%s2472_s0 + $0x40] sm:$0xff]  ;;  %v37_v26 = vld [vmem:[%s2472_s0 + $0x30] sm:$0xff] }
   0x9   :  { %141 = vadd.xlane.f32.xlu2 %v140_v12  ;;  %135 = vadd.xlane.f32.xlu1 %v134_v16  ;;  %v1224_v20 = vadd.f32 %v64_v15, %v32_v14  ;;  %v143_v21 = vsel %vm127_vm0, %v1220_v18, 0.0  ;;  %v71_v23 = vld [vmem:[%s2473_s1 + $0x40] sm:$0xff]  ;;  %v69_v27 = vld [vmem:[%s2473_s1 + $0x30] sm:$0xff]  ;;  %v38_v28 = vld [vmem:[%s2472_s0 + $0x38] sm:$0xff] }
   0xa   :  { %v128_v17 = vsel %vm127_vm0, %v1194_v8, 0.0  ;;  %v137_v24 = vsel %vm127_vm0, %v1222_v19, 0.0  ;;  %v70_v29 = vld [vmem:[%s2473_s1 + $0x38] sm:$0xff]  ;;  %v1250_v30 = vadd.f32 %v71_v23, %v39_v22  ;;  %v1252_v31 = vadd.f32 %v69_v27, %v37_v26  ;;  %v40_v38 = vld [vmem:[%s2472_s0 + $0x48] sm:$0xff]  ;;  %v41_v40 = vld [vmem:[%s2472_s0 + $0x50] sm:$0xff] }
   0xb   :  { %129 = vadd.xlane.f32.xlu0 %v128_v17  ;;  %v131_v25 = vsel %vm127_vm0, %v1224_v20, 0.0  ;;  %v1254_v32 = vadd.f32 %v70_v29, %v38_v28  ;;  %v42_v35 = vld [vmem:[%s2472_s0 + $0x58] sm:$0xff]  ;;  %v72_v39 = vld [vmem:[%s2473_s1 + $0x48] sm:$0xff]  ;;  %v73_v41 = vld [vmem:[%s2473_s1 + $0x50] sm:$0xff] }
   0xc   :  { %v152_v33 = vsel %vm127_vm0, %v1250_v30, 0.0  ;;  %v146_v34 = vsel %vm127_vm0, %v1252_v31, 0.0  ;;  %v74_v36 = vld [vmem:[%s2473_s1 + $0x58] sm:$0xff]  ;;  %v1282_v43 = vadd.f32 %v72_v39, %v40_v38  ;;  %v1284_v44 = vadd.f32 %v73_v41, %v41_v40  ;;  %v45_v47 = vld [vmem:[%s2472_s0 + $0x70] sm:$0xff]  ;;  %v43_v50 = vld [vmem:[%s2472_s0 + $0x60] sm:$0xff] }
   0xd   :  { %v149_v37 = vsel %vm127_vm0, %v1254_v32, 0.0  ;;  %v1280_v42 = vadd.f32 %v74_v36, %v42_v35  ;;  %v77_v48 = vld [vmem:[%s2473_s1 + $0x70] sm:$0xff]  ;;  %v75_v51 = vld [vmem:[%s2473_s1 + $0x60] sm:$0xff]  ;;  %v44_v52 = vld [vmem:[%s2472_s0 + $0x68] sm:$0xff] }
   0xe   :  { %v155_v46 = vsel %vm127_vm0, %v1282_v43, 0.0  ;;  %v158_v49 = vsel %vm127_vm0, %v1284_v44, 0.0  ;;  %v76_v53 = vld [vmem:[%s2473_s1 + $0x68] sm:$0xff]  ;;  %v1310_v54 = vadd.f32 %v77_v48, %v45_v47  ;;  %v1312_v55 = vadd.f32 %v75_v51, %v43_v50  ;;  %v46_v62 = vld [vmem:[%s2472_s0 + $0x78] sm:$0xff]  ;;  %v47_v0 = vld [vmem:[%s2472_s0 + $0x80] sm:$0xff] }
   0xf   :  { %v161_v45 = vsel %vm127_vm0, %v1280_v42, 0.0  ;;  %v1314_v56 = vadd.f32 %v76_v53, %v44_v52  ;;  %v48_v59 = vld [vmem:[%s2472_s0 + $0x88] sm:$0xff]  ;;  %v78_v63 = vld [vmem:[%s2473_s1 + $0x78] sm:$0xff]  ;;  %v79_v1 = vld [vmem:[%s2473_s1 + $0x80] sm:$0xff] }
  0x10   :  { %v170_v57 = vsel %vm127_vm0, %v1310_v54, 0.0  ;;  %v164_v58 = vsel %vm127_vm0, %v1312_v55, 0.0  ;;  %v80_v60 = vld [vmem:[%s2473_s1 + $0x88] sm:$0xff]  ;;  %v1342_v4 = vadd.f32 %v78_v63, %v46_v62  ;;  %v1344_v5 = vadd.f32 %v79_v1, %v47_v0  ;;  %v51_v10 = vld [vmem:[%s2472_s0 + $0xa0] sm:$0xff]  ;;  %v49_v13 = vld [vmem:[%s2472_s0 + $0x90] sm:$0xff] }
  0x11   :  { %144 = vadd.xlane.f32.xlu2 %v143_v21  ;;  %138 = vadd.xlane.f32.xlu1 %v137_v24  ;;  %v167_v61 = vsel %vm127_vm0, %v1314_v56, 0.0  ;;  %v1340_v2 = vadd.f32 %v80_v60, %v48_v59  ;;  %v83_v11 = vld [vmem:[%s2473_s1 + $0xa0] sm:$0xff]  ;;  %v81_v14 = vld [vmem:[%s2473_s1 + $0x90] sm:$0xff]  ;;  %v50_v15 = vld [vmem:[%s2472_s0 + $0x98] sm:$0xff] }
  0x12   :  { %v173_v9 = vsel %vm127_vm0, %v1342_v4, 0.0  ;;  %v176_v12 = vsel %vm127_vm0, %v1344_v5, 0.0  ;;  %v82_v16 = vld [vmem:[%s2473_s1 + $0x98] sm:$0xff]  ;;  %v1370_v17 = vadd.f32 %v83_v11, %v51_v10  ;;  %v1372_v21 = vadd.f32 %v81_v14, %v49_v13  ;;  %v52_v28 = vld [vmem:[%s2472_s0 + $0xa8] sm:$0xff]  ;;  %v57_v40 = vld [vmem:[%s2472_s0 + $0xd0] sm:$0xff] }
  0x13   :  { %132 = vadd.xlane.f32.xlu0 %v131_v25  ;;  %v179_v6 = vsel %vm127_vm0, %v1340_v2, 0.0  ;;  %v1374_v22 = vadd.f32 %v82_v16, %v50_v15  ;;  %v54_v25 = vld [vmem:[%s2472_s0 + $0xb8] sm:$0xff]  ;;  %v84_v29 = vld [vmem:[%s2473_s1 + $0xa8] sm:$0xff]  ;;  %v89_v41 = vld [vmem:[%s2473_s1 + $0xd0] sm:$0xff] }
  0x14   :  { %v188_v23 = vsel %vm127_vm0, %v1370_v17, 0.0  ;;  %v182_v24 = vsel %vm127_vm0, %v1372_v21, 0.0  ;;  %v86_v26 = vld [vmem:[%s2473_s1 + $0xb8] sm:$0xff]  ;;  %v1402_v36 = vadd.f32 %v84_v29, %v52_v28  ;;  %v87_v47 = vld [vmem:[%s2473_s1 + $0xc0] sm:$0xff]  ;;  %v56_v48 = vld [vmem:[%s2472_s0 + $0xc8] sm:$0xff]  ;;  %v1430_v50 = vadd.f32 %v89_v41, %v57_v40 }
  0x15   :  { %v185_v27 = vsel %vm127_vm0, %v1374_v22, 0.0  ;;  %v1400_v35 = vadd.f32 %v86_v26, %v54_v25  ;;  %v92_v59 = vld [vmem:[%s2473_s1 + $0xe8] sm:$0xff]  ;;  %v90_v62 = vld [vmem:[%s2473_s1 + $0xd8] sm:$0xff]  ;;  %v59_v63 = vld [vmem:[%s2472_s0 + $0xe0] sm:$0xff] }
  0x16   :  { %v191_v39 = vsel %vm127_vm0, %v1402_v36, 0.0  ;;  %v206_v53 = vsel %vm127_vm0, %v1430_v50, 0.0  ;;  %v91_v0 = vld [vmem:[%s2473_s1 + $0xe0] sm:$0xff]  ;;  %v61_v13 = vld [vmem:[%s2472_s0 + $0xf0] sm:$0xff]  ;;  %v62_v15 = vld [vmem:[%s2472_s0 + $0xf8] sm:$0xff] }
  0x17   :  { %v197_v38 = vsel %vm127_vm0, %v1400_v35, 0.0  ;;  %v93_v14 = vld [vmem:[%s2473_s1 + $0xf0] sm:$0xff]  ;;  %v94_v16 = vld [vmem:[%s2473_s1 + $0xf8] sm:$0xff] }
  0x19   :  { %153 = vadd.xlane.f32.xlu2 %v152_v33  ;;  %150 = vadd.xlane.f32.xlu1 %v149_v37  ;;  %v53_v33 = vld [vmem:[%s2472_s0 + $0xb0] sm:$0xff] }
  0x1b   :  { %147 = vadd.xlane.f32.xlu0 %v146_v34  ;;  %v85_v34 = vld [vmem:[%s2473_s1 + $0xb0] sm:$0xff] }
  0x1c   :  { %v1404_v37 = vadd.f32 %v85_v34, %v53_v33 }
  0x21   :  { %162 = vadd.xlane.f32.xlu2 %v161_v45  ;;  %159 = vadd.xlane.f32.xlu1 %v158_v49  ;;  %v194_v45 = vsel %vm127_vm0, %v1404_v37, 0.0  ;;  %v88_v49 = vld [vmem:[%s2473_s1 + $0xc8] sm:$0xff] }
  0x22   :  { %v1434_v52 = vadd.f32 %v88_v49, %v56_v48 }
  0x23   :  { %156 = vadd.xlane.f32.xlu0 %v155_v46  ;;  %v55_v46 = vld [vmem:[%s2472_s0 + $0xc0] sm:$0xff] }
  0x24   :  { %v1432_v51 = vadd.f32 %v87_v47, %v55_v46  ;;  %v203_v60 = vsel %vm127_vm0, %v1434_v52, 0.0 }
  0x29   :  { %171 = vadd.xlane.f32.xlu2 %v170_v57  ;;  %168 = vadd.xlane.f32.xlu1 %v167_v61  ;;  %v200_v57 = vsel %vm127_vm0, %v1432_v51, 0.0  ;;  %v58_v61 = vld [vmem:[%s2472_s0 + $0xd8] sm:$0xff] }
  0x2b   :  { %165 = vadd.xlane.f32.xlu0 %v164_v58  ;;  %v60_v58 = vld [vmem:[%s2472_s0 + $0xe8] sm:$0xff] }
  0x2c   :  { %v1460_v1 = vadd.f32 %v92_v59, %v60_v58 }
  0x2e   :  { %v215_v10 = vsel %vm127_vm0, %v1460_v1, 0.0 }
  0x31   :  { %180 = vadd.xlane.f32.xlu2 %v179_v6  ;;  %177 = vadd.xlane.f32.xlu1 %v176_v12  ;;  %v1462_v6 = vadd.f32 %v90_v62, %v58_v61 }
  0x33   :  { %174 = vadd.xlane.f32.xlu0 %v173_v9  ;;  %v1464_v9 = vadd.f32 %v91_v0, %v59_v63  ;;  %v209_v11 = vsel %vm127_vm0, %v1462_v6, 0.0 }
  0x35   :  { %v212_v12 = vsel %vm127_vm0, %v1464_v9, 0.0 }
  0x39   :  { %189 = vadd.xlane.f32.xlu2 %v188_v23  ;;  %186 = vadd.xlane.f32.xlu1 %v185_v27  ;;  %v1484_v23 = vadd.f32 %v93_v14, %v61_v13  ;;  %v1143_v27 = vmov 32.0  }
  0x3a   :  { %1048 = vrcp.f32 %v1143_v27 }
  0x3b   :  { %183 = vadd.xlane.f32.xlu0 %v182_v24  ;;  %v1486_v24 = vadd.f32 %v94_v16, %v62_v15  ;;  %v218_v25 = vsel %vm127_vm0, %v1484_v23, 0.0 }
  0x3d   :  { %v221_v26 = vsel %vm127_vm0, %v1486_v24, 0.0 }
  0x40   :  { %v1049_v28 = vpop.eup %1048 }
  0x41   :  { %198 = vadd.xlane.f32.xlu2 %v197_v38  ;;  %195 = vadd.xlane.f32.xlu1 %v194_v45  ;;  %v225_v29 = vmul.f32 32.0, %v1049_v28  ;;  %vm229_vm1 = vweird.f32 %v1049_v28 }
  0x43   :  { %192 = vadd.xlane.f32.xlu0 %v191_v39  ;;  %v226_v33 = vsub.f32 1.0, %v225_v29 }
  0x45   :  { %v227_v34 = vmul.f32 %v1049_v28, %v226_v33 }
  0x47   :  { %v228_v38 = vadd.f32 %v1049_v28, %v227_v34 }
  0x49   :  { %207 = vadd.xlane.f32.xlu2 %v206_v53  ;;  %204 = vadd.xlane.f32.xlu1 %v203_v60  ;;  %v1492_v39 = vsel %vm229_vm1, %v1049_v28, %v228_v38 }
  0x4b   :  { %201 = vadd.xlane.f32.xlu0 %v200_v57 }
  0x51   :  { %216 = vadd.xlane.f32.xlu2 %v215_v10  ;;  %213 = vadd.xlane.f32.xlu1 %v212_v12 }
  0x53   :  { %210 = vadd.xlane.f32.xlu0 %v209_v11 }
  0x59   :  { %222 = vadd.xlane.f32.xlu1 %v221_v26 }
  0x5b   :  { %219 = vadd.xlane.f32.xlu0 %v218_v25 }
  0x7c   :  { %v142_v40 = vpop.xlane.xlu2 %141  ;;  %v136_v41 = vpop.xlane.xlu1 %135 }
  0x7d   :  { %v233_v46 = vmul.f32 %v1492_v39, %v136_v41  ;;  %v235_v0 = vmul.f32 %v1492_v39, %v142_v40 }
  0x7e   :  { %v130_v45 = vpop.xlane.xlu0 %129 }
  0x7f   :  { %v231_v47 = vmul.f32 %v1492_v39, %v130_v45  ;;  %v1497_v48 = vsub.f32 %v1192_v7, %v233_v46  ;;  %v1528_v16 = vsub.f32 %v1181_v3, %v235_v0 }
  0x81   :  { %v1500_v49 = vsub.f32 %v1194_v8, %v231_v47  ;;  %v297_v53 = vmul.f32 %v1497_v48, %v1497_v48  ;;  %v299_v34 = vmul.f32 %v1528_v16, %v1528_v16 }
  0x83   :  { %v295_v57 = vmul.f32 %v1500_v49, %v1500_v49  ;;  %v333_v59 = vsel %vm127_vm0, %v297_v53, 0.0 }
  0x84   :  { %v145_v58 = vpop.xlane.xlu2 %144  ;;  %334 = vadd.xlane.f32.xlu1 %v333_v59  ;;  %v139_v62 = vpop.xlane.xlu1 %138 }
  0x85   :  { %v327_v60 = vsel %vm127_vm0, %v295_v57, 0.0  ;;  %v236_v61 = vmul.f32 %v1492_v39, %v145_v58  ;;  %v234_v8 = vmul.f32 %v1492_v39, %v139_v62 }
  0x86   :  { %328 = vadd.xlane.f32.xlu2 %v327_v60  ;;  %v133_v7 = vpop.xlane.xlu0 %132 }
  0x87   :  { %v232_v63 = vmul.f32 %v1492_v39, %v133_v7  ;;  %v1513_v10 = vsub.f32 %v1220_v18, %v236_v61  ;;  %v1516_v11 = vsub.f32 %v1222_v19, %v234_v8 }
  0x89   :  { %v1519_v12 = vsub.f32 %v1224_v20, %v232_v63  ;;  %v300_v13 = vmul.f32 %v1513_v10, %v1513_v10  ;;  %v298_v14 = vmul.f32 %v1516_v11, %v1516_v11 }
  0x8b   :  { %v296_v15 = vmul.f32 %v1519_v12, %v1519_v12  ;;  %v342_v18 = vsel %vm127_vm0, %v300_v13, 0.0  ;;  %v336_v19 = vsel %vm127_vm0, %v298_v14, 0.0 }
  0x8c   :  { %v154_v25 = vpop.xlane.xlu2 %153  ;;  %343 = vadd.xlane.f32.xlu1 %v342_v18  ;;  %v151_v28 = vpop.xlane.xlu1 %150 }
  0x8d   :  { %v330_v20 = vsel %vm127_vm0, %v296_v15, 0.0  ;;  %v239_v26 = vmul.f32 %v1492_v39, %v154_v25  ;;  %v238_v3 = vmul.f32 %v1492_v39, %v151_v28 }
  0x8e   :  { %337 = vadd.xlane.f32.xlu2 %v336_v19  ;;  %v148_v27 = vpop.xlane.xlu0 %147  ;;  %331 = vadd.xlane.f32.xlu0 %v330_v20 }
  0x8f   :  { %v237_v29 = vmul.f32 %v1492_v39, %v148_v27  ;;  %v1536_v33 = vsub.f32 %v1250_v30, %v239_v26  ;;  %v1550_v46 = vsub.f32 %v1254_v32, %v238_v3  ;;  %v339_v30 = vsel %vm127_vm0, %v299_v34, 0.0 }
  0x91   :  { %v1542_v38 = vsub.f32 %v1252_v31, %v237_v29  ;;  %v303_v40 = vmul.f32 %v1536_v33, %v1536_v33  ;;  %v302_v61 = vmul.f32 %v1550_v46, %v1550_v46 }
  0x93   :  { %v301_v41 = vmul.f32 %v1542_v38, %v1542_v38  ;;  %v351_v45 = vsel %vm127_vm0, %v303_v40, 0.0 }
  0x94   :  { %v163_v47 = vpop.xlane.xlu2 %162  ;;  %352 = vadd.xlane.f32.xlu1 %v351_v45  ;;  %v160_v58 = vpop.xlane.xlu1 %159 }
  0x95   :  { %v345_v53 = vsel %vm127_vm0, %v301_v41, 0.0  ;;  %v242_v57 = vmul.f32 %v1492_v39, %v163_v47  ;;  %v241_v32 = vmul.f32 %v1492_v39, %v160_v58 }
  0x96   :  { %346 = vadd.xlane.f32.xlu2 %v345_v53  ;;  %v157_v31 = vpop.xlane.xlu0 %156  ;;  %340 = vadd.xlane.f32.xlu0 %v339_v30 }
  0x97   :  { %v240_v59 = vmul.f32 %v1492_v39, %v157_v31  ;;  %v1557_v60 = vsub.f32 %v1280_v42, %v242_v57  ;;  %v1571_v0 = vsub.f32 %v1284_v44, %v241_v32  ;;  %v348_v42 = vsel %vm127_vm0, %v302_v61, 0.0 }
  0x99   :  { %v1563_v62 = vsub.f32 %v1282_v43, %v240_v59  ;;  %v306_v7 = vmul.f32 %v1557_v60, %v1557_v60  ;;  %v305_v20 = vmul.f32 %v1571_v0, %v1571_v0 }
  0x9b   :  { %v304_v8 = vmul.f32 %v1563_v62, %v1563_v62  ;;  %v360_v63 = vsel %vm127_vm0, %v306_v7, 0.0 }
  0x9c   :  { %v172_v13 = vpop.xlane.xlu2 %171  ;;  %361 = vadd.xlane.f32.xlu1 %v360_v63  ;;  %v169_v18 = vpop.xlane.xlu1 %168 }
  0x9d   :  { %v354_v14 = vsel %vm127_vm0, %v304_v8, 0.0  ;;  %v245_v15 = vmul.f32 %v1492_v39, %v172_v13  ;;  %v244_v44 = vmul.f32 %v1492_v39, %v169_v18 }
  0x9e   :  { %355 = vadd.xlane.f32.xlu2 %v354_v14  ;;  %v166_v43 = vpop.xlane.xlu0 %165  ;;  %349 = vadd.xlane.f32.xlu0 %v348_v42 }
  0x9f   :  { %v243_v25 = vmul.f32 %v1492_v39, %v166_v43  ;;  %v1578_v19 = vsub.f32 %v1310_v54, %v245_v15  ;;  %v1592_v3 = vsub.f32 %v1314_v56, %v244_v44  ;;  %v357_v54 = vsel %vm127_vm0, %v305_v20, 0.0 }
  0xa1   :  { %v1584_v26 = vsub.f32 %v1312_v55, %v243_v25  ;;  %v309_v27 = vmul.f32 %v1578_v19, %v1578_v19  ;;  %v308_v53 = vmul.f32 %v1592_v3, %v1592_v3 }
  0xa3   :  { %v307_v28 = vmul.f32 %v1584_v26, %v1584_v26  ;;  %v369_v29 = vsel %vm127_vm0, %v309_v27, 0.0 }
  0xa4   :  { %v181_v34 = vpop.xlane.xlu2 %180  ;;  %370 = vadd.xlane.f32.xlu1 %v369_v29  ;;  %v178_v45 = vpop.xlane.xlu1 %177 }
  0xa5   :  { %v363_v40 = vsel %vm127_vm0, %v307_v28, 0.0  ;;  %v248_v41 = vmul.f32 %v1492_v39, %v181_v34  ;;  %v247_v56 = vmul.f32 %v1492_v39, %v178_v45 }
  0xa6   :  { %364 = vadd.xlane.f32.xlu2 %v363_v40  ;;  %v175_v55 = vpop.xlane.xlu0 %174  ;;  %358 = vadd.xlane.f32.xlu0 %v357_v54 }
  0xa7   :  { %v246_v30 = vmul.f32 %v1492_v39, %v175_v55  ;;  %v1599_v47 = vsub.f32 %v1340_v2, %v248_v41  ;;  %v1613_v32 = vsub.f32 %v1344_v5, %v247_v56  ;;  %v366_v2 = vsel %vm127_vm0, %v308_v53, 0.0 }
  0xa9   :  { %v1605_v57 = vsub.f32 %v1342_v4, %v246_v30  ;;  %v312_v31 = vmul.f32 %v1599_v47, %v1599_v47  ;;  %v311_v14 = vmul.f32 %v1613_v32, %v1613_v32 }
  0xab   :  { %v310_v58 = vmul.f32 %v1605_v57, %v1605_v57  ;;  %v378_v59 = vsel %vm127_vm0, %v312_v31, 0.0 }
  0xac   :  { %v190_v61 = vpop.xlane.xlu2 %189  ;;  %379 = vadd.xlane.f32.xlu1 %v378_v59  ;;  %v187_v63 = vpop.xlane.xlu1 %186 }
  0xad   :  { %v372_v7 = vsel %vm127_vm0, %v310_v58, 0.0  ;;  %v251_v8 = vmul.f32 %v1492_v39, %v190_v61  ;;  %v250_v5 = vmul.f32 %v1492_v39, %v187_v63 }
  0xae   :  { %373 = vadd.xlane.f32.xlu2 %v372_v7  ;;  %v184_v4 = vpop.xlane.xlu0 %183  ;;  %367 = vadd.xlane.f32.xlu0 %v366_v2 }
  0xaf   :  { %v249_v42 = vmul.f32 %v1492_v39, %v184_v4  ;;  %v1620_v13 = vsub.f32 %v1370_v17, %v251_v8  ;;  %v1634_v44 = vsub.f32 %v1374_v22, %v250_v5  ;;  %v375_v17 = vsel %vm127_vm0, %v311_v14, 0.0 }
  0xb1   :  { %v1626_v15 = vsub.f32 %v1372_v21, %v249_v42  ;;  %v315_v43 = vmul.f32 %v1620_v13, %v1620_v13  ;;  %v314_v40 = vmul.f32 %v1634_v44, %v1634_v44 }
  0xb3   :  { %v313_v18 = vmul.f32 %v1626_v15, %v1626_v15  ;;  %v387_v25 = vsel %vm127_vm0, %v315_v43, 0.0 }
  0xb4   :  { %v199_v20 = vpop.xlane.xlu2 %198  ;;  %388 = vadd.xlane.f32.xlu1 %v387_v25  ;;  %v196_v29 = vpop.xlane.xlu1 %195 }
  0xb5   :  { %v381_v27 = vsel %vm127_vm0, %v313_v18, 0.0  ;;  %v254_v28 = vmul.f32 %v1492_v39, %v199_v20  ;;  %v253_v22 = vmul.f32 %v1492_v39, %v196_v29 }
  0xb6   :  { %382 = vadd.xlane.f32.xlu2 %v381_v27  ;;  %v193_v21 = vpop.xlane.xlu0 %192  ;;  %376 = vadd.xlane.f32.xlu0 %v375_v17 }
  0xb7   :  { %v252_v54 = vmul.f32 %v1492_v39, %v193_v21  ;;  %v1641_v34 = vsub.f32 %v1400_v35, %v254_v28  ;;  %v1655_v56 = vsub.f32 %v1404_v37, %v253_v22  ;;  %v384_v35 = vsel %vm127_vm0, %v314_v40, 0.0 }
  0xb9   :  { %v1647_v41 = vsub.f32 %v1402_v36, %v252_v54  ;;  %v318_v55 = vmul.f32 %v1641_v34, %v1641_v34  ;;  %v317_v7 = vmul.f32 %v1655_v56, %v1655_v56 }
  0xbb   :  { %v316_v45 = vmul.f32 %v1647_v41, %v1647_v41  ;;  %v396_v30 = vsel %vm127_vm0, %v318_v55, 0.0 }
  0xbc   :  { %v208_v53 = vpop.xlane.xlu2 %207  ;;  %397 = vadd.xlane.f32.xlu1 %v396_v30  ;;  %v205_v59 = vpop.xlane.xlu1 %204 }
  0xbd   :  { %v390_v31 = vsel %vm127_vm0, %v316_v45, 0.0  ;;  %v257_v58 = vmul.f32 %v1492_v39, %v208_v53  ;;  %v256_v37 = vmul.f32 %v1492_v39, %v205_v59 }
  0xbe   :  { %391 = vadd.xlane.f32.xlu2 %v390_v31  ;;  %v202_v36 = vpop.xlane.xlu0 %201  ;;  %385 = vadd.xlane.f32.xlu0 %v384_v35 }
  0xbf   :  { %v255_v2 = vmul.f32 %v1492_v39, %v202_v36  ;;  %v1662_v61 = vsub.f32 %v1430_v50, %v257_v58  ;;  %v1676_v5 = vsub.f32 %v1434_v52, %v256_v37  ;;  %v393_v50 = vsel %vm127_vm0, %v317_v7, 0.0 }
  0xc1   :  { %v1668_v8 = vsub.f32 %v1432_v51, %v255_v2  ;;  %v321_v4 = vmul.f32 %v1662_v61, %v1662_v61  ;;  %v320_v27 = vmul.f32 %v1676_v5, %v1676_v5 }
  0xc3   :  { %v319_v63 = vmul.f32 %v1668_v8, %v1668_v8  ;;  %v405_v42 = vsel %vm127_vm0, %v321_v4, 0.0 }
  0xc4   :  { %v217_v14 = vpop.xlane.xlu2 %216  ;;  %406 = vadd.xlane.f32.xlu1 %v405_v42  ;;  %v214_v25 = vpop.xlane.xlu1 %213 }
  0xc5   :  { %v399_v43 = vsel %vm127_vm0, %v319_v63, 0.0  ;;  %v260_v18 = vmul.f32 %v1492_v39, %v217_v14  ;;  %v259_v52 = vmul.f32 %v1492_v39, %v214_v25 }
  0xc6   :  { %400 = vadd.xlane.f32.xlu2 %v399_v43  ;;  %v211_v51 = vpop.xlane.xlu0 %210  ;;  %394 = vadd.xlane.f32.xlu0 %v393_v50 }
  0xc7   :  { %v258_v17 = vmul.f32 %v1492_v39, %v211_v51  ;;  %v1683_v20 = vsub.f32 %v1460_v1, %v260_v18  ;;  %v1697_v22 = vsub.f32 %v1464_v9, %v259_v52  ;;  %v402_v1 = vsel %vm127_vm0, %v320_v27, 0.0 }
  0xc9   :  { %v1689_v28 = vsub.f32 %v1462_v6, %v258_v17  ;;  %v324_v21 = vmul.f32 %v1683_v20, %v1683_v20  ;;  %v323_v35 = vmul.f32 %v1697_v22, %v1697_v22 }
  0xcb   :  { %v322_v29 = vmul.f32 %v1689_v28, %v1689_v28  ;;  %v414_v54 = vsel %vm127_vm0, %v324_v21, 0.0  ;;  %v411_v58 = vsel %vm127_vm0, %v323_v35, 0.0 }
  0xcc   :  { %415 = vadd.xlane.f32.xlu1 %v414_v54  ;;  %v223_v6 = vpop.xlane.xlu1 %222 }
  0xcd   :  { %v408_v40 = vsel %vm127_vm0, %v322_v29, 0.0  ;;  %v262_v30 = vmul.f32 %v1492_v39, %v223_v6 }
  0xce   :  { %409 = vadd.xlane.f32.xlu2 %v408_v40  ;;  %v220_v55 = vpop.xlane.xlu0 %219  ;;  %403 = vadd.xlane.f32.xlu0 %v402_v1 }
  0xcf   :  { %v261_v45 = vmul.f32 %v1492_v39, %v220_v55  ;;  %v1711_v31 = vsub.f32 %v1486_v24, %v262_v30 }
  0xd1   :  { %v1706_v53 = vsub.f32 %v1484_v23, %v261_v45  ;;  %v326_v59 = vmul.f32 %v1711_v31, %v1711_v31 }
  0xd3   :  { %v325_v9 = vmul.f32 %v1706_v53, %v1706_v53  ;;  %v420_v2 = vsel %vm127_vm0, %v326_v59, 0.0 }
  0xd5   :  { %v417_v36 = vsel %vm127_vm0, %v325_v9, 0.0 }
  0xd6   :  { %418 = vadd.xlane.f32.xlu2 %v417_v36  ;;  %412 = vadd.xlane.f32.xlu0 %v411_v58 }
  0xde   :  { %421 = vadd.xlane.f32.xlu0 %v420_v2 }
  0xf7   :  { %v335_v23 = vpop.xlane.xlu1 %334 }
  0xf8   :  { %v425_v7 = vmul.f32 %v335_v23, %v1492_v39 }
  0xf9   :  { %v329_v37 = vpop.xlane.xlu2 %328 }
  0xfa   :  { %v423_v4 = vmul.f32 %v329_v37, %v1492_v39  ;;  %v457_v24 = vadd.f32 1e-05, %v425_v7 }
  0xfc   :  { %v455_v63 = vadd.f32 1e-05, %v423_v4  ;;  %1050 = vrsqrt.f32 %v457_v24  ;;  %vm513_vm2 = vweird.f32 %v457_v24 }
  0xfe   :  { %1052 = vrsqrt.f32 %v455_v63  ;;  %vm493_vm4 = vweird.f32 %v455_v63 }
  0xff   :  { %v344_v42 = vpop.xlane.xlu1 %343 }
 0x100   :  { %v428_v14 = vmul.f32 %v344_v42, %v1492_v39 }
 0x101   :  { %v338_v50 = vpop.xlane.xlu2 %337  ;;  %v332_v18 = vpop.xlane.xlu0 %331 }
 0x102   :  { %v426_v43 = vmul.f32 %v338_v50, %v1492_v39  ;;  %v424_v51 = vmul.f32 %v332_v18, %v1492_v39  ;;  %v1051_v25 = vpop.eup %1050  ;;  %v1723_v17 = vadd.f32 1e-05, %v428_v14 }
 0x103   :  { %v508_v21 = vmul.f32 %v1051_v25, %v457_v24  ;;  %vm514_vm3 = vweird.f32 %v1051_v25 }
 0x104   :  { %v1725_v52 = vadd.f32 1e-05, %v426_v43  ;;  %v1053_v27 = vpop.eup %1052  ;;  %v1727_v29 = vadd.f32 1e-05, %v424_v51  ;;  %1054 = vrsqrt.f32 %v1723_v17  ;;  %vm543_vm6 = vweird.f32 %v1723_v17  ;;  %v1752_v43 = vld [vmem:[%s2474_s2] ss:$0 sm:$0xff]  ;;  %vm515_vm8 = vmor %vm513_vm2, %vm514_vm3 }
 0x105   :  { %v488_v54 = vmul.f32 %v1053_v27, %v455_v63  ;;  %v509_v1 = vmul.f32 %v1051_v25, %v508_v21  ;;  %vm494_vm5 = vweird.f32 %v1053_v27 }
 0x106   :  { %1056 = vrsqrt.f32 %v1725_v52  ;;  %vm523_vm7 = vweird.f32 %v1725_v52  ;;  %vm495_vm9 = vmor %vm493_vm4, %vm494_vm5  ;;  %vm503_vm11 = vweird.f32 %v1727_v29 }
 0x107   :  { %v489_v40 = vmul.f32 %v1053_v27, %v488_v54  ;;  %1058 = vrsqrt.f32 %v1727_v29  ;;  %v510_v55 = vmul.f32 0.5, %v509_v1  ;;  %v353_v6 = vpop.xlane.xlu1 %352 }
 0x108   :  { %v431_v35 = vmul.f32 %v353_v6, %v1492_v39 }
 0x109   :  { %v347_v45 = vpop.xlane.xlu2 %346  ;;  %v490_v30 = vmul.f32 0.5, %v489_v40  ;;  %v341_v58 = vpop.xlane.xlu0 %340  ;;  %v511_v36 = vsub.f32 1.5, %v510_v55  ;;  %v1768_v40 = vld [vmem:[#allocation2] ss:$0 sm:$0xff] }
 0x10a   :  { %v429_v9 = vmul.f32 %v347_v45, %v1492_v39  ;;  %v427_v59 = vmul.f32 %v341_v58, %v1492_v39  ;;  %v1735_v2 = vpop.eup %1054  ;;  %v1738_v37 = vadd.f32 1e-05, %v431_v35 }
 0x10b   :  { %v491_v23 = vsub.f32 1.5, %v490_v30  ;;  %v512_v4 = vmul.f32 %v1051_v25, %v511_v36  ;;  %v538_v42 = vmul.f32 %v1735_v2, %v1723_v17  ;;  %vm544_vm10 = vweird.f32 %v1735_v2 }
 0x10c   :  { %v1740_v7 = vpop.eup %1056  ;;  %v1745_v50 = vadd.f32 1e-05, %v429_v9  ;;  %1060 = vrsqrt.f32 %v1738_v37  ;;  %v1759_v21 = vadd.f32 1e-05, %v427_v59  ;;  %vm573_vm14 = vweird.f32 %v1738_v37  ;;  %vm1788_vm15 = vmor %vm543_vm6, %vm544_vm10 }
 0x10d   :  { %v1747_v14 = vpop.eup %1058  ;;  %v492_v18 = vmul.f32 %v1053_v27, %v491_v23  ;;  %v518_v51 = vmul.f32 %v1740_v7, %v1725_v52  ;;  %v516_v54 = vsel %vm515_vm8, %v1051_v25, %v512_v4  ;;  %v539_v1 = vmul.f32 %v1735_v2, %v538_v42 }
 0x10e   :  { %v498_v24 = vmul.f32 %v1747_v14, %v1727_v29  ;;  %v809_v55 = vmul.f32 %v516_v54, %v1497_v48  ;;  %vm524_vm12 = vweird.f32 %v1740_v7  ;;  %1062 = vrsqrt.f32 %v1745_v50 }
 0x10f   :  { %v496_v6 = vsel %vm495_vm9, %v1053_v27, %v492_v18  ;;  %v519_v45 = vmul.f32 %v1740_v7, %v518_v51  ;;  %v540_v25 = vmul.f32 0.5, %v539_v1  ;;  %v362_v35 = vpop.xlane.xlu1 %361  ;;  %vm504_vm13 = vweird.f32 %v1747_v14  ;;  %vm525_vm4 = vmor %vm523_vm7, %vm524_vm12 }
 0x110   :  { %v807_v63 = vmul.f32 %v496_v6, %v1500_v49  ;;  %v499_v30 = vmul.f32 %v1747_v14, %v498_v24  ;;  %v845_v58 = vmul.f32 %v1752_v43, %v809_v55  ;;  %1064 = vrsqrt.f32 %v1759_v21  ;;  %vm505_vm6 = vmor %vm503_vm11, %vm504_vm13 }
 0x111   :  { %v356_v9 = vpop.xlane.xlu2 %355  ;;  %v520_v36 = vmul.f32 0.5, %v519_v45  ;;  %v541_v27 = vsub.f32 1.5, %v540_v25  ;;  %v434_v18 = vmul.f32 %v362_v35, %v1492_v39  ;;  %vm553_vm5 = vweird.f32 %v1745_v50 }
 0x112   :  { %v843_v48 = vmul.f32 %v1752_v43, %v807_v63  ;;  %v500_v59 = vmul.f32 0.5, %v499_v30  ;;  %v1781_v49 = vpop.eup %1060  ;;  %v881_v23 = vadd.f32 %v1768_v40, %v845_v58  ;;  %v432_v51 = vmul.f32 %v356_v9, %v1492_v39 }
 0x113   :  { %v521_v42 = vsub.f32 1.5, %v520_v36  ;;  %v542_v1 = vmul.f32 %v1735_v2, %v541_v27  ;;  %v568_v55 = vmul.f32 %v1781_v49, %v1738_v37  ;;  %vm574_vm2 = vweird.f32 %v1781_v49 }
 0x114   :  { %v879_v54 = vadd.f32 %v1768_v40, %v843_v48  ;;  %v501_v24 = vsub.f32 1.5, %v500_v59  ;;  %vm913_vm1 = vcmp.ge.f32.partialorder %v881_v23, 0.0  ;;  %v945_v6 = vmul.f32 0.1, %v881_v23  ;;  %v1800_v45 = vpop.eup %1062  ;;  %vm1849_vm9 = vmor %vm573_vm14, %vm574_vm2 }
 0x115   :  { %v522_v17 = vmul.f32 %v1740_v7, %v521_v42  ;;  %v546_v25 = vsel %vm1788_vm15, %v1735_v2, %v542_v1  ;;  %v569_v2 = vmul.f32 %v1781_v49, %v568_v55  ;;  %vm554_vm7 = vweird.f32 %v1800_v45 }
 0x116   :  { %vm911_vm3 = vcmp.ge.f32.partialorder %v879_v54, 0.0  ;;  %v943_v63 = vmul.f32 0.1, %v879_v54  ;;  %v502_v30 = vmul.f32 %v1747_v14, %v501_v24  ;;  %v1811_v35 = vpop.eup %1064  ;;  %v977_v9 = vsel %vm913_vm1, %v881_v23, %v945_v6  ;;  %vm555_vm13 = vmor %vm553_vm5, %vm554_vm7 }
 0x117   :  { %v812_v58 = vmul.f32 %v546_v25, %v1513_v10  ;;  %v526_v36 = vsel %vm525_vm4, %v1740_v7, %v522_v17  ;;  %1009 = vst.msk [vmem:[%s2476_s4 + $0x10] sm:$0xff] %vm127_vm0, %v977_v9  ;;  %v548_v10 = vmul.f32 %v1800_v45, %v1745_v50  ;;  %v350_v7 = vpop.xlane.xlu0 %349  ;;  %v570_v23 = vmul.f32 0.5, %v569_v2 }
 0x118   :  { %v975_v52 = vsel %vm911_vm3, %v879_v54, %v943_v63  ;;  %v810_v48 = vmul.f32 %v526_v36, %v1516_v11  ;;  %v506_v27 = vsel %vm505_vm6, %v1747_v14, %v502_v30  ;;  %v528_v4 = vmul.f32 %v1811_v35, %v1759_v21 }
 0x119   :  { %1007 = vst.msk [vmem:[%s2476_s4] sm:$0xff] %vm127_vm0, %v975_v52  ;;  %v848_v29 = vmul.f32 %v1752_v43, %v812_v58  ;;  %v808_v59 = vmul.f32 %v506_v27, %v1519_v12  ;;  %v549_v14 = vmul.f32 %v1800_v45, %v548_v10  ;;  %vm534_vm8 = vweird.f32 %v1811_v35  ;;  %v371_v12 = vpop.xlane.xlu1 %370  ;;  %v365_v58 = vpop.xlane.xlu2 %364 }
 0x11a   :  { %v846_v11 = vmul.f32 %v1752_v43, %v810_v48  ;;  %v571_v1 = vsub.f32 1.5, %v570_v23  ;;  %v1842_v24 = vadd.f32 1e-05, %v434_v18  ;;  %v529_v63 = vmul.f32 %v1811_v35, %v528_v4 }
 0x11b   :  { %v884_v42 = vadd.f32 %v1768_v40, %v848_v29  ;;  %v844_v54 = vmul.f32 %v1752_v43, %v808_v59  ;;  %v550_v17 = vmul.f32 0.5, %v549_v14  ;;  %v1854_v25 = vadd.f32 1e-05, %v432_v51 }
 0x11c   :  { %v882_v55 = vadd.f32 %v1768_v40, %v846_v11  ;;  %v572_v9 = vmul.f32 %v1781_v49, %v571_v1  ;;  %v530_v37 = vmul.f32 0.5, %v529_v63  ;;  %vm533_vm14 = vweird.f32 %v1759_v21 }
 0x11d   :  { %vm916_vm10 = vcmp.ge.f32.partialorder %v884_v42, 0.0  ;;  %v948_v30 = vmul.f32 0.1, %v884_v42  ;;  %v880_v18 = vadd.f32 %v1768_v40, %v844_v54  ;;  %v551_v2 = vsub.f32 1.5, %v550_v17  ;;  %vm535_vm15 = vmor %vm533_vm14, %vm534_vm8 }
 0x11e   :  { %vm914_vm11 = vcmp.ge.f32.partialorder %v882_v55, 0.0  ;;  %v946_v36 = vmul.f32 0.1, %v882_v55  ;;  %v576_v27 = vsel %vm1849_vm9, %v1781_v49, %v572_v9  ;;  %v531_v59 = vsub.f32 1.5, %v530_v37 }
 0x11f   :  { %v980_v52 = vsel %vm916_vm10, %v884_v42, %v948_v30  ;;  %vm912_vm12 = vcmp.ge.f32.partialorder %v880_v18, 0.0  ;;  %v944_v48 = vmul.f32 0.1, %v880_v18  ;;  %v815_v10 = vmul.f32 %v576_v27, %v1536_v33  ;;  %v359_v14 = vpop.xlane.xlu0 %358 }
 0x120   :  { %1012 = vst.msk [vmem:[%s2476_s4 + $0x28] sm:$0xff] %vm127_vm0, %v980_v52  ;;  %v978_v51 = vsel %vm914_vm11, %v882_v55, %v946_v36  ;;  %v552_v29 = vmul.f32 %v1800_v45, %v551_v2  ;;  %1066 = vrsqrt.f32 %v1842_v24  ;;  %v532_v11 = vmul.f32 %v1811_v35, %v531_v59 }
 0x121   :  { %1010 = vst.msk [vmem:[%s2476_s4 + $0x18] sm:$0xff] %vm127_vm0, %v978_v51  ;;  %v976_v23 = vsel %vm912_vm12, %v880_v18, %v944_v48  ;;  %v851_v33 = vmul.f32 %v1752_v43, %v815_v10  ;;  %1068 = vrsqrt.f32 %v1854_v25  ;;  %v430_v21 = vmul.f32 %v350_v7, %v1492_v39  ;;  %v380_v17 = vpop.xlane.xlu1 %379 }
 0x122   :  { %1008 = vst.msk [vmem:[%s2476_s4 + $0x8] sm:$0xff] %vm127_vm0, %v976_v23  ;;  %v556_v49 = vsel %vm555_vm13, %v1800_v45, %v552_v29  ;;  %v437_v4 = vmul.f32 %v371_v12, %v1492_v39  ;;  %v435_v42 = vmul.f32 %v365_v58, %v1492_v39  ;;  %v536_v45 = vsel %vm535_vm15, %v1811_v35, %v532_v11 }
 0x123   :  { %v813_v50 = vmul.f32 %v556_v49, %v1542_v38  ;;  %v887_v54 = vadd.f32 %v1768_v40, %v851_v33  ;;  %v811_v55 = vmul.f32 %v536_v45, %v1528_v16  ;;  %v1895_v6 = vadd.f32 1e-05, %v430_v21  ;;  %v374_v16 = vpop.xlane.xlu2 %373 }
 0x124   :  { %v1897_v38 = vadd.f32 1e-05, %v437_v4  ;;  %v1899_v7 = vadd.f32 1e-05, %v435_v42  ;;  %v433_v35 = vmul.f32 %v359_v14, %v1492_v39  ;;  %v440_v2 = vmul.f32 %v380_v17, %v1492_v39 }
 0x125   :  { %v849_v1 = vmul.f32 %v1752_v43, %v813_v50  ;;  %vm919_vm1 = vcmp.ge.f32.partialorder %v887_v54, 0.0  ;;  %v951_v63 = vmul.f32 0.1, %v887_v54  ;;  %v847_v18 = vmul.f32 %v1752_v43, %v811_v55 }
 0x126   :  { %v1901_v12 = vpop.eup %1066  ;;  %1070 = vrsqrt.f32 %v1895_v6  ;;  %vm603_vm3 = vweird.f32 %v1842_v24  ;;  %v438_v51 = vmul.f32 %v374_v16, %v1492_v39  ;;  %v1930_v33 = vadd.f32 1e-05, %v433_v35 }
 0x127   :  { %v885_v30 = vadd.f32 %v1768_v40, %v849_v1  ;;  %v1907_v9 = vpop.eup %1068  ;;  %v983_v58 = vsel %vm919_vm1, %v887_v54, %v951_v63  ;;  %v598_v36 = vmul.f32 %v1901_v12, %v1842_v24  ;;  %1072 = vrsqrt.f32 %v1897_v38  ;;  %v368_v11 = vpop.xlane.xlu0 %367 }
 0x128   :  { %1015 = vst.msk [vmem:[%s2476_s4 + $0x40] sm:$0xff] %vm127_vm0, %v983_v58  ;;  %v883_v52 = vadd.f32 %v1768_v40, %v847_v18  ;;  %v578_v48 = vmul.f32 %v1907_v9, %v1854_v25  ;;  %1074 = vrsqrt.f32 %v1899_v7  ;;  %vm604_vm5 = vweird.f32 %v1901_v12 }
 0x129   :  { %vm917_vm2 = vcmp.ge.f32.partialorder %v885_v30, 0.0  ;;  %v949_v37 = vmul.f32 0.1, %v885_v30  ;;  %v599_v27 = vmul.f32 %v1901_v12, %v598_v36  ;;  %v1932_v49 = vadd.f32 1e-05, %v440_v2  ;;  %vm1954_vm9 = vmor %vm603_vm3, %vm604_vm5  ;;  %v389_v36 = vpop.xlane.xlu1 %388 }
 0x12a   :  { %vm915_vm4 = vcmp.ge.f32.partialorder %v883_v52, 0.0  ;;  %v947_v29 = vmul.f32 0.1, %v883_v52  ;;  %v579_v59 = vmul.f32 %v1907_v9, %v578_v48  ;;  %vm583_vm6 = vweird.f32 %v1854_v25 }
 0x12b   :  { %v981_v10 = vsel %vm917_vm2, %v885_v30, %v949_v37  ;;  %v600_v23 = vmul.f32 0.5, %v599_v27  ;;  %vm584_vm7 = vweird.f32 %v1907_v9  ;;  %vm563_vm8 = vweird.f32 %v1895_v6 }
 0x12c   :  { %1013 = vst.msk [vmem:[%s2476_s4 + $0x30] sm:$0xff] %vm127_vm0, %v981_v10  ;;  %v1934_v14 = vpop.eup %1070  ;;  %v979_v50 = vsel %vm915_vm4, %v883_v52, %v947_v29  ;;  %v580_v21 = vmul.f32 0.5, %v579_v59  ;;  %1076 = vrsqrt.f32 %v1930_v33  ;;  %v1948_v45 = vadd.f32 1e-05, %v438_v51  ;;  %vm585_vm14 = vmor %vm583_vm6, %vm584_vm7 }
 0x12d   :  { %v1938_v4 = vpop.eup %1072  ;;  %1011 = vst.msk [vmem:[%s2476_s4 + $0x20] sm:$0xff] %vm127_vm0, %v979_v50  ;;  %v601_v42 = vsub.f32 1.5, %v600_v23  ;;  %v558_v54 = vmul.f32 %v1934_v14, %v1895_v6  ;;  %vm633_vm10 = vweird.f32 %v1897_v38  ;;  %v436_v63 = vmul.f32 %v368_v11, %v1492_v39 }
 0x12e   :  { %v581_v55 = vsub.f32 1.5, %v580_v21  ;;  %v628_v17 = vmul.f32 %v1938_v4, %v1897_v38  ;;  %v1962_v30 = vpop.eup %1074  ;;  %vm564_vm11 = vweird.f32 %v1934_v14  ;;  %vm613_vm12 = vweird.f32 %v1899_v7 }
 0x12f   :  { %v602_v18 = vmul.f32 %v1901_v12, %v601_v42  ;;  %v559_v35 = vmul.f32 %v1934_v14, %v558_v54  ;;  %1078 = vrsqrt.f32 %v1932_v49  ;;  %vm634_vm13 = vweird.f32 %v1938_v4  ;;  %v2012_v54 = vpop.xlane.xlu2 %382  ;;  %vm565_vm4 = vmor %vm563_vm8, %vm564_vm11 }
 0x130   :  { %v582_v24 = vmul.f32 %v1907_v9, %v581_v55  ;;  %v629_v16 = vmul.f32 %v1938_v4, %v628_v17  ;;  %v608_v58 = vmul.f32 %v1962_v30, %v1899_v7  ;;  %vm614_vm15 = vweird.f32 %v1962_v30  ;;  %vm2005_vm1 = vmor %vm633_vm10, %vm634_vm13  ;;  %v377_v7 = vpop.xlane.xlu0 %376 }
 0x131   :  { %v606_v2 = vsel %vm1954_vm9, %v1901_v12, %v602_v18  ;;  %v560_v37 = vmul.f32 0.5, %v559_v35  ;;  %1080 = vrsqrt.f32 %v1948_v45  ;;  %v1989_v59 = vadd.f32 1e-05, %v436_v63  ;;  %vm615_vm10 = vmor %vm613_vm12, %vm614_vm15 }
 0x132   :  { %v818_v52 = vmul.f32 %v606_v2, %v1557_v60  ;;  %v586_v48 = vsel %vm585_vm14, %v1907_v9, %v582_v24  ;;  %v630_v27 = vmul.f32 0.5, %v629_v16  ;;  %v609_v51 = vmul.f32 %v1962_v30, %v608_v58  ;;  %v1986_v10 = vpop.eup %1076 }
 0x133   :  { %v816_v12 = vmul.f32 %v586_v48, %v1563_v62  ;;  %v561_v29 = vsub.f32 1.5, %v560_v37  ;;  %v1992_v25 = vmul.f32 %v389_v36, %v1492_v39  ;;  %v588_v60 = vmul.f32 %v1986_v10, %v1930_v33 }
 0x134   :  { %v854_v23 = vmul.f32 %v1752_v43, %v818_v52  ;;  %v631_v11 = vsub.f32 1.5, %v630_v27  ;;  %v610_v50 = vmul.f32 0.5, %v609_v51  ;;  %vm594_vm2 = vweird.f32 %v1986_v10 }
 0x135   :  { %v1997_v9 = vpop.eup %1078  ;;  %v852_v21 = vmul.f32 %v1752_v43, %v816_v12  ;;  %v562_v42 = vmul.f32 %v1934_v14, %v561_v29  ;;  %vm663_vm3 = vweird.f32 %v1932_v49  ;;  %1082 = vrsqrt.f32 %v1989_v59 }
 0x136   :  { %v890_v1 = vadd.f32 %v1768_v40, %v854_v23  ;;  %v632_v38 = vmul.f32 %v1938_v4, %v631_v11  ;;  %v611_v55 = vsub.f32 1.5, %v610_v50  ;;  %v589_v17 = vmul.f32 %v1986_v10, %v588_v60 }
 0x137   :  { %vm593_vm5 = vweird.f32 %v1930_v33  ;;  %v2022_v63 = vpop.eup %1080  ;;  %v888_v18 = vadd.f32 %v1768_v40, %v852_v21  ;;  %v566_v35 = vsel %vm565_vm4, %v1934_v14, %v562_v42  ;;  %v658_v24 = vmul.f32 %v1997_v9, %v1932_v49 }
 0x138   :  { %vm664_vm6 = vweird.f32 %v1997_v9  ;;  %vm922_vm7 = vcmp.ge.f32.partialorder %v890_v1, 0.0  ;;  %v954_v6 = vmul.f32 0.1, %v890_v1  ;;  %v814_v16 = vmul.f32 %v566_v35, %v1550_v46  ;;  %vm595_vm14 = vmor %vm593_vm5, %vm594_vm2 }
 0x139   :  { %v636_v58 = vsel %vm2005_vm1, %v1938_v4, %v632_v38  ;;  %vm920_vm8 = vcmp.ge.f32.partialorder %v888_v18, 0.0  ;;  %v952_v36 = vmul.f32 0.1, %v888_v18  ;;  %v612_v37 = vmul.f32 %v1962_v30, %v611_v55  ;;  %v398_v38 = vpop.xlane.xlu1 %397  ;;  %vm2075_vm15 = vmor %vm663_vm3, %vm664_vm6 }
 0x13a   :  { %v821_v2 = vmul.f32 %v636_v58, %v1578_v19  ;;  %vm643_vm9 = vweird.f32 %v1948_v45  ;;  %v986_v14 = vsel %vm922_vm7, %v890_v1, %v954_v6  ;;  %v850_v52 = vmul.f32 %v1752_v43, %v814_v16 }
 0x13b   :  { %v590_v46 = vmul.f32 0.5, %v589_v17  ;;  %v659_v48 = vmul.f32 %v1997_v9, %v658_v24  ;;  %v2042_v4 = vpop.eup %1082  ;;  %1018 = vst.msk [vmem:[%s2476_s4 + $0x58] sm:$0xff] %vm127_vm0, %v986_v14  ;;  %v984_v19 = vsel %vm920_vm8, %v888_v18, %v952_v36  ;;  %v616_v51 = vsel %vm615_vm10, %v1962_v30, %v612_v37  ;;  %v392_v18 = vpop.xlane.xlu2 %391 }
 0x13c   :  { %v857_v27 = vmul.f32 %v1752_v43, %v821_v2  ;;  %v638_v12 = vmul.f32 %v2022_v63, %v1948_v45  ;;  %1016 = vst.msk [vmem:[%s2476_s4 + $0x48] sm:$0xff] %vm127_vm0, %v984_v19  ;;  %v886_v29 = vadd.f32 %v1768_v40, %v850_v52  ;;  %v819_v23 = vmul.f32 %v616_v51, %v1584_v26  ;;  %v386_v45 = vpop.xlane.xlu0 %385 }
 0x13d   :  { %v591_v11 = vsub.f32 1.5, %v590_v46  ;;  %v660_v50 = vmul.f32 0.5, %v659_v48  ;;  %vm644_vm11 = vweird.f32 %v2022_v63  ;;  %v618_v30 = vmul.f32 %v2042_v4, %v1989_v59 }
 0x13e   :  { %v893_v60 = vadd.f32 %v1768_v40, %v857_v27  ;;  %v639_v21 = vmul.f32 %v2022_v63, %v638_v12  ;;  %vm918_vm12 = vcmp.ge.f32.partialorder %v886_v29, 0.0  ;;  %v950_v42 = vmul.f32 0.1, %v886_v29  ;;  %vm645_vm4 = vmor %vm643_vm9, %vm644_vm11 }
 0x13f   :  { %v855_v62 = vmul.f32 %v1752_v43, %v819_v23  ;;  %v592_v1 = vmul.f32 %v1986_v10, %v591_v11  ;;  %v661_v55 = vsub.f32 1.5, %v660_v50  ;;  %v619_v58 = vmul.f32 %v2042_v4, %v618_v30 }
 0x140   :  { %vm925_vm13 = vcmp.ge.f32.partialorder %v893_v60, 0.0  ;;  %v957_v26 = vmul.f32 0.1, %v893_v60  ;;  %v640_v17 = vmul.f32 0.5, %v639_v21  ;;  %v982_v35 = vsel %vm918_vm12, %v886_v29, %v950_v42 }
 0x141   :  { %v891_v24 = vadd.f32 %v1768_v40, %v855_v62  ;;  %v596_v6 = vsel %vm595_vm14, %v1986_v10, %v592_v1  ;;  %1014 = vst.msk [vmem:[%s2476_s4 + $0x38] sm:$0xff] %vm127_vm0, %v982_v35  ;;  %v662_v10 = vmul.f32 %v1997_v9, %v661_v55  ;;  %v620_v37 = vmul.f32 0.5, %v619_v58 }
 0x142   :  { %v989_v33 = vsel %vm925_vm13, %v893_v60, %v957_v26  ;;  %v817_v36 = vmul.f32 %v596_v6, %v1571_v0  ;;  %v641_v2 = vsub.f32 1.5, %v640_v17  ;;  %vm623_vm2 = vweird.f32 %v1989_v59  ;;  %v407_v60 = vpop.xlane.xlu1 %406 }
 0x143   :  { %1021 = vst.msk [vmem:[%s2476_s4 + $0x70] sm:$0xff] %vm127_vm0, %v989_v33  ;;  %vm923_vm1 = vcmp.ge.f32.partialorder %v891_v24, 0.0  ;;  %v955_v49 = vmul.f32 0.1, %v891_v24  ;;  %v666_v52 = vsel %vm2075_vm15, %v1997_v9, %v662_v10  ;;  %vm624_vm3 = vweird.f32 %v2042_v4  ;;  %v401_v42 = vpop.xlane.xlu2 %400 }
 0x144   :  { %v853_v14 = vmul.f32 %v1752_v43, %v817_v36  ;;  %v642_v0 = vmul.f32 %v2022_v63, %v641_v2  ;;  %v824_v48 = vmul.f32 %v666_v52, %v1599_v47  ;;  %v621_v19 = vsub.f32 1.5, %v620_v37  ;;  %vm625_vm6 = vmor %vm623_vm2, %vm624_vm3 }
 0x145   :  { %v987_v46 = vsel %vm923_vm1, %v891_v24, %v955_v49  ;;  %v2103_v27 = vadd.f32 1e-05, %v1992_v25  ;;  %v441_v47 = vmul.f32 %v2012_v54, %v1492_v39  ;;  %v439_v12 = vmul.f32 %v377_v7, %v1492_v39  ;;  %v395_v49 = vpop.xlane.xlu0 %394 }
 0x146   :  { %1019 = vst.msk [vmem:[%s2476_s4 + $0x60] sm:$0xff] %vm127_vm0, %v987_v46  ;;  %v889_v9 = vadd.f32 %v1768_v40, %v853_v14  ;;  %v646_v51 = vsel %vm645_vm4, %v2022_v63, %v642_v0  ;;  %v860_v29 = vmul.f32 %v1752_v43, %v824_v48  ;;  %v622_v23 = vmul.f32 %v2042_v4, %v621_v19 }
 0x147   :  { %v822_v25 = vmul.f32 %v646_v51, %v1605_v57  ;;  %1084 = vrsqrt.f32 %v2103_v27  ;;  %v2122_v63 = vadd.f32 1e-05, %v441_v47  ;;  %v2127_v57 = vadd.f32 1e-05, %v439_v12 }
 0x148   :  { %vm921_vm5 = vcmp.ge.f32.partialorder %v889_v9, 0.0  ;;  %v953_v11 = vmul.f32 0.1, %v889_v9  ;;  %v896_v54 = vadd.f32 %v1768_v40, %v860_v29  ;;  %v626_v50 = vsel %vm625_vm6, %v2042_v4, %v622_v23 }
 0x149   :  { %v858_v7 = vmul.f32 %v1752_v43, %v822_v25  ;;  %v820_v30 = vmul.f32 %v626_v50, %v1592_v3  ;;  %1086 = vrsqrt.f32 %v2122_v63  ;;  %v446_v1 = vmul.f32 %v398_v38, %v1492_v39 }
 0x14a   :  { %v985_v21 = vsel %vm921_vm5, %v889_v9, %v953_v11  ;;  %vm928_vm7 = vcmp.ge.f32.partialorder %v896_v54, 0.0  ;;  %v960_v59 = vmul.f32 0.1, %v896_v54  ;;  %1088 = vrsqrt.f32 %v2127_v57  ;;  %v416_v19 = vpop.xlane.xlu1 %415 }
 0x14b   :  { %1017 = vst.msk [vmem:[%s2476_s4 + $0x50] sm:$0xff] %vm127_vm0, %v985_v21  ;;  %v894_v62 = vadd.f32 %v1768_v40, %v858_v7  ;;  %v856_v4 = vmul.f32 %v1752_v43, %v820_v30  ;;  %v444_v3 = vmul.f32 %v392_v18, %v1492_v39  ;;  %v442_v35 = vmul.f32 %v386_v45, %v1492_v39  ;;  %v410_v45 = vpop.xlane.xlu2 %409 }
 0x14c   :  { %v992_v55 = vsel %vm928_vm7, %v896_v54, %v960_v59  ;;  %v2147_v16 = vadd.f32 1e-05, %v446_v1  ;;  %v449_v33 = vmul.f32 %v407_v60, %v1492_v39  ;;  %vm693_vm10 = vweird.f32 %v2103_v27 }
 0x14d   :  { %v1085_v26 = vpop.eup %1084  ;;  %vm926_vm8 = vcmp.ge.f32.partialorder %v894_v62, 0.0  ;;  %v958_v17 = vmul.f32 0.1, %v894_v62  ;;  %1024 = vst.msk [vmem:[%s2476_s4 + $0x88] sm:$0xff] %vm127_vm0, %v992_v55  ;;  %v892_v24 = vadd.f32 %v1768_v40, %v856_v4  ;;  %v2149_v58 = vadd.f32 1e-05, %v444_v3 }
 0x14e   :  { %v688_v6 = vmul.f32 %v1085_v26, %v2103_v27  ;;  %v2151_v18 = vadd.f32 1e-05, %v442_v35  ;;  %1090 = vrsqrt.f32 %v2147_v16  ;;  %vm673_vm11 = vweird.f32 %v2122_v63 }
 0x14f   :  { %v990_v38 = vsel %vm926_vm8, %v894_v62, %v958_v17  ;;  %v2154_v36 = vpop.eup %1086  ;;  %vm924_vm9 = vcmp.ge.f32.partialorder %v892_v24, 0.0  ;;  %v956_v10 = vmul.f32 0.1, %v892_v24  ;;  %1092 = vrsqrt.f32 %v2149_v58 }
 0x150   :  { %1022 = vst.msk [vmem:[%s2476_s4 + $0x78] sm:$0xff] %vm127_vm0, %v990_v38  ;;  %v689_v2 = vmul.f32 %v1085_v26, %v688_v6  ;;  %v2161_v37 = vpop.eup %1088  ;;  %v668_v14 = vmul.f32 %v2154_v36, %v2122_v63  ;;  %vm694_vm12 = vweird.f32 %v1085_v26  ;;  %vm674_vm13 = vweird.f32 %v2154_v36 }
 0x151   :  { %v988_v52 = vsel %vm924_vm9, %v892_v24, %v956_v10  ;;  %v648_v46 = vmul.f32 %v2161_v37, %v2127_v57  ;;  %vm653_vm14 = vweird.f32 %v2127_v57  ;;  %1094 = vrsqrt.f32 %v2151_v18  ;;  %vm2184_vm15 = vmor %vm693_vm10, %vm694_vm12  ;;  %v2229_v24 = vpop.xlane.xlu0 %403 }
 0x152   :  { %v690_v0 = vmul.f32 0.5, %v689_v2  ;;  %1020 = vst.msk [vmem:[%s2476_s4 + $0x68] sm:$0xff] %vm127_vm0, %v988_v52  ;;  %v669_v48 = vmul.f32 %v2154_v36, %v668_v14  ;;  %v2179_v47 = vadd.f32 1e-05, %v449_v33  ;;  %v447_v12 = vmul.f32 %v401_v42, %v1492_v39  ;;  %vm675_vm5 = vmor %vm673_vm11, %vm674_vm13 }
 0x153   :  { %v649_v51 = vmul.f32 %v2161_v37, %v648_v46  ;;  %vm654_vm1 = vweird.f32 %v2161_v37  ;;  %vm723_vm2 = vweird.f32 %v2147_v16  ;;  %v2191_v23 = vmul.f32 %v395_v49, %v1492_v39 }
 0x154   :  { %v691_v9 = vsub.f32 1.5, %v690_v0  ;;  %v670_v25 = vmul.f32 0.5, %v669_v48  ;;  %v2193_v11 = vpop.eup %1090  ;;  %vm703_vm3 = vweird.f32 %v2149_v58  ;;  %1096 = vrsqrt.f32 %v2179_v47  ;;  %vm655_vm7 = vmor %vm653_vm14, %vm654_vm1 }
 0x155   :  { %v650_v7 = vmul.f32 0.5, %v649_v51  ;;  %v2198_v27 = vmul.f32 %v416_v19, %v1492_v39  ;;  %v2200_v50 = vpop.eup %1092  ;;  %v718_v21 = vmul.f32 %v2193_v11, %v2147_v16  ;;  %v2204_v30 = vadd.f32 1e-05, %v447_v12 }
 0x156   :  { %v692_v54 = vmul.f32 %v1085_v26, %v691_v9  ;;  %v671_v60 = vsub.f32 1.5, %v670_v25  ;;  %v2207_v42 = vmul.f32 %v410_v45, %v1492_v39  ;;  %vm724_vm4 = vweird.f32 %v2193_v11 }
 0x157   :  { %v651_v62 = vsub.f32 1.5, %v650_v7  ;;  %v698_v4 = vmul.f32 %v2200_v50, %v2149_v58  ;;  %v2214_v1 = vpop.eup %1094  ;;  %v719_v17 = vmul.f32 %v2193_v11, %v718_v21  ;;  %1098 = vrsqrt.f32 %v2204_v30  ;;  %vm2254_vm11 = vmor %vm723_vm2, %vm724_vm4 }
 0x158   :  { %v696_v59 = vsel %vm2184_vm15, %v1085_v26, %v692_v54  ;;  %v672_v55 = vmul.f32 %v2154_v36, %v671_v60  ;;  %vm704_vm6 = vweird.f32 %v2200_v50  ;;  %vm683_vm8 = vweird.f32 %v2151_v18 }
 0x159   :  { %v827_v3 = vmul.f32 %v696_v59, %v1620_v13  ;;  %v652_v26 = vmul.f32 %v2161_v37, %v651_v62  ;;  %v699_v35 = vmul.f32 %v2200_v50, %v698_v4  ;;  %v678_v13 = vmul.f32 %v2214_v1, %v2151_v18  ;;  %vm705_vm14 = vmor %vm703_vm3, %vm704_vm6 }
 0x15a   :  { %v676_v38 = vsel %vm675_vm5, %v2154_v36, %v672_v55  ;;  %v720_v63 = vmul.f32 0.5, %v719_v17  ;;  %vm684_vm9 = vweird.f32 %v2214_v1  ;;  %v2239_v33 = vpop.eup %1096  ;;  %vm753_vm10 = vweird.f32 %v2179_v47 }
 0x15b   :  { %v863_v6 = vmul.f32 %v1752_v43, %v827_v3  ;;  %v825_v10 = vmul.f32 %v676_v38, %v1626_v15  ;;  %v656_v2 = vsel %vm655_vm7, %v2161_v37, %v652_v26  ;;  %v700_v49 = vmul.f32 0.5, %v699_v35  ;;  %vm685_vm3 = vmor %vm683_vm8, %vm684_vm9  ;;  %v419_v15 = vpop.xlane.xlu2 %418 }
 0x15c   :  { %v679_v14 = vmul.f32 %v2214_v1, %v678_v13  ;;  %v823_v57 = vmul.f32 %v656_v2, %v1613_v32  ;;  %v721_v52 = vsub.f32 1.5, %v720_v63  ;;  %v748_v0 = vmul.f32 %v2239_v33, %v2179_v47 }
 0x15d   :  { %v899_v36 = vadd.f32 %v1768_v40, %v863_v6  ;;  %v861_v46 = vmul.f32 %v1752_v43, %v825_v10  ;;  %v701_v37 = vsub.f32 1.5, %v700_v49  ;;  %vm754_vm12 = vweird.f32 %v2239_v33  ;;  %v2259_v19 = vpop.eup %1098 }
 0x15e   :  { %v680_v48 = vmul.f32 0.5, %v679_v14  ;;  %v859_v9 = vmul.f32 %v1752_v43, %v823_v57  ;;  %v722_v51 = vmul.f32 %v2193_v11, %v721_v52  ;;  %v749_v29 = vmul.f32 %v2239_v33, %v748_v0  ;;  %vm2309_vm5 = vmor %vm753_vm10, %vm754_vm12 }
 0x15f   :  { %vm931_vm13 = vcmp.ge.f32.partialorder %v899_v36, 0.0  ;;  %v963_v32 = vmul.f32 0.1, %v899_v36  ;;  %v897_v12 = vadd.f32 %v1768_v40, %v861_v46  ;;  %v702_v16 = vmul.f32 %v2200_v50, %v701_v37 }
 0x160   :  { %v681_v45 = vsub.f32 1.5, %v680_v48  ;;  %v895_v54 = vadd.f32 %v1768_v40, %v859_v9  ;;  %v726_v7 = vsel %vm2254_vm11, %v2193_v11, %v722_v51  ;;  %v728_v60 = vmul.f32 %v2259_v19, %v2204_v30 }
 0x161   :  { %v995_v25 = vsel %vm931_vm13, %v899_v36, %v963_v32  ;;  %vm733_vm15 = vweird.f32 %v2204_v30  ;;  %vm929_vm1 = vcmp.ge.f32.partialorder %v897_v12, 0.0  ;;  %v961_v21 = vmul.f32 0.1, %v897_v12 }
 0x162   :  { %1027 = vst.msk [vmem:[%s2476_s4 + $0xa0] sm:$0xff] %vm127_vm0, %v995_v25  ;;  %v830_v59 = vmul.f32 %v726_v7, %v1641_v34  ;;  %v706_v11 = vsel %vm705_vm14, %v2200_v50, %v702_v16  ;;  %vm927_vm2 = vcmp.ge.f32.partialorder %v895_v54, 0.0  ;;  %v959_v62 = vmul.f32 0.1, %v895_v54  ;;  %v413_v34 = vpop.xlane.xlu0 %412 }
 0x163   :  { %v828_v58 = vmul.f32 %v706_v11, %v1647_v41  ;;  %v682_v4 = vmul.f32 %v2214_v1, %v681_v45  ;;  %v993_v3 = vsel %vm929_vm1, %v897_v12, %v961_v21  ;;  %v750_v17 = vmul.f32 0.5, %v749_v29 }
 0x164   :  { %v866_v55 = vmul.f32 %v1752_v43, %v830_v59  ;;  %v729_v26 = vmul.f32 %v2259_v19, %v728_v60  ;;  %1025 = vst.msk [vmem:[%s2476_s4 + $0x90] sm:$0xff] %vm127_vm0, %v993_v3  ;;  %v991_v41 = vsel %vm927_vm2, %v895_v54, %v959_v62  ;;  %vm734_vm4 = vweird.f32 %v2259_v19 }
 0x165   :  { %v864_v50 = vmul.f32 %v1752_v43, %v828_v58  ;;  %v686_v35 = vsel %vm685_vm3, %v2214_v1, %v682_v4  ;;  %1023 = vst.msk [vmem:[%s2476_s4 + $0x80] sm:$0xff] %vm127_vm0, %v991_v41  ;;  %v751_v6 = vsub.f32 1.5, %v750_v17  ;;  %v2314_v10 = vadd.f32 1e-05, %v2191_v23  ;;  %vm735_vm9 = vmor %vm733_vm15, %vm734_vm4 }
 0x166   :  { %v902_v18 = vadd.f32 %v1768_v40, %v866_v55  ;;  %v826_v13 = vmul.f32 %v686_v35, %v1634_v44  ;;  %v730_v38 = vmul.f32 0.5, %v729_v26  ;;  %v2317_v2 = vadd.f32 1e-05, %v2198_v27 }
 0x167   :  { %v900_v63 = vadd.f32 %v1768_v40, %v864_v50  ;;  %v2320_v44 = vadd.f32 1e-05, %v2207_v42  ;;  %v752_v36 = vmul.f32 %v2239_v33, %v751_v6  ;;  %1100 = vrsqrt.f32 %v2314_v10 }
 0x168   :  { %vm934_vm6 = vcmp.ge.f32.partialorder %v902_v18, 0.0  ;;  %v966_v49 = vmul.f32 0.1, %v902_v18  ;;  %v862_v14 = vmul.f32 %v1752_v43, %v826_v13  ;;  %v731_v57 = vsub.f32 1.5, %v730_v38 }
 0x169   :  { %vm932_vm7 = vcmp.ge.f32.partialorder %v900_v63, 0.0  ;;  %v964_v47 = vmul.f32 0.1, %v900_v63  ;;  %v756_v27 = vsel %vm2309_vm5, %v2239_v33, %v752_v36  ;;  %1102 = vrsqrt.f32 %v2317_v2 }
 0x16a   :  { %v998_v52 = vsel %vm934_vm6, %v902_v18, %v966_v49  ;;  %v898_v23 = vadd.f32 %v1768_v40, %v862_v14  ;;  %v833_v0 = vmul.f32 %v756_v27, %v1662_v61  ;;  %v732_v46 = vmul.f32 %v2259_v19, %v731_v57  ;;  %v422_v12 = vpop.xlane.xlu0 %421 }
 0x16b   :  { %1030 = vst.msk [vmem:[%s2476_s4 + $0xb8] sm:$0xff] %vm127_vm0, %v998_v52  ;;  %v996_v42 = vsel %vm932_vm7, %v900_v63, %v964_v47  ;;  %1104 = vrsqrt.f32 %v2320_v44  ;;  %v448_v48 = vmul.f32 %v2229_v24, %v1492_v39  ;;  %v453_v51 = vmul.f32 %v419_v15, %v1492_v39 }
 0x16c   :  { %1028 = vst.msk [vmem:[%s2476_s4 + $0xa8] sm:$0xff] %vm127_vm0, %v996_v42  ;;  %vm930_vm8 = vcmp.ge.f32.partialorder %v898_v23, 0.0  ;;  %v962_v33 = vmul.f32 0.1, %v898_v23  ;;  %v869_v61 = vmul.f32 %v1752_v43, %v833_v0  ;;  %v736_v37 = vsel %vm735_vm9, %v2259_v19, %v732_v46 }
 0x16d   :  { %v831_v9 = vmul.f32 %v736_v37, %v1668_v8  ;;  %v1101_v16 = vpop.eup %1100  ;;  %v2356_v45 = vadd.f32 1e-05, %v448_v48  ;;  %v2360_v29 = vadd.f32 1e-05, %v453_v51  ;;  %v451_v8 = vmul.f32 %v413_v34, %v1492_v39  ;;  %v2410_v37 = vld [vmem:[#allocation2] ss:$0 sm:$0xff] }
 0x16e   :  { %v994_v32 = vsel %vm930_vm8, %v898_v23, %v962_v33  ;;  %v905_v30 = vadd.f32 %v1768_v40, %v869_v61  ;;  %v708_v24 = vmul.f32 %v1101_v16, %v2314_v10  ;;  %v454_v7 = vmul.f32 %v422_v12, %v1492_v39  ;;  %v2402_v23 = vld [vmem:[%s2474_s2] ss:$0 sm:$0xff] }
 0x16f   :  { %1026 = vst.msk [vmem:[%s2476_s4 + $0x98] sm:$0xff] %vm127_vm0, %v994_v32  ;;  %v867_v19 = vmul.f32 %v1752_v43, %v831_v9  ;;  %v1103_v25 = vpop.eup %1102  ;;  %1106 = vrsqrt.f32 %v2356_v45  ;;  %vm783_vm11 = vweird.f32 %v2317_v2  ;;  %vm714_vm13 = vweird.f32 %v1101_v16 }
 0x170   :  { %vm937_vm10 = vcmp.ge.f32.partialorder %v905_v30, 0.0  ;;  %v969_v54 = vmul.f32 0.1, %v905_v30  ;;  %v709_v59 = vmul.f32 %v1101_v16, %v708_v24  ;;  %v778_v11 = vmul.f32 %v1103_v25, %v2317_v2 }
 0x171   :  { %v1105_v60 = vpop.eup %1104  ;;  %v903_v21 = vadd.f32 %v1768_v40, %v867_v19  ;;  %1108 = vrsqrt.f32 %v2360_v29  ;;  %v2374_v3 = vadd.f32 1e-05, %v451_v8  ;;  %v2376_v55 = vadd.f32 1e-05, %v454_v7 }
 0x172   :  { %v1001_v43 = vsel %vm937_vm10, %v905_v30, %v969_v54  ;;  %v758_v62 = vmul.f32 %v1105_v60, %v2320_v44  ;;  %v710_v58 = vmul.f32 0.5, %v709_v59  ;;  %v779_v4 = vmul.f32 %v1103_v25, %v778_v11 }
 0x173   :  { %1033 = vst.msk [vmem:[%s2476_s4 + $0xd0] sm:$0xff] %vm127_vm0, %v1001_v43  ;;  %vm935_vm12 = vcmp.ge.f32.partialorder %v903_v21, 0.0  ;;  %v967_v39 = vmul.f32 0.1, %v903_v21  ;;  %vm784_vm14 = vweird.f32 %v1103_v25  ;;  %vm713_vm15 = vweird.f32 %v2314_v10 }
 0x174   :  { %v759_v40 = vmul.f32 %v1105_v60, %v758_v62  ;;  %v711_v26 = vsub.f32 1.5, %v710_v58  ;;  %v780_v34 = vmul.f32 0.5, %v779_v4  ;;  %1110 = vrsqrt.f32 %v2374_v3  ;;  %vm715_vm1 = vmor %vm713_vm15, %vm714_vm13 }
 0x175   :  { %v999_v17 = vsel %vm935_vm12, %v903_v21, %v967_v39  ;;  %v1107_v41 = vpop.eup %1106  ;;  %vm2387_vm2 = vmor %vm783_vm11, %vm784_vm14  ;;  %vm763_vm3 = vweird.f32 %v2320_v44  ;;  %vm764_vm4 = vweird.f32 %v1105_v60  ;;  %1112 = vrsqrt.f32 %v2376_v55 }
 0x176   :  { %1031 = vst.msk [vmem:[%s2476_s4 + $0xc0] sm:$0xff] %vm127_vm0, %v999_v17  ;;  %v760_v50 = vmul.f32 0.5, %v759_v40  ;;  %v712_v35 = vmul.f32 %v1101_v16, %v711_v26  ;;  %v781_v18 = vsub.f32 1.5, %v780_v34  ;;  %v738_v13 = vmul.f32 %v1107_v41, %v2356_v45  ;;  %vm765_vm6 = vmor %vm763_vm3, %vm764_vm4 }
 0x177   :  { %v1109_v6 = vpop.eup %1108  ;;  %vm743_vm5 = vweird.f32 %v2356_v45  ;;  %vm793_vm7 = vweird.f32 %v2360_v29  ;;  %vm744_vm8 = vweird.f32 %v1107_v41 }
 0x178   :  { %v761_v63 = vsub.f32 1.5, %v760_v50  ;;  %v716_v1 = vsel %vm715_vm1, %v1101_v16, %v712_v35  ;;  %v782_v10 = vmul.f32 %v1103_v25, %v781_v18  ;;  %v739_v49 = vmul.f32 %v1107_v41, %v738_v13  ;;  %vm745_vm12 = vmor %vm743_vm5, %vm744_vm8 }
 0x179   :  { %v788_v14 = vmul.f32 %v1109_v6, %v2360_v29  ;;  %v829_v36 = vmul.f32 %v716_v1, %v1655_v56  ;;  %vm794_vm9 = vweird.f32 %v1109_v6  ;;  %vm773_vm1 = vweird.f32 %v2374_v3 }
 0x17a   :  { %v762_v47 = vmul.f32 %v1105_v60, %v761_v63  ;;  %v786_v2 = vsel %vm2387_vm2, %v1103_v25, %v782_v10  ;;  %v740_v57 = vmul.f32 0.5, %v739_v49  ;;  %v1111_v44 = vpop.eup %1110  ;;  %vm795_vm14 = vmor %vm793_vm7, %vm794_vm9 }
 0x17b   :  { %v789_v52 = vmul.f32 %v1109_v6, %v788_v14  ;;  %v865_v27 = vmul.f32 %v2402_v23, %v829_v36  ;;  %v836_v56 = vmul.f32 %v786_v2, %v1683_v20  ;;  %v768_v33 = vmul.f32 %v1111_v44, %v2374_v3  ;;  %v2408_v61 = vpop.eup %1112 }
 0x17c   :  { %v766_v42 = vsel %vm765_vm6, %v1105_v60, %v762_v47  ;;  %v741_v46 = vsub.f32 1.5, %v740_v57  ;;  %vm774_vm10 = vweird.f32 %v1111_v44  ;;  %v798_v30 = vmul.f32 %v2408_v61, %v2376_v55 }
 0x17d   :  { %v834_v0 = vmul.f32 %v766_v42, %v1689_v28  ;;  %v790_v15 = vmul.f32 0.5, %v789_v52  ;;  %v901_v48 = vadd.f32 %v2410_v37, %v865_v27  ;;  %v872_v32 = vmul.f32 %v2402_v23, %v836_v56  ;;  %vm775_vm2 = vmor %vm773_vm1, %vm774_vm10 }
 0x17e   :  { %v742_v9 = vmul.f32 %v1107_v41, %v741_v46  ;;  %v769_v12 = vmul.f32 %v1111_v44, %v768_v33  ;;  %vm804_vm4 = vweird.f32 %v2408_v61  ;;  %vm803_vm6 = vweird.f32 %v2376_v55 }
 0x17f   :  { %v870_v20 = vmul.f32 %v2402_v23, %v834_v0  ;;  %v791_v51 = vsub.f32 1.5, %v790_v15  ;;  %vm933_vm11 = vcmp.ge.f32.partialorder %v901_v48, 0.0  ;;  %v965_v28 = vmul.f32 0.1, %v901_v48  ;;  %vm805_vm7 = vmor %vm803_vm6, %vm804_vm4 }
 0x180   :  { %v908_v16 = vadd.f32 %v2410_v37, %v872_v32  ;;  %v746_v24 = vsel %vm745_vm12, %v1107_v41, %v742_v9  ;;  %v770_v25 = vmul.f32 0.5, %v769_v12 }
 0x181   :  { %v906_v19 = vadd.f32 %v2410_v37, %v870_v20  ;;  %v792_v8 = vmul.f32 %v1109_v6, %v791_v51  ;;  %v997_v54 = vsel %vm933_vm11, %v901_v48, %v965_v28  ;;  %v832_v60 = vmul.f32 %v746_v24, %v1676_v5 }
 0x182   :  { %vm940_vm13 = vcmp.ge.f32.partialorder %v908_v16, 0.0  ;;  %v972_v7 = vmul.f32 0.1, %v908_v16  ;;  %1029 = vst.msk [vmem:[%s2476_s4 + $0xb0] sm:$0xff] %vm127_vm0, %v997_v54  ;;  %v771_v59 = vsub.f32 1.5, %v770_v25  ;;  %v799_v5 = vmul.f32 %v2408_v61, %v798_v30 }
 0x183   :  { %vm938_vm15 = vcmp.ge.f32.partialorder %v906_v19, 0.0  ;;  %v970_v45 = vmul.f32 0.1, %v906_v19  ;;  %v796_v21 = vsel %vm795_vm14, %v1109_v6, %v792_v8  ;;  %v868_v43 = vmul.f32 %v2402_v23, %v832_v60 }
 0x184   :  { %v1004_v11 = vsel %vm940_vm13, %v908_v16, %v972_v7  ;;  %v837_v62 = vmul.f32 %v796_v21, %v1706_v53  ;;  %v772_v39 = vmul.f32 %v1111_v44, %v771_v59  ;;  %v800_v4 = vmul.f32 0.5, %v799_v5 }
 0x185   :  { %1036 = vst.msk [vmem:[%s2476_s4 + $0xe8] sm:$0xff] %vm127_vm0, %v1004_v11  ;;  %v1002_v29 = vsel %vm938_vm15, %v906_v19, %v970_v45  ;;  %v904_v58 = vadd.f32 %v2410_v37, %v868_v43 }
 0x186   :  { %1034 = vst.msk [vmem:[%s2476_s4 + $0xd8] sm:$0xff] %vm127_vm0, %v1002_v29  ;;  %v873_v53 = vmul.f32 %v2402_v23, %v837_v62  ;;  %v776_v40 = vsel %vm775_vm2, %v1111_v44, %v772_v39  ;;  %v801_v3 = vsub.f32 1.5, %v800_v4 }
 0x187   :  { %vm936_vm3 = vcmp.ge.f32.partialorder %v904_v58, 0.0  ;;  %v968_v17 = vmul.f32 0.1, %v904_v58  ;;  %v835_v34 = vmul.f32 %v776_v40, %v1697_v22 }
 0x188   :  { %v909_v26 = vadd.f32 %v2410_v37, %v873_v53  ;;  %v802_v18 = vmul.f32 %v2408_v61, %v801_v3 }
 0x189   :  { %v1000_v41 = vsel %vm936_vm3, %v904_v58, %v968_v17  ;;  %v871_v35 = vmul.f32 %v2402_v23, %v835_v34 }
 0x18a   :  { %vm941_vm5 = vcmp.ge.f32.partialorder %v909_v26, 0.0  ;;  %v973_v50 = vmul.f32 0.1, %v909_v26  ;;  %1032 = vst.msk [vmem:[%s2476_s4 + $0xc8] sm:$0xff] %vm127_vm0, %v1000_v41  ;;  %v806_v6 = vsel %vm805_vm7, %v2408_v61, %v802_v18 }
 0x18b   :  { %v907_v22 = vadd.f32 %v2410_v37, %v871_v35  ;;  %v838_v63 = vmul.f32 %v806_v6, %v1711_v31 }
 0x18c   :  { %v1005_v13 = vsel %vm941_vm5, %v909_v26, %v973_v50 }
 0x18d   :  { %1037 = vst.msk [vmem:[%s2476_s4 + $0xf0] sm:$0xff] %vm127_vm0, %v1005_v13  ;;  %vm939_vm8 = vcmp.ge.f32.partialorder %v907_v22, 0.0  ;;  %v971_v38 = vmul.f32 0.1, %v907_v22  ;;  %v874_v10 = vmul.f32 %v2402_v23, %v838_v63 }
 0x18f   :  { %v1003_v1 = vsel %vm939_vm8, %v907_v22, %v971_v38  ;;  %v910_v55 = vadd.f32 %v2410_v37, %v874_v10 }
 0x190   :  { %1035 = vst.msk [vmem:[%s2476_s4 + $0xe0] sm:$0xff] %vm127_vm0, %v1003_v1 }
 0x191   :  { %vm942_vm9 = vcmp.ge.f32.partialorder %v910_v55, 0.0  ;;  %v974_v49 = vmul.f32 0.1, %v910_v55 }
 0x193   :  { %v1006_v14 = vsel %vm942_vm9, %v910_v55, %v974_v49 }
 0x194   :  { %1038 = vst.msk [vmem:[%s2476_s4 + $0xf8] sm:$0xff] %vm127_vm0, %v1006_v14 }
 0x195   :  { %1043 = vsyncpa [#allocation3], 1 }

// kernel: gnn_node_forward.14
= control target key start
LH: loop header
LB: loop body
LE: loop exit
PB: predicated region body
PF: predicated region fallthrough
CT: control target
= control target key end

     0   :  { %12 = vsyncpa [#allocation3], 0  ;;  %s611_s27 = smov [#allocation2]   ;;  %s612_s29 = smov 256   ;;  %s945_s0 = inlined_call_operand.hbm [shape: f32[128,256], index: 0, kind: input, shape index: {}]   ;;  %s946_s1 = inlined_call_operand.vmem [shape: f32[256,32], index: 1, kind: input, shape index: {}]   ;;  %s947_s2 = inlined_call_operand.vmem [shape: f32[32,32], index: 2, kind: input, shape index: {}]   ;;  %s948_s3 = inlined_call_operand.vmem [shape: f32[1,32], index: 3, kind: input, shape index: {}]   ;;  %s949_s4 = inlined_call_operand.vmem [shape: f32[32,32], index: 4, kind: input, shape index: {}]   ;;  %s950_s5 = inlined_call_operand.vmem [shape: f32[1,32], index: 5, kind: input, shape index: {}]   ;;  %s951_s6 = inlined_call_operand.vmem [shape: f32[128,32], index: 6, kind: input, shape index: {}]   ;;  %s952_s7 = inlined_call_operand.vmem [shape: f32[128,32], index: 7, kind: output, shape index: {}]  }
   0x1   :  { %s17_s26 = sshll.u32 %s945_s0, 4  ;;  %s19_s28 = sshll.u32 %s611_s27, 4  ;;  %s18_s26 = int_to_ptr.hbm [resolvable:$true] %s17_s26  ;;  %s20_s28 = int_to_ptr.vmem [resolvable:$true] %s19_s28 }
   0x2   :  { %s613_s30 = smov 16  }
   0x3   :  { %25 = dma.hbm_to_vmem [thread:$0]  %s18_s26, 4096, %s20_s28, [#allocation3], %s612_s29, %s612_s29, %s613_s30  }
   0x4   :  { %609 = dma.done.wait [#allocation3], 4096  }
   0x5   :  { %610 = vsyncadd [#allocation3], 4294963200  ;;  %v89_v0 = vld [vmem:[%s946_s1 + $0x78] sm:$0xff]  ;;  %v88_v2 = vld [vmem:[%s946_s1 + $0x70] sm:$0xff]  ;;  %vm244_vm0 = vcmask 261120  }
   0x6   :  { %v105_v1 = vld [vmem:[%s946_s1 + $0xf8] sm:$0xff]  ;;  %106 = vmatpush.msra.mxu0 %v89_v0  ;;  %v104_v3 = vld [vmem:[%s946_s1 + $0xf0] sm:$0xff]  ;;  %v87_v4 = vld [vmem:[%s946_s1 + $0x68] sm:$0xff] }
   0x7   :  { %171 = vmatpush.msra.mxu1 %v105_v1  ;;  %v103_v5 = vld [vmem:[%s946_s1 + $0xe8] sm:$0xff]  ;;  %v86_v6 = vld [vmem:[%s946_s1 + $0x60] sm:$0xff]  ;;  %v85_v8 = vld [vmem:[%s946_s1 + $0x58] sm:$0xff] }
   0x8   :  { %107 = vmatpush.msra.mxu0 %v88_v2  ;;  %v102_v7 = vld [vmem:[%s946_s1 + $0xe0] sm:$0xff]  ;;  %v101_v9 = vld [vmem:[%s946_s1 + $0xd8] sm:$0xff]  ;;  %v84_v10 = vld [vmem:[%s946_s1 + $0x50] sm:$0xff] }
   0x9   :  { %172 = vmatpush.msra.mxu1 %v104_v3  ;;  %v100_v11 = vld [vmem:[%s946_s1 + $0xd0] sm:$0xff]  ;;  %v83_v12 = vld [vmem:[%s946_s1 + $0x48] sm:$0xff]  ;;  %v82_v14 = vld [vmem:[%s946_s1 + $0x40] sm:$0xff] }
   0xa   :  { %108 = vmatpush.msra.mxu0 %v87_v4  ;;  %v99_v13 = vld [vmem:[%s946_s1 + $0xc8] sm:$0xff]  ;;  %v98_v15 = vld [vmem:[%s946_s1 + $0xc0] sm:$0xff]  ;;  %v81_v16 = vld [vmem:[%s946_s1 + $0x38] sm:$0xff] }
   0xb   :  { %173 = vmatpush.msra.mxu1 %v103_v5  ;;  %v97_v17 = vld [vmem:[%s946_s1 + $0xb8] sm:$0xff]  ;;  %v80_v18 = vld [vmem:[%s946_s1 + $0x30] sm:$0xff]  ;;  %v79_v20 = vld [vmem:[%s946_s1 + $0x28] sm:$0xff] }
   0xc   :  { %109 = vmatpush.msra.mxu0 %v86_v6  ;;  %v96_v19 = vld [vmem:[%s946_s1 + $0xb0] sm:$0xff]  ;;  %v95_v21 = vld [vmem:[%s946_s1 + $0xa8] sm:$0xff]  ;;  %v78_v22 = vld [vmem:[%s946_s1 + $0x20] sm:$0xff] }
   0xd   :  { %174 = vmatpush.msra.mxu1 %v102_v7  ;;  %v94_v23 = vld [vmem:[%s946_s1 + $0xa0] sm:$0xff]  ;;  %v77_v24 = vld [vmem:[%s946_s1 + $0x18] sm:$0xff]  ;;  %v76_v26 = vld [vmem:[%s946_s1 + $0x10] sm:$0xff] }
   0xe   :  { %110 = vmatpush.msra.mxu0 %v85_v8  ;;  %v93_v25 = vld [vmem:[%s946_s1 + $0x98] sm:$0xff]  ;;  %v92_v27 = vld [vmem:[%s946_s1 + $0x90] sm:$0xff]  ;;  %v75_v28 = vld [vmem:[%s946_s1 + $0x8] sm:$0xff] }
   0xf   :  { %175 = vmatpush.msra.mxu1 %v101_v9  ;;  %v91_v29 = vld [vmem:[%s946_s1 + $0x88] sm:$0xff]  ;;  %v74_v30 = vld [vmem:[%s946_s1] sm:$0xff]  ;;  %v44_v34 = vld [vmem:[#allocation2 + $0x10] sm:$0xff] }
  0x10   :  { %111 = vmatpush.msra.mxu0 %v84_v10  ;;  %v90_v31 = vld [vmem:[%s946_s1 + $0x80] sm:$0xff]  ;;  %v43_v33 = vld [vmem:[#allocation2 + $0x8] sm:$0xff]  ;;  %v45_v35 = vld [vmem:[#allocation2 + $0x18] sm:$0xff] }
  0x11   :  { %176 = vmatpush.msra.mxu1 %v100_v11  ;;  %v42_v32 = vld [vmem:[#allocation2] sm:$0xff]  ;;  %v47_v37 = vld [vmem:[#allocation2 + $0x28] sm:$0xff]  ;;  %v48_v38 = vld [vmem:[#allocation2 + $0x30] sm:$0xff] }
  0x12   :  { %112 = vmatpush.msra.mxu0 %v83_v12  ;;  %v46_v36 = vld [vmem:[#allocation2 + $0x20] sm:$0xff]  ;;  %v49_v39 = vld [vmem:[#allocation2 + $0x38] sm:$0xff]  ;;  %v51_v41 = vld [vmem:[#allocation2 + $0x48] sm:$0xff] }
  0x13   :  { %177 = vmatpush.msra.mxu1 %v99_v13  ;;  %v50_v40 = vld [vmem:[#allocation2 + $0x40] sm:$0xff]  ;;  %v52_v42 = vld [vmem:[#allocation2 + $0x50] sm:$0xff]  ;;  %v53_v43 = vld [vmem:[#allocation2 + $0x58] sm:$0xff] }
  0x14   :  { %113 = vmatpush.msra.mxu0 %v82_v14  ;;  %v54_v44 = vld [vmem:[#allocation2 + $0x60] sm:$0xff]  ;;  %v55_v45 = vld [vmem:[#allocation2 + $0x68] sm:$0xff]  ;;  %v56_v46 = vld [vmem:[#allocation2 + $0x70] sm:$0xff] }
  0x15   :  { %178 = vmatpush.msra.mxu1 %v98_v15  ;;  %v57_v47 = vld [vmem:[#allocation2 + $0x78] sm:$0xff]  ;;  %v58_v48 = vld [vmem:[#allocation2 + $0x80] sm:$0xff]  ;;  %v59_v49 = vld [vmem:[#allocation2 + $0x88] sm:$0xff] }
  0x16   :  { %114 = vmatpush.msra.mxu0 %v81_v16  ;;  %v60_v50 = vld [vmem:[#allocation2 + $0x90] sm:$0xff]  ;;  %v61_v51 = vld [vmem:[#allocation2 + $0x98] sm:$0xff]  ;;  %v62_v52 = vld [vmem:[#allocation2 + $0xa0] sm:$0xff] }
  0x17   :  { %179 = vmatpush.msra.mxu1 %v97_v17  ;;  %v63_v53 = vld [vmem:[#allocation2 + $0xa8] sm:$0xff]  ;;  %v64_v54 = vld [vmem:[#allocation2 + $0xb0] sm:$0xff]  ;;  %v65_v55 = vld [vmem:[#allocation2 + $0xb8] sm:$0xff] }
  0x18   :  { %115 = vmatpush.msra.mxu0 %v80_v18  ;;  %v239_v56 = vld [vmem:[%s947_s2 + $0x18] sm:$0xff]  ;;  %v238_v57 = vld [vmem:[%s947_s2 + $0x10] sm:$0xff]  ;;  %v237_v58 = vld [vmem:[%s947_s2 + $0x8] sm:$0xff] }
  0x19   :  { %180 = vmatpush.msra.mxu1 %v96_v19  ;;  %305 = vmatpush.msra.mxu2 %v239_v56  ;;  %v66_v59 = vld [vmem:[#allocation2 + $0xc0] sm:$0xff]  ;;  %v67_v60 = vld [vmem:[#allocation2 + $0xc8] sm:$0xff]  ;;  %v68_v62 = vld [vmem:[#allocation2 + $0xd0] sm:$0xff] }
  0x1a   :  { %116 = vmatpush.msra.mxu0 %v79_v20  ;;  %v236_v61 = vld [vmem:[%s947_s2] sm:$0xff]  ;;  %v69_v63 = vld [vmem:[#allocation2 + $0xd8] sm:$0xff]  ;;  %v71_v1 = vld [vmem:[#allocation2 + $0xe8] sm:$0xff] }
  0x1b   :  { %181 = vmatpush.msra.mxu1 %v95_v21  ;;  %306 = vmatpush.msra.mxu2 %v238_v57  ;;  %v70_v0 = vld [vmem:[#allocation2 + $0xe0] sm:$0xff]  ;;  %v72_v2 = vld [vmem:[#allocation2 + $0xf0] sm:$0xff]  ;;  %v73_v3 = vld [vmem:[#allocation2 + $0xf8] sm:$0xff] }
  0x1c   :  { %117 = vmatpush.msra.mxu0 %v78_v22  ;;  %v583_v56 = vld [vmem:[%s948_s3] ss:$0 sm:$0xff] }
  0x1d   :  { %182 = vmatpush.msra.mxu1 %v94_v23  ;;  %307 = vmatpush.msra.mxu2 %v237_v58 }
  0x1e   :  { %118 = vmatpush.msra.mxu0 %v77_v24 }
  0x1f   :  { %183 = vmatpush.msra.mxu1 %v93_v25  ;;  %308 = vmatpush.msra.mxu2 %v236_v61 }
  0x20   :  { %119 = vmatpush.msra.mxu0 %v76_v26 }
  0x21   :  { %184 = vmatpush.msra.mxu1 %v92_v27 }
  0x22   :  { %120 = vmatpush.msra.mxu0 %v75_v28 }
  0x23   :  { %185 = vmatpush.msra.mxu1 %v91_v29 }
  0x24   :  { %121 = vmatpush.msra.mxu0 %v74_v30 }
  0x25   :  { %186 = vmatpush.msra.mxu1 %v90_v31  ;;  %122 = vmatmul.f32.vlgmr.msra.gmra.mxu0 %v42_v32 }
  0x26   :  { %187 = vmatmul.f32.vlgmr.msra.gmra.mxu1 %v43_v33 }
  0x2d   :  { %125 = vmatmul.f32.gmra.mxu0 %v44_v34 }
  0x2e   :  { %190 = vmatmul.f32.gmra.mxu1 %v45_v35 }
  0x35   :  { %128 = vmatmul.f32.gmra.mxu0 %v46_v36 }
  0x36   :  { %193 = vmatmul.f32.gmra.mxu1 %v47_v37 }
  0x3d   :  { %131 = vmatmul.f32.gmra.mxu0 %v48_v38 }
  0x3e   :  { %196 = vmatmul.f32.gmra.mxu1 %v49_v39 }
  0x45   :  { %134 = vmatmul.f32.gmra.mxu0 %v50_v40  ;;  %v377_v40 = vld [vmem:[%s949_s4 + $0x18] sm:$0xff] }
  0x46   :  { %199 = vmatmul.f32.gmra.mxu1 %v51_v41  ;;  %442 = vmatpush.msra.mxu3 %v377_v40 }
  0x4d   :  { %137 = vmatmul.f32.gmra.mxu0 %v52_v42 }
  0x4e   :  { %202 = vmatmul.f32.gmra.mxu1 %v53_v43 }
  0x55   :  { %140 = vmatmul.f32.gmra.mxu0 %v54_v44  ;;  %v376_v44 = vld [vmem:[%s949_s4 + $0x10] sm:$0xff] }
  0x56   :  { %205 = vmatmul.f32.gmra.mxu1 %v55_v45  ;;  %443 = vmatpush.msra.mxu3 %v376_v44  ;;  %v375_v45 = vld [vmem:[%s949_s4 + $0x8] sm:$0xff] }
  0x58   :  { %444 = vmatpush.msra.mxu3 %v375_v45 }
  0x5d   :  { %143 = vmatmul.f32.gmra.mxu0 %v56_v46 }
  0x5e   :  { %208 = vmatmul.f32.gmra.mxu1 %v57_v47 }
  0x65   :  { %146 = vmatmul.f32.gmra.mxu0 %v58_v48 }
  0x66   :  { %211 = vmatmul.f32.gmra.mxu1 %v59_v49  ;;  %v374_v49 = vld [vmem:[%s949_s4] sm:$0xff] }
  0x67   :  { %445 = vmatpush.msra.mxu3 %v374_v49 }
  0x6d   :  { %149 = vmatmul.f32.gmra.mxu0 %v60_v50 }
  0x6e   :  { %214 = vmatmul.f32.gmra.mxu1 %v61_v51 }
  0x75   :  { %152 = vmatmul.f32.gmra.mxu0 %v62_v52 }
  0x76   :  { %217 = vmatmul.f32.gmra.mxu1 %v63_v53 }
  0x7d   :  { %155 = vmatmul.f32.gmra.mxu0 %v64_v54 }
  0x7e   :  { %220 = vmatmul.f32.gmra.mxu1 %v65_v55 }
  0x85   :  { %158 = vmatmul.f32.gmra.mxu0 %v66_v59 }
  0x86   :  { %223 = vmatmul.f32.gmra.mxu1 %v67_v60 }
  0x8d   :  { %161 = vmatmul.f32.gmra.mxu0 %v68_v62 }
  0x8e   :  { %226 = vmatmul.f32.gmra.mxu1 %v69_v63 }
  0x95   :  { %164 = vmatmul.f32.gmra.mxu0 %v70_v0 }
  0x96   :  { %229 = vmatmul.f32.gmra.mxu1 %v71_v1 }
  0x9d   :  { %167 = vmatmul.f32.gmra.mxu0 %v72_v2 }
  0x9e   :  { %232 = vmatmul.f32.gmra.mxu1 %v73_v3 }
  0xa2   :  { %v123_v4 = vpop.f32.mrf.mxu0 }
  0xa3   :  { %v188_v5 = vpop.f32.mrf.mxu1 }
  0xa4   :  { %v189_v6 = vadd.f32 %v188_v5, %v123_v4 }
  0xa6   :  { %548 = vmatmul.msk.f32.vlgmr.msra.gmra.mxu2 %vm244_vm0, %v189_v6 }
  0xaa   :  { %v126_v7 = vpop.f32.mrf.mxu0 }
  0xab   :  { %v191_v8 = vpop.f32.mrf.mxu1 }
  0xac   :  { %v192_v9 = vadd.f32 %v191_v8, %v126_v7 }
  0xae   :  { %549 = vmatmul.msk.f32.gmra.mxu2 %vm244_vm0, %v192_v9 }
  0xb2   :  { %v129_v10 = vpop.f32.mrf.mxu0 }
  0xb3   :  { %v194_v11 = vpop.f32.mrf.mxu1 }
  0xb4   :  { %v195_v12 = vadd.f32 %v194_v11, %v129_v10 }
  0xb6   :  { %550 = vmatmul.msk.f32.gmra.mxu2 %vm244_vm0, %v195_v12 }
  0xba   :  { %v132_v13 = vpop.f32.mrf.mxu0 }
  0xbb   :  { %v197_v14 = vpop.f32.mrf.mxu1 }
  0xbc   :  { %v198_v15 = vadd.f32 %v197_v14, %v132_v13 }
  0xbe   :  { %551 = vmatmul.msk.f32.gmra.mxu2 %vm244_vm0, %v198_v15 }
  0xc2   :  { %v135_v16 = vpop.f32.mrf.mxu0 }
  0xc3   :  { %v200_v17 = vpop.f32.mrf.mxu1 }
  0xc4   :  { %v201_v18 = vadd.f32 %v200_v17, %v135_v16 }
  0xc6   :  { %552 = vmatmul.msk.f32.gmra.mxu2 %vm244_vm0, %v201_v18 }
  0xca   :  { %v138_v19 = vpop.f32.mrf.mxu0 }
  0xcb   :  { %v203_v20 = vpop.f32.mrf.mxu1 }
  0xcc   :  { %v204_v21 = vadd.f32 %v203_v20, %v138_v19 }
  0xce   :  { %553 = vmatmul.msk.f32.gmra.mxu2 %vm244_vm0, %v204_v21 }
  0xd2   :  { %v141_v22 = vpop.f32.mrf.mxu0 }
  0xd3   :  { %v206_v23 = vpop.f32.mrf.mxu1 }
  0xd4   :  { %v207_v24 = vadd.f32 %v206_v23, %v141_v22 }
  0xd6   :  { %554 = vmatmul.msk.f32.gmra.mxu2 %vm244_vm0, %v207_v24 }
  0xda   :  { %v144_v25 = vpop.f32.mrf.mxu0 }
  0xdb   :  { %v209_v26 = vpop.f32.mrf.mxu1 }
  0xdc   :  { %v210_v27 = vadd.f32 %v209_v26, %v144_v25 }
  0xde   :  { %555 = vmatmul.msk.f32.gmra.mxu2 %vm244_vm0, %v210_v27 }
  0xe2   :  { %v147_v28 = vpop.f32.mrf.mxu0 }
  0xe3   :  { %v212_v29 = vpop.f32.mrf.mxu1 }
  0xe4   :  { %v213_v30 = vadd.f32 %v212_v29, %v147_v28 }
  0xe6   :  { %556 = vmatmul.msk.f32.gmra.mxu2 %vm244_vm0, %v213_v30 }
  0xea   :  { %v150_v31 = vpop.f32.mrf.mxu0 }
  0xeb   :  { %v215_v32 = vpop.f32.mrf.mxu1 }
  0xec   :  { %v216_v33 = vadd.f32 %v215_v32, %v150_v31 }
  0xee   :  { %557 = vmatmul.msk.f32.gmra.mxu2 %vm244_vm0, %v216_v33 }
  0xf2   :  { %v153_v34 = vpop.f32.mrf.mxu0 }
  0xf3   :  { %v218_v35 = vpop.f32.mrf.mxu1 }
  0xf4   :  { %v219_v36 = vadd.f32 %v218_v35, %v153_v34 }
  0xf6   :  { %558 = vmatmul.msk.f32.gmra.mxu2 %vm244_vm0, %v219_v36 }
  0xfa   :  { %v156_v37 = vpop.f32.mrf.mxu0 }
  0xfb   :  { %v221_v38 = vpop.f32.mrf.mxu1 }
  0xfc   :  { %v222_v39 = vadd.f32 %v221_v38, %v156_v37 }
  0xfe   :  { %559 = vmatmul.msk.f32.gmra.mxu2 %vm244_vm0, %v222_v39 }
 0x102   :  { %v159_v41 = vpop.f32.mrf.mxu0 }
 0x103   :  { %v224_v42 = vpop.f32.mrf.mxu1 }
 0x104   :  { %v225_v43 = vadd.f32 %v224_v42, %v159_v41  ;;  %v815_v41 = vld [vmem:[%s950_s5] ss:$0 sm:$0xff] }
 0x106   :  { %560 = vmatmul.msk.f32.gmra.mxu2 %vm244_vm0, %v225_v43  ;;  %v495_v43 = vld [vmem:[%s951_s6] sm:$0xff] }
 0x10a   :  { %v162_v46 = vpop.f32.mrf.mxu0 }
 0x10b   :  { %v227_v47 = vpop.f32.mrf.mxu1 }
 0x10c   :  { %v228_v48 = vadd.f32 %v227_v47, %v162_v46  ;;  %v496_v47 = vld [vmem:[%s951_s6 + $0x8] sm:$0xff] }
 0x10e   :  { %561 = vmatmul.msk.f32.gmra.mxu2 %vm244_vm0, %v228_v48 }
 0x112   :  { %v165_v50 = vpop.f32.mrf.mxu0 }
 0x113   :  { %v230_v51 = vpop.f32.mrf.mxu1 }
 0x114   :  { %v231_v52 = vadd.f32 %v230_v51, %v165_v50  ;;  %v497_v51 = vld [vmem:[%s951_s6 + $0x10] sm:$0xff] }
 0x116   :  { %562 = vmatmul.msk.f32.gmra.mxu2 %vm244_vm0, %v231_v52 }
 0x11a   :  { %v168_v53 = vpop.f32.mrf.mxu0 }
 0x11b   :  { %v233_v54 = vpop.f32.mrf.mxu1 }
 0x11c   :  { %v234_v55 = vadd.f32 %v233_v54, %v168_v53 }
 0x11e   :  { %563 = vmatmul.msk.f32.gmra.mxu2 %vm244_vm0, %v234_v55  ;;  %v498_v55 = vld [vmem:[%s951_s6 + $0x18] sm:$0xff] }
 0x129   :  { %v310_v57 = vpop.f32.mrf.mxu2 }
 0x12a   :  { %v311_v58 = vadd.f32 %v583_v56, %v310_v57 }
 0x12c   :  { %v358_v59 = vmax.f32 %v311_v58, 0.0 }
 0x12e   :  { %564 = vmatmul.msk.f32.vlgmr.msra.gmra.mxu3 %vm244_vm0, %v358_v59  ;;  %v499_v59 = vld [vmem:[%s951_s6 + $0x20] sm:$0xff] }
 0x131   :  { %v313_v60 = vpop.f32.mrf.mxu2 }
 0x132   :  { %v314_v61 = vadd.f32 %v583_v56, %v313_v60 }
 0x134   :  { %v359_v62 = vmax.f32 %v314_v61, 0.0 }
 0x136   :  { %565 = vmatmul.msk.f32.gmra.mxu3 %vm244_vm0, %v359_v62 }
 0x139   :  { %v316_v63 = vpop.f32.mrf.mxu2 }
 0x13a   :  { %v317_v0 = vadd.f32 %v583_v56, %v316_v63  ;;  %v500_v63 = vld [vmem:[%s951_s6 + $0x28] sm:$0xff] }
 0x13c   :  { %v360_v1 = vmax.f32 %v317_v0, 0.0 }
 0x13e   :  { %566 = vmatmul.msk.f32.gmra.mxu3 %vm244_vm0, %v360_v1 }
 0x141   :  { %v319_v2 = vpop.f32.mrf.mxu2 }
 0x142   :  { %v320_v3 = vadd.f32 %v583_v56, %v319_v2 }
 0x144   :  { %v361_v4 = vmax.f32 %v320_v3, 0.0  ;;  %v501_v3 = vld [vmem:[%s951_s6 + $0x30] sm:$0xff] }
 0x146   :  { %567 = vmatmul.msk.f32.gmra.mxu3 %vm244_vm0, %v361_v4 }
 0x149   :  { %v322_v5 = vpop.f32.mrf.mxu2 }
 0x14a   :  { %v323_v6 = vadd.f32 %v583_v56, %v322_v5 }
 0x14c   :  { %v362_v7 = vmax.f32 %v323_v6, 0.0 }
 0x14e   :  { %568 = vmatmul.msk.f32.gmra.mxu3 %vm244_vm0, %v362_v7  ;;  %v502_v7 = vld [vmem:[%s951_s6 + $0x38] sm:$0xff] }
 0x151   :  { %v325_v8 = vpop.f32.mrf.mxu2 }
 0x152   :  { %v326_v9 = vadd.f32 %v583_v56, %v325_v8 }
 0x154   :  { %v363_v10 = vmax.f32 %v326_v9, 0.0 }
 0x156   :  { %569 = vmatmul.msk.f32.gmra.mxu3 %vm244_vm0, %v363_v10 }
 0x159   :  { %v328_v11 = vpop.f32.mrf.mxu2 }
 0x15a   :  { %v329_v12 = vadd.f32 %v583_v56, %v328_v11  ;;  %v503_v11 = vld [vmem:[%s951_s6 + $0x40] sm:$0xff] }
 0x15c   :  { %v364_v13 = vmax.f32 %v329_v12, 0.0 }
 0x15e   :  { %570 = vmatmul.msk.f32.gmra.mxu3 %vm244_vm0, %v364_v13 }
 0x161   :  { %v331_v14 = vpop.f32.mrf.mxu2 }
 0x162   :  { %v332_v15 = vadd.f32 %v583_v56, %v331_v14 }
 0x164   :  { %v365_v16 = vmax.f32 %v332_v15, 0.0  ;;  %v504_v15 = vld [vmem:[%s951_s6 + $0x48] sm:$0xff] }
 0x166   :  { %571 = vmatmul.msk.f32.gmra.mxu3 %vm244_vm0, %v365_v16 }
 0x169   :  { %v334_v17 = vpop.f32.mrf.mxu2 }
 0x16a   :  { %v335_v18 = vadd.f32 %v583_v56, %v334_v17 }
 0x16c   :  { %v366_v19 = vmax.f32 %v335_v18, 0.0 }
 0x16e   :  { %572 = vmatmul.msk.f32.gmra.mxu3 %vm244_vm0, %v366_v19  ;;  %v505_v19 = vld [vmem:[%s951_s6 + $0x50] sm:$0xff] }
 0x171   :  { %v337_v20 = vpop.f32.mrf.mxu2 }
 0x172   :  { %v338_v21 = vadd.f32 %v583_v56, %v337_v20 }
 0x174   :  { %v367_v22 = vmax.f32 %v338_v21, 0.0 }
 0x176   :  { %573 = vmatmul.msk.f32.gmra.mxu3 %vm244_vm0, %v367_v22 }
 0x179   :  { %v340_v23 = vpop.f32.mrf.mxu2 }
 0x17a   :  { %v341_v24 = vadd.f32 %v583_v56, %v340_v23  ;;  %v506_v23 = vld [vmem:[%s951_s6 + $0x58] sm:$0xff] }
 0x17c   :  { %v368_v25 = vmax.f32 %v341_v24, 0.0 }
 0x17e   :  { %574 = vmatmul.msk.f32.gmra.mxu3 %vm244_vm0, %v368_v25 }
 0x181   :  { %v343_v26 = vpop.f32.mrf.mxu2 }
 0x182   :  { %v344_v27 = vadd.f32 %v583_v56, %v343_v26 }
 0x184   :  { %v369_v28 = vmax.f32 %v344_v27, 0.0  ;;  %v507_v27 = vld [vmem:[%s951_s6 + $0x60] sm:$0xff] }
 0x186   :  { %575 = vmatmul.msk.f32.gmra.mxu3 %vm244_vm0, %v369_v28 }
 0x189   :  { %v346_v29 = vpop.f32.mrf.mxu2 }
 0x18a   :  { %v347_v30 = vadd.f32 %v583_v56, %v346_v29 }
 0x18c   :  { %v370_v31 = vmax.f32 %v347_v30, 0.0 }
 0x18e   :  { %576 = vmatmul.msk.f32.gmra.mxu3 %vm244_vm0, %v370_v31  ;;  %v508_v31 = vld [vmem:[%s951_s6 + $0x68] sm:$0xff] }
 0x191   :  { %v349_v32 = vpop.f32.mrf.mxu2 }
 0x192   :  { %v350_v33 = vadd.f32 %v583_v56, %v349_v32 }
 0x194   :  { %v371_v34 = vmax.f32 %v350_v33, 0.0 }
 0x196   :  { %577 = vmatmul.msk.f32.gmra.mxu3 %vm244_vm0, %v371_v34 }
 0x199   :  { %v352_v35 = vpop.f32.mrf.mxu2 }
 0x19a   :  { %v353_v36 = vadd.f32 %v583_v56, %v352_v35  ;;  %v509_v35 = vld [vmem:[%s951_s6 + $0x70] sm:$0xff] }
 0x19c   :  { %v372_v37 = vmax.f32 %v353_v36, 0.0 }
 0x19e   :  { %578 = vmatmul.msk.f32.gmra.mxu3 %vm244_vm0, %v372_v37 }
 0x1a1   :  { %v355_v38 = vpop.f32.mrf.mxu2 }
 0x1a2   :  { %v356_v39 = vadd.f32 %v583_v56, %v355_v38 }
 0x1a4   :  { %v373_v40 = vmax.f32 %v356_v39, 0.0  ;;  %v510_v39 = vld [vmem:[%s951_s6 + $0x78] sm:$0xff] }
 0x1a6   :  { %579 = vmatmul.msk.f32.gmra.mxu3 %vm244_vm0, %v373_v40 }
 0x1b1   :  { %v447_v42 = vpop.f32.mrf.mxu3 }
 0x1b2   :  { %v448_v44 = vadd.f32 %v815_v41, %v447_v42 }
 0x1b4   :  { %v511_v45 = vadd.f32 %v495_v43, %v448_v44 }
 0x1b6   :  { %527 = vst.msk [vmem:[%s952_s7] sm:$0xff] %vm244_vm0, %v511_v45 }
 0x1b9   :  { %v450_v46 = vpop.f32.mrf.mxu3 }
 0x1ba   :  { %v451_v48 = vadd.f32 %v815_v41, %v450_v46 }
 0x1bc   :  { %v512_v49 = vadd.f32 %v496_v47, %v451_v48 }
 0x1be   :  { %528 = vst.msk [vmem:[%s952_s7 + $0x8] sm:$0xff] %vm244_vm0, %v512_v49 }
 0x1c1   :  { %v453_v50 = vpop.f32.mrf.mxu3 }
 0x1c2   :  { %v454_v52 = vadd.f32 %v815_v41, %v453_v50 }
 0x1c4   :  { %v513_v53 = vadd.f32 %v497_v51, %v454_v52 }
 0x1c6   :  { %529 = vst.msk [vmem:[%s952_s7 + $0x10] sm:$0xff] %vm244_vm0, %v513_v53 }
 0x1c9   :  { %v456_v54 = vpop.f32.mrf.mxu3 }
 0x1ca   :  { %v457_v56 = vadd.f32 %v815_v41, %v456_v54 }
 0x1cc   :  { %v514_v57 = vadd.f32 %v498_v55, %v457_v56 }
 0x1ce   :  { %530 = vst.msk [vmem:[%s952_s7 + $0x18] sm:$0xff] %vm244_vm0, %v514_v57 }
 0x1d1   :  { %v459_v58 = vpop.f32.mrf.mxu3 }
 0x1d2   :  { %v460_v60 = vadd.f32 %v815_v41, %v459_v58 }
 0x1d4   :  { %v515_v61 = vadd.f32 %v499_v59, %v460_v60 }
 0x1d6   :  { %531 = vst.msk [vmem:[%s952_s7 + $0x20] sm:$0xff] %vm244_vm0, %v515_v61 }
 0x1d9   :  { %v462_v62 = vpop.f32.mrf.mxu3 }
 0x1da   :  { %v463_v0 = vadd.f32 %v815_v41, %v462_v62 }
 0x1dc   :  { %v516_v1 = vadd.f32 %v500_v63, %v463_v0 }
 0x1de   :  { %532 = vst.msk [vmem:[%s952_s7 + $0x28] sm:$0xff] %vm244_vm0, %v516_v1 }
 0x1e1   :  { %v465_v2 = vpop.f32.mrf.mxu3 }
 0x1e2   :  { %v466_v4 = vadd.f32 %v815_v41, %v465_v2 }
 0x1e4   :  { %v517_v5 = vadd.f32 %v501_v3, %v466_v4 }
 0x1e6   :  { %533 = vst.msk [vmem:[%s952_s7 + $0x30] sm:$0xff] %vm244_vm0, %v517_v5 }
 0x1e9   :  { %v468_v6 = vpop.f32.mrf.mxu3 }
 0x1ea   :  { %v469_v8 = vadd.f32 %v815_v41, %v468_v6 }
 0x1ec   :  { %v518_v9 = vadd.f32 %v502_v7, %v469_v8 }
 0x1ee   :  { %534 = vst.msk [vmem:[%s952_s7 + $0x38] sm:$0xff] %vm244_vm0, %v518_v9 }
 0x1f1   :  { %v471_v10 = vpop.f32.mrf.mxu3 }
 0x1f2   :  { %v472_v12 = vadd.f32 %v815_v41, %v471_v10 }
 0x1f4   :  { %v519_v13 = vadd.f32 %v503_v11, %v472_v12 }
 0x1f6   :  { %535 = vst.msk [vmem:[%s952_s7 + $0x40] sm:$0xff] %vm244_vm0, %v519_v13 }
 0x1f9   :  { %v474_v14 = vpop.f32.mrf.mxu3 }
 0x1fa   :  { %v475_v16 = vadd.f32 %v815_v41, %v474_v14 }
 0x1fc   :  { %v520_v17 = vadd.f32 %v504_v15, %v475_v16 }
 0x1fe   :  { %536 = vst.msk [vmem:[%s952_s7 + $0x48] sm:$0xff] %vm244_vm0, %v520_v17 }
 0x201   :  { %v477_v18 = vpop.f32.mrf.mxu3 }
 0x202   :  { %v478_v20 = vadd.f32 %v815_v41, %v477_v18 }
 0x204   :  { %v521_v21 = vadd.f32 %v505_v19, %v478_v20 }
 0x206   :  { %537 = vst.msk [vmem:[%s952_s7 + $0x50] sm:$0xff] %vm244_vm0, %v521_v21 }
 0x209   :  { %v480_v22 = vpop.f32.mrf.mxu3 }
 0x20a   :  { %v481_v24 = vadd.f32 %v815_v41, %v480_v22 }
 0x20c   :  { %v522_v25 = vadd.f32 %v506_v23, %v481_v24 }
 0x20e   :  { %538 = vst.msk [vmem:[%s952_s7 + $0x58] sm:$0xff] %vm244_vm0, %v522_v25 }
 0x211   :  { %v483_v26 = vpop.f32.mrf.mxu3 }
 0x212   :  { %v484_v28 = vadd.f32 %v815_v41, %v483_v26 }
 0x214   :  { %v523_v29 = vadd.f32 %v507_v27, %v484_v28 }
 0x216   :  { %539 = vst.msk [vmem:[%s952_s7 + $0x60] sm:$0xff] %vm244_vm0, %v523_v29 }
 0x219   :  { %v486_v30 = vpop.f32.mrf.mxu3 }
 0x21a   :  { %v487_v32 = vadd.f32 %v815_v41, %v486_v30 }
 0x21c   :  { %v524_v33 = vadd.f32 %v508_v31, %v487_v32 }
 0x21e   :  { %540 = vst.msk [vmem:[%s952_s7 + $0x68] sm:$0xff] %vm244_vm0, %v524_v33 }
 0x221   :  { %v489_v34 = vpop.f32.mrf.mxu3 }
 0x222   :  { %v490_v36 = vadd.f32 %v815_v41, %v489_v34 }
 0x224   :  { %v525_v37 = vadd.f32 %v509_v35, %v490_v36 }
 0x226   :  { %541 = vst.msk [vmem:[%s952_s7 + $0x70] sm:$0xff] %vm244_vm0, %v525_v37 }
 0x229   :  { %v492_v38 = vpop.f32.mrf.mxu3 }
 0x22a   :  { %v493_v40 = vadd.f32 %v815_v41, %v492_v38 }
 0x22c   :  { %v526_v42 = vadd.f32 %v510_v39, %v493_v40 }
 0x22e   :  { %542 = vst.msk [vmem:[%s952_s7 + $0x78] sm:$0xff] %vm244_vm0, %v526_v42 }
 0x22f   :  { %547 = vsyncpa [#allocation3], 1 }

// kernel: gnn_node_forward.11
= control target key start
LH: loop header
LB: loop body
LE: loop exit
PB: predicated region body
PF: predicated region fallthrough
CT: control target
= control target key end

     0   :  { %s2702_s0 = inlined_call_operand.vmem [shape: f32[256,32], index: 0, kind: input, shape index: {}]   ;;  %s2703_s1 = inlined_call_operand.vmem [shape: f32[256,128], index: 1, kind: input, shape index: {}]   ;;  %s2704_s2 = inlined_call_operand.hbm [shape: f32[256,128], index: 2, kind: input, shape index: {}]   ;;  %s2705_s3 = inlined_call_operand.vmem [shape: f32[128,32], index: 3, kind: input, shape index: {}]   ;;  %s2706_s4 = inlined_call_operand.vmem [shape: f32[32,32], index: 4, kind: input, shape index: {}]   ;;  %s2707_s5 = inlined_call_operand.vmem [shape: f32[1,32], index: 5, kind: input, shape index: {}]   ;;  %s2708_s6 = inlined_call_operand.vmem [shape: f32[32,32], index: 6, kind: input, shape index: {}]   ;;  %s2709_s7 = inlined_call_operand.vmem [shape: f32[1,32], index: 7, kind: input, shape index: {}]   ;;  %s2710_s8 = inlined_call_operand.vmem [shape: f32[32,96], index: 8, kind: input, shape index: {}]   ;;  %s2711_s9 = inlined_call_operand.vmem [shape: f32[32,96], index: 9, kind: input, shape index: {}]   ;;  %s2712_s10 = inlined_call_operand.vmem [shape: f32[32,96], index: 10, kind: input, shape index: {}]   ;;  %s2713_s11 = inlined_call_operand.hbm [shape: f32[1,96], index: 11, kind: input, shape index: {}]   ;;  %s2714_s12 = inlined_call_operand.vmem [shape: f32[96,32], index: 12, kind: input, shape index: {}]   ;;  %s2715_s13 = inlined_call_operand.hbm [shape: f32[1,32], index: 13, kind: input, shape index: {}]   ;;  %s2716_s14 = inlined_call_operand.vmem [shape: f32[256,32], index: 14, kind: output, shape index: {}]  }
   0x1   :  { %2721 = sst [smem:[#allocation11_spill]] %s2702_s0 }
   0x2   :  { %2722 = sst [smem:[#allocation12_spill]] %s2709_s7 }
   0x3   :  { %2723 = sst [smem:[#allocation13_spill]] %s2713_s11 }
   0x4   :  { %2724 = sst [smem:[#allocation14_spill]] %s2714_s12 }
   0x5   :  { %2725 = sst [smem:[#allocation15_spill]] %s2715_s13 }
   0x6   :  { %2726 = sst [smem:[#allocation16_spill]] %s2716_s14 }
   0x7   :  { %19 = vsyncpa [#allocation3], 0 }
   0x8   :  { %21 = vsyncpa [#allocation3 + $0x1], 0 }
   0x9   :  { %22 = vsyncpa [#allocation5], 0  ;;  %s2102_s29 = smov 0   ;;  %s2104_s30 = smov 0  }
   0xa   :  { %s2106_s15 = smov 0   ;;  %s2108_s16 = smov 0  }
   0xb LB: > { %s2717_s17 = sadd.s32 4294967295, %s2021_s16   ;;  %s2122_s18 = sadd.s32 1, %s2021_s16   ;;  %s2021_s16 = sphi %s2108_s16, %s2741_s16   ;;  %s2017_s15 = sphi %s2106_s15, %s2745_s15   ;;  %s2013_s30 = sphi %s2104_s30, %s2744_s30   ;;  %s2009_s29 = sphi %s2102_s29, %s2743_s29  }
   0xc   : > { %2727 = sst [smem:[#allocation9_spill]] %s2122_s18  ;;  %s84_s19 = ssub.s32 %s2021_s16, %s2122_s18 }
   0xd   : > { %s87_s20 = sadd.s32 1, %s2017_s15  ;;  %p85_p0 = scmp.eq.s32.totalorder %s84_s19, 0 }
   0xe   : > { %p94_p1 = scmp.ne.s32.totalorder %s2017_s15, %s2013_s30  ;;  %p95_p2 = scmp.eq.s32.totalorder %s2021_s16, 0 }
   0xf   : > { %p100_p3 = scmp.ne.s32.totalorder %s2013_s30, %s2009_s29  ;;  %p2140_p5 = scmp.eq.s32.totalorder %s2717_s17, 0 }
  0x10   : > { %s2132_s21 = scalar_select %p85_p0, %s2017_s15, %s87_s20  }
  0x11   : > { %p2134_p4 = por %p95_p2, %p94_p1  ;;  %p1695_p6 = scmp.ge.s32.totalorder %s2021_s16, 1 }
  0x12   : > { %2728 = sst [smem:[#allocation10_spill]] %s2132_s21  ;;  %p368_p7 = scmp.lt.s32.totalorder %s2021_s16, 3 }
  0x13   : > { %p2148_p8 = por %p2140_p5, %p100_p3  ;;  %s2733_s11 = sld [smem:[#allocation13_spill]] }
  0x14   : > { %p2152_p9 = pnand %p1695_p6, %p368_p7  ;;  %s2023_s29 = smov [#allocation4]  }
  0x15   : > { %s406_s19 = sshll.u32 %s2023_s29, 4  ;;  %p1850_p12 = scmp.lt.s32.totalorder %s2021_s16, 2  ;;  %s407_s19 = int_to_ptr.vmem [resolvable:$true] %s406_s19 }
  0x16   : > { %p1837_p10 = pneg %p2152_p9  ;;  %s2734_s13 = sld [smem:[#allocation15_spill]] }
  0x17   : > { %p2169_p13 = pnand %p1850_p12, %p2134_p4  ;;  %s2024_s26 = smov [#allocation6]  }
  0x18   : > { %p1838_p11 = pnand %p1837_p10, %p2140_p5  ;;  %s421_s27 = sshll.u32 %s2024_s26, 4  ;;  %s422_s27 = int_to_ptr.vmem [resolvable:$true] %s421_s27 }
  0x19   : > { %s404_s28 = sshll.u32 %s2733_s11, 4  ;;  %s450_s11 = sand.u32 1, %s2017_s15   ;;  %s405_s28 = int_to_ptr.hbm [resolvable:$true] %s404_s28 }
  0x1a   : > { %1840 = dma.hbm_to_vmem [thread:$0]  (!%p1838_p11), %s405_s28, 16, %s407_s19, [#allocation5]  }
  0x1b   : > { %s1699_s29 = sshll.u32 %s450_s11, 7  ;;  %s1810_s14 = sshll.u32 %s2021_s16, 7 }
  0x1c   : > { %s419_s21 = sshll.u32 %s2734_s13, 4  ;;  %s459_s17 = scalar_lea.hbm %s2704_s2, %s1810_s14  ;;  %s420_s21 = int_to_ptr.hbm [resolvable:$true] %s419_s21 }
  0x1d   : > { %1843 = dma.hbm_to_vmem [thread:$0]  (!%p1838_p11), %s420_s21, 16, %s422_s27, [#allocation5]  }
  0x1e   : > { %s460_s20 = sshll.u32 %s459_s17, 4  ;;  %s454_s22 = scalar_lea.vmem [#allocation2], %s1699_s29  ;;  %s461_s20 = int_to_ptr.hbm [resolvable:$true] %s460_s20 }
  0x1f   : > { %s462_s13 = sshll.u32 %s454_s22, 4  ;;  %s451_s0 = scalar_lea.sflag [#allocation3], %s450_s11  ;;  %s463_s13 = int_to_ptr.vmem [resolvable:$true] %s462_s13 }
  0x20   : > { %s1953_s28 = sshra.s32 %s461_s20, 4  ;;  %p1957_p1 = pneg %p2169_p13  ;;  %s1954_s28 = int_to_ptr.hbm [resolvable:$true] %s1953_s28 }
  0x21   : > { %s1955_s19 = scalar_lea.hbm %s1954_s28, 128  ;;  %s1960_s27 = scalar_lea.hbm %s2704_s2, 256 }
  0x22   : > { %p1956_p0 = scmp.ne.s32.totalorder %s1954_s28, %s1955_s19  ;;  %p1961_p4 = scmp.lt.s32.totalorder %s1954_s28, %s2704_s2 }
  0x23   : > { %p1962_p6 = scmp.lt.s32.totalorder %s1960_s27, %s1955_s19 }
  0x24   : > { %p1958_p2 = pnand %p1957_p1, %p1956_p0 }
  0x25   : > { %p1963_p7 = por %p1962_p6, %p1961_p4 }
  0x26   : > { %p1959_p3 = pneg %p1958_p2 }
  0x28   : > { %p1964_p10 = pnand %p1963_p7, %p1959_p3 }
  0x2a   : > { %1967 = shalt.err (!%p1964_p10)
}
  0x2b   : > { %s2025_s11 = smov 128   ;;  %s2026_s14 = smov 8  }
  0x2c   : > { %1847 = dma.hbm_to_vmem [thread:$0]  (!%p2169_p13), %s461_s20, 2048, %s463_s13, %s451_s0, %s2025_s11, %s2025_s11, %s2026_s14  }
  0x2d   : > { %474 = sbr.rel (%p2152_p9) target bundleno = 876 (0x36c), region = 76  ;;  %s476_s29 = sand.u32 (!%p2152_p9), 1, %s2013_s30  }
  0x2e   : > { %s1703_s17 = sshll.u32 (!%p2152_p9), %s476_s29, 7  ;;  %s477_s22 = scalar_lea.sflag (!%p2152_p9), [#allocation3], %s476_s29 }
  0x2f   : > { %s2191_s21 = scalar_lea.vmem (!%p2152_p9), [#allocation2], %s1703_s17 }
  0x32   : > { %2000 = dma.done.wait (%p2148_p8), %s477_s22, 2048  }
  0x33   : > { %2002 = vsyncadd (%p2148_p8), %s477_s22, 4294965248 }
  0x34   : > { %2004 = dma.done.wait (%p2140_p5), [#allocation5], 32  }
  0x35   : > { %2006 = vsyncadd (%p2140_p5), [#allocation5], 4294967264  ;;  %v596_v0 = vld [vmem:[%s2705_s3 + $0x78] sm:$0xff]  ;;  %v595_v1 = vld [vmem:[%s2705_s3 + $0x70] sm:$0xff]  ;;  %vm767_vm0 = vcmask 261120   ;;  %s2737_s24 = sld [smem:[#allocation11_spill]] }
  0x36   : > { %694 = vmatpush.msra.mxu1 %v596_v0  ;;  %613 = vmatpush.msra.mxu0 %v596_v0  ;;  %v594_v2 = vld [vmem:[%s2705_s3 + $0x68] sm:$0xff]  ;;  %v593_v3 = vld [vmem:[%s2705_s3 + $0x60] sm:$0xff]  ;;  %v592_v4 = vld [vmem:[%s2705_s3 + $0x58] sm:$0xff]  ;;  %s2738_s27 = sld [smem:[#allocation14_spill]]  ;;  %vm1437_vm1 = vcmask 785408  }
  0x37   : > { %v591_v5 = vld [vmem:[%s2705_s3 + $0x50] sm:$0xff]  ;;  %v590_v6 = vld [vmem:[%s2705_s3 + $0x48] sm:$0xff]  ;;  %v589_v7 = vld [vmem:[%s2705_s3 + $0x40] sm:$0xff]  ;;  %s2739_s14 = sld [smem:[#allocation12_spill]] }
  0x38   : > { %695 = vmatpush.msra.mxu1 %v595_v1  ;;  %614 = vmatpush.msra.mxu0 %v595_v1  ;;  %v588_v8 = vld [vmem:[%s2705_s3 + $0x38] sm:$0xff]  ;;  %v587_v9 = vld [vmem:[%s2705_s3 + $0x30] sm:$0xff]  ;;  %v586_v10 = vld [vmem:[%s2705_s3 + $0x28] sm:$0xff]  ;;  %s2740_s25 = sld [smem:[#allocation16_spill]] }
  0x39   : > { %v585_v11 = vld [vmem:[%s2705_s3 + $0x20] sm:$0xff]  ;;  %v584_v12 = vld [vmem:[%s2705_s3 + $0x18] sm:$0xff]  ;;  %v583_v13 = vld [vmem:[%s2705_s3 + $0x10] sm:$0xff] }
  0x3a   : > { %696 = vmatpush.msra.mxu1 %v594_v2  ;;  %615 = vmatpush.msra.mxu0 %v594_v2  ;;  %v582_v14 = vld [vmem:[%s2705_s3 + $0x8] sm:$0xff]  ;;  %v581_v15 = vld [vmem:[%s2705_s3] sm:$0xff]  ;;  %v680_v18 = vld [vmem:[%s2191_s21 + $0x10] sm:$0xff] }
  0x3b   : > { %v678_v16 = vld [vmem:[%s2191_s21] sm:$0xff]  ;;  %v679_v17 = vld [vmem:[%s2191_s21 + $0x8] sm:$0xff]  ;;  %v681_v19 = vld [vmem:[%s2191_s21 + $0x18] sm:$0xff] }
  0x3c   : > { %697 = vmatpush.msra.mxu1 %v593_v3  ;;  %616 = vmatpush.msra.mxu0 %v593_v3  ;;  %v682_v20 = vld [vmem:[%s2191_s21 + $0x20] sm:$0xff]  ;;  %v683_v21 = vld [vmem:[%s2191_s21 + $0x28] sm:$0xff]  ;;  %v684_v22 = vld [vmem:[%s2191_s21 + $0x30] sm:$0xff] }
  0x3d   : > { %v685_v23 = vld [vmem:[%s2191_s21 + $0x38] sm:$0xff]  ;;  %v686_v24 = vld [vmem:[%s2191_s21 + $0x40] sm:$0xff]  ;;  %v687_v25 = vld [vmem:[%s2191_s21 + $0x48] sm:$0xff] }
  0x3e   : > { %698 = vmatpush.msra.mxu1 %v592_v4  ;;  %617 = vmatpush.msra.mxu0 %v592_v4  ;;  %v688_v26 = vld [vmem:[%s2191_s21 + $0x50] sm:$0xff]  ;;  %v762_v27 = vld [vmem:[%s2706_s4 + $0x18] sm:$0xff]  ;;  %v760_v30 = vld [vmem:[%s2706_s4 + $0x8] sm:$0xff] }
  0x3f   : > { %828 = vmatpush.msra.mxu2 %v762_v27  ;;  %v689_v28 = vld [vmem:[%s2191_s21 + $0x58] sm:$0xff]  ;;  %v761_v29 = vld [vmem:[%s2706_s4 + $0x10] sm:$0xff]  ;;  %v759_v31 = vld [vmem:[%s2706_s4] sm:$0xff] }
  0x40   : > { %699 = vmatpush.msra.mxu1 %v591_v5  ;;  %618 = vmatpush.msra.mxu0 %v591_v5  ;;  %v690_v32 = vld [vmem:[%s2191_s21 + $0x60] sm:$0xff]  ;;  %v691_v33 = vld [vmem:[%s2191_s21 + $0x68] sm:$0xff]  ;;  %v692_v34 = vld [vmem:[%s2191_s21 + $0x70] sm:$0xff] }
  0x41   : > { %829 = vmatpush.msra.mxu2 %v761_v29  ;;  %v693_v35 = vld [vmem:[%s2191_s21 + $0x78] sm:$0xff]  ;;  %s2736_s21 = sadd.s32 4294967295, %s2021_s16   ;;  %v899_v50 = vld [vmem:[%s2708_s6 + $0x10] sm:$0xff]  ;;  %v898_v51 = vld [vmem:[%s2708_s6 + $0x8] sm:$0xff] }
  0x42   : > { %700 = vmatpush.msra.mxu1 %v590_v6  ;;  %619 = vmatpush.msra.mxu0 %v590_v6  ;;  %s1706_s20 = sshll.u32 %s2736_s21, 4  ;;  %v900_v48 = vld [vmem:[%s2708_s6 + $0x18] sm:$0xff]  ;;  %v897_v53 = vld [vmem:[%s2708_s6] sm:$0xff]  ;;  %v1024_v3 = vld [vmem:[%s2711_s9 + $0x10] sm:$0xff] }
  0x43   : > { %830 = vmatpush.msra.mxu2 %v760_v30  ;;  %p547_p5 = scmp.lt.s32.totalorder %s1706_s20, 31  ;;  %965 = vmatpush.msra.mxu3 %v900_v48  ;;  %v1025_v52 = vld [vmem:[%s2711_s9 + $0x18] sm:$0xff]  ;;  %v2328_v62 = vld [vmem:[%s2707_s5] ss:$0 sm:$0xff]  ;;  %v1019_v27 = vld [vmem:[%s2710_s8 + $0x8] sm:$0xff] }
  0x44   : > { %701 = vmatpush.msra.mxu1 %v589_v7  ;;  %620 = vmatpush.msra.mxu0 %v589_v7  ;;  %v1021_v56 = vld [vmem:[%s2710_s8 + $0x18] sm:$0xff] }
  0x45   : > { %831 = vmatpush.msra.mxu2 %v759_v31  ;;  %s2747_s20 = smov (!%p547_p5, %s1706_s20), 31  ;;  %966 = vmatpush.msra.mxu3 %v899_v50  ;;  %v2333_v63 = vld [vmem:[%s2712_s10 + $0x18] sm:$0xff] }
  0x46   : > { %702 = vmatpush.msra.mxu1 %v588_v8  ;;  %621 = vmatpush.msra.mxu0 %v588_v8  ;;  %s2295_s19 = sshll.u32 %s2747_s20, 3  ;;  %v1020_v8 = vld [vmem:[%s2710_s8 + $0x10] sm:$0xff] }
  0x47   : > { %s2304_s7 = scalar_lea.vmem %s2703_s1, %s2295_s19  ;;  %967 = vmatpush.msra.mxu3 %v898_v51  ;;  %1086 = vmatpush.msrb.mxu2 %v1025_v52  ;;  %s2416_s23 = scalar_lea.vmem %s2737_s24, %s2295_s19 }
  0x48   : > { %703 = vmatpush.msra.mxu1 %v587_v9  ;;  %622 = vmatpush.msra.mxu0 %v587_v9  ;;  %v597_v54 = vld [vmem:[%s2304_s7] sm:$0xff]  ;;  %v598_v57 = vld [vmem:[%s2304_s7 + $0x8] sm:$0xff]  ;;  %v599_v59 = vld [vmem:[%s2304_s7 + $0x10] sm:$0xff]  ;;  %s2624_s21 = scalar_lea.vmem %s2740_s25, %s2295_s19 }
  0x49   : > { %968 = vmatpush.msra.mxu3 %v897_v53  ;;  %v600_v61 = vld [vmem:[%s2304_s7 + $0x18] sm:$0xff]  ;;  %v601_v4 = vld [vmem:[%s2304_s7 + $0x20] sm:$0xff]  ;;  %1087 = vmatpush.msrb.mxu2 %v1024_v3  ;;  %v602_v9 = vld [vmem:[%s2304_s7 + $0x28] sm:$0xff] }
  0x4a   : > { %704 = vmatpush.msra.mxu1 %v586_v10  ;;  %623 = vmatpush.msra.mxu0 %v586_v10  ;;  %v611_v51 = vld [vmem:[%s2304_s7 + $0x70] sm:$0xff] }
  0x4b   : > { %1199 = vmatpush.msrb.mxu3 %v1021_v56  ;;  %v1252_v56 = vld [vmem:[%s2712_s10] sm:$0xff] }
  0x4c   : > { %705 = vmatpush.msra.mxu1 %v585_v11  ;;  %624 = vmatpush.msra.mxu0 %v585_v11 }
  0x4d   : > { %1200 = vmatpush.msrb.mxu3 %v1020_v8 }
  0x4e   : > { %706 = vmatpush.msra.mxu1 %v584_v12  ;;  %625 = vmatpush.msra.mxu0 %v584_v12 }
  0x4f   : > { %1201 = vmatpush.msrb.mxu3 %v1019_v27 }
  0x50   : > { %707 = vmatpush.msra.mxu1 %v583_v13  ;;  %626 = vmatpush.msra.mxu0 %v583_v13  ;;  %v603_v13 = vld [vmem:[%s2304_s7 + $0x30] sm:$0xff] }
  0x52   : > { %708 = vmatpush.msra.mxu1 %v582_v14  ;;  %627 = vmatpush.msra.mxu0 %v582_v14 }
  0x54   : > { %709 = vmatpush.msra.mxu1 %v581_v15  ;;  %628 = vmatpush.msra.mxu0 %v581_v15 }
  0x55   : > { %710 = vmatmul.f32.vlgmr.msra.gmra.mxu1 %v678_v16  ;;  %629 = vmatmul.f32.vlgmr.msra.gmra.mxu0 %v597_v54 }
  0x56   : > { %1316 = vmatpush.msrb.mxu0 %v2333_v63 }
  0x5d   : > { %713 = vmatmul.f32.gmra.mxu1 %v679_v17  ;;  %632 = vmatmul.f32.gmra.mxu0 %v598_v57  ;;  %v604_v17 = vld [vmem:[%s2304_s7 + $0x38] sm:$0xff] }
  0x65   : > { %716 = vmatmul.f32.gmra.mxu1 %v680_v18  ;;  %635 = vmatmul.f32.gmra.mxu0 %v599_v59  ;;  %v1254_v18 = vld [vmem:[%s2712_s10 + $0x10] sm:$0xff] }
  0x66   : > { %1317 = vmatpush.msrb.mxu0 %v1254_v18 }
  0x6d   : > { %719 = vmatmul.f32.gmra.mxu1 %v681_v19  ;;  %638 = vmatmul.f32.gmra.mxu0 %v600_v61 }
  0x75   : > { %722 = vmatmul.f32.gmra.mxu1 %v682_v20  ;;  %641 = vmatmul.f32.gmra.mxu0 %v601_v4 }
  0x7d   : > { %725 = vmatmul.f32.gmra.mxu1 %v683_v21  ;;  %644 = vmatmul.f32.gmra.mxu0 %v602_v9 }
  0x85   : > { %728 = vmatmul.f32.gmra.mxu1 %v684_v22  ;;  %647 = vmatmul.f32.gmra.mxu0 %v603_v13  ;;  %v1023_v22 = vld [vmem:[%s2711_s9 + $0x8] sm:$0xff] }
  0x86   : > { %1088 = vmatpush.msrb.mxu2 %v1023_v22 }
  0x8d   : > { %731 = vmatmul.f32.gmra.mxu1 %v685_v23  ;;  %650 = vmatmul.f32.gmra.mxu0 %v604_v17  ;;  %v605_v23 = vld [vmem:[%s2304_s7 + $0x40] sm:$0xff]  ;;  %v1431_v17 = vld [vmem:[%s2738_s27 + $0x50] sm:$0xff] }
  0x95   : > { %734 = vmatmul.f32.gmra.mxu1 %v686_v24  ;;  %653 = vmatmul.f32.gmra.mxu0 %v605_v23 }
  0x9d   : > { %737 = vmatmul.f32.gmra.mxu1 %v687_v25 }
  0xa5   : > { %740 = vmatmul.f32.gmra.mxu1 %v688_v26 }
  0xad   : > { %743 = vmatmul.f32.gmra.mxu1 %v689_v28  ;;  %v606_v28 = vld [vmem:[%s2304_s7 + $0x48] sm:$0xff] }
  0xae   : > { %656 = vmatmul.f32.gmra.mxu0 %v606_v28 }
  0xb5   : > { %746 = vmatmul.f32.gmra.mxu1 %v690_v32  ;;  %v607_v32 = vld [vmem:[%s2304_s7 + $0x50] sm:$0xff] }
  0xb6   : > { %659 = vmatmul.f32.gmra.mxu0 %v607_v32 }
  0xbd   : > { %749 = vmatmul.f32.gmra.mxu1 %v691_v33 }
  0xc5   : > { %752 = vmatmul.f32.gmra.mxu1 %v692_v34 }
  0xcd   : > { %755 = vmatmul.f32.gmra.mxu1 %v693_v35 }
  0xd2   : > { %v711_v36 = vpop.f32.mrf.mxu1  ;;  %v630_v59 = vpop.f32.mrf.mxu0 }
  0xd3   : > { %1712 = vmatmul.msk.f32.vlgmr.msra.gmra.mxu2 %vm767_vm0, %v711_v36  ;;  %v608_v36 = vld [vmem:[%s2304_s7 + $0x58] sm:$0xff] }
  0xd4   : > { %662 = vmatmul.f32.gmra.mxu0 %v608_v36  ;;  %v1428_v36 = vld [vmem:[%s2738_s27 + $0x38] sm:$0xff] }
  0xda   : > { %v714_v37 = vpop.f32.mrf.mxu1 }
  0xdb   : > { %1713 = vmatmul.msk.f32.gmra.mxu2 %vm767_vm0, %v714_v37  ;;  %v1253_v37 = vld [vmem:[%s2712_s10 + $0x8] sm:$0xff] }
  0xdc   : > { %1318 = vmatpush.msrb.mxu0 %v1253_v37 }
  0xde   : > { %1319 = vmatpush.msrb.mxu0 %v1252_v56 }
  0xe2   : > { %v717_v38 = vpop.f32.mrf.mxu1 }
  0xe3   : > { %1714 = vmatmul.msk.f32.gmra.mxu2 %vm767_vm0, %v717_v38 }
  0xea   : > { %v720_v39 = vpop.f32.mrf.mxu1 }
  0xeb   : > { %1715 = vmatmul.msk.f32.gmra.mxu2 %vm767_vm0, %v720_v39 }
  0xf2   : > { %v723_v40 = vpop.f32.mrf.mxu1 }
  0xf3   : > { %1716 = vmatmul.msk.f32.gmra.mxu2 %vm767_vm0, %v723_v40 }
  0xfa   : > { %v726_v41 = vpop.f32.mrf.mxu1 }
  0xfb   : > { %1717 = vmatmul.msk.f32.gmra.mxu2 %vm767_vm0, %v726_v41  ;;  %v1022_v41 = vld [vmem:[%s2711_s9] sm:$0xff] }
  0xfc   : > { %1089 = vmatpush.msrb.mxu2 %v1022_v41 }
  0xfe   : > { %1811 = vmatpush.msra.mxu2 %v2333_v63 }
 0x100   : > { %1812 = vmatpush.msra.mxu2 %v1254_v18 }
 0x102   : > { %v729_v42 = vpop.f32.mrf.mxu1  ;;  %1813 = vmatpush.msra.mxu2 %v1253_v37 }
 0x103   : > { %1718 = vmatmul.msk.f32.gmra.mxu2 %vm767_vm0, %v729_v42  ;;  %v609_v42 = vld [vmem:[%s2304_s7 + $0x60] sm:$0xff] }
 0x104   : > { %665 = vmatmul.f32.gmra.mxu0 %v609_v42  ;;  %1814 = vmatpush.msra.mxu2 %v1252_v56 }
 0x10a   : > { %v732_v43 = vpop.f32.mrf.mxu1 }
 0x10b   : > { %1719 = vmatmul.msk.f32.gmra.mxu2 %vm767_vm0, %v732_v43 }
 0x112   : > { %v735_v44 = vpop.f32.mrf.mxu1 }
 0x113   : > { %1720 = vmatmul.msk.f32.gmra.mxu2 %vm767_vm0, %v735_v44 }
 0x11a   : > { %v738_v45 = vpop.f32.mrf.mxu1 }
 0x11b   : > { %1721 = vmatmul.msk.f32.gmra.mxu2 %vm767_vm0, %v738_v45 }
 0x122   : > { %v741_v46 = vpop.f32.mrf.mxu1 }
 0x123   : > { %1722 = vmatmul.msk.f32.gmra.mxu2 %vm767_vm0, %v741_v46  ;;  %v1018_v46 = vld [vmem:[%s2710_s8] sm:$0xff] }
 0x124   : > { %1202 = vmatpush.msrb.mxu3 %v1018_v46 }
 0x12a   : > { %v744_v47 = vpop.f32.mrf.mxu1 }
 0x12b   : > { %1723 = vmatmul.msk.f32.gmra.mxu2 %vm767_vm0, %v744_v47  ;;  %v610_v47 = vld [vmem:[%s2304_s7 + $0x68] sm:$0xff] }
 0x12c   : > { %668 = vmatmul.f32.gmra.mxu0 %v610_v47 }
 0x132   : > { %v747_v49 = vpop.f32.mrf.mxu1 }
 0x133   : > { %1724 = vmatmul.msk.f32.gmra.mxu2 %vm767_vm0, %v747_v49 }
 0x134   : > { %671 = vmatmul.f32.gmra.mxu0 %v611_v51 }
 0x13a   : > { %v750_v55 = vpop.f32.mrf.mxu1 }
 0x13b   : > { %1725 = vmatmul.msk.f32.gmra.mxu2 %vm767_vm0, %v750_v55  ;;  %v612_v55 = vld [vmem:[%s2304_s7 + $0x78] sm:$0xff] }
 0x13c   : > { %674 = vmatmul.f32.gmra.mxu0 %v612_v55  ;;  %v1425_v55 = vld [vmem:[%s2738_s27 + $0x20] sm:$0xff] }
 0x142   : > { %v753_v58 = vpop.f32.mrf.mxu1 }
 0x143   : > { %1726 = vmatmul.msk.f32.gmra.mxu2 %vm767_vm0, %v753_v58 }
 0x14a   : > { %v756_v60 = vpop.f32.mrf.mxu1 }
 0x14b   : > { %1727 = vmatmul.msk.f32.gmra.mxu2 %vm767_vm0, %v756_v60 }
 0x153   : > { %1744 = vmatmul.msk.f32.vlgmr.msrb.gmra.mxu2 %vm767_vm0, %v630_v59 }
 0x156   : > { %v833_v0 = vpop.f32.mrf.mxu2 }
 0x157   : > { %v834_v1 = vadd.f32 %v2328_v62, %v833_v0  ;;  %v633_v0 = vpop.f32.mrf.mxu0 }
 0x159   : > { %v881_v2 = vmax.f32 %v834_v1, 0.0 }
 0x15b   : > { %1728 = vmatmul.msk.f32.vlgmr.msra.gmra.mxu3 %vm767_vm0, %v881_v2  ;;  %1745 = vmatmul.msk.f32.gmra.mxu2 %vm767_vm0, %v633_v0  ;;  %v2538_v0 = vld [vmem:[%s2416_s23 + $0x58] sm:$0xff] }
 0x15e   : > { %v836_v5 = vpop.f32.mrf.mxu2 }
 0x15f   : > { %v837_v6 = vadd.f32 %v2328_v62, %v836_v5  ;;  %v636_v4 = vpop.f32.mrf.mxu0 }
 0x161   : > { %v882_v7 = vmax.f32 %v837_v6, 0.0 }
 0x163   : > { %1729 = vmatmul.msk.f32.gmra.mxu3 %vm767_vm0, %v882_v7  ;;  %1746 = vmatmul.msk.f32.gmra.mxu2 %vm767_vm0, %v636_v4  ;;  %v2546_v4 = vld [vmem:[%s2416_s23 + $0x60] sm:$0xff] }
 0x166   : > { %v839_v10 = vpop.f32.mrf.mxu2 }
 0x167   : > { %v840_v11 = vadd.f32 %v2328_v62, %v839_v10  ;;  %v639_v8 = vpop.f32.mrf.mxu0  ;;  %v2419_v10 = vld [vmem:[%s2416_s23] sm:$0xff] }
 0x169   : > { %v883_v12 = vmax.f32 %v840_v11, 0.0 }
 0x16b   : > { %1730 = vmatmul.msk.f32.gmra.mxu3 %vm767_vm0, %v883_v12  ;;  %1747 = vmatmul.msk.f32.gmra.mxu2 %vm767_vm0, %v639_v8  ;;  %v2430_v12 = vld [vmem:[%s2739_s14] ss:$0 sm:$0xff] }
 0x16e   : > { %v842_v14 = vpop.f32.mrf.mxu2 }
 0x16f   : > { %v843_v15 = vadd.f32 %v2328_v62, %v842_v14  ;;  %v642_v11 = vpop.f32.mrf.mxu0 }
 0x171   : > { %v884_v16 = vmax.f32 %v843_v15, 0.0  ;;  %v2434_v15 = vld [vmem:[%s2416_s23 + $0x8] sm:$0xff] }
 0x173   : > { %1731 = vmatmul.msk.f32.gmra.mxu3 %vm767_vm0, %v884_v16  ;;  %1748 = vmatmul.msk.f32.gmra.mxu2 %vm767_vm0, %v642_v11  ;;  %v1422_v11 = vld [vmem:[%s2738_s27 + $0x8] sm:$0xff] }
 0x176   : > { %v845_v19 = vpop.f32.mrf.mxu2 }
 0x177   : > { %v846_v20 = vadd.f32 %v2328_v62, %v845_v19  ;;  %v645_v16 = vpop.f32.mrf.mxu0 }
 0x179   : > { %v885_v21 = vmax.f32 %v846_v20, 0.0  ;;  %v2445_v20 = vld [vmem:[%s2416_s23 + $0x10] sm:$0xff] }
 0x17b   : > { %1732 = vmatmul.msk.f32.gmra.mxu3 %vm767_vm0, %v885_v21  ;;  %1749 = vmatmul.msk.f32.gmra.mxu2 %vm767_vm0, %v645_v16 }
 0x17e   : > { %v848_v24 = vpop.f32.mrf.mxu2 }
 0x17f   : > { %v849_v25 = vadd.f32 %v2328_v62, %v848_v24  ;;  %v648_v21 = vpop.f32.mrf.mxu0  ;;  %v1430_v24 = vld [vmem:[%s2738_s27 + $0x48] sm:$0xff] }
 0x181   : > { %v886_v26 = vmax.f32 %v849_v25, 0.0  ;;  %v2456_v25 = vld [vmem:[%s2416_s23 + $0x18] sm:$0xff] }
 0x183   : > { %1733 = vmatmul.msk.f32.gmra.mxu3 %vm767_vm0, %v886_v26  ;;  %1750 = vmatmul.msk.f32.gmra.mxu2 %vm767_vm0, %v648_v21 }
 0x186   : > { %v851_v29 = vpop.f32.mrf.mxu2 }
 0x187   : > { %v852_v30 = vadd.f32 %v2328_v62, %v851_v29  ;;  %v651_v26 = vpop.f32.mrf.mxu0  ;;  %v2464_v29 = vld [vmem:[%s2416_s23 + $0x20] sm:$0xff] }
 0x189   : > { %v887_v31 = vmax.f32 %v852_v30, 0.0 }
 0x18b   : > { %1734 = vmatmul.msk.f32.gmra.mxu3 %vm767_vm0, %v887_v31  ;;  %1751 = vmatmul.msk.f32.gmra.mxu2 %vm767_vm0, %v651_v26  ;;  %v1429_v31 = vld [vmem:[%s2738_s27 + $0x40] sm:$0xff] }
 0x18e   : > { %v854_v33 = vpop.f32.mrf.mxu2 }
 0x18f   : > { %v855_v34 = vadd.f32 %v2328_v62, %v854_v33  ;;  %v654_v30 = vpop.f32.mrf.mxu0 }
 0x191   : > { %v888_v35 = vmax.f32 %v855_v34, 0.0  ;;  %v2475_v34 = vld [vmem:[%s2416_s23 + $0x28] sm:$0xff] }
 0x193   : > { %1735 = vmatmul.msk.f32.gmra.mxu3 %vm767_vm0, %v888_v35  ;;  %1752 = vmatmul.msk.f32.gmra.mxu2 %vm767_vm0, %v654_v30 }
 0x196   : > { %v857_v38 = vpop.f32.mrf.mxu2 }
 0x197   : > { %v858_v39 = vadd.f32 %v2328_v62, %v857_v38  ;;  %v657_v35 = vpop.f32.mrf.mxu0 }
 0x199   : > { %v889_v40 = vmax.f32 %v858_v39, 0.0  ;;  %v2486_v39 = vld [vmem:[%s2416_s23 + $0x30] sm:$0xff] }
 0x19b   : > { %1736 = vmatmul.msk.f32.gmra.mxu3 %vm767_vm0, %v889_v40  ;;  %1753 = vmatmul.msk.f32.gmra.mxu2 %vm767_vm0, %v657_v35 }
 0x19e   : > { %v860_v43 = vpop.f32.mrf.mxu2 }
 0x19f   : > { %v861_v44 = vadd.f32 %v2328_v62, %v860_v43  ;;  %v660_v40 = vpop.f32.mrf.mxu0  ;;  %v1427_v43 = vld [vmem:[%s2738_s27 + $0x30] sm:$0xff] }
 0x1a1   : > { %v890_v45 = vmax.f32 %v861_v44, 0.0  ;;  %v2497_v44 = vld [vmem:[%s2416_s23 + $0x38] sm:$0xff] }
 0x1a3   : > { %1737 = vmatmul.msk.f32.gmra.mxu3 %vm767_vm0, %v890_v45  ;;  %1754 = vmatmul.msk.f32.gmra.mxu2 %vm767_vm0, %v660_v40 }
 0x1a6   : > { %v863_v48 = vpop.f32.mrf.mxu2 }
 0x1a7   : > { %v864_v49 = vadd.f32 %v2328_v62, %v863_v48  ;;  %v663_v45 = vpop.f32.mrf.mxu0  ;;  %v2505_v48 = vld [vmem:[%s2416_s23 + $0x40] sm:$0xff] }
 0x1a9   : > { %v891_v50 = vmax.f32 %v864_v49, 0.0 }
 0x1ab   : > { %1738 = vmatmul.msk.f32.gmra.mxu3 %vm767_vm0, %v891_v50  ;;  %1755 = vmatmul.msk.f32.gmra.mxu2 %vm767_vm0, %v663_v45  ;;  %v1426_v50 = vld [vmem:[%s2738_s27 + $0x28] sm:$0xff] }
 0x1ae   : > { %v866_v52 = vpop.f32.mrf.mxu2 }
 0x1af   : > { %v867_v53 = vadd.f32 %v2328_v62, %v866_v52  ;;  %v666_v49 = vpop.f32.mrf.mxu0 }
 0x1b1   : > { %v892_v54 = vmax.f32 %v867_v53, 0.0  ;;  %v2516_v53 = vld [vmem:[%s2416_s23 + $0x48] sm:$0xff] }
 0x1b3   : > { %1739 = vmatmul.msk.f32.gmra.mxu3 %vm767_vm0, %v892_v54  ;;  %1756 = vmatmul.msk.f32.gmra.mxu2 %vm767_vm0, %v666_v49 }
 0x1b6   : > { %v869_v57 = vpop.f32.mrf.mxu2 }
 0x1b7   : > { %v870_v58 = vadd.f32 %v2328_v62, %v869_v57  ;;  %v669_v54 = vpop.f32.mrf.mxu0 }
 0x1b9   : > { %v893_v60 = vmax.f32 %v870_v58, 0.0  ;;  %v2527_v58 = vld [vmem:[%s2416_s23 + $0x50] sm:$0xff] }
 0x1bb   : > { %1740 = vmatmul.msk.f32.gmra.mxu3 %vm767_vm0, %v893_v60  ;;  %1757 = vmatmul.msk.f32.gmra.mxu2 %vm767_vm0, %v669_v54 }
 0x1be   : > { %v872_v61 = vpop.f32.mrf.mxu2 }
 0x1bf   : > { %v873_v63 = vadd.f32 %v2328_v62, %v872_v61  ;;  %v672_v59 = vpop.f32.mrf.mxu0 }
 0x1c1   : > { %v894_v1 = vmax.f32 %v873_v63, 0.0  ;;  %v1424_v63 = vld [vmem:[%s2738_s27 + $0x18] sm:$0xff] }
 0x1c3   : > { %1741 = vmatmul.msk.f32.gmra.mxu3 %vm767_vm0, %v894_v1  ;;  %1758 = vmatmul.msk.f32.gmra.mxu2 %vm767_vm0, %v672_v59 }
 0x1c6   : > { %v875_v2 = vpop.f32.mrf.mxu2 }
 0x1c7   : > { %v876_v3 = vadd.f32 %v2328_v62, %v875_v2  ;;  %v675_v1 = vpop.f32.mrf.mxu0 }
 0x1c9   : > { %v895_v5 = vmax.f32 %v876_v3, 0.0 }
 0x1cb   : > { %1742 = vmatmul.msk.f32.gmra.mxu3 %vm767_vm0, %v895_v5  ;;  %1759 = vmatmul.msk.f32.gmra.mxu2 %vm767_vm0, %v675_v1  ;;  %v1423_v5 = vld [vmem:[%s2738_s27 + $0x10] sm:$0xff] }
 0x1ce   : > { %v878_v6 = vpop.f32.mrf.mxu2 }
 0x1cf   : > { %v879_v7 = vadd.f32 %v2328_v62, %v878_v6  ;;  %v1432_v62 = vld [vmem:[%s2738_s27 + $0x58] sm:$0xff] }
 0x1d0   : > { %1490 = vmatpush.msrb.mxu1 %v1432_v62  ;;  %1815 = vmatpush.msra.mxu3 %v1432_v62 }
 0x1d1   : > { %v896_v9 = vmax.f32 %v879_v7, 0.0 }
 0x1d2   : > { %1491 = vmatpush.msrb.mxu1 %v1431_v17  ;;  %1816 = vmatpush.msra.mxu3 %v1431_v17  ;;  %v2569_v17 = vld [vmem:[%s2416_s23 + $0x70] sm:$0xff] }
 0x1d3   : > { %1743 = vmatmul.msk.f32.gmra.mxu3 %vm767_vm0, %v896_v9  ;;  %v2556_v9 = vld [vmem:[%s2416_s23 + $0x68] sm:$0xff] }
 0x1d4   : > { %1492 = vmatpush.msrb.mxu1 %v1430_v24  ;;  %1817 = vmatpush.msra.mxu3 %v1430_v24 }
 0x1d6   : > { %1493 = vmatpush.msrb.mxu1 %v1429_v31  ;;  %1818 = vmatpush.msra.mxu3 %v1429_v31  ;;  %v1091_v6 = vpop.f32.mrf.mxu2  ;;  %v2583_v31 = vld [vmem:[#allocation4] ss:$0 sm:$0xff] }
 0x1d8   : > { %1494 = vmatpush.msrb.mxu1 %v1428_v36  ;;  %1819 = vmatpush.msra.mxu3 %v1428_v36 }
 0x1da   : > { %1495 = vmatpush.msrb.mxu1 %v1427_v43  ;;  %1820 = vmatpush.msra.mxu3 %v1427_v43 }
 0x1db   : > { %1760 = vmatmul.msk.f32.vlgmr.msrb.gmra.mxu3 %vm767_vm0, %v2419_v10 }
 0x1dc   : > { %1496 = vmatpush.msrb.mxu1 %v1426_v50  ;;  %1821 = vmatpush.msra.mxu3 %v1426_v50 }
 0x1de   : > { %v970_v13 = vpop.f32.mrf.mxu3  ;;  %1497 = vmatpush.msrb.mxu1 %v1425_v55  ;;  %1822 = vmatpush.msra.mxu3 %v1425_v55  ;;  %v1094_v62 = vpop.f32.mrf.mxu2 }
 0x1df   : > { %v971_v14 = vadd.f32 %v2430_v12, %v970_v13  ;;  %v1421_v13 = vld [vmem:[%s2738_s27] sm:$0xff] }
 0x1e0   : > { %1498 = vmatpush.msrb.mxu1 %v1424_v63  ;;  %1823 = vmatpush.msra.mxu3 %v1424_v63 }
 0x1e1   : > { %1776 = vmatmul.msk.f32.vlgmr.msrb.gmra.mxu0 %vm767_vm0, %v971_v14 }
 0x1e2   : > { %1499 = vmatpush.msrb.mxu1 %v1423_v5  ;;  %1824 = vmatpush.msra.mxu3 %v1423_v5 }
 0x1e3   : > { %1761 = vmatmul.msk.f32.gmra.mxu3 %vm767_vm0, %v2434_v15 }
 0x1e4   : > { %1500 = vmatpush.msrb.mxu1 %v1422_v11  ;;  %1825 = vmatpush.msra.mxu3 %v1422_v11 }
 0x1e6   : > { %v973_v18 = vpop.f32.mrf.mxu3  ;;  %1501 = vmatpush.msrb.mxu1 %v1421_v13  ;;  %1826 = vmatpush.msra.mxu3 %v1421_v13  ;;  %v1097_v21 = vpop.f32.mrf.mxu2 }
 0x1e7   : > { %v974_v19 = vadd.f32 %v2430_v12, %v973_v18 }
 0x1e9   : > { %1777 = vmatmul.msk.f32.gmra.mxu0 %vm767_vm0, %v974_v19 }
 0x1eb   : > { %1762 = vmatmul.msk.f32.gmra.mxu3 %vm767_vm0, %v2445_v20 }
 0x1ee   : > { %v976_v22 = vpop.f32.mrf.mxu3  ;;  %v1100_v26 = vpop.f32.mrf.mxu2 }
 0x1ef   : > { %v977_v23 = vadd.f32 %v2430_v12, %v976_v22  ;;  %v2576_v22 = vld [vmem:[%s2416_s23 + $0x78] sm:$0xff] }
 0x1f1   : > { %1778 = vmatmul.msk.f32.gmra.mxu0 %vm767_vm0, %v977_v23 }
 0x1f3   : > { %1763 = vmatmul.msk.f32.gmra.mxu3 %vm767_vm0, %v2456_v25 }
 0x1f6   : > { %v979_v27 = vpop.f32.mrf.mxu3  ;;  %v1103_v35 = vpop.f32.mrf.mxu2 }
 0x1f7   : > { %v980_v28 = vadd.f32 %v2430_v12, %v979_v27 }
 0x1f9   : > { %1779 = vmatmul.msk.f32.gmra.mxu0 %vm767_vm0, %v980_v28 }
 0x1fb   : > { %1764 = vmatmul.msk.f32.gmra.mxu3 %vm767_vm0, %v2464_v29 }
 0x1fe   : > { %v982_v32 = vpop.f32.mrf.mxu3  ;;  %v1106_v43 = vpop.f32.mrf.mxu2 }
 0x1ff   : > { %v983_v33 = vadd.f32 %v2430_v12, %v982_v32 }
 0x201   : > { %1780 = vmatmul.msk.f32.gmra.mxu0 %vm767_vm0, %v983_v33 }
 0x203   : > { %1765 = vmatmul.msk.f32.gmra.mxu3 %vm767_vm0, %v2475_v34 }
 0x206   : > { %v985_v37 = vpop.f32.mrf.mxu3 }
 0x207   : > { %v986_v38 = vadd.f32 %v2430_v12, %v985_v37 }
 0x209   : > { %1781 = vmatmul.msk.f32.gmra.mxu0 %vm767_vm0, %v986_v38 }
 0x20b   : > { %1766 = vmatmul.msk.f32.gmra.mxu3 %vm767_vm0, %v2486_v39 }
 0x20e   : > { %v988_v41 = vpop.f32.mrf.mxu3 }
 0x20f   : > { %v989_v42 = vadd.f32 %v2430_v12, %v988_v41 }
 0x211   : > { %1782 = vmatmul.msk.f32.gmra.mxu0 %vm767_vm0, %v989_v42 }
 0x213   : > { %1767 = vmatmul.msk.f32.gmra.mxu3 %vm767_vm0, %v2497_v44 }
 0x216   : > { %v991_v46 = vpop.f32.mrf.mxu3 }
 0x217   : > { %v992_v47 = vadd.f32 %v2430_v12, %v991_v46 }
 0x219   : > { %1783 = vmatmul.msk.f32.gmra.mxu0 %vm767_vm0, %v992_v47 }
 0x21b   : > { %1768 = vmatmul.msk.f32.gmra.mxu3 %vm767_vm0, %v2505_v48 }
 0x21e   : > { %v994_v51 = vpop.f32.mrf.mxu3 }
 0x21f   : > { %v995_v52 = vadd.f32 %v2430_v12, %v994_v51 }
 0x221   : > { %1784 = vmatmul.msk.f32.gmra.mxu0 %vm767_vm0, %v995_v52 }
 0x223   : > { %1769 = vmatmul.msk.f32.gmra.mxu3 %vm767_vm0, %v2516_v53 }
 0x226   : > { %v997_v56 = vpop.f32.mrf.mxu3 }
 0x227   : > { %v998_v57 = vadd.f32 %v2430_v12, %v997_v56  ;;  %v1109_v56 = vpop.f32.mrf.mxu2 }
 0x229   : > { %1785 = vmatmul.msk.f32.gmra.mxu0 %vm767_vm0, %v998_v57 }
 0x22b   : > { %1770 = vmatmul.msk.f32.gmra.mxu3 %vm767_vm0, %v2527_v58 }
 0x22e   : > { %v1000_v60 = vpop.f32.mrf.mxu3 }
 0x22f   : > { %v1001_v61 = vadd.f32 %v2430_v12, %v1000_v60 }
 0x231   : > { %1786 = vmatmul.msk.f32.gmra.mxu0 %vm767_vm0, %v1001_v61 }
 0x233   : > { %1771 = vmatmul.msk.f32.gmra.mxu3 %vm767_vm0, %v2538_v0 }
 0x236   : > { %v1003_v2 = vpop.f32.mrf.mxu3 }
 0x237   : > { %v1004_v3 = vadd.f32 %v2430_v12, %v1003_v2 }
 0x239   : > { %1787 = vmatmul.msk.f32.gmra.mxu0 %vm767_vm0, %v1004_v3  ;;  %v1112_v3 = vpop.f32.mrf.mxu2 }
 0x23b   : > { %1772 = vmatmul.msk.f32.gmra.mxu3 %vm767_vm0, %v2546_v4 }
 0x23e   : > { %v1006_v7 = vpop.f32.mrf.mxu3 }
 0x23f   : > { %v1007_v8 = vadd.f32 %v2430_v12, %v1006_v7 }
 0x241   : > { %1788 = vmatmul.msk.f32.gmra.mxu0 %vm767_vm0, %v1007_v8 }
 0x243   : > { %1773 = vmatmul.msk.f32.gmra.mxu3 %vm767_vm0, %v2556_v9 }
 0x246   : > { %v1009_v14 = vpop.f32.mrf.mxu3 }
 0x247   : > { %v1010_v16 = vadd.f32 %v2430_v12, %v1009_v14  ;;  %v1115_v14 = vpop.f32.mrf.mxu2 }
 0x249   : > { %1789 = vmatmul.msk.f32.gmra.mxu0 %vm767_vm0, %v1010_v16 }
 0x24b   : > { %1774 = vmatmul.msk.f32.gmra.mxu3 %vm767_vm0, %v2569_v17 }
 0x24e   : > { %v1012_v18 = vpop.f32.mrf.mxu3 }
 0x24f   : > { %v1013_v19 = vadd.f32 %v2430_v12, %v1012_v18 }
 0x251   : > { %1790 = vmatmul.msk.f32.gmra.mxu0 %vm767_vm0, %v1013_v19 }
 0x253   : > { %1775 = vmatmul.msk.f32.gmra.mxu3 %vm767_vm0, %v2576_v22 }
 0x256   : > { %v1015_v23 = vpop.f32.mrf.mxu3 }
 0x257   : > { %v1016_v24 = vadd.f32 %v2430_v12, %v1015_v23 }
 0x259   : > { %1791 = vmatmul.msk.f32.vlgmr.msra.gmra.mxu2 %vm767_vm0, %v1016_v24 }
 0x25e   : > { %v1204_v27 = vpop.f32.mrf.mxu3  ;;  %v1321_v28 = vpop.f32.mrf.mxu0 }
 0x25f   : > { %v1205_v30 = vadd.f32 %v1204_v27, %v1091_v6  ;;  %v1118_v27 = vpop.f32.mrf.mxu2 }
 0x261   : > { %v1369_v32 = vadd.f32 %v1321_v28, %v1205_v30 }
 0x263   : > { %v1389_v33 = vadd.f32 %v2583_v31, %v1369_v32 }
 0x265   : > { %v1405_v36 = vmax.f32 %v1389_v33, 0.0 }
 0x266   : > { %v1207_v37 = vpop.f32.mrf.mxu3  ;;  %v1324_v38 = vpop.f32.mrf.mxu0 }
 0x267   : > { %v1208_v40 = vadd.f32 %v1207_v37, %v1094_v62  ;;  %1792 = vmatmul.msk.f32.vlgmr.msrb.gmra.mxu1 %vm1437_vm1, %v1405_v36 }
 0x269   : > { %v1370_v12 = vadd.f32 %v1324_v38, %v1208_v40 }
 0x26b   : > { %v1390_v41 = vadd.f32 %v2583_v31, %v1370_v12  ;;  %v1121_v12 = vpop.f32.mrf.mxu2 }
 0x26d   : > { %v1406_v42 = vmax.f32 %v1390_v41, 0.0 }
 0x26e   : > { %v1210_v45 = vpop.f32.mrf.mxu3  ;;  %v1327_v46 = vpop.f32.mrf.mxu0 }
 0x26f   : > { %v1211_v47 = vadd.f32 %v1210_v45, %v1097_v21  ;;  %1793 = vmatmul.msk.f32.gmra.mxu1 %vm1437_vm1, %v1406_v42 }
 0x271   : > { %v1371_v49 = vadd.f32 %v1327_v46, %v1211_v47 }
 0x273   : > { %v1391_v50 = vadd.f32 %v2583_v31, %v1371_v49 }
 0x275   : > { %v1407_v51 = vmax.f32 %v1391_v50, 0.0  ;;  %v1124_v50 = vpop.f32.mrf.mxu2 }
 0x276   : > { %v1213_v52 = vpop.f32.mrf.mxu3  ;;  %v1330_v54 = vpop.f32.mrf.mxu0 }
 0x277   : > { %v1214_v55 = vadd.f32 %v1213_v52, %v1100_v26  ;;  %1794 = vmatmul.msk.f32.gmra.mxu1 %vm1437_vm1, %v1407_v51 }
 0x279   : > { %v1372_v57 = vadd.f32 %v1330_v54, %v1214_v55 }
 0x27b   : > { %v1392_v59 = vadd.f32 %v2583_v31, %v1372_v57 }
 0x27d   : > { %v1408_v60 = vmax.f32 %v1392_v59, 0.0 }
 0x27e   : > { %v1216_v61 = vpop.f32.mrf.mxu3  ;;  %v1333_v63 = vpop.f32.mrf.mxu0 }
 0x27f   : > { %v1217_v1 = vadd.f32 %v1216_v61, %v1103_v35  ;;  %1795 = vmatmul.msk.f32.gmra.mxu1 %vm1437_vm1, %v1408_v60  ;;  %v1127_v60 = vpop.f32.mrf.mxu2 }
 0x281   : > { %v1373_v2 = vadd.f32 %v1333_v63, %v1217_v1 }
 0x283   : > { %v1393_v5 = vadd.f32 %v2583_v31, %v1373_v2 }
 0x285   : > { %v1409_v6 = vmax.f32 %v1393_v5, 0.0 }
 0x286   : > { %v1219_v7 = vpop.f32.mrf.mxu3  ;;  %v1336_v8 = vpop.f32.mrf.mxu0 }
 0x287   : > { %v1220_v11 = vadd.f32 %v1219_v7, %v1106_v43  ;;  %1796 = vmatmul.msk.f32.gmra.mxu1 %vm1437_vm1, %v1409_v6  ;;  %v1130_v7 = vpop.f32.mrf.mxu2 }
 0x289   : > { %v1374_v62 = vadd.f32 %v1336_v8, %v1220_v11 }
 0x28b   : > { %v1394_v13 = vadd.f32 %v2583_v31, %v1374_v62 }
 0x28d   : > { %v1410_v16 = vmax.f32 %v1394_v13, 0.0 }
 0x28e   : > { %v1222_v18 = vpop.f32.mrf.mxu3  ;;  %v1339_v19 = vpop.f32.mrf.mxu0 }
 0x28f   : > { %v1223_v21 = vadd.f32 %v1222_v18, %v1109_v56  ;;  %1797 = vmatmul.msk.f32.gmra.mxu1 %vm1437_vm1, %v1410_v16 }
 0x291   : > { %v1375_v23 = vadd.f32 %v1339_v19, %v1223_v21 }
 0x293   : > { %v1395_v24 = vadd.f32 %v2583_v31, %v1375_v23  ;;  %v1133_v23 = vpop.f32.mrf.mxu2 }
 0x295   : > { %v1411_v26 = vmax.f32 %v1395_v24, 0.0 }
 0x296   : > { %v1225_v28 = vpop.f32.mrf.mxu3  ;;  %v1342_v30 = vpop.f32.mrf.mxu0 }
 0x297   : > { %v1226_v32 = vadd.f32 %v1225_v28, %v1112_v3  ;;  %1798 = vmatmul.msk.f32.gmra.mxu1 %vm1437_vm1, %v1411_v26 }
 0x299   : > { %v1376_v33 = vadd.f32 %v1342_v30, %v1226_v32 }
 0x29b   : > { %v1396_v35 = vadd.f32 %v2583_v31, %v1376_v33 }
 0x29d   : > { %v1412_v36 = vmax.f32 %v1396_v35, 0.0  ;;  %v1136_v35 = vpop.f32.mrf.mxu2 }
 0x29e   : > { %v1228_v37 = vpop.f32.mrf.mxu3  ;;  %v1345_v38 = vpop.f32.mrf.mxu0 }
 0x29f   : > { %v1229_v40 = vadd.f32 %v1228_v37, %v1115_v14  ;;  %1799 = vmatmul.msk.f32.gmra.mxu1 %vm1437_vm1, %v1412_v36 }
 0x2a1   : > { %v1377_v41 = vadd.f32 %v1345_v38, %v1229_v40 }
 0x2a3   : > { %v1397_v42 = vadd.f32 %v2583_v31, %v1377_v41 }
 0x2a5   : > { %v1413_v43 = vmax.f32 %v1397_v42, 0.0 }
 0x2a6   : > { %v1231_v45 = vpop.f32.mrf.mxu3  ;;  %v1348_v46 = vpop.f32.mrf.mxu0 }
 0x2a7   : > { %v1232_v47 = vadd.f32 %v1231_v45, %v1118_v27  ;;  %1800 = vmatmul.msk.f32.gmra.mxu1 %vm1437_vm1, %v1413_v43  ;;  %v2616_v45 = vld [vmem:[#allocation6] ss:$0 sm:$0xff] }
 0x2a9   : > { %v1378_v49 = vadd.f32 %v1348_v46, %v1232_v47 }
 0x2ab   : > { %v1398_v51 = vadd.f32 %v2583_v31, %v1378_v49 }
 0x2ad   : > { %v1414_v52 = vmax.f32 %v1398_v51, 0.0 }
 0x2ae   : > { %v1234_v54 = vpop.f32.mrf.mxu3  ;;  %v1351_v55 = vpop.f32.mrf.mxu0 }
 0x2af   : > { %v1235_v56 = vadd.f32 %v1234_v54, %v1121_v12  ;;  %1801 = vmatmul.msk.f32.gmra.mxu1 %vm1437_vm1, %v1414_v52 }
 0x2b1   : > { %v1379_v57 = vadd.f32 %v1351_v55, %v1235_v56 }
 0x2b3   : > { %v1399_v59 = vadd.f32 %v2583_v31, %v1379_v57 }
 0x2b5   : > { %v1415_v61 = vmax.f32 %v1399_v59, 0.0 }
 0x2b6   : > { %v1237_v63 = vpop.f32.mrf.mxu3  ;;  %v1354_v1 = vpop.f32.mrf.mxu0 }
 0x2b7   : > { %v1238_v2 = vadd.f32 %v1237_v63, %v1124_v50  ;;  %1802 = vmatmul.msk.f32.gmra.mxu1 %vm1437_vm1, %v1415_v61 }
 0x2b9   : > { %v1380_v3 = vadd.f32 %v1354_v1, %v1238_v2 }
 0x2bb   : > { %v1400_v5 = vadd.f32 %v2583_v31, %v1380_v3 }
 0x2bd   : > { %v1416_v6 = vmax.f32 %v1400_v5, 0.0 }
 0x2be   : > { %v1240_v8 = vpop.f32.mrf.mxu3  ;;  %v1357_v11 = vpop.f32.mrf.mxu0 }
 0x2bf   : > { %v1241_v62 = vadd.f32 %v1240_v8, %v1127_v60  ;;  %1803 = vmatmul.msk.f32.gmra.mxu1 %vm1437_vm1, %v1416_v6 }
 0x2c1   : > { %v1381_v13 = vadd.f32 %v1357_v11, %v1241_v62 }
 0x2c3   : > { %v1401_v14 = vadd.f32 %v2583_v31, %v1381_v13 }
 0x2c5   : > { %v1417_v16 = vmax.f32 %v1401_v14, 0.0 }
 0x2c6   : > { %v1243_v18 = vpop.f32.mrf.mxu3  ;;  %v1360_v19 = vpop.f32.mrf.mxu0 }
 0x2c7   : > { %v1244_v21 = vadd.f32 %v1243_v18, %v1130_v7  ;;  %1804 = vmatmul.msk.f32.gmra.mxu1 %vm1437_vm1, %v1417_v16 }
 0x2c9   : > { %v1382_v24 = vadd.f32 %v1360_v19, %v1244_v21 }
 0x2cb   : > { %v1402_v26 = vadd.f32 %v2583_v31, %v1382_v24 }
 0x2cd   : > { %v1418_v27 = vmax.f32 %v1402_v26, 0.0 }
 0x2ce   : > { %v1246_v28 = vpop.f32.mrf.mxu3  ;;  %v1363_v32 = vpop.f32.mrf.mxu0 }
 0x2cf   : > { %v1247_v30 = vadd.f32 %v1246_v28, %v1133_v23  ;;  %1805 = vmatmul.msk.f32.gmra.mxu1 %vm1437_vm1, %v1418_v27 }
 0x2d1   : > { %v1383_v33 = vadd.f32 %v1363_v32, %v1247_v30 }
 0x2d3   : > { %v1403_v36 = vadd.f32 %v2583_v31, %v1383_v33 }
 0x2d5   : > { %v1419_v37 = vmax.f32 %v1403_v36, 0.0 }
 0x2d6   : > { %v1249_v38 = vpop.f32.mrf.mxu3 }
 0x2d7   : > { %1806 = vmatmul.msk.f32.gmra.mxu1 %vm1437_vm1, %v1419_v37  ;;  %v1250_v40 = vadd.f32 %v1249_v38, %v1136_v35 }
 0x2dc   : > { %v1366_v12 = vpop.f32.mrf.mxu2 }
 0x2dd   : > { %v1384_v41 = vadd.f32 %v1366_v12, %v1250_v40 }
 0x2df   : > { %v1404_v42 = vadd.f32 %v2583_v31, %v1384_v41 }
 0x2e1   : > { %v1420_v43 = vmax.f32 %v1404_v42, 0.0 }
 0x2e3   : > { %1807 = vmatmul.msk.f32.vlgmr.msra.gmra.mxu3 %vm1437_vm1, %v1420_v43 }
 0x2e4   : > { %v1503_v46 = vpop.f32.mrf.mxu1 }
 0x2e5   : > { %v1504_v47 = vadd.f32 %v2616_v45, %v1503_v46 }
 0x2e7   : > { %v1551_v49 = vadd.f32 %v1504_v47, %v2419_v10 }
 0x2e9   : > { %1567 = vst.msk [vmem:[%s2624_s21] sm:$0xff] %vm767_vm0, %v1551_v49 }
 0x2ec   : > { %v1506_v31 = vpop.f32.mrf.mxu1 }
 0x2ed   : > { %v1507_v50 = vadd.f32 %v2616_v45, %v1506_v31 }
 0x2ef   : > { %v1552_v51 = vadd.f32 %v1507_v50, %v2434_v15 }
 0x2f1   : > { %1568 = vst.msk [vmem:[%s2624_s21 + $0x8] sm:$0xff] %vm767_vm0, %v1552_v51 }
 0x2f4   : > { %v1509_v52 = vpop.f32.mrf.mxu1 }
 0x2f5   : > { %v1510_v54 = vadd.f32 %v2616_v45, %v1509_v52 }
 0x2f7   : > { %v1553_v55 = vadd.f32 %v1510_v54, %v2445_v20 }
 0x2f9   : > { %1569 = vst.msk [vmem:[%s2624_s21 + $0x10] sm:$0xff] %vm767_vm0, %v1553_v55 }
 0x2fc   : > { %v1512_v10 = vpop.f32.mrf.mxu1 }
 0x2fd   : > { %v1513_v56 = vadd.f32 %v2616_v45, %v1512_v10 }
 0x2ff   : > { %v1554_v57 = vadd.f32 %v1513_v56, %v2456_v25 }
 0x301   : > { %1570 = vst.msk [vmem:[%s2624_s21 + $0x18] sm:$0xff] %vm767_vm0, %v1554_v57 }
 0x304   : > { %v1515_v15 = vpop.f32.mrf.mxu1 }
 0x305   : > { %v1516_v59 = vadd.f32 %v2616_v45, %v1515_v15 }
 0x307   : > { %v1555_v60 = vadd.f32 %v1516_v59, %v2464_v29 }
 0x309   : > { %1571 = vst.msk [vmem:[%s2624_s21 + $0x20] sm:$0xff] %vm767_vm0, %v1555_v60 }
 0x30c   : > { %v1518_v20 = vpop.f32.mrf.mxu1 }
 0x30d   : > { %v1519_v61 = vadd.f32 %v2616_v45, %v1518_v20 }
 0x30f   : > { %v1556_v63 = vadd.f32 %v1519_v61, %v2475_v34 }
 0x311   : > { %1572 = vst.msk [vmem:[%s2624_s21 + $0x28] sm:$0xff] %vm767_vm0, %v1556_v63 }
 0x314   : > { %v1521_v25 = vpop.f32.mrf.mxu1 }
 0x315   : > { %v1522_v1 = vadd.f32 %v2616_v45, %v1521_v25 }
 0x317   : > { %v1557_v2 = vadd.f32 %v1522_v1, %v2486_v39 }
 0x319   : > { %1573 = vst.msk [vmem:[%s2624_s21 + $0x30] sm:$0xff] %vm767_vm0, %v1557_v2 }
 0x31c   : > { %v1524_v29 = vpop.f32.mrf.mxu1 }
 0x31d   : > { %v1525_v3 = vadd.f32 %v2616_v45, %v1524_v29 }
 0x31f   : > { %v1558_v5 = vadd.f32 %v1525_v3, %v2497_v44 }
 0x321   : > { %1574 = vst.msk [vmem:[%s2624_s21 + $0x38] sm:$0xff] %vm767_vm0, %v1558_v5 }
 0x324   : > { %v1527_v34 = vpop.f32.mrf.mxu1 }
 0x325   : > { %v1528_v6 = vadd.f32 %v2616_v45, %v1527_v34 }
 0x327   : > { %v1559_v7 = vadd.f32 %v1528_v6, %v2505_v48 }
 0x329   : > { %1575 = vst.msk [vmem:[%s2624_s21 + $0x40] sm:$0xff] %vm767_vm0, %v1559_v7 }
 0x32c   : > { %v1530_v39 = vpop.f32.mrf.mxu1 }
 0x32d   : > { %v1531_v8 = vadd.f32 %v2616_v45, %v1530_v39 }
 0x32f   : > { %v1560_v11 = vadd.f32 %v1531_v8, %v2516_v53 }
 0x331   : > { %1576 = vst.msk [vmem:[%s2624_s21 + $0x48] sm:$0xff] %vm767_vm0, %v1560_v11 }
 0x334   : > { %v1533_v44 = vpop.f32.mrf.mxu1 }
 0x335   : > { %v1534_v62 = vadd.f32 %v2616_v45, %v1533_v44 }
 0x337   : > { %v1561_v13 = vadd.f32 %v1534_v62, %v2527_v58 }
 0x339   : > { %1577 = vst.msk [vmem:[%s2624_s21 + $0x50] sm:$0xff] %vm767_vm0, %v1561_v13 }
 0x33c   : > { %v1536_v48 = vpop.f32.mrf.mxu1 }
 0x33d   : > { %v1537_v14 = vadd.f32 %v2616_v45, %v1536_v48 }
 0x33f   : > { %v1562_v16 = vadd.f32 %v1537_v14, %v2538_v0 }
 0x341   : > { %1578 = vst.msk [vmem:[%s2624_s21 + $0x58] sm:$0xff] %vm767_vm0, %v1562_v16 }
 0x344   : > { %v1539_v53 = vpop.f32.mrf.mxu1 }
 0x345   : > { %v1540_v18 = vadd.f32 %v2616_v45, %v1539_v53 }
 0x347   : > { %v1563_v19 = vadd.f32 %v1540_v18, %v2546_v4 }
 0x349   : > { %1579 = vst.msk [vmem:[%s2624_s21 + $0x60] sm:$0xff] %vm767_vm0, %v1563_v19 }
 0x34c   : > { %v1542_v21 = vpop.f32.mrf.mxu1 }
 0x34d   : > { %v1543_v58 = vadd.f32 %v2616_v45, %v1542_v21 }
 0x34f   : > { %v1564_v23 = vadd.f32 %v1543_v58, %v2556_v9 }
 0x351   : > { %1580 = vst.msk [vmem:[%s2624_s21 + $0x68] sm:$0xff] %vm767_vm0, %v1564_v23 }
 0x354   : > { %v1545_v24 = vpop.f32.mrf.mxu1 }
 0x355   : > { %v1546_v0 = vadd.f32 %v2616_v45, %v1545_v24 }
 0x357   : > { %v1565_v26 = vadd.f32 %v1546_v0, %v2569_v17 }
 0x359   : > { %1581 = vst.msk [vmem:[%s2624_s21 + $0x70] sm:$0xff] %vm767_vm0, %v1565_v26 }
 0x366   : > { %v1548_v27 = vpop.f32.mrf.mxu3 }
 0x367   : > { %v1549_v28 = vadd.f32 %v2616_v45, %v1548_v27 }
 0x369   : > { %v1566_v4 = vadd.f32 %v1549_v28, %v2576_v22 }
 0x36b   : > { %1582 = vst.msk [vmem:[%s2624_s21 + $0x78] sm:$0xff] %vm767_vm0, %v1566_v4 }
 0x36c PF: > { %s2741_s16 = sld [smem:[#allocation9_spill]]  ;;  %s2743_s29 = smov %s2013_s30 }
 0x36d   : > { %s2742_s19 = sld [smem:[#allocation10_spill]]  ;;  %s2744_s30 = smov %s2017_s15 }
 0x372   : > { %p25_p8 = scmp.ge.s32.totalorder %s2741_s16, 4  }
 0x373   : > { %s2745_s15 = smov %s2742_s19 }
 0x374   :  { %27 = sbr.rel (!%p25_p8) target bundleno = 11 (0xb), region = 130 }
 0x379   :  { %1605 = vsyncpa [#allocation3], 1 }
 0x37a   :  { %1607 = vsyncpa [#allocation3 + $0x1], 1 }
 0x37b   :  { %1608 = vsyncpa [#allocation5], 1 }

// kernel: gnn_node_forward.15
= control target key start
LH: loop header
LB: loop body
LE: loop exit
PB: predicated region body
PF: predicated region fallthrough
CT: control target
= control target key end

     0   :  { %vm65_vm0 = vcmask 261120   ;;  %s1171_s0 = inlined_call_operand.vmem [shape: f32[128,32], index: 0, kind: input, shape index: {}]   ;;  %s1172_s1 = inlined_call_operand.vmem [shape: f32[128,32], index: 1, kind: input, shape index: {}]   ;;  %s1173_s2 = inlined_call_operand.vmem [shape: f32[1,32], index: 2, kind: input, shape index: {}]   ;;  %s1174_s3 = inlined_call_operand.vmem [shape: f32[1,32], index: 3, kind: input, shape index: {}]   ;;  %s1175_s4 = inlined_call_operand.vmem [shape: f32[128,32], index: 4, kind: output, shape index: {}]  }
   0x1   :  { %v21_v0 = vld [vmem:[%s1171_s0 + $0x20] sm:$0xff]  ;;  %v19_v2 = vld [vmem:[%s1171_s0 + $0x10] sm:$0xff]  ;;  %v22_v9 = vld [vmem:[%s1171_s0 + $0x28] sm:$0xff] }
   0x2   :  { %v37_v1 = vld [vmem:[%s1172_s1 + $0x20] sm:$0xff]  ;;  %v35_v4 = vld [vmem:[%s1172_s1 + $0x10] sm:$0xff]  ;;  %v38_v10 = vld [vmem:[%s1172_s1 + $0x28] sm:$0xff] }
   0x3   :  { %v605_v3 = vadd.f32 %v37_v1, %v21_v0  ;;  %v17_v5 = vld [vmem:[%s1171_s0] sm:$0xff]  ;;  %v616_v7 = vadd.f32 %v35_v4, %v19_v2  ;;  %v20_v11 = vld [vmem:[%s1171_s0 + $0x18] sm:$0xff]  ;;  %v18_v14 = vld [vmem:[%s1171_s0 + $0x8] sm:$0xff]  ;;  %v644_v18 = vadd.f32 %v38_v10, %v22_v9  ;;  %v570_v0 = vmov 32.0  }
   0x4   :  { %v33_v6 = vld [vmem:[%s1172_s1] sm:$0xff]  ;;  %v36_v13 = vld [vmem:[%s1172_s1 + $0x18] sm:$0xff]  ;;  %v34_v15 = vld [vmem:[%s1172_s1 + $0x8] sm:$0xff]  ;;  %536 = vrcp.f32 %v570_v0 }
   0x5   :  { %v618_v8 = vadd.f32 %v33_v6, %v17_v5  ;;  %v78_v12 = vsel %vm65_vm0, %v605_v3, 0.0  ;;  %v72_v16 = vsel %vm65_vm0, %v616_v7, 0.0  ;;  %v646_v19 = vadd.f32 %v36_v13, %v20_v11  ;;  %v25_v24 = vld [vmem:[%s1171_s0 + $0x40] sm:$0xff]  ;;  %v23_v26 = vld [vmem:[%s1171_s0 + $0x30] sm:$0xff]  ;;  %v24_v28 = vld [vmem:[%s1171_s0 + $0x38] sm:$0xff] }
   0x6   :  { %79 = vadd.xlane.f32.xlu2 %v78_v12  ;;  %73 = vadd.xlane.f32.xlu1 %v72_v16  ;;  %v648_v20 = vadd.f32 %v34_v15, %v18_v14  ;;  %v81_v21 = vsel %vm65_vm0, %v644_v18, 0.0  ;;  %v41_v25 = vld [vmem:[%s1172_s1 + $0x40] sm:$0xff]  ;;  %v39_v27 = vld [vmem:[%s1172_s1 + $0x30] sm:$0xff]  ;;  %v40_v29 = vld [vmem:[%s1172_s1 + $0x38] sm:$0xff] }
   0x7   :  { %v66_v17 = vsel %vm65_vm0, %v618_v8, 0.0  ;;  %v75_v22 = vsel %vm65_vm0, %v646_v19, 0.0  ;;  %v674_v30 = vadd.f32 %v41_v25, %v25_v24  ;;  %v676_v31 = vadd.f32 %v39_v27, %v23_v26  ;;  %v28_v35 = vld [vmem:[%s1171_s0 + $0x58] sm:$0xff]  ;;  %v26_v38 = vld [vmem:[%s1171_s0 + $0x48] sm:$0xff]  ;;  %v27_v40 = vld [vmem:[%s1171_s0 + $0x50] sm:$0xff] }
   0x8   :  { %67 = vadd.xlane.f32.xlu0 %v66_v17  ;;  %v69_v23 = vsel %vm65_vm0, %v648_v20, 0.0  ;;  %v678_v32 = vadd.f32 %v40_v29, %v24_v28  ;;  %v44_v36 = vld [vmem:[%s1172_s1 + $0x58] sm:$0xff]  ;;  %v42_v39 = vld [vmem:[%s1172_s1 + $0x48] sm:$0xff]  ;;  %v43_v41 = vld [vmem:[%s1172_s1 + $0x50] sm:$0xff] }
   0x9   :  { %v90_v33 = vsel %vm65_vm0, %v674_v30, 0.0  ;;  %v84_v34 = vsel %vm65_vm0, %v676_v31, 0.0  ;;  %v704_v42 = vadd.f32 %v44_v36, %v28_v35  ;;  %v706_v43 = vadd.f32 %v42_v39, %v26_v38  ;;  %v31_v47 = vld [vmem:[%s1171_s0 + $0x70] sm:$0xff]  ;;  %v29_v50 = vld [vmem:[%s1171_s0 + $0x60] sm:$0xff]  ;;  %v30_v52 = vld [vmem:[%s1171_s0 + $0x68] sm:$0xff] }
   0xa   :  { %v87_v37 = vsel %vm65_vm0, %v678_v32, 0.0  ;;  %v708_v44 = vadd.f32 %v43_v41, %v27_v40  ;;  %v47_v48 = vld [vmem:[%s1172_s1 + $0x70] sm:$0xff]  ;;  %v45_v51 = vld [vmem:[%s1172_s1 + $0x60] sm:$0xff]  ;;  %v46_v53 = vld [vmem:[%s1172_s1 + $0x68] sm:$0xff]  ;;  %v537_v1 = vpop.eup %536 }
   0xb   :  { %v99_v45 = vsel %vm65_vm0, %v704_v42, 0.0  ;;  %v93_v46 = vsel %vm65_vm0, %v706_v43, 0.0  ;;  %v734_v54 = vadd.f32 %v47_v48, %v31_v47  ;;  %v736_v55 = vadd.f32 %v45_v51, %v29_v50  ;;  %v32_v60 = vld [vmem:[%s1171_s0 + $0x78] sm:$0xff] }
   0xc   :  { %v96_v49 = vsel %vm65_vm0, %v708_v44, 0.0  ;;  %v738_v56 = vadd.f32 %v46_v53, %v30_v52  ;;  %v48_v61 = vld [vmem:[%s1172_s1 + $0x78] sm:$0xff]  ;;  %v115_v2 = vmul.f32 32.0, %v537_v1  ;;  %vm119_vm1 = vweird.f32 %v537_v1 }
   0xd   :  { %v108_v57 = vsel %vm65_vm0, %v734_v54, 0.0  ;;  %v102_v58 = vsel %vm65_vm0, %v736_v55, 0.0  ;;  %v752_v62 = vadd.f32 %v48_v61, %v32_v60 }
   0xe   :  { %82 = vadd.xlane.f32.xlu2 %v81_v21  ;;  %76 = vadd.xlane.f32.xlu1 %v75_v22  ;;  %v105_v59 = vsel %vm65_vm0, %v738_v56, 0.0  ;;  %v116_v4 = vsub.f32 1.0, %v115_v2 }
   0xf   :  { %v111_v63 = vsel %vm65_vm0, %v752_v62, 0.0 }
  0x10   :  { %70 = vadd.xlane.f32.xlu0 %v69_v23  ;;  %v117_v5 = vmul.f32 %v537_v1, %v116_v4 }
  0x12   :  { %v118_v6 = vadd.f32 %v537_v1, %v117_v5 }
  0x14   :  { %v756_v9 = vsel %vm119_vm1, %v537_v1, %v118_v6 }
  0x16   :  { %91 = vadd.xlane.f32.xlu2 %v90_v33  ;;  %88 = vadd.xlane.f32.xlu1 %v87_v37 }
  0x18   :  { %85 = vadd.xlane.f32.xlu0 %v84_v34 }
  0x1e   :  { %100 = vadd.xlane.f32.xlu2 %v99_v45  ;;  %97 = vadd.xlane.f32.xlu1 %v96_v49 }
  0x20   :  { %94 = vadd.xlane.f32.xlu0 %v93_v46 }
  0x26   :  { %109 = vadd.xlane.f32.xlu2 %v108_v57  ;;  %106 = vadd.xlane.f32.xlu1 %v105_v59 }
  0x28   :  { %103 = vadd.xlane.f32.xlu0 %v102_v58 }
  0x30   :  { %112 = vadd.xlane.f32.xlu0 %v111_v63 }
  0x79   :  { %v80_v10 = vpop.xlane.xlu2 %79  ;;  %v74_v11 = vpop.xlane.xlu1 %73 }
  0x7a   :  { %v123_v13 = vmul.f32 %v756_v9, %v74_v11  ;;  %v125_v34 = vmul.f32 %v756_v9, %v80_v10 }
  0x7b   :  { %v68_v12 = vpop.xlane.xlu0 %67 }
  0x7c   :  { %v121_v14 = vmul.f32 %v756_v9, %v68_v12  ;;  %v761_v15 = vsub.f32 %v616_v7, %v123_v13 }
  0x7e   :  { %v764_v16 = vsub.f32 %v618_v8, %v121_v14  ;;  %v155_v17 = vmul.f32 %v761_v15, %v761_v15 }
  0x80   :  { %v153_v21 = vmul.f32 %v764_v16, %v764_v16  ;;  %v175_v23 = vsel %vm65_vm0, %v155_v17, 0.0 }
  0x81   :  { %v83_v22 = vpop.xlane.xlu2 %82  ;;  %v77_v26 = vpop.xlane.xlu1 %76  ;;  %176 = vadd.xlane.f32.xlu0 %v175_v23 }
  0x82   :  { %v169_v24 = vsel %vm65_vm0, %v153_v21, 0.0  ;;  %v126_v25 = vmul.f32 %v756_v9, %v83_v22  ;;  %v124_v8 = vmul.f32 %v756_v9, %v77_v26 }
  0x83   :  { %170 = vadd.xlane.f32.xlu1 %v169_v24  ;;  %v71_v7 = vpop.xlane.xlu0 %70 }
  0x84   :  { %v122_v27 = vmul.f32 %v756_v9, %v71_v7  ;;  %v776_v28 = vsub.f32 %v644_v18, %v126_v25  ;;  %v779_v29 = vsub.f32 %v646_v19, %v124_v8 }
  0x86   :  { %v782_v33 = vsub.f32 %v648_v20, %v122_v27  ;;  %v158_v35 = vmul.f32 %v776_v28, %v776_v28  ;;  %v156_v36 = vmul.f32 %v779_v29, %v779_v29  ;;  %v795_v20 = vsub.f32 %v605_v3, %v125_v34 }
  0x88   :  { %v154_v37 = vmul.f32 %v782_v33, %v782_v33  ;;  %v184_v18 = vsel %vm65_vm0, %v158_v35, 0.0  ;;  %v178_v19 = vsel %vm65_vm0, %v156_v36, 0.0  ;;  %v157_v50 = vmul.f32 %v795_v20, %v795_v20 }
  0x89   :  { %v92_v38 = vpop.xlane.xlu2 %91  ;;  %185 = vadd.xlane.f32.xlu0 %v184_v18  ;;  %v89_v45 = vpop.xlane.xlu1 %88 }
  0x8a   :  { %v172_v39 = vsel %vm65_vm0, %v154_v37, 0.0  ;;  %v129_v40 = vmul.f32 %v756_v9, %v92_v38  ;;  %v128_v48 = vmul.f32 %v756_v9, %v89_v45  ;;  %v181_v58 = vsel %vm65_vm0, %v157_v50, 0.0 }
  0x8b   :  { %179 = vadd.xlane.f32.xlu1 %v178_v19  ;;  %v86_v41 = vpop.xlane.xlu0 %85  ;;  %173 = vadd.xlane.f32.xlu2 %v172_v39 }
  0x8c   :  { %v127_v46 = vmul.f32 %v756_v9, %v86_v41  ;;  %v800_v47 = vsub.f32 %v674_v30, %v129_v40  ;;  %v813_v52 = vsub.f32 %v678_v32, %v128_v48 }
  0x8e   :  { %v804_v49 = vsub.f32 %v676_v31, %v127_v46  ;;  %v161_v3 = vmul.f32 %v800_v47, %v800_v47  ;;  %v160_v0 = vmul.f32 %v813_v52, %v813_v52 }
  0x90   :  { %v159_v51 = vmul.f32 %v804_v49, %v804_v49  ;;  %v193_v30 = vsel %vm65_vm0, %v161_v3, 0.0  ;;  %v190_v6 = vsel %vm65_vm0, %v160_v0, 0.0 }
  0x91   :  { %v101_v53 = vpop.xlane.xlu2 %100  ;;  %194 = vadd.xlane.f32.xlu0 %v193_v30  ;;  %v98_v60 = vpop.xlane.xlu1 %97 }
  0x92   :  { %v187_v57 = vsel %vm65_vm0, %v159_v51, 0.0  ;;  %v132_v31 = vmul.f32 %v756_v9, %v101_v53  ;;  %v131_v32 = vmul.f32 %v756_v9, %v98_v60 }
  0x93   :  { %188 = vadd.xlane.f32.xlu1 %v187_v57  ;;  %v95_v59 = vpop.xlane.xlu0 %94  ;;  %182 = vadd.xlane.f32.xlu2 %v181_v58 }
  0x94   :  { %v130_v61 = vmul.f32 %v756_v9, %v95_v59  ;;  %v821_v63 = vsub.f32 %v704_v42, %v132_v31  ;;  %v834_v5 = vsub.f32 %v708_v44, %v131_v32 }
  0x96   :  { %v827_v1 = vsub.f32 %v706_v43, %v130_v61  ;;  %v164_v2 = vmul.f32 %v821_v63, %v821_v63  ;;  %v163_v21 = vmul.f32 %v834_v5, %v834_v5 }
  0x98   :  { %v162_v4 = vmul.f32 %v827_v1, %v827_v1  ;;  %v202_v42 = vsel %vm65_vm0, %v164_v2, 0.0  ;;  %v199_v26 = vsel %vm65_vm0, %v163_v21, 0.0 }
  0x99   :  { %v110_v10 = vpop.xlane.xlu2 %109  ;;  %203 = vadd.xlane.f32.xlu0 %v202_v42  ;;  %v107_v13 = vpop.xlane.xlu1 %106 }
  0x9a   :  { %v196_v11 = vsel %vm65_vm0, %v162_v4, 0.0  ;;  %v135_v12 = vmul.f32 %v756_v9, %v110_v10  ;;  %v134_v44 = vmul.f32 %v756_v9, %v107_v13 }
  0x9b   :  { %197 = vadd.xlane.f32.xlu1 %v196_v11  ;;  %v104_v43 = vpop.xlane.xlu0 %103  ;;  %191 = vadd.xlane.f32.xlu2 %v190_v6 }
  0x9c   :  { %v133_v14 = vmul.f32 %v756_v9, %v104_v43  ;;  %v842_v17 = vsub.f32 %v734_v54, %v135_v12  ;;  %v855_v25 = vsub.f32 %v738_v56, %v134_v44 }
  0x9e   :  { %v848_v22 = vsub.f32 %v736_v55, %v133_v14  ;;  %v167_v23 = vmul.f32 %v842_v17, %v842_v17  ;;  %v166_v27 = vmul.f32 %v855_v25, %v855_v25 }
  0xa0   :  { %v165_v24 = vmul.f32 %v848_v22, %v848_v22  ;;  %v211_v54 = vsel %vm65_vm0, %v167_v23, 0.0  ;;  %v208_v35 = vsel %vm65_vm0, %v166_v27, 0.0 }
  0xa1   :  { %212 = vadd.xlane.f32.xlu0 %v211_v54  ;;  %v903_v54 = vld [vmem:[%s1173_s2] ss:$0 sm:$0xff] }
  0xa2   :  { %v205_v7 = vsel %vm65_vm0, %v165_v24, 0.0 }
  0xa3   :  { %206 = vadd.xlane.f32.xlu1 %v205_v7  ;;  %v113_v8 = vpop.xlane.xlu0 %112  ;;  %200 = vadd.xlane.f32.xlu2 %v199_v26 }
  0xa4   :  { %v136_v55 = vmul.f32 %v756_v9, %v113_v8 }
  0xa6   :  { %v864_v34 = vsub.f32 %v752_v62, %v136_v55 }
  0xa8   :  { %v168_v56 = vmul.f32 %v864_v34, %v864_v34 }
  0xaa   :  { %v214_v36 = vsel %vm65_vm0, %v168_v56, 0.0 }
  0xab   :  { %215 = vadd.xlane.f32.xlu1 %v214_v36  ;;  %209 = vadd.xlane.f32.xlu2 %v208_v35  ;;  %v920_v35 = vld [vmem:[%s1174_s3] ss:$0 sm:$0xff] }
  0xf4   :  { %v177_v18 = vpop.xlane.xlu0 %176 }
  0xf5   :  { %v219_v19 = vmul.f32 %v177_v18, %v756_v9 }
  0xf6   :  { %v171_v37 = vpop.xlane.xlu1 %170 }
  0xf7   :  { %v217_v38 = vmul.f32 %v171_v37, %v756_v9  ;;  %v235_v40 = vadd.f32 1e-05, %v219_v19 }
  0xf9   :  { %v233_v39 = vadd.f32 1e-05, %v217_v38  ;;  %vm275_vm4 = vweird.f32 %v235_v40 }
  0xfb   :  { %538 = vrsqrt.f32 %v233_v39  ;;  %vm255_vm2 = vweird.f32 %v233_v39 }
  0xfc   :  { %540 = vrsqrt.f32 %v235_v40  ;;  %v186_v41 = vpop.xlane.xlu0 %185 }
  0xfd   :  { %v222_v48 = vmul.f32 %v186_v41, %v756_v9 }
  0xfe   :  { %v180_v62 = vpop.xlane.xlu1 %179  ;;  %v174_v46 = vpop.xlane.xlu2 %173 }
  0xff   :  { %v220_v45 = vmul.f32 %v180_v62, %v756_v9  ;;  %v218_v3 = vmul.f32 %v174_v46, %v756_v9  ;;  %v877_v30 = vadd.f32 1e-05, %v222_v48 }
 0x101   :  { %v539_v50 = vpop.eup %538  ;;  %v875_v51 = vadd.f32 1e-05, %v220_v45  ;;  %v879_v31 = vadd.f32 1e-05, %v218_v3  ;;  %vm305_vm10 = vweird.f32 %v877_v30 }
 0x102   :  { %v541_v53 = vpop.eup %540  ;;  %v250_v57 = vmul.f32 %v539_v50, %v233_v39  ;;  %vm256_vm3 = vweird.f32 %v539_v50 }
 0x103   :  { %v270_v58 = vmul.f32 %v541_v53, %v235_v40  ;;  %542 = vrsqrt.f32 %v875_v51  ;;  %vm276_vm5 = vweird.f32 %v541_v53  ;;  %vm285_vm6 = vweird.f32 %v875_v51  ;;  %vm257_vm7 = vmor %vm255_vm2, %vm256_vm3 }
 0x104   :  { %v251_v59 = vmul.f32 %v539_v50, %v250_v57  ;;  %544 = vrsqrt.f32 %v879_v31  ;;  %v195_v0 = vpop.xlane.xlu0 %194  ;;  %vm277_vm8 = vmor %vm275_vm4, %vm276_vm5  ;;  %vm265_vm9 = vweird.f32 %v879_v31 }
 0x105   :  { %v271_v60 = vmul.f32 %v541_v53, %v270_v58  ;;  %546 = vrsqrt.f32 %v877_v30  ;;  %v225_v6 = vmul.f32 %v195_v0, %v756_v9 }
 0x106   :  { %v252_v61 = vmul.f32 0.5, %v251_v59  ;;  %v189_v32 = vpop.xlane.xlu1 %188  ;;  %v183_v4 = vpop.xlane.xlu2 %182 }
 0x107   :  { %v272_v2 = vmul.f32 0.5, %v271_v60  ;;  %v223_v42 = vmul.f32 %v189_v32, %v756_v9  ;;  %v221_v11 = vmul.f32 %v183_v4, %v756_v9  ;;  %v909_v8 = vadd.f32 1e-05, %v225_v6 }
 0x108   :  { %v253_v10 = vsub.f32 1.5, %v252_v61 }
 0x109   :  { %v887_v12 = vpop.eup %542  ;;  %v273_v43 = vsub.f32 1.5, %v272_v2  ;;  %v889_v13 = vadd.f32 1e-05, %v223_v42  ;;  %v896_v23 = vadd.f32 1e-05, %v221_v11 }
 0x10a   :  { %v891_v14 = vpop.eup %544  ;;  %v254_v44 = vmul.f32 %v539_v50, %v253_v10  ;;  %v280_v21 = vmul.f32 %v887_v12, %v875_v51  ;;  %vm286_vm11 = vweird.f32 %v887_v12 }
 0x10b   :  { %v898_v24 = vpop.eup %546  ;;  %v274_v26 = vmul.f32 %v541_v53, %v273_v43  ;;  %v260_v7 = vmul.f32 %v891_v14, %v879_v31  ;;  %548 = vrsqrt.f32 %v889_v13  ;;  %vm266_vm12 = vweird.f32 %v891_v14  ;;  %vm287_vm15 = vmor %vm285_vm6, %vm286_vm11 }
 0x10c   :  { %v258_v55 = vsel %vm257_vm7, %v539_v50, %v254_v44  ;;  %v281_v27 = vmul.f32 %v887_v12, %v280_v21  ;;  %v300_v56 = vmul.f32 %v898_v24, %v877_v30  ;;  %550 = vrsqrt.f32 %v896_v23  ;;  %vm267_vm2 = vmor %vm265_vm9, %vm266_vm12 }
 0x10d   :  { %v409_v36 = vmul.f32 %v258_v55, %v764_v16  ;;  %v278_v37 = vsel %vm277_vm8, %v541_v53, %v274_v26  ;;  %v261_v18 = vmul.f32 %v891_v14, %v260_v7  ;;  %552 = vrsqrt.f32 %v909_v8 }
 0x10e   :  { %v411_v38 = vmul.f32 %v278_v37, %v761_v15  ;;  %v282_v19 = vmul.f32 0.5, %v281_v27  ;;  %v301_v39 = vmul.f32 %v898_v24, %v300_v56  ;;  %v192_v16 = vpop.xlane.xlu2 %191  ;;  %v198_v41 = vpop.xlane.xlu1 %197  ;;  %vm306_vm13 = vweird.f32 %v898_v24 }
 0x10f   :  { %v429_v40 = vmul.f32 %v903_v54, %v409_v36  ;;  %v262_v62 = vmul.f32 0.5, %v261_v18  ;;  %v224_v53 = vmul.f32 %v192_v16, %v756_v9  ;;  %v226_v60 = vmul.f32 %v198_v41, %v756_v9  ;;  %vm307_vm3 = vmor %vm305_vm10, %vm306_vm13 }
 0x110   :  { %v431_v45 = vmul.f32 %v903_v54, %v411_v38  ;;  %v283_v46 = vsub.f32 1.5, %v282_v19  ;;  %v302_v15 = vmul.f32 0.5, %v301_v39  ;;  %vm295_vm4 = vweird.f32 %v896_v23 }
 0x111   :  { %v933_v48 = vpop.eup %548  ;;  %v449_v3 = vadd.f32 %v920_v35, %v429_v40  ;;  %v263_v50 = vsub.f32 1.5, %v262_v62  ;;  %vm315_vm5 = vweird.f32 %v889_v13  ;;  %vm335_vm7 = vweird.f32 %v909_v8 }
 0x112   :  { %v451_v57 = vadd.f32 %v920_v35, %v431_v45  ;;  %v284_v58 = vmul.f32 %v887_v12, %v283_v46  ;;  %v303_v59 = vsub.f32 1.5, %v302_v15  ;;  %v941_v61 = vpop.eup %550  ;;  %v310_v2 = vmul.f32 %v933_v48, %v889_v13 }
 0x113   :  { %vm465_vm14 = vcmp.ge.f32.partialorder %v449_v3, 0.0  ;;  %v481_v32 = vmul.f32 0.1, %v449_v3  ;;  %v264_v0 = vmul.f32 %v891_v14, %v263_v50  ;;  %v956_v10 = vpop.eup %552  ;;  %vm316_vm6 = vweird.f32 %v933_v48 }
 0x114   :  { %vm467_vm1 = vcmp.ge.f32.partialorder %v451_v57, 0.0  ;;  %v483_v4 = vmul.f32 0.1, %v451_v57  ;;  %v288_v42 = vsel %vm287_vm15, %v887_v12, %v284_v58  ;;  %v304_v6 = vmul.f32 %v898_v24, %v303_v59 }
 0x115   :  { %v497_v51 = vsel %vm465_vm14, %v449_v3, %v481_v32  ;;  %v412_v11 = vmul.f32 %v288_v42, %v779_v29  ;;  %v268_v43 = vsel %vm267_vm2, %v891_v14, %v264_v0  ;;  %v290_v12 = vmul.f32 %v941_v61, %v896_v23  ;;  %vm317_vm14 = vmor %vm315_vm5, %vm316_vm6 }
 0x116   :  { %513 = vst.msk [vmem:[%s1175_s4] sm:$0xff] %vm65_vm0, %v497_v51  ;;  %v499_v31 = vsel %vm467_vm1, %v451_v57, %v483_v4  ;;  %v410_v29 = vmul.f32 %v268_v43, %v782_v33  ;;  %v308_v14 = vsel %vm307_vm3, %v898_v24, %v304_v6  ;;  %v311_v33 = vmul.f32 %v933_v48, %v310_v2  ;;  %v201_v41 = vpop.xlane.xlu2 %200  ;;  %v207_v13 = vpop.xlane.xlu1 %206 }
 0x117   :  { %515 = vst.msk [vmem:[%s1175_s4 + $0x10] sm:$0xff] %vm65_vm0, %v499_v31  ;;  %v432_v30 = vmul.f32 %v903_v54, %v412_v11  ;;  %v414_v44 = vmul.f32 %v308_v14, %v776_v28  ;;  %v291_v21 = vmul.f32 %v941_v61, %v290_v12  ;;  %vm296_vm8 = vweird.f32 %v941_v61  ;;  %v204_v28 = vpop.xlane.xlu0 %203 }
 0x118   :  { %v430_v24 = vmul.f32 %v903_v54, %v410_v29  ;;  %v330_v26 = vmul.f32 %v956_v10, %v909_v8  ;;  %v988_v7 = vadd.f32 1e-05, %v224_v53  ;;  %v312_v36 = vmul.f32 0.5, %v311_v33  ;;  %vm297_vm13 = vmor %vm295_vm4, %vm296_vm8 }
 0x119   :  { %v452_v55 = vadd.f32 %v920_v35, %v432_v30  ;;  %v434_v27 = vmul.f32 %v903_v54, %v414_v44  ;;  %v292_v56 = vmul.f32 0.5, %v291_v21  ;;  %vm336_vm9 = vweird.f32 %v956_v10 }
 0x11a   :  { %v450_v37 = vadd.f32 %v920_v35, %v430_v24  ;;  %v331_v18 = vmul.f32 %v956_v10, %v330_v26  ;;  %554 = vrsqrt.f32 %v988_v7  ;;  %v313_v62 = vsub.f32 1.5, %v312_v36  ;;  %vm337_vm15 = vmor %vm335_vm7, %vm336_vm9 }
 0x11b   :  { %vm468_vm10 = vcmp.ge.f32.partialorder %v452_v55, 0.0  ;;  %v484_v38 = vmul.f32 0.1, %v452_v55  ;;  %v454_v19 = vadd.f32 %v920_v35, %v434_v27  ;;  %v293_v39 = vsub.f32 1.5, %v292_v56 }
 0x11c   :  { %vm466_vm11 = vcmp.ge.f32.partialorder %v450_v37, 0.0  ;;  %v482_v40 = vmul.f32 0.1, %v450_v37  ;;  %v332_v16 = vmul.f32 0.5, %v331_v18  ;;  %v314_v50 = vmul.f32 %v933_v48, %v313_v62 }
 0x11d   :  { %v500_v45 = vsel %vm468_vm10, %v452_v55, %v484_v38  ;;  %vm470_vm12 = vcmp.ge.f32.partialorder %v454_v19, 0.0  ;;  %v486_v46 = vmul.f32 0.1, %v454_v19  ;;  %v294_v15 = vmul.f32 %v941_v61, %v293_v39 }
 0x11e   :  { %516 = vst.msk [vmem:[%s1175_s4 + $0x18] sm:$0xff] %vm65_vm0, %v500_v45  ;;  %v498_v3 = vsel %vm466_vm11, %v450_v37, %v482_v40  ;;  %v333_v53 = vsub.f32 1.5, %v332_v16  ;;  %v1007_v57 = vadd.f32 1e-05, %v226_v60  ;;  %v228_v23 = vmul.f32 %v204_v28, %v756_v9  ;;  %v210_v55 = vpop.xlane.xlu2 %209 }
 0x11f   :  { %514 = vst.msk [vmem:[%s1175_s4 + $0x8] sm:$0xff] %vm65_vm0, %v498_v3  ;;  %v502_v58 = vsel %vm470_vm12, %v454_v19, %v486_v46  ;;  %v298_v59 = vsel %vm297_vm13, %v941_v61, %v294_v15  ;;  %v227_v32 = vmul.f32 %v201_v41, %v756_v9  ;;  %v318_v2 = vsel %vm317_vm14, %v933_v48, %v314_v50  ;;  %v213_v31 = vpop.xlane.xlu0 %212  ;;  %v216_v41 = vpop.xlane.xlu1 %215 }
 0x120   :  { %v555_v0 = vpop.eup %554  ;;  %518 = vst.msk [vmem:[%s1175_s4 + $0x28] sm:$0xff] %vm65_vm0, %v502_v58  ;;  %v413_v60 = vmul.f32 %v298_v59, %v795_v20  ;;  %v334_v61 = vmul.f32 %v956_v10, %v333_v53  ;;  %556 = vrsqrt.f32 %v1007_v57  ;;  %v415_v4 = vmul.f32 %v318_v2, %v804_v49 }
 0x121   :  { %v320_v42 = vmul.f32 %v555_v0, %v988_v7  ;;  %v1036_v51 = vadd.f32 1e-05, %v228_v23  ;;  %v1038_v48 = vadd.f32 1e-05, %v227_v32  ;;  %v229_v12 = vmul.f32 %v207_v13, %v756_v9 }
 0x122   :  { %v433_v6 = vmul.f32 %v903_v54, %v413_v60  ;;  %v338_v20 = vsel %vm337_vm15, %v956_v10, %v334_v61  ;;  %v435_v11 = vmul.f32 %v903_v54, %v415_v4  ;;  %vm326_vm1 = vweird.f32 %v555_v0 }
 0x123   :  { %v417_v43 = vmul.f32 %v338_v20, %v800_v47  ;;  %v321_v49 = vmul.f32 %v555_v0, %v320_v42  ;;  %558 = vrsqrt.f32 %v1036_v51  ;;  %v1050_v44 = vadd.f32 1e-05, %v229_v12 }
 0x124   :  { %v453_v8 = vadd.f32 %v920_v35, %v433_v6  ;;  %v455_v29 = vadd.f32 %v920_v35, %v435_v11  ;;  %560 = vrsqrt.f32 %v1038_v48  ;;  %v231_v21 = vmul.f32 %v213_v31, %v756_v9 }
 0x125   :  { %v437_v10 = vmul.f32 %v903_v54, %v417_v43  ;;  %v322_v14 = vmul.f32 0.5, %v321_v49  ;;  %vm325_vm4 = vweird.f32 %v988_v7  ;;  %562 = vrsqrt.f32 %v1050_v44 }
 0x126   :  { %v1048_v30 = vpop.eup %556  ;;  %vm469_vm2 = vcmp.ge.f32.partialorder %v453_v8, 0.0  ;;  %v485_v47 = vmul.f32 0.1, %v453_v8  ;;  %vm471_vm3 = vcmp.ge.f32.partialorder %v455_v29, 0.0  ;;  %v487_v33 = vmul.f32 0.1, %v455_v29  ;;  %vm327_vm6 = vmor %vm325_vm4, %vm326_vm1 }
 0x127   :  { %v457_v24 = vadd.f32 %v920_v35, %v437_v10  ;;  %v323_v26 = vsub.f32 1.5, %v322_v14  ;;  %v340_v56 = vmul.f32 %v1048_v30, %v1007_v57  ;;  %v1068_v38 = vadd.f32 1e-05, %v231_v21 }
 0x128   :  { %v501_v27 = vsel %vm469_vm2, %v453_v8, %v485_v47  ;;  %v503_v36 = vsel %vm471_vm3, %v455_v29, %v487_v33  ;;  %v230_v19 = vmul.f32 %v210_v55, %v756_v9  ;;  %vm345_vm7 = vweird.f32 %v1007_v57 }
 0x129   :  { %517 = vst.msk [vmem:[%s1175_s4 + $0x20] sm:$0xff] %vm65_vm0, %v501_v27  ;;  %vm473_vm5 = vcmp.ge.f32.partialorder %v457_v24, 0.0  ;;  %v489_v28 = vmul.f32 0.1, %v457_v24  ;;  %v324_v37 = vmul.f32 %v555_v0, %v323_v26  ;;  %v559_v18 = vpop.eup %558  ;;  %v341_v7 = vmul.f32 %v1048_v30, %v340_v56 }
 0x12a   :  { %519 = vst.msk [vmem:[%s1175_s4 + $0x30] sm:$0xff] %vm65_vm0, %v503_v36  ;;  %v561_v39 = vpop.eup %560  ;;  %v360_v16 = vmul.f32 %v559_v18, %v1036_v51  ;;  %vm365_vm8 = vweird.f32 %v1036_v51  ;;  %vm346_vm9 = vweird.f32 %v1048_v30  ;;  %564 = vrsqrt.f32 %v1068_v38 }
 0x12b   :  { %v505_v40 = vsel %vm473_vm5, %v457_v24, %v489_v28  ;;  %v328_v62 = vsel %vm327_vm6, %v555_v0, %v324_v37  ;;  %v342_v46 = vmul.f32 0.5, %v341_v7  ;;  %v350_v15 = vmul.f32 %v561_v39, %v1038_v48  ;;  %v563_v53 = vpop.eup %562  ;;  %vm347_vm12 = vmor %vm345_vm7, %vm346_vm9 }
 0x12c   :  { %521 = vst.msk [vmem:[%s1175_s4 + $0x40] sm:$0xff] %vm65_vm0, %v505_v40  ;;  %v416_v45 = vmul.f32 %v328_v62, %v813_v52  ;;  %v361_v3 = vmul.f32 %v559_v18, %v360_v16  ;;  %v1082_v50 = vadd.f32 1e-05, %v230_v19  ;;  %v232_v32 = vmul.f32 %v216_v41, %v756_v9 }
 0x12d   :  { %v343_v59 = vsub.f32 1.5, %v342_v46  ;;  %v351_v23 = vmul.f32 %v561_v39, %v350_v15  ;;  %vm355_vm10 = vweird.f32 %v1038_v48  ;;  %v370_v0 = vmul.f32 %v563_v53, %v1050_v44 }
 0x12e   :  { %v436_v58 = vmul.f32 %v903_v54, %v416_v45  ;;  %v362_v52 = vmul.f32 0.5, %v361_v3  ;;  %566 = vrsqrt.f32 %v1082_v50  ;;  %vm366_vm11 = vweird.f32 %v559_v18 }
 0x12f   :  { %v344_v2 = vmul.f32 %v1048_v30, %v343_v59  ;;  %v352_v61 = vmul.f32 0.5, %v351_v23  ;;  %vm356_vm13 = vweird.f32 %v561_v39  ;;  %v371_v9 = vmul.f32 %v563_v53, %v370_v0  ;;  %vm367_vm15 = vmor %vm365_vm8, %vm366_vm11 }
 0x130   :  { %v456_v60 = vadd.f32 %v920_v35, %v436_v58  ;;  %v363_v13 = vsub.f32 1.5, %v362_v52  ;;  %v1095_v4 = vadd.f32 1e-05, %v232_v32  ;;  %v565_v11 = vpop.eup %564  ;;  %vm375_vm1 = vweird.f32 %v1050_v44  ;;  %vm357_vm2 = vmor %vm355_vm10, %vm356_vm13 }
 0x131   :  { %v348_v6 = vsel %vm347_vm12, %v1048_v30, %v344_v2  ;;  %v353_v20 = vsub.f32 1.5, %v352_v61  ;;  %v372_v12 = vmul.f32 0.5, %v371_v9  ;;  %v390_v8 = vmul.f32 %v565_v11, %v1068_v38 }
 0x132   :  { %vm472_vm14 = vcmp.ge.f32.partialorder %v456_v60, 0.0  ;;  %v488_v42 = vmul.f32 0.1, %v456_v60  ;;  %v418_v43 = vmul.f32 %v348_v6, %v827_v1  ;;  %v364_v49 = vmul.f32 %v559_v18, %v363_v13 }
 0x133   :  { %568 = vrsqrt.f32 %v1095_v4  ;;  %v354_v57 = vmul.f32 %v561_v39, %v353_v20  ;;  %v373_v51 = vsub.f32 1.5, %v372_v12  ;;  %vm376_vm3 = vweird.f32 %v563_v53 }
 0x134   :  { %v504_v31 = vsel %vm472_vm14, %v456_v60, %v488_v42  ;;  %v567_v29 = vpop.eup %566  ;;  %v438_v1 = vmul.f32 %v903_v54, %v418_v43  ;;  %v368_v10 = vsel %vm367_vm15, %v559_v18, %v364_v49  ;;  %v391_v47 = vmul.f32 %v565_v11, %v390_v8  ;;  %vm377_vm5 = vmor %vm375_vm1, %vm376_vm3 }
 0x135   :  { %520 = vst.msk [vmem:[%s1175_s4 + $0x38] sm:$0xff] %vm65_vm0, %v504_v31  ;;  %v420_v14 = vmul.f32 %v368_v10, %v821_v63  ;;  %v358_v30 = vsel %vm357_vm2, %v561_v39, %v354_v57  ;;  %v380_v21 = vmul.f32 %v567_v29, %v1082_v50  ;;  %v374_v26 = vmul.f32 %v563_v53, %v373_v51 }
 0x136   :  { %v458_v33 = vadd.f32 %v920_v35, %v438_v1  ;;  %v419_v24 = vmul.f32 %v358_v30, %v834_v5  ;;  %vm395_vm4 = vweird.f32 %v1068_v38  ;;  %v392_v48 = vmul.f32 0.5, %v391_v47 }
 0x137   :  { %v440_v55 = vmul.f32 %v903_v54, %v420_v14  ;;  %vm396_vm6 = vweird.f32 %v565_v11  ;;  %v381_v27 = vmul.f32 %v567_v29, %v380_v21  ;;  %v378_v28 = vsel %vm377_vm5, %v563_v53, %v374_v26 }
 0x138   :  { %vm474_vm7 = vcmp.ge.f32.partialorder %v458_v33, 0.0  ;;  %v490_v56 = vmul.f32 0.1, %v458_v33  ;;  %v439_v36 = vmul.f32 %v903_v54, %v419_v24  ;;  %v421_v5 = vmul.f32 %v378_v28, %v848_v22  ;;  %vm397_vm11 = vmor %vm395_vm4, %vm396_vm6 }
 0x139   :  { %v569_v63 = vpop.eup %568  ;;  %v460_v37 = vadd.f32 %v920_v35, %v440_v55  ;;  %v393_v18 = vsub.f32 1.5, %v392_v48  ;;  %v382_v7 = vmul.f32 0.5, %v381_v27  ;;  %vm386_vm8 = vweird.f32 %v567_v29 }
 0x13a   :  { %v506_v19 = vsel %vm474_vm7, %v458_v33, %v490_v56  ;;  %v459_v39 = vadd.f32 %v920_v35, %v439_v36  ;;  %v400_v44 = vmul.f32 %v569_v63, %v1095_v4  ;;  %v441_v62 = vmul.f32 %v903_v54, %v421_v5 }
 0x13b   :  { %522 = vst.msk [vmem:[%s1175_s4 + $0x48] sm:$0xff] %vm65_vm0, %v506_v19  ;;  %vm476_vm9 = vcmp.ge.f32.partialorder %v460_v37, 0.0  ;;  %v492_v40 = vmul.f32 0.1, %v460_v37  ;;  %v394_v16 = vmul.f32 %v565_v11, %v393_v18  ;;  %v383_v41 = vsub.f32 1.5, %v382_v7 }
 0x13c   :  { %vm475_vm10 = vcmp.ge.f32.partialorder %v459_v39, 0.0  ;;  %v491_v22 = vmul.f32 0.1, %v459_v39  ;;  %v401_v45 = vmul.f32 %v569_v63, %v400_v44  ;;  %v461_v15 = vadd.f32 %v920_v35, %v441_v62 }
 0x13d   :  { %v508_v46 = vsel %vm476_vm9, %v460_v37, %v492_v40  ;;  %v398_v3 = vsel %vm397_vm11, %v565_v11, %v394_v16  ;;  %vm385_vm12 = vweird.f32 %v1082_v50  ;;  %v384_v59 = vmul.f32 %v567_v29, %v383_v41 }
 0x13e   :  { %524 = vst.msk [vmem:[%s1175_s4 + $0x58] sm:$0xff] %vm65_vm0, %v508_v46  ;;  %v507_v53 = vsel %vm475_vm10, %v459_v39, %v491_v22  ;;  %v423_v58 = vmul.f32 %v398_v3, %v842_v17  ;;  %v402_v23 = vmul.f32 0.5, %v401_v45  ;;  %vm477_vm13 = vcmp.ge.f32.partialorder %v461_v15, 0.0  ;;  %vm387_vm14 = vmor %vm385_vm12, %vm386_vm8 }
 0x13f   :  { %523 = vst.msk [vmem:[%s1175_s4 + $0x50] sm:$0xff] %vm65_vm0, %v507_v53  ;;  %v493_v38 = vmul.f32 0.1, %v461_v15  ;;  %v388_v32 = vsel %vm387_vm14, %v567_v29, %v384_v59  ;;  %vm406_vm15 = vweird.f32 %v569_v63  ;;  %vm405_vm1 = vweird.f32 %v1095_v4 }
 0x140   :  { %v443_v50 = vmul.f32 %v903_v54, %v423_v58  ;;  %v403_v52 = vsub.f32 1.5, %v402_v23  ;;  %v422_v60 = vmul.f32 %v388_v32, %v855_v25  ;;  %vm407_vm2 = vmor %vm405_vm1, %vm406_vm15 }
 0x141   :  { %v509_v0 = vsel %vm477_vm13, %v461_v15, %v493_v38 }
 0x142   :  { %525 = vst.msk [vmem:[%s1175_s4 + $0x60] sm:$0xff] %vm65_vm0, %v509_v0  ;;  %v463_v17 = vadd.f32 %v920_v35, %v443_v50  ;;  %v404_v2 = vmul.f32 %v569_v63, %v403_v52  ;;  %v442_v61 = vmul.f32 %v903_v54, %v422_v60 }
 0x144   :  { %vm479_vm3 = vcmp.ge.f32.partialorder %v463_v17, 0.0  ;;  %v495_v13 = vmul.f32 0.1, %v463_v17  ;;  %v408_v9 = vsel %vm407_vm2, %v569_v63, %v404_v2  ;;  %v462_v42 = vadd.f32 %v920_v35, %v442_v61 }
 0x145   :  { %v424_v25 = vmul.f32 %v408_v9, %v864_v34 }
 0x146   :  { %v511_v6 = vsel %vm479_vm3, %v463_v17, %v495_v13  ;;  %vm478_vm4 = vcmp.ge.f32.partialorder %v462_v42, 0.0  ;;  %v494_v20 = vmul.f32 0.1, %v462_v42 }
 0x147   :  { %527 = vst.msk [vmem:[%s1175_s4 + $0x70] sm:$0xff] %vm65_vm0, %v511_v6  ;;  %v444_v4 = vmul.f32 %v903_v54, %v424_v25 }
 0x148   :  { %v510_v11 = vsel %vm478_vm4, %v462_v42, %v494_v20 }
 0x149   :  { %v464_v43 = vadd.f32 %v920_v35, %v444_v4  ;;  %526 = vst.msk [vmem:[%s1175_s4 + $0x68] sm:$0xff] %vm65_vm0, %v510_v11 }
 0x14b   :  { %vm480_vm5 = vcmp.ge.f32.partialorder %v464_v43, 0.0  ;;  %v496_v34 = vmul.f32 0.1, %v464_v43 }
 0x14d   :  { %v512_v49 = vsel %vm480_vm5, %v464_v43, %v496_v34 }
 0x14e   :  { %528 = vst.msk [vmem:[%s1175_s4 + $0x78] sm:$0xff] %vm65_vm0, %v512_v49 }

</bundles_post_ra>
